<compile_context>
chip_gen: v7x
topology: tpu7x:2x2x1
jax: 0.10.0
libtpu: 0.0.40
codegen_flags: <defaults>
</compile_context>

<pallas_src>
import math

import jax
import jax.numpy as jnp
from jax.experimental import pallas as pl
from jax.experimental.pallas import tpu as pltpu

# ----------------------------------------------------------------------------
# config (Unet(dim=16, dim_mults=(1,2), channels=3))
# ----------------------------------------------------------------------------
DIM = 16
DIM_MULTS = (1, 2)
CHANNELS = 3
GROUPS = 8
HEADS = 4
DIM_HEAD = 32
TIME_DIM = DIM * 4


# ----------------------------------------------------------------------------
# Pallas matmul kernels (the hot path)
# ----------------------------------------------------------------------------
def _mm_bias_kernel(a_ref, b_ref, bias_ref, o_ref):
    # Single-shot: full K and full N resident in VMEM, bias fused into the
    # final write.  bf16 operands -> MXU, f32 accumulate.
    o_ref[...] = (jnp.dot(a_ref[...], b_ref[...],
                          preferred_element_type=jnp.float32)
                  + bias_ref[...])


def _num_m_tiles(M):
    # 2-way split along M (when it splits into 8-aligned halves) so a v7x
    # megacore gets one block per TensorCore; otherwise a single full-M block.
    if M >= 16 and M % 16 == 0:
        return 2
    return 1


def pallas_matmul(a, b, bias=None):
    """a:(M,K), b:(K,N) -> (M,N) f32.  bf16 MXU operands, fused bias."""
    M, K = a.shape
    K2, N = b.shape
    assert K == K2
    if bias is None:
        bias = jnp.zeros((N,), jnp.float32)
    nm = _num_m_tiles(M)
    tm = M // nm
    out = pl.pallas_call(
        _mm_bias_kernel,
        out_shape=jax.ShapeDtypeStruct((M, N), jnp.float32),
        grid_spec=pltpu.PrefetchScalarGridSpec(
            num_scalar_prefetch=0,
            grid=(nm,),
            in_specs=[pl.BlockSpec((tm, K), lambda i: (i, 0)),
                      pl.BlockSpec((K, N), lambda i: (0, 0)),
                      pl.BlockSpec((1, N), lambda i: (0, 0))],
            out_specs=pl.BlockSpec((tm, N), lambda i: (i, 0))),
        compiler_params=pltpu.CompilerParams(
            dimension_semantics=("parallel",)),
    )(a.astype(jnp.bfloat16), b.astype(jnp.bfloat16),
      bias.astype(jnp.float32).reshape(1, N))
    return out


def _bmm_kernel(a_ref, b_ref, o_ref):
    # Batched matmul over the heads packed into one block (no per-head grid
    # steps): (Gb, M, K) x (Gb, K, N) -> (Gb, M, N), f32 accumulate.
    o_ref[...] = jnp.einsum('gmk,gkn->gmn', a_ref[...], b_ref[...],
                            preferred_element_type=jnp.float32)


def pallas_bmm(a, b):
    """a:(G,M,K), b:(G,K,N) -> (G,M,N) f32.  bf16 operands, G split in two
    parallel blocks (both TensorCores busy on v7x)."""
    G, M, K = a.shape
    G2, K2, N = b.shape
    assert G == G2 and K == K2
    gb = G // 2 if (G % 2 == 0 and G > 1) else G
    out = pl.pallas_call(
        _bmm_kernel,
        out_shape=jax.ShapeDtypeStruct((G, M, N), jnp.float32),
        grid_spec=pltpu.PrefetchScalarGridSpec(
            num_scalar_prefetch=0,
            grid=(G // gb,),
            in_specs=[pl.BlockSpec((gb, M, K), lambda g: (g, 0, 0)),
                      pl.BlockSpec((gb, K, N), lambda g: (g, 0, 0))],
            out_specs=pl.BlockSpec((gb, M, N), lambda g: (g, 0, 0))),
        compiler_params=pltpu.CompilerParams(
            dimension_semantics=("parallel",)),
    )(a.astype(jnp.bfloat16), b.astype(jnp.bfloat16))
    return out


# ----------------------------------------------------------------------------
# JAX glue ops built on the Pallas matmuls (all NHWC internally)
# ----------------------------------------------------------------------------
def conv2d(x, w, b=None):
    """NHWC conv, stride 1, 'same' padding for odd kernels, via bf16 im2col
    matmul.  w keeps the PyTorch (O, C, kh, kw) layout."""
    B, H, W, C = x.shape
    O, _, kh, kw = w.shape
    x = x.astype(jnp.bfloat16)           # build im2col in bf16 (half the bytes)
    if kh == 1 and kw == 1:
        cols = x.reshape(B * H * W, C)
        w2 = jnp.transpose(w[:, :, 0, 0], (1, 0))               # (C, O)
    else:
        # TODO(synk): im2col still materializes kh*kw shifted copies in HBM;
        # an in-kernel shifted-read conv would remove this amplification.
        ph, pw = kh // 2, kw // 2
        xp = jnp.pad(x, ((0, 0), (ph, ph), (pw, pw), (0, 0)))
        cols = jnp.concatenate(
            [xp[:, i:i + H, j:j + W, :] for i in range(kh) for j in range(kw)],
            axis=-1).reshape(B * H * W, kh * kw * C)
        w2 = jnp.transpose(w, (2, 3, 1, 0)).reshape(kh * kw * C, O)
    y = pallas_matmul(cols, w2, b)
    return y.reshape(B, H, W, O)


def linear(x, w, b):
    # PyTorch nn.Linear layout: w (out, in)
    return pallas_matmul(x, w.T, b)


def silu(x):
    return x * jax.nn.sigmoid(x)


def group_norm(x, gamma, beta, groups, eps=1e-5):
    B, H, W, C = x.shape
    xg = x.reshape(B, H, W, groups, C // groups)
    mean = jnp.mean(xg, axis=(1, 2, 4), keepdims=True)
    var = jnp.mean((xg - mean) ** 2, axis=(1, 2, 4), keepdims=True)
    xn = ((xg - mean) * jax.lax.rsqrt(var + eps)).reshape(B, H, W, C)
    return xn * gamma.reshape(1, 1, 1, C) + beta.reshape(1, 1, 1, C)


def layer_norm_chan(x, g, eps=1e-5):
    # lucidrains LayerNorm over channel dim (g-only affine); channels = last axis
    mean = jnp.mean(x, axis=-1, keepdims=True)
    var = jnp.mean((x - mean) ** 2, axis=-1, keepdims=True)
    return (x - mean) * jax.lax.rsqrt(var + eps) * g.reshape(1, 1, 1, -1)


def weight_standardize(w, eps=1e-5):
    mean = jnp.mean(w, axis=(1, 2, 3), keepdims=True)
    var = jnp.mean((w - mean) ** 2, axis=(1, 2, 3), keepdims=True)
    return (w - mean) * jax.lax.rsqrt(var + eps)


def sinusoidal_pos_emb(t, dim):
    half = dim // 2
    emb = math.log(10000.0) / (half - 1)
    emb = jnp.exp(jnp.arange(half, dtype=jnp.float32) * -emb)
    emb = t.astype(jnp.float32)[:, None] * emb[None, :]
    return jnp.concatenate([jnp.sin(emb), jnp.cos(emb)], axis=-1)


# ----------------------------------------------------------------------------
# Unet sub-modules (forward only, NHWC)
# ----------------------------------------------------------------------------
# TODO(synk): ResnetBlock-granularity fusion (conv+GN+scale/shift+SiLU in one
# pallas_call) would cut the remaining per-op HBM round trips further.
def block_fwd(x, w, b, gn_g, gn_b, groups, scale_shift=None):
    x = conv2d(x, weight_standardize(w), b)   # WeightStandardizedConv2d
    x = group_norm(x, gn_g, gn_b, groups)
    if scale_shift is not None:
        scale, shift = scale_shift
        x = x * (scale + 1.0) + shift
    return silu(x)


def resnet_block_fwd(x, t, p, groups):
    temb = linear(silu(t), p['mlp_w'], p['mlp_b'])            # (B, 2*dout)
    scale, shift = jnp.split(temb, 2, axis=1)
    scale = scale[:, None, None, :]
    shift = shift[:, None, None, :]
    h = block_fwd(x, p['c1_w'], p['c1_b'], p['gn1_g'], p['gn1_b'], groups,
                  (scale, shift))
    h = block_fwd(h, p['c2_w'], p['c2_b'], p['gn2_g'], p['gn2_b'], groups)
    res = conv2d(x, p['res_w'], p['res_b']) if 'res_w' in p else x
    return h + res


def _to_heads(t, B, n, heads, dim_head):
    # (B, H, W, heads*dim_head) -> (B*heads, dim_head, n)
    t = t.reshape(B, n, heads, dim_head)
    return jnp.transpose(t, (0, 2, 3, 1)).reshape(B * heads, dim_head, n)


def linear_attention_fwd(x, p, heads, dim_head):
    # Residual(PreNorm(dim, LinearAttention(dim)))
    B, H, W, C = x.shape
    n = H * W
    hidden = heads * dim_head
    xn = layer_norm_chan(x, p['pre_g'])
    qkv = conv2d(xn, p['qkv_w'])                               # (B,H,W,3*hidden)
    q, k, v = jnp.split(qkv, 3, axis=-1)
    q = _to_heads(q, B, n, heads, dim_head)
    k = _to_heads(k, B, n, heads, dim_head)
    v = _to_heads(v, B, n, heads, dim_head)
    q = jax.nn.softmax(q, axis=-2) * (dim_head ** -0.5)
    k = jax.nn.softmax(k, axis=-1)
    v = v / float(n)
    # context[d,e] = sum_n k[d,n] v[e,n]
    context = pallas_bmm(k, jnp.transpose(v, (0, 2, 1)))       # (BH, d, e)
    # out[e,n] = sum_d context[d,e] q[d,n]
    out = pallas_bmm(jnp.transpose(context, (0, 2, 1)), q)     # (BH, e, n)
    out = out.reshape(B, heads, dim_head, H, W)
    out = jnp.transpose(out, (0, 3, 4, 1, 2)).reshape(B, H, W, hidden)
    out = conv2d(out, p['out_w'], p['out_b'])
    out = layer_norm_chan(out, p['out_g'])
    return x + out


def attention_fwd(x, p, heads, dim_head):
    # Residual(PreNorm(dim, Attention(dim)))
    B, H, W, C = x.shape
    n = H * W
    hidden = heads * dim_head
    xn = layer_norm_chan(x, p['pre_g'])
    qkv = conv2d(xn, p['qkv_w'])
    q, k, v = jnp.split(qkv, 3, axis=-1)
    q = _to_heads(q, B, n, heads, dim_head)
    k = _to_heads(k, B, n, heads, dim_head)
    v = _to_heads(v, B, n, heads, dim_head)
    q = q * (dim_head ** -0.5)
    sim = pallas_bmm(jnp.transpose(q, (0, 2, 1)), k)            # (BH, n, n)
    attn = jax.nn.softmax(sim, axis=-1)
    out = pallas_bmm(attn, jnp.transpose(v, (0, 2, 1)))         # (BH, n, d)
    out = out.reshape(B, heads, n, dim_head)
    out = jnp.transpose(out, (0, 2, 1, 3)).reshape(B, H, W, hidden)
    out = conv2d(out, p['out_w'], p['out_b'])
    return x + out


def downsample_fwd(x, w, b):
    # Rearrange 'b c (h p1) (w p2) -> b (c p1 p2) h w' (channel order c,p1,p2)
    B, H, W, C = x.shape
    x = x.reshape(B, H // 2, 2, W // 2, 2, C)
    x = jnp.transpose(x, (0, 1, 3, 5, 2, 4)).reshape(B, H // 2, W // 2, C * 4)
    return conv2d(x, w, b)


def upsample_fwd(x, w, b):
    # nearest 2x upsample then 3x3 conv
    x = jnp.repeat(jnp.repeat(x, 2, axis=1), 2, axis=2)
    return conv2d(x, w, b)


# ----------------------------------------------------------------------------
# Parameter construction (deterministic synthetic init, PyTorch layouts)
# ----------------------------------------------------------------------------
class PGen:
    def __init__(self, seed=0):
        self.key = jax.random.PRNGKey(seed)
        self.i = 0

    def __call__(self, shape, scale=0.05):
        self.i += 1
        k = jax.random.fold_in(self.key, self.i)
        return jax.random.normal(k, shape, dtype=jnp.float32) * scale


def make_unet_params(seed=0):
    pg = PGen(seed)
    dims = [DIM] + [DIM * m for m in DIM_MULTS]
    in_out = list(zip(dims[:-1], dims[1:]))
    n = len(in_out)
    hidden = HEADS * DIM_HEAD

    def rb(din, dout):
        d = {'mlp_w': pg((2 * dout, TIME_DIM)), 'mlp_b': pg((2 * dout,)),
             'c1_w': pg((dout, din, 3, 3)), 'c1_b': pg((dout,)),
             'gn1_g': jnp.ones((dout,), jnp.float32),
             'gn1_b': jnp.zeros((dout,), jnp.float32),
             'c2_w': pg((dout, dout, 3, 3)), 'c2_b': pg((dout,)),
             'gn2_g': jnp.ones((dout,), jnp.float32),
             'gn2_b': jnp.zeros((dout,), jnp.float32)}
        if din != dout:
            d['res_w'] = pg((dout, din, 1, 1))
            d['res_b'] = pg((dout,))
        return d

    def attn_p(d):
        return {'pre_g': jnp.ones((d,), jnp.float32),
                'qkv_w': pg((hidden * 3, d, 1, 1)),
                'out_w': pg((d, hidden, 1, 1)), 'out_b': pg((d,)),
                'out_g': jnp.ones((d,), jnp.float32)}

    p = {'init_w': pg((DIM, CHANNELS, 7, 7)), 'init_b': pg((DIM,)),
         'time_w1': pg((TIME_DIM, DIM)), 'time_b1': pg((TIME_DIM,)),
         'time_w2': pg((TIME_DIM, TIME_DIM)), 'time_b2': pg((TIME_DIM,))}

    downs = []
    for ind, (din, dout) in enumerate(in_out):
        is_last = ind >= n - 1
        lvl = {'rb1': rb(din, din), 'rb2': rb(din, din), 'attn': attn_p(din)}
        if not is_last:
            lvl['down_w'] = pg((dout, din * 4, 1, 1))   # Downsample 1x1 conv
            lvl['down_b'] = pg((dout,))
        else:
            lvl['down_w'] = pg((dout, din, 3, 3))       # plain 3x3 conv
            lvl['down_b'] = pg((dout,))
        downs.append(lvl)
    p['downs'] = downs

    mid_dim = dims[-1]
    p['mid1'] = rb(mid_dim, mid_dim)
    p['mid_attn'] = attn_p(mid_dim)
    p['mid2'] = rb(mid_dim, mid_dim)

    ups = []
    for ind, (din, dout) in enumerate(reversed(in_out)):
        lvl = {'rb1': rb(dout + din, dout), 'rb2': rb(dout + din, dout),
               'attn': attn_p(dout)}
        lvl['up_w'] = pg((din, dout, 3, 3))   # Upsample conv / plain 3x3 conv
        lvl['up_b'] = pg((din,))
        ups.append(lvl)
    p['ups'] = ups

    p['final_rb'] = rb(DIM * 2, DIM)
    p['final_w'] = pg((CHANNELS, DIM, 1, 1))
    p['final_b'] = pg((CHANNELS,))
    return p


# ----------------------------------------------------------------------------
# Full Unet forward (self_condition=False, learned_variance=False)
# ----------------------------------------------------------------------------
def unet_forward(p, x, time):
    dims = [DIM] + [DIM * m for m in DIM_MULTS]
    in_out = list(zip(dims[:-1], dims[1:]))
    n = len(in_out)

    x = jnp.transpose(x, (0, 2, 3, 1))            # NCHW -> NHWC (internal)
    x = conv2d(x, p['init_w'], p['init_b'])
    r = x

    t = sinusoidal_pos_emb(time, DIM)
    t = linear(t, p['time_w1'], p['time_b1'])
    t = jax.nn.gelu(t, approximate=False)         # nn.GELU() default = exact
    t = linear(t, p['time_w2'], p['time_b2'])

    h = []
    for ind, lvl in enumerate(p['downs']):
        is_last = ind >= n - 1
        x = resnet_block_fwd(x, t, lvl['rb1'], GROUPS)
        h.append(x)
        x = resnet_block_fwd(x, t, lvl['rb2'], GROUPS)
        x = linear_attention_fwd(x, lvl['attn'], HEADS, DIM_HEAD)
        h.append(x)
        if is_last:
            x = conv2d(x, lvl['down_w'], lvl['down_b'])
        else:
            x = downsample_fwd(x, lvl['down_w'], lvl['down_b'])

    x = resnet_block_fwd(x, t, p['mid1'], GROUPS)
    x = attention_fwd(x, p['mid_attn'], HEADS, DIM_HEAD)
    x = resnet_block_fwd(x, t, p['mid2'], GROUPS)

    for ind, lvl in enumerate(p['ups']):
        is_last = ind == n - 1
        x = jnp.concatenate([x, h.pop()], axis=-1)
        x = resnet_block_fwd(x, t, lvl['rb1'], GROUPS)
        x = jnp.concatenate([x, h.pop()], axis=-1)
        x = resnet_block_fwd(x, t, lvl['rb2'], GROUPS)
        x = linear_attention_fwd(x, lvl['attn'], HEADS, DIM_HEAD)
        if is_last:
            x = conv2d(x, lvl['up_w'], lvl['up_b'])
        else:
            x = upsample_fwd(x, lvl['up_w'], lvl['up_b'])

    x = jnp.concatenate([x, r], axis=-1)
    x = resnet_block_fwd(x, t, p['final_rb'], GROUPS)
    x = conv2d(x, p['final_w'], p['final_b'])
    return jnp.transpose(x, (0, 3, 1, 2))         # NHWC -> NCHW


# ----------------------------------------------------------------------------
if __name__ == "__main__":
    key = jax.random.PRNGKey(0)
    kx, kt = jax.random.split(key)
    B, H, W = 2, 16, 16
    x = jax.random.normal(kx, (B, CHANNELS, H, W), dtype=jnp.float32)
    time = jax.random.uniform(kt, (B,), dtype=jnp.float32) * 100.0

    params = make_unet_params(seed=0)
    fwd = jax.jit(unet_forward)
    out = fwd(params, x, time)
    out = jax.block_until_ready(out)
    assert out.shape == (B, CHANNELS, H, W), out.shape
    assert jnp.all(jnp.isfinite(out))
    print("KERNEL_OK")
</pallas_src>

<mosaic_0001>
module attributes {stable_mosaic.version = 11 : i64} {
  func.func @_mm_bias_kernel(%arg0: i32, %arg1: memref<256x147xbf16, #tpu.memory_space<vmem>>, %arg2: memref<147x16xbf16, #tpu.memory_space<vmem>>, %arg3: memref<1x16xf32, #tpu.memory_space<vmem>>, %arg4: memref<256x16xf32, #tpu.memory_space<vmem>>) attributes {dimension_semantics = [#tpu.dimension_semantics<parallel>], iteration_bounds = array<i64: 2>, scalar_prefetch = 0 : i64, scratch_operands = 0 : i64, tpu.core_type = #tpu.core_type<tc>, window_params = [{transform_indices = @transform_0, window_bounds = array<i64: 256, 147>}, {pipeline_mode = #tpu.pipeline_mode<synchronous>, transform_indices = @transform_1, window_bounds = array<i64: 147, 16>}, {pipeline_mode = #tpu.pipeline_mode<synchronous>, transform_indices = @transform_2, window_bounds = array<i64: 1, 16>}, {transform_indices = @transform_3, window_bounds = array<i64: 256, 16>}]} {
    %c0 = arith.constant 0 : index
    %c0_0 = arith.constant 0 : index
    %0 = vector.load %arg1[%c0, %c0_0] : memref<256x147xbf16, #tpu.memory_space<vmem>>, vector<256x147xbf16>
    %c0_1 = arith.constant 0 : index
    %c0_2 = arith.constant 0 : index
    %1 = vector.load %arg2[%c0_1, %c0_2] : memref<147x16xbf16, #tpu.memory_space<vmem>>, vector<147x16xbf16>
    %cst = arith.constant dense<0.000000e+00> : vector<256x16xf32>
    %2 = tpu.matmul %0, %1, %cst {dimension_numbers = #tpu.dot_dimension_numbers<[1], [0], [0], [1], [0, 0, 1, 1], [], []>} : vector<256x147xbf16>, vector<147x16xbf16>, vector<256x16xf32> -> vector<256x16xf32>
    %c0_3 = arith.constant 0 : index
    %c0_4 = arith.constant 0 : index
    %3 = vector.load %arg3[%c0_3, %c0_4] : memref<1x16xf32, #tpu.memory_space<vmem>>, vector<1x16xf32>
    %4 = vector.broadcast %3 : vector<1x16xf32> to vector<256x16xf32>
    %5 = arith.addf %2, %4 : vector<256x16xf32>
    %c0_5 = arith.constant 0 : index
    %c0_6 = arith.constant 0 : index
    %6 = vector.load %arg4[%c0_5, %c0_6] : memref<256x16xf32, #tpu.memory_space<vmem>>, vector<256x16xf32>
    tpu.vector_store %arg4[%c0_5, %c0_6], %5 {strides = array<i32>} : memref<256x16xf32, #tpu.memory_space<vmem>>, vector<256x16xf32>,
    return
  }
  func.func @transform_0(%arg0: i32) -> (i32, i32) {
    %c0_i32 = arith.constant 0 : i32
    %c0_i32_0 = arith.constant 0 : i32
    return %arg0, %c0_i32 : i32, i32
  }
  func.func @transform_1(%arg0: i32) -> (i32, i32) {
    %c0_i32 = arith.constant 0 : i32
    %c0_i32_0 = arith.constant 0 : i32
    %c0_i32_1 = arith.constant 0 : i32
    return %c0_i32, %c0_i32_0 : i32, i32
  }
  func.func @transform_2(%arg0: i32) -> (i32, i32) {
    %c0_i32 = arith.constant 0 : i32
    %c0_i32_0 = arith.constant 0 : i32
    %c0_i32_1 = arith.constant 0 : i32
    return %c0_i32, %c0_i32_0 : i32, i32
  }
  func.func @transform_3(%arg0: i32) -> (i32, i32) {
    %c0_i32 = arith.constant 0 : i32
    %c0_i32_0 = arith.constant 0 : i32
    return %arg0, %c0_i32 : i32, i32
  }
}

module attributes {stable_mosaic.version = 11 : i64} {
  func.func @_mm_bias_kernel(%arg0: i32, %arg1: memref<256x144xbf16, #tpu.memory_space<vmem>>, %arg2: memref<144x16xbf16, #tpu.memory_space<vmem>>, %arg3: memref<1x16xf32, #tpu.memory_space<vmem>>, %arg4: memref<256x16xf32, #tpu.memory_space<vmem>>) attributes {dimension_semantics = [#tpu.dimension_semantics<parallel>], iteration_bounds = array<i64: 2>, scalar_prefetch = 0 : i64, scratch_operands = 0 : i64, tpu.core_type = #tpu.core_type<tc>, window_params = [{transform_indices = @transform_0, window_bounds = array<i64: 256, 144>}, {pipeline_mode = #tpu.pipeline_mode<synchronous>, transform_indices = @transform_1, window_bounds = array<i64: 144, 16>}, {pipeline_mode = #tpu.pipeline_mode<synchronous>, transform_indices = @transform_2, window_bounds = array<i64: 1, 16>}, {transform_indices = @transform_3, window_bounds = array<i64: 256, 16>}]} {
    %c0 = arith.constant 0 : index
    %c0_0 = arith.constant 0 : index
    %0 = vector.load %arg1[%c0, %c0_0] : memref<256x144xbf16, #tpu.memory_space<vmem>>, vector<256x144xbf16>
    %c0_1 = arith.constant 0 : index
    %c0_2 = arith.constant 0 : index
    %1 = vector.load %arg2[%c0_1, %c0_2] : memref<144x16xbf16, #tpu.memory_space<vmem>>, vector<144x16xbf16>
    %cst = arith.constant dense<0.000000e+00> : vector<256x16xf32>
    %2 = tpu.matmul %0, %1, %cst {dimension_numbers = #tpu.dot_dimension_numbers<[1], [0], [0], [1], [0, 0, 1, 1], [], []>} : vector<256x144xbf16>, vector<144x16xbf16>, vector<256x16xf32> -> vector<256x16xf32>
    %c0_3 = arith.constant 0 : index
    %c0_4 = arith.constant 0 : index
    %3 = vector.load %arg3[%c0_3, %c0_4] : memref<1x16xf32, #tpu.memory_space<vmem>>, vector<1x16xf32>
    %4 = vector.broadcast %3 : vector<1x16xf32> to vector<256x16xf32>
    %5 = arith.addf %2, %4 : vector<256x16xf32>
    %c0_5 = arith.constant 0 : index
    %c0_6 = arith.constant 0 : index
    %6 = vector.load %arg4[%c0_5, %c0_6] : memref<256x16xf32, #tpu.memory_space<vmem>>, vector<256x16xf32>
    tpu.vector_store %arg4[%c0_5, %c0_6], %5 {strides = array<i32>} : memref<256x16xf32, #tpu.memory_space<vmem>>, vector<256x16xf32>,
    return
  }
  func.func @transform_0(%arg0: i32) -> (i32, i32) {
    %c0_i32 = arith.constant 0 : i32
    %c0_i32_0 = arith.constant 0 : i32
    return %arg0, %c0_i32 : i32, i32
  }
  func.func @transform_1(%arg0: i32) -> (i32, i32) {
    %c0_i32 = arith.constant 0 : i32
    %c0_i32_0 = arith.constant 0 : i32
    %c0_i32_1 = arith.constant 0 : i32
    return %c0_i32, %c0_i32_0 : i32, i32
  }
  func.func @transform_2(%arg0: i32) -> (i32, i32) {
    %c0_i32 = arith.constant 0 : i32
    %c0_i32_0 = arith.constant 0 : i32
    %c0_i32_1 = arith.constant 0 : i32
    return %c0_i32, %c0_i32_0 : i32, i32
  }
  func.func @transform_3(%arg0: i32) -> (i32, i32) {
    %c0_i32 = arith.constant 0 : i32
    %c0_i32_0 = arith.constant 0 : i32
    return %arg0, %c0_i32 : i32, i32
  }
}

module attributes {stable_mosaic.version = 11 : i64} {
  func.func @_mm_bias_kernel(%arg0: i32, %arg1: memref<2x16xbf16, #tpu.memory_space<vmem>>, %arg2: memref<16x64xbf16, #tpu.memory_space<vmem>>, %arg3: memref<1x64xf32, #tpu.memory_space<vmem>>, %arg4: memref<2x64xf32, #tpu.memory_space<vmem>>) attributes {dimension_semantics = [#tpu.dimension_semantics<parallel>], iteration_bounds = array<i64: 1>, scalar_prefetch = 0 : i64, scratch_operands = 0 : i64, tpu.core_type = #tpu.core_type<tc>, window_params = [{transform_indices = @transform_0, window_bounds = array<i64: 2, 16>}, {pipeline_mode = #tpu.pipeline_mode<synchronous>, transform_indices = @transform_1, window_bounds = array<i64: 16, 64>}, {pipeline_mode = #tpu.pipeline_mode<synchronous>, transform_indices = @transform_2, window_bounds = array<i64: 1, 64>}, {transform_indices = @transform_3, window_bounds = array<i64: 2, 64>}]} {
    %c0 = arith.constant 0 : index
    %c0_0 = arith.constant 0 : index
    %0 = vector.load %arg1[%c0, %c0_0] : memref<2x16xbf16, #tpu.memory_space<vmem>>, vector<2x16xbf16>
    %c0_1 = arith.constant 0 : index
    %c0_2 = arith.constant 0 : index
    %1 = vector.load %arg2[%c0_1, %c0_2] : memref<16x64xbf16, #tpu.memory_space<vmem>>, vector<16x64xbf16>
    %cst = arith.constant dense<0.000000e+00> : vector<2x64xf32>
    %2 = tpu.matmul %0, %1, %cst {dimension_numbers = #tpu.dot_dimension_numbers<[1], [0], [0], [1], [0, 0, 1, 1], [], []>} : vector<2x16xbf16>, vector<16x64xbf16>, vector<2x64xf32> -> vector<2x64xf32>
    %c0_3 = arith.constant 0 : index
    %c0_4 = arith.constant 0 : index
    %3 = vector.load %arg3[%c0_3, %c0_4] : memref<1x64xf32, #tpu.memory_space<vmem>>, vector<1x64xf32>
    %4 = vector.broadcast %3 : vector<1x64xf32> to vector<2x64xf32>
    %5 = arith.addf %2, %4 : vector<2x64xf32>
    %c0_5 = arith.constant 0 : index
    %c0_6 = arith.constant 0 : index
    %6 = vector.load %arg4[%c0_5, %c0_6] : memref<2x64xf32, #tpu.memory_space<vmem>>, vector<2x64xf32>
    tpu.vector_store %arg4[%c0_5, %c0_6], %5 {strides = array<i32>} : memref<2x64xf32, #tpu.memory_space<vmem>>, vector<2x64xf32>,
    return
  }
  func.func @transform_0(%arg0: i32) -> (i32, i32) {
    %c0_i32 = arith.constant 0 : i32
    %c0_i32_0 = arith.constant 0 : i32
    return %arg0, %c0_i32 : i32, i32
  }
  func.func @transform_1(%arg0: i32) -> (i32, i32) {
    %c0_i32 = arith.constant 0 : i32
    %c0_i32_0 = arith.constant 0 : i32
    %c0_i32_1 = arith.constant 0 : i32
    return %c0_i32, %c0_i32_0 : i32, i32
  }
  func.func @transform_2(%arg0: i32) -> (i32, i32) {
    %c0_i32 = arith.constant 0 : i32
    %c0_i32_0 = arith.constant 0 : i32
    %c0_i32_1 = arith.constant 0 : i32
    return %c0_i32, %c0_i32_0 : i32, i32
  }
  func.func @transform_3(%arg0: i32) -> (i32, i32) {
    %c0_i32 = arith.constant 0 : i32
    %c0_i32_0 = arith.constant 0 : i32
    return %arg0, %c0_i32 : i32, i32
  }
}

module attributes {stable_mosaic.version = 11 : i64} {
  func.func @_mm_bias_kernel(%arg0: i32, %arg1: memref<2x64xbf16, #tpu.memory_space<vmem>>, %arg2: memref<64x64xbf16, #tpu.memory_space<vmem>>, %arg3: memref<1x64xf32, #tpu.memory_space<vmem>>, %arg4: memref<2x64xf32, #tpu.memory_space<vmem>>) attributes {dimension_semantics = [#tpu.dimension_semantics<parallel>], iteration_bounds = array<i64: 1>, scalar_prefetch = 0 : i64, scratch_operands = 0 : i64, tpu.core_type = #tpu.core_type<tc>, window_params = [{transform_indices = @transform_0, window_bounds = array<i64: 2, 64>}, {pipeline_mode = #tpu.pipeline_mode<synchronous>, transform_indices = @transform_1, window_bounds = array<i64: 64, 64>}, {pipeline_mode = #tpu.pipeline_mode<synchronous>, transform_indices = @transform_2, window_bounds = array<i64: 1, 64>}, {transform_indices = @transform_3, window_bounds = array<i64: 2, 64>}]} {
    %c0 = arith.constant 0 : index
    %c0_0 = arith.constant 0 : index
    %0 = vector.load %arg1[%c0, %c0_0] : memref<2x64xbf16, #tpu.memory_space<vmem>>, vector<2x64xbf16>
    %c0_1 = arith.constant 0 : index
    %c0_2 = arith.constant 0 : index
    %1 = vector.load %arg2[%c0_1, %c0_2] : memref<64x64xbf16, #tpu.memory_space<vmem>>, vector<64x64xbf16>
    %cst = arith.constant dense<0.000000e+00> : vector<2x64xf32>
    %2 = tpu.matmul %0, %1, %cst {dimension_numbers = #tpu.dot_dimension_numbers<[1], [0], [0], [1], [0, 0, 1, 1], [], []>} : vector<2x64xbf16>, vector<64x64xbf16>, vector<2x64xf32> -> vector<2x64xf32>
    %c0_3 = arith.constant 0 : index
    %c0_4 = arith.constant 0 : index
    %3 = vector.load %arg3[%c0_3, %c0_4] : memref<1x64xf32, #tpu.memory_space<vmem>>, vector<1x64xf32>
    %4 = vector.broadcast %3 : vector<1x64xf32> to vector<2x64xf32>
    %5 = arith.addf %2, %4 : vector<2x64xf32>
    %c0_5 = arith.constant 0 : index
    %c0_6 = arith.constant 0 : index
    %6 = vector.load %arg4[%c0_5, %c0_6] : memref<2x64xf32, #tpu.memory_space<vmem>>, vector<2x64xf32>
    tpu.vector_store %arg4[%c0_5, %c0_6], %5 {strides = array<i32>} : memref<2x64xf32, #tpu.memory_space<vmem>>, vector<2x64xf32>,
    return
  }
  func.func @transform_0(%arg0: i32) -> (i32, i32) {
    %c0_i32 = arith.constant 0 : i32
    %c0_i32_0 = arith.constant 0 : i32
    return %arg0, %c0_i32 : i32, i32
  }
  func.func @transform_1(%arg0: i32) -> (i32, i32) {
    %c0_i32 = arith.constant 0 : i32
    %c0_i32_0 = arith.constant 0 : i32
    %c0_i32_1 = arith.constant 0 : i32
    return %c0_i32, %c0_i32_0 : i32, i32
  }
  func.func @transform_2(%arg0: i32) -> (i32, i32) {
    %c0_i32 = arith.constant 0 : i32
    %c0_i32_0 = arith.constant 0 : i32
    %c0_i32_1 = arith.constant 0 : i32
    return %c0_i32, %c0_i32_0 : i32, i32
  }
  func.func @transform_3(%arg0: i32) -> (i32, i32) {
    %c0_i32 = arith.constant 0 : i32
    %c0_i32_0 = arith.constant 0 : i32
    return %arg0, %c0_i32 : i32, i32
  }
}

module attributes {stable_mosaic.version = 11 : i64} {
  func.func @_mm_bias_kernel(%arg0: i32, %arg1: memref<2x64xbf16, #tpu.memory_space<vmem>>, %arg2: memref<64x32xbf16, #tpu.memory_space<vmem>>, %arg3: memref<1x32xf32, #tpu.memory_space<vmem>>, %arg4: memref<2x32xf32, #tpu.memory_space<vmem>>) attributes {dimension_semantics = [#tpu.dimension_semantics<parallel>], iteration_bounds = array<i64: 1>, scalar_prefetch = 0 : i64, scratch_operands = 0 : i64, tpu.core_type = #tpu.core_type<tc>, window_params = [{transform_indices = @transform_0, window_bounds = array<i64: 2, 64>}, {pipeline_mode = #tpu.pipeline_mode<synchronous>, transform_indices = @transform_1, window_bounds = array<i64: 64, 32>}, {pipeline_mode = #tpu.pipeline_mode<synchronous>, transform_indices = @transform_2, window_bounds = array<i64: 1, 32>}, {transform_indices = @transform_3, window_bounds = array<i64: 2, 32>}]} {
    %c0 = arith.constant 0 : index
    %c0_0 = arith.constant 0 : index
    %0 = vector.load %arg1[%c0, %c0_0] : memref<2x64xbf16, #tpu.memory_space<vmem>>, vector<2x64xbf16>
    %c0_1 = arith.constant 0 : index
    %c0_2 = arith.constant 0 : index
    %1 = vector.load %arg2[%c0_1, %c0_2] : memref<64x32xbf16, #tpu.memory_space<vmem>>, vector<64x32xbf16>
    %cst = arith.constant dense<0.000000e+00> : vector<2x32xf32>
    %2 = tpu.matmul %0, %1, %cst {dimension_numbers = #tpu.dot_dimension_numbers<[1], [0], [0], [1], [0, 0, 1, 1], [], []>} : vector<2x64xbf16>, vector<64x32xbf16>, vector<2x32xf32> -> vector<2x32xf32>
    %c0_3 = arith.constant 0 : index
    %c0_4 = arith.constant 0 : index
    %3 = vector.load %arg3[%c0_3, %c0_4] : memref<1x32xf32, #tpu.memory_space<vmem>>, vector<1x32xf32>
    %4 = vector.broadcast %3 : vector<1x32xf32> to vector<2x32xf32>
    %5 = arith.addf %2, %4 : vector<2x32xf32>
    %c0_5 = arith.constant 0 : index
    %c0_6 = arith.constant 0 : index
    %6 = vector.load %arg4[%c0_5, %c0_6] : memref<2x32xf32, #tpu.memory_space<vmem>>, vector<2x32xf32>
    tpu.vector_store %arg4[%c0_5, %c0_6], %5 {strides = array<i32>} : memref<2x32xf32, #tpu.memory_space<vmem>>, vector<2x32xf32>,
    return
  }
  func.func @transform_0(%arg0: i32) -> (i32, i32) {
    %c0_i32 = arith.constant 0 : i32
    %c0_i32_0 = arith.constant 0 : i32
    return %arg0, %c0_i32 : i32, i32
  }
  func.func @transform_1(%arg0: i32) -> (i32, i32) {
    %c0_i32 = arith.constant 0 : i32
    %c0_i32_0 = arith.constant 0 : i32
    %c0_i32_1 = arith.constant 0 : i32
    return %c0_i32, %c0_i32_0 : i32, i32
  }
  func.func @transform_2(%arg0: i32) -> (i32, i32) {
    %c0_i32 = arith.constant 0 : i32
    %c0_i32_0 = arith.constant 0 : i32
    %c0_i32_1 = arith.constant 0 : i32
    return %c0_i32, %c0_i32_0 : i32, i32
  }
  func.func @transform_3(%arg0: i32) -> (i32, i32) {
    %c0_i32 = arith.constant 0 : i32
    %c0_i32_0 = arith.constant 0 : i32
    return %arg0, %c0_i32 : i32, i32
  }
}

module attributes {stable_mosaic.version = 11 : i64} {
  func.func @_mm_bias_kernel(%arg0: i32, %arg1: memref<256x16xbf16, #tpu.memory_space<vmem>>, %arg2: memref<16x384xbf16, #tpu.memory_space<vmem>>, %arg3: memref<1x384xf32, #tpu.memory_space<vmem>>, %arg4: memref<256x384xf32, #tpu.memory_space<vmem>>) attributes {dimension_semantics = [#tpu.dimension_semantics<parallel>], iteration_bounds = array<i64: 2>, scalar_prefetch = 0 : i64, scratch_operands = 0 : i64, tpu.core_type = #tpu.core_type<tc>, window_params = [{transform_indices = @transform_0, window_bounds = array<i64: 256, 16>}, {pipeline_mode = #tpu.pipeline_mode<synchronous>, transform_indices = @transform_1, window_bounds = array<i64: 16, 384>}, {pipeline_mode = #tpu.pipeline_mode<synchronous>, transform_indices = @transform_2, window_bounds = array<i64: 1, 384>}, {transform_indices = @transform_3, window_bounds = array<i64: 256, 384>}]} {
    %c0 = arith.constant 0 : index
    %c0_0 = arith.constant 0 : index
    %0 = vector.load %arg1[%c0, %c0_0] : memref<256x16xbf16, #tpu.memory_space<vmem>>, vector<256x16xbf16>
    %c0_1 = arith.constant 0 : index
    %c0_2 = arith.constant 0 : index
    %1 = vector.load %arg2[%c0_1, %c0_2] : memref<16x384xbf16, #tpu.memory_space<vmem>>, vector<16x384xbf16>
    %cst = arith.constant dense<0.000000e+00> : vector<256x384xf32>
    %2 = tpu.matmul %0, %1, %cst {dimension_numbers = #tpu.dot_dimension_numbers<[1], [0], [0], [1], [0, 0, 1, 1], [], []>} : vector<256x16xbf16>, vector<16x384xbf16>, vector<256x384xf32> -> vector<256x384xf32>
    %c0_3 = arith.constant 0 : index
    %c0_4 = arith.constant 0 : index
    %3 = vector.load %arg3[%c0_3, %c0_4] : memref<1x384xf32, #tpu.memory_space<vmem>>, vector<1x384xf32>
    %4 = vector.broadcast %3 : vector<1x384xf32> to vector<256x384xf32>
    %5 = arith.addf %2, %4 : vector<256x384xf32>
    %c0_5 = arith.constant 0 : index
    %c0_6 = arith.constant 0 : index
    %6 = vector.load %arg4[%c0_5, %c0_6] : memref<256x384xf32, #tpu.memory_space<vmem>>, vector<256x384xf32>
    tpu.vector_store %arg4[%c0_5, %c0_6], %5 {strides = array<i32>} : memref<256x384xf32, #tpu.memory_space<vmem>>, vector<256x384xf32>,
    return
  }
  func.func @transform_0(%arg0: i32) -> (i32, i32) {
    %c0_i32 = arith.constant 0 : i32
    %c0_i32_0 = arith.constant 0 : i32
    return %arg0, %c0_i32 : i32, i32
  }
  func.func @transform_1(%arg0: i32) -> (i32, i32) {
    %c0_i32 = arith.constant 0 : i32
    %c0_i32_0 = arith.constant 0 : i32
    %c0_i32_1 = arith.constant 0 : i32
    return %c0_i32, %c0_i32_0 : i32, i32
  }
  func.func @transform_2(%arg0: i32) -> (i32, i32) {
    %c0_i32 = arith.constant 0 : i32
    %c0_i32_0 = arith.constant 0 : i32
    %c0_i32_1 = arith.constant 0 : i32
    return %c0_i32, %c0_i32_0 : i32, i32
  }
  func.func @transform_3(%arg0: i32) -> (i32, i32) {
    %c0_i32 = arith.constant 0 : i32
    %c0_i32_0 = arith.constant 0 : i32
    return %arg0, %c0_i32 : i32, i32
  }
}

module attributes {stable_mosaic.version = 11 : i64} {
  func.func @_bmm_kernel(%arg0: i32, %arg1: memref<4x32x256xbf16, #tpu.memory_space<vmem>>, %arg2: memref<4x256x32xbf16, #tpu.memory_space<vmem>>, %arg3: memref<4x32x32xf32, #tpu.memory_space<vmem>>) attributes {dimension_semantics = [#tpu.dimension_semantics<parallel>], iteration_bounds = array<i64: 2>, scalar_prefetch = 0 : i64, scratch_operands = 0 : i64, tpu.core_type = #tpu.core_type<tc>, window_params = [{transform_indices = @transform_0, window_bounds = array<i64: 4, 32, 256>}, {transform_indices = @transform_1, window_bounds = array<i64: 4, 256, 32>}, {transform_indices = @transform_2, window_bounds = array<i64: 4, 32, 32>}]} {
    %c0 = arith.constant 0 : index
    %c0_0 = arith.constant 0 : index
    %c0_1 = arith.constant 0 : index
    %0 = vector.load %arg1[%c0, %c0_0, %c0_1] : memref<4x32x256xbf16, #tpu.memory_space<vmem>>, vector<4x32x256xbf16>
    %c0_2 = arith.constant 0 : index
    %c0_3 = arith.constant 0 : index
    %c0_4 = arith.constant 0 : index
    %1 = vector.load %arg2[%c0_2, %c0_3, %c0_4] : memref<4x256x32xbf16, #tpu.memory_space<vmem>>, vector<4x256x32xbf16>
    "tpu.trace_start"() <{level = 10 : i32, message = "gmk,gkn->gmn"}> : () -> ()
    %cst = arith.constant dense<0.000000e+00> : vector<4x32x32xf32>
    %2 = tpu.matmul %0, %1, %cst {dimension_numbers = #tpu.dot_dimension_numbers<[2], [1], [1], [2], [0, 0, 0, 1, 1, 2], [0], [0]>} : vector<4x32x256xbf16>, vector<4x256x32xbf16>, vector<4x32x32xf32> -> vector<4x32x32xf32>
    "tpu.trace_stop"() : () -> ()
    %c0_5 = arith.constant 0 : index
    %c0_6 = arith.constant 0 : index
    %c0_7 = arith.constant 0 : index
    %3 = vector.load %arg3[%c0_5, %c0_6, %c0_7] : memref<4x32x32xf32, #tpu.memory_space<vmem>>, vector<4x32x32xf32>
    tpu.vector_store %arg3[%c0_5, %c0_6, %c0_7], %2 {strides = array<i32>} : memref<4x32x32xf32, #tpu.memory_space<vmem>>, vector<4x32x32xf32>,
    return
  }
  func.func @transform_0(%arg0: i32) -> (i32, i32, i32) {
    %c0_i32 = arith.constant 0 : i32
    %c0_i32_0 = arith.constant 0 : i32
    %c0_i32_1 = arith.constant 0 : i32
    return %arg0, %c0_i32, %c0_i32_0 : i32, i32, i32
  }
  func.func @transform_1(%arg0: i32) -> (i32, i32, i32) {
    %c0_i32 = arith.constant 0 : i32
    %c0_i32_0 = arith.constant 0 : i32
    %c0_i32_1 = arith.constant 0 : i32
    return %arg0, %c0_i32, %c0_i32_0 : i32, i32, i32
  }
  func.func @transform_2(%arg0: i32) -> (i32, i32, i32) {
    %c0_i32 = arith.constant 0 : i32
    %c0_i32_0 = arith.constant 0 : i32
    %c0_i32_1 = arith.constant 0 : i32
    return %arg0, %c0_i32, %c0_i32_0 : i32, i32, i32
  }
}

module attributes {stable_mosaic.version = 11 : i64} {
  func.func @_bmm_kernel(%arg0: i32, %arg1: memref<4x32x32xbf16, #tpu.memory_space<vmem>>, %arg2: memref<4x32x256xbf16, #tpu.memory_space<vmem>>, %arg3: memref<4x32x256xf32, #tpu.memory_space<vmem>>) attributes {dimension_semantics = [#tpu.dimension_semantics<parallel>], iteration_bounds = array<i64: 2>, scalar_prefetch = 0 : i64, scratch_operands = 0 : i64, tpu.core_type = #tpu.core_type<tc>, window_params = [{transform_indices = @transform_0, window_bounds = array<i64: 4, 32, 32>}, {transform_indices = @transform_1, window_bounds = array<i64: 4, 32, 256>}, {transform_indices = @transform_2, window_bounds = array<i64: 4, 32, 256>}]} {
    %c0 = arith.constant 0 : index
    %c0_0 = arith.constant 0 : index
    %c0_1 = arith.constant 0 : index
    %0 = vector.load %arg1[%c0, %c0_0, %c0_1] : memref<4x32x32xbf16, #tpu.memory_space<vmem>>, vector<4x32x32xbf16>
    %c0_2 = arith.constant 0 : index
    %c0_3 = arith.constant 0 : index
    %c0_4 = arith.constant 0 : index
    %1 = vector.load %arg2[%c0_2, %c0_3, %c0_4] : memref<4x32x256xbf16, #tpu.memory_space<vmem>>, vector<4x32x256xbf16>
    "tpu.trace_start"() <{level = 10 : i32, message = "gmk,gkn->gmn"}> : () -> ()
    %cst = arith.constant dense<0.000000e+00> : vector<4x32x256xf32>
    %2 = tpu.matmul %0, %1, %cst {dimension_numbers = #tpu.dot_dimension_numbers<[2], [1], [1], [2], [0, 0, 0, 1, 1, 2], [0], [0]>} : vector<4x32x32xbf16>, vector<4x32x256xbf16>, vector<4x32x256xf32> -> vector<4x32x256xf32>
    "tpu.trace_stop"() : () -> ()
    %c0_5 = arith.constant 0 : index
    %c0_6 = arith.constant 0 : index
    %c0_7 = arith.constant 0 : index
    %3 = vector.load %arg3[%c0_5, %c0_6, %c0_7] : memref<4x32x256xf32, #tpu.memory_space<vmem>>, vector<4x32x256xf32>
    tpu.vector_store %arg3[%c0_5, %c0_6, %c0_7], %2 {strides = array<i32>} : memref<4x32x256xf32, #tpu.memory_space<vmem>>, vector<4x32x256xf32>,
    return
  }
  func.func @transform_0(%arg0: i32) -> (i32, i32, i32) {
    %c0_i32 = arith.constant 0 : i32
    %c0_i32_0 = arith.constant 0 : i32
    %c0_i32_1 = arith.constant 0 : i32
    return %arg0, %c0_i32, %c0_i32_0 : i32, i32, i32
  }
  func.func @transform_1(%arg0: i32) -> (i32, i32, i32) {
    %c0_i32 = arith.constant 0 : i32
    %c0_i32_0 = arith.constant 0 : i32
    %c0_i32_1 = arith.constant 0 : i32
    return %arg0, %c0_i32, %c0_i32_0 : i32, i32, i32
  }
  func.func @transform_2(%arg0: i32) -> (i32, i32, i32) {
    %c0_i32 = arith.constant 0 : i32
    %c0_i32_0 = arith.constant 0 : i32
    %c0_i32_1 = arith.constant 0 : i32
    return %arg0, %c0_i32, %c0_i32_0 : i32, i32, i32
  }
}

module attributes {stable_mosaic.version = 11 : i64} {
  func.func @_mm_bias_kernel(%arg0: i32, %arg1: memref<256x128xbf16, #tpu.memory_space<vmem>>, %arg2: memref<128x16xbf16, #tpu.memory_space<vmem>>, %arg3: memref<1x16xf32, #tpu.memory_space<vmem>>, %arg4: memref<256x16xf32, #tpu.memory_space<vmem>>) attributes {dimension_semantics = [#tpu.dimension_semantics<parallel>], iteration_bounds = array<i64: 2>, scalar_prefetch = 0 : i64, scratch_operands = 0 : i64, tpu.core_type = #tpu.core_type<tc>, window_params = [{transform_indices = @transform_0, window_bounds = array<i64: 256, 128>}, {pipeline_mode = #tpu.pipeline_mode<synchronous>, transform_indices = @transform_1, window_bounds = array<i64: 128, 16>}, {pipeline_mode = #tpu.pipeline_mode<synchronous>, transform_indices = @transform_2, window_bounds = array<i64: 1, 16>}, {transform_indices = @transform_3, window_bounds = array<i64: 256, 16>}]} {
    %c0 = arith.constant 0 : index
    %c0_0 = arith.constant 0 : index
    %0 = vector.load %arg1[%c0, %c0_0] : memref<256x128xbf16, #tpu.memory_space<vmem>>, vector<256x128xbf16>
    %c0_1 = arith.constant 0 : index
    %c0_2 = arith.constant 0 : index
    %1 = vector.load %arg2[%c0_1, %c0_2] : memref<128x16xbf16, #tpu.memory_space<vmem>>, vector<128x16xbf16>
    %cst = arith.constant dense<0.000000e+00> : vector<256x16xf32>
    %2 = tpu.matmul %0, %1, %cst {dimension_numbers = #tpu.dot_dimension_numbers<[1], [0], [0], [1], [0, 0, 1, 1], [], []>} : vector<256x128xbf16>, vector<128x16xbf16>, vector<256x16xf32> -> vector<256x16xf32>
    %c0_3 = arith.constant 0 : index
    %c0_4 = arith.constant 0 : index
    %3 = vector.load %arg3[%c0_3, %c0_4] : memref<1x16xf32, #tpu.memory_space<vmem>>, vector<1x16xf32>
    %4 = vector.broadcast %3 : vector<1x16xf32> to vector<256x16xf32>
    %5 = arith.addf %2, %4 : vector<256x16xf32>
    %c0_5 = arith.constant 0 : index
    %c0_6 = arith.constant 0 : index
    %6 = vector.load %arg4[%c0_5, %c0_6] : memref<256x16xf32, #tpu.memory_space<vmem>>, vector<256x16xf32>
    tpu.vector_store %arg4[%c0_5, %c0_6], %5 {strides = array<i32>} : memref<256x16xf32, #tpu.memory_space<vmem>>, vector<256x16xf32>,
    return
  }
  func.func @transform_0(%arg0: i32) -> (i32, i32) {
    %c0_i32 = arith.constant 0 : i32
    %c0_i32_0 = arith.constant 0 : i32
    return %arg0, %c0_i32 : i32, i32
  }
  func.func @transform_1(%arg0: i32) -> (i32, i32) {
    %c0_i32 = arith.constant 0 : i32
    %c0_i32_0 = arith.constant 0 : i32
    %c0_i32_1 = arith.constant 0 : i32
    return %c0_i32, %c0_i32_0 : i32, i32
  }
  func.func @transform_2(%arg0: i32) -> (i32, i32) {
    %c0_i32 = arith.constant 0 : i32
    %c0_i32_0 = arith.constant 0 : i32
    %c0_i32_1 = arith.constant 0 : i32
    return %c0_i32, %c0_i32_0 : i32, i32
  }
  func.func @transform_3(%arg0: i32) -> (i32, i32) {
    %c0_i32 = arith.constant 0 : i32
    %c0_i32_0 = arith.constant 0 : i32
    return %arg0, %c0_i32 : i32, i32
  }
}

module attributes {stable_mosaic.version = 11 : i64} {
  func.func @_mm_bias_kernel(%arg0: i32, %arg1: memref<64x64xbf16, #tpu.memory_space<vmem>>, %arg2: memref<64x16xbf16, #tpu.memory_space<vmem>>, %arg3: memref<1x16xf32, #tpu.memory_space<vmem>>, %arg4: memref<64x16xf32, #tpu.memory_space<vmem>>) attributes {dimension_semantics = [#tpu.dimension_semantics<parallel>], iteration_bounds = array<i64: 2>, scalar_prefetch = 0 : i64, scratch_operands = 0 : i64, tpu.core_type = #tpu.core_type<tc>, window_params = [{transform_indices = @transform_0, window_bounds = array<i64: 64, 64>}, {pipeline_mode = #tpu.pipeline_mode<synchronous>, transform_indices = @transform_1, window_bounds = array<i64: 64, 16>}, {pipeline_mode = #tpu.pipeline_mode<synchronous>, transform_indices = @transform_2, window_bounds = array<i64: 1, 16>}, {transform_indices = @transform_3, window_bounds = array<i64: 64, 16>}]} {
    %c0 = arith.constant 0 : index
    %c0_0 = arith.constant 0 : index
    %0 = vector.load %arg1[%c0, %c0_0] : memref<64x64xbf16, #tpu.memory_space<vmem>>, vector<64x64xbf16>
    %c0_1 = arith.constant 0 : index
    %c0_2 = arith.constant 0 : index
    %1 = vector.load %arg2[%c0_1, %c0_2] : memref<64x16xbf16, #tpu.memory_space<vmem>>, vector<64x16xbf16>
    %cst = arith.constant dense<0.000000e+00> : vector<64x16xf32>
    %2 = tpu.matmul %0, %1, %cst {dimension_numbers = #tpu.dot_dimension_numbers<[1], [0], [0], [1], [0, 0, 1, 1], [], []>} : vector<64x64xbf16>, vector<64x16xbf16>, vector<64x16xf32> -> vector<64x16xf32>
    %c0_3 = arith.constant 0 : index
    %c0_4 = arith.constant 0 : index
    %3 = vector.load %arg3[%c0_3, %c0_4] : memref<1x16xf32, #tpu.memory_space<vmem>>, vector<1x16xf32>
    %4 = vector.broadcast %3 : vector<1x16xf32> to vector<64x16xf32>
    %5 = arith.addf %2, %4 : vector<64x16xf32>
    %c0_5 = arith.constant 0 : index
    %c0_6 = arith.constant 0 : index
    %6 = vector.load %arg4[%c0_5, %c0_6] : memref<64x16xf32, #tpu.memory_space<vmem>>, vector<64x16xf32>
    tpu.vector_store %arg4[%c0_5, %c0_6], %5 {strides = array<i32>} : memref<64x16xf32, #tpu.memory_space<vmem>>, vector<64x16xf32>,
    return
  }
  func.func @transform_0(%arg0: i32) -> (i32, i32) {
    %c0_i32 = arith.constant 0 : i32
    %c0_i32_0 = arith.constant 0 : i32
    return %arg0, %c0_i32 : i32, i32
  }
  func.func @transform_1(%arg0: i32) -> (i32, i32) {
    %c0_i32 = arith.constant 0 : i32
    %c0_i32_0 = arith.constant 0 : i32
    %c0_i32_1 = arith.constant 0 : i32
    return %c0_i32, %c0_i32_0 : i32, i32
  }
  func.func @transform_2(%arg0: i32) -> (i32, i32) {
    %c0_i32 = arith.constant 0 : i32
    %c0_i32_0 = arith.constant 0 : i32
    %c0_i32_1 = arith.constant 0 : i32
    return %c0_i32, %c0_i32_0 : i32, i32
  }
  func.func @transform_3(%arg0: i32) -> (i32, i32) {
    %c0_i32 = arith.constant 0 : i32
    %c0_i32_0 = arith.constant 0 : i32
    return %arg0, %c0_i32 : i32, i32
  }
}

module attributes {stable_mosaic.version = 11 : i64} {
  func.func @_mm_bias_kernel(%arg0: i32, %arg1: memref<64x144xbf16, #tpu.memory_space<vmem>>, %arg2: memref<144x16xbf16, #tpu.memory_space<vmem>>, %arg3: memref<1x16xf32, #tpu.memory_space<vmem>>, %arg4: memref<64x16xf32, #tpu.memory_space<vmem>>) attributes {dimension_semantics = [#tpu.dimension_semantics<parallel>], iteration_bounds = array<i64: 2>, scalar_prefetch = 0 : i64, scratch_operands = 0 : i64, tpu.core_type = #tpu.core_type<tc>, window_params = [{transform_indices = @transform_0, window_bounds = array<i64: 64, 144>}, {pipeline_mode = #tpu.pipeline_mode<synchronous>, transform_indices = @transform_1, window_bounds = array<i64: 144, 16>}, {pipeline_mode = #tpu.pipeline_mode<synchronous>, transform_indices = @transform_2, window_bounds = array<i64: 1, 16>}, {transform_indices = @transform_3, window_bounds = array<i64: 64, 16>}]} {
    %c0 = arith.constant 0 : index
    %c0_0 = arith.constant 0 : index
    %0 = vector.load %arg1[%c0, %c0_0] : memref<64x144xbf16, #tpu.memory_space<vmem>>, vector<64x144xbf16>
    %c0_1 = arith.constant 0 : index
    %c0_2 = arith.constant 0 : index
    %1 = vector.load %arg2[%c0_1, %c0_2] : memref<144x16xbf16, #tpu.memory_space<vmem>>, vector<144x16xbf16>
    %cst = arith.constant dense<0.000000e+00> : vector<64x16xf32>
    %2 = tpu.matmul %0, %1, %cst {dimension_numbers = #tpu.dot_dimension_numbers<[1], [0], [0], [1], [0, 0, 1, 1], [], []>} : vector<64x144xbf16>, vector<144x16xbf16>, vector<64x16xf32> -> vector<64x16xf32>
    %c0_3 = arith.constant 0 : index
    %c0_4 = arith.constant 0 : index
    %3 = vector.load %arg3[%c0_3, %c0_4] : memref<1x16xf32, #tpu.memory_space<vmem>>, vector<1x16xf32>
    %4 = vector.broadcast %3 : vector<1x16xf32> to vector<64x16xf32>
    %5 = arith.addf %2, %4 : vector<64x16xf32>
    %c0_5 = arith.constant 0 : index
    %c0_6 = arith.constant 0 : index
    %6 = vector.load %arg4[%c0_5, %c0_6] : memref<64x16xf32, #tpu.memory_space<vmem>>, vector<64x16xf32>
    tpu.vector_store %arg4[%c0_5, %c0_6], %5 {strides = array<i32>} : memref<64x16xf32, #tpu.memory_space<vmem>>, vector<64x16xf32>,
    return
  }
  func.func @transform_0(%arg0: i32) -> (i32, i32) {
    %c0_i32 = arith.constant 0 : i32
    %c0_i32_0 = arith.constant 0 : i32
    return %arg0, %c0_i32 : i32, i32
  }
  func.func @transform_1(%arg0: i32) -> (i32, i32) {
    %c0_i32 = arith.constant 0 : i32
    %c0_i32_0 = arith.constant 0 : i32
    %c0_i32_1 = arith.constant 0 : i32
    return %c0_i32, %c0_i32_0 : i32, i32
  }
  func.func @transform_2(%arg0: i32) -> (i32, i32) {
    %c0_i32 = arith.constant 0 : i32
    %c0_i32_0 = arith.constant 0 : i32
    %c0_i32_1 = arith.constant 0 : i32
    return %c0_i32, %c0_i32_0 : i32, i32
  }
  func.func @transform_3(%arg0: i32) -> (i32, i32) {
    %c0_i32 = arith.constant 0 : i32
    %c0_i32_0 = arith.constant 0 : i32
    return %arg0, %c0_i32 : i32, i32
  }
}

module attributes {stable_mosaic.version = 11 : i64} {
  func.func @_mm_bias_kernel(%arg0: i32, %arg1: memref<64x16xbf16, #tpu.memory_space<vmem>>, %arg2: memref<16x384xbf16, #tpu.memory_space<vmem>>, %arg3: memref<1x384xf32, #tpu.memory_space<vmem>>, %arg4: memref<64x384xf32, #tpu.memory_space<vmem>>) attributes {dimension_semantics = [#tpu.dimension_semantics<parallel>], iteration_bounds = array<i64: 2>, scalar_prefetch = 0 : i64, scratch_operands = 0 : i64, tpu.core_type = #tpu.core_type<tc>, window_params = [{transform_indices = @transform_0, window_bounds = array<i64: 64, 16>}, {pipeline_mode = #tpu.pipeline_mode<synchronous>, transform_indices = @transform_1, window_bounds = array<i64: 16, 384>}, {pipeline_mode = #tpu.pipeline_mode<synchronous>, transform_indices = @transform_2, window_bounds = array<i64: 1, 384>}, {transform_indices = @transform_3, window_bounds = array<i64: 64, 384>}]} {
    %c0 = arith.constant 0 : index
    %c0_0 = arith.constant 0 : index
    %0 = vector.load %arg1[%c0, %c0_0] : memref<64x16xbf16, #tpu.memory_space<vmem>>, vector<64x16xbf16>
    %c0_1 = arith.constant 0 : index
    %c0_2 = arith.constant 0 : index
    %1 = vector.load %arg2[%c0_1, %c0_2] : memref<16x384xbf16, #tpu.memory_space<vmem>>, vector<16x384xbf16>
    %cst = arith.constant dense<0.000000e+00> : vector<64x384xf32>
    %2 = tpu.matmul %0, %1, %cst {dimension_numbers = #tpu.dot_dimension_numbers<[1], [0], [0], [1], [0, 0, 1, 1], [], []>} : vector<64x16xbf16>, vector<16x384xbf16>, vector<64x384xf32> -> vector<64x384xf32>
    %c0_3 = arith.constant 0 : index
    %c0_4 = arith.constant 0 : index
    %3 = vector.load %arg3[%c0_3, %c0_4] : memref<1x384xf32, #tpu.memory_space<vmem>>, vector<1x384xf32>
    %4 = vector.broadcast %3 : vector<1x384xf32> to vector<64x384xf32>
    %5 = arith.addf %2, %4 : vector<64x384xf32>
    %c0_5 = arith.constant 0 : index
    %c0_6 = arith.constant 0 : index
    %6 = vector.load %arg4[%c0_5, %c0_6] : memref<64x384xf32, #tpu.memory_space<vmem>>, vector<64x384xf32>
    tpu.vector_store %arg4[%c0_5, %c0_6], %5 {strides = array<i32>} : memref<64x384xf32, #tpu.memory_space<vmem>>, vector<64x384xf32>,
    return
  }
  func.func @transform_0(%arg0: i32) -> (i32, i32) {
    %c0_i32 = arith.constant 0 : i32
    %c0_i32_0 = arith.constant 0 : i32
    return %arg0, %c0_i32 : i32, i32
  }
  func.func @transform_1(%arg0: i32) -> (i32, i32) {
    %c0_i32 = arith.constant 0 : i32
    %c0_i32_0 = arith.constant 0 : i32
    %c0_i32_1 = arith.constant 0 : i32
    return %c0_i32, %c0_i32_0 : i32, i32
  }
  func.func @transform_2(%arg0: i32) -> (i32, i32) {
    %c0_i32 = arith.constant 0 : i32
    %c0_i32_0 = arith.constant 0 : i32
    %c0_i32_1 = arith.constant 0 : i32
    return %c0_i32, %c0_i32_0 : i32, i32
  }
  func.func @transform_3(%arg0: i32) -> (i32, i32) {
    %c0_i32 = arith.constant 0 : i32
    %c0_i32_0 = arith.constant 0 : i32
    return %arg0, %c0_i32 : i32, i32
  }
}

module attributes {stable_mosaic.version = 11 : i64} {
  func.func @_bmm_kernel(%arg0: i32, %arg1: memref<4x32x64xbf16, #tpu.memory_space<vmem>>, %arg2: memref<4x64x32xbf16, #tpu.memory_space<vmem>>, %arg3: memref<4x32x32xf32, #tpu.memory_space<vmem>>) attributes {dimension_semantics = [#tpu.dimension_semantics<parallel>], iteration_bounds = array<i64: 2>, scalar_prefetch = 0 : i64, scratch_operands = 0 : i64, tpu.core_type = #tpu.core_type<tc>, window_params = [{transform_indices = @transform_0, window_bounds = array<i64: 4, 32, 64>}, {transform_indices = @transform_1, window_bounds = array<i64: 4, 64, 32>}, {transform_indices = @transform_2, window_bounds = array<i64: 4, 32, 32>}]} {
    %c0 = arith.constant 0 : index
    %c0_0 = arith.constant 0 : index
    %c0_1 = arith.constant 0 : index
    %0 = vector.load %arg1[%c0, %c0_0, %c0_1] : memref<4x32x64xbf16, #tpu.memory_space<vmem>>, vector<4x32x64xbf16>
    %c0_2 = arith.constant 0 : index
    %c0_3 = arith.constant 0 : index
    %c0_4 = arith.constant 0 : index
    %1 = vector.load %arg2[%c0_2, %c0_3, %c0_4] : memref<4x64x32xbf16, #tpu.memory_space<vmem>>, vector<4x64x32xbf16>
    "tpu.trace_start"() <{level = 10 : i32, message = "gmk,gkn->gmn"}> : () -> ()
    %cst = arith.constant dense<0.000000e+00> : vector<4x32x32xf32>
    %2 = tpu.matmul %0, %1, %cst {dimension_numbers = #tpu.dot_dimension_numbers<[2], [1], [1], [2], [0, 0, 0, 1, 1, 2], [0], [0]>} : vector<4x32x64xbf16>, vector<4x64x32xbf16>, vector<4x32x32xf32> -> vector<4x32x32xf32>
    "tpu.trace_stop"() : () -> ()
    %c0_5 = arith.constant 0 : index
    %c0_6 = arith.constant 0 : index
    %c0_7 = arith.constant 0 : index
    %3 = vector.load %arg3[%c0_5, %c0_6, %c0_7] : memref<4x32x32xf32, #tpu.memory_space<vmem>>, vector<4x32x32xf32>
    tpu.vector_store %arg3[%c0_5, %c0_6, %c0_7], %2 {strides = array<i32>} : memref<4x32x32xf32, #tpu.memory_space<vmem>>, vector<4x32x32xf32>,
    return
  }
  func.func @transform_0(%arg0: i32) -> (i32, i32, i32) {
    %c0_i32 = arith.constant 0 : i32
    %c0_i32_0 = arith.constant 0 : i32
    %c0_i32_1 = arith.constant 0 : i32
    return %arg0, %c0_i32, %c0_i32_0 : i32, i32, i32
  }
  func.func @transform_1(%arg0: i32) -> (i32, i32, i32) {
    %c0_i32 = arith.constant 0 : i32
    %c0_i32_0 = arith.constant 0 : i32
    %c0_i32_1 = arith.constant 0 : i32
    return %arg0, %c0_i32, %c0_i32_0 : i32, i32, i32
  }
  func.func @transform_2(%arg0: i32) -> (i32, i32, i32) {
    %c0_i32 = arith.constant 0 : i32
    %c0_i32_0 = arith.constant 0 : i32
    %c0_i32_1 = arith.constant 0 : i32
    return %arg0, %c0_i32, %c0_i32_0 : i32, i32, i32
  }
}

module attributes {stable_mosaic.version = 11 : i64} {
  func.func @_bmm_kernel(%arg0: i32, %arg1: memref<4x32x32xbf16, #tpu.memory_space<vmem>>, %arg2: memref<4x32x64xbf16, #tpu.memory_space<vmem>>, %arg3: memref<4x32x64xf32, #tpu.memory_space<vmem>>) attributes {dimension_semantics = [#tpu.dimension_semantics<parallel>], iteration_bounds = array<i64: 2>, scalar_prefetch = 0 : i64, scratch_operands = 0 : i64, tpu.core_type = #tpu.core_type<tc>, window_params = [{transform_indices = @transform_0, window_bounds = array<i64: 4, 32, 32>}, {transform_indices = @transform_1, window_bounds = array<i64: 4, 32, 64>}, {transform_indices = @transform_2, window_bounds = array<i64: 4, 32, 64>}]} {
    %c0 = arith.constant 0 : index
    %c0_0 = arith.constant 0 : index
    %c0_1 = arith.constant 0 : index
    %0 = vector.load %arg1[%c0, %c0_0, %c0_1] : memref<4x32x32xbf16, #tpu.memory_space<vmem>>, vector<4x32x32xbf16>
    %c0_2 = arith.constant 0 : index
    %c0_3 = arith.constant 0 : index
    %c0_4 = arith.constant 0 : index
    %1 = vector.load %arg2[%c0_2, %c0_3, %c0_4] : memref<4x32x64xbf16, #tpu.memory_space<vmem>>, vector<4x32x64xbf16>
    "tpu.trace_start"() <{level = 10 : i32, message = "gmk,gkn->gmn"}> : () -> ()
    %cst = arith.constant dense<0.000000e+00> : vector<4x32x64xf32>
    %2 = tpu.matmul %0, %1, %cst {dimension_numbers = #tpu.dot_dimension_numbers<[2], [1], [1], [2], [0, 0, 0, 1, 1, 2], [0], [0]>} : vector<4x32x32xbf16>, vector<4x32x64xbf16>, vector<4x32x64xf32> -> vector<4x32x64xf32>
    "tpu.trace_stop"() : () -> ()
    %c0_5 = arith.constant 0 : index
    %c0_6 = arith.constant 0 : index
    %c0_7 = arith.constant 0 : index
    %3 = vector.load %arg3[%c0_5, %c0_6, %c0_7] : memref<4x32x64xf32, #tpu.memory_space<vmem>>, vector<4x32x64xf32>
    tpu.vector_store %arg3[%c0_5, %c0_6, %c0_7], %2 {strides = array<i32>} : memref<4x32x64xf32, #tpu.memory_space<vmem>>, vector<4x32x64xf32>,
    return
  }
  func.func @transform_0(%arg0: i32) -> (i32, i32, i32) {
    %c0_i32 = arith.constant 0 : i32
    %c0_i32_0 = arith.constant 0 : i32
    %c0_i32_1 = arith.constant 0 : i32
    return %arg0, %c0_i32, %c0_i32_0 : i32, i32, i32
  }
  func.func @transform_1(%arg0: i32) -> (i32, i32, i32) {
    %c0_i32 = arith.constant 0 : i32
    %c0_i32_0 = arith.constant 0 : i32
    %c0_i32_1 = arith.constant 0 : i32
    return %arg0, %c0_i32, %c0_i32_0 : i32, i32, i32
  }
  func.func @transform_2(%arg0: i32) -> (i32, i32, i32) {
    %c0_i32 = arith.constant 0 : i32
    %c0_i32_0 = arith.constant 0 : i32
    %c0_i32_1 = arith.constant 0 : i32
    return %arg0, %c0_i32, %c0_i32_0 : i32, i32, i32
  }
}

module attributes {stable_mosaic.version = 11 : i64} {
  func.func @_mm_bias_kernel(%arg0: i32, %arg1: memref<64x128xbf16, #tpu.memory_space<vmem>>, %arg2: memref<128x16xbf16, #tpu.memory_space<vmem>>, %arg3: memref<1x16xf32, #tpu.memory_space<vmem>>, %arg4: memref<64x16xf32, #tpu.memory_space<vmem>>) attributes {dimension_semantics = [#tpu.dimension_semantics<parallel>], iteration_bounds = array<i64: 2>, scalar_prefetch = 0 : i64, scratch_operands = 0 : i64, tpu.core_type = #tpu.core_type<tc>, window_params = [{transform_indices = @transform_0, window_bounds = array<i64: 64, 128>}, {pipeline_mode = #tpu.pipeline_mode<synchronous>, transform_indices = @transform_1, window_bounds = array<i64: 128, 16>}, {pipeline_mode = #tpu.pipeline_mode<synchronous>, transform_indices = @transform_2, window_bounds = array<i64: 1, 16>}, {transform_indices = @transform_3, window_bounds = array<i64: 64, 16>}]} {
    %c0 = arith.constant 0 : index
    %c0_0 = arith.constant 0 : index
    %0 = vector.load %arg1[%c0, %c0_0] : memref<64x128xbf16, #tpu.memory_space<vmem>>, vector<64x128xbf16>
    %c0_1 = arith.constant 0 : index
    %c0_2 = arith.constant 0 : index
    %1 = vector.load %arg2[%c0_1, %c0_2] : memref<128x16xbf16, #tpu.memory_space<vmem>>, vector<128x16xbf16>
    %cst = arith.constant dense<0.000000e+00> : vector<64x16xf32>
    %2 = tpu.matmul %0, %1, %cst {dimension_numbers = #tpu.dot_dimension_numbers<[1], [0], [0], [1], [0, 0, 1, 1], [], []>} : vector<64x128xbf16>, vector<128x16xbf16>, vector<64x16xf32> -> vector<64x16xf32>
    %c0_3 = arith.constant 0 : index
    %c0_4 = arith.constant 0 : index
    %3 = vector.load %arg3[%c0_3, %c0_4] : memref<1x16xf32, #tpu.memory_space<vmem>>, vector<1x16xf32>
    %4 = vector.broadcast %3 : vector<1x16xf32> to vector<64x16xf32>
    %5 = arith.addf %2, %4 : vector<64x16xf32>
    %c0_5 = arith.constant 0 : index
    %c0_6 = arith.constant 0 : index
    %6 = vector.load %arg4[%c0_5, %c0_6] : memref<64x16xf32, #tpu.memory_space<vmem>>, vector<64x16xf32>
    tpu.vector_store %arg4[%c0_5, %c0_6], %5 {strides = array<i32>} : memref<64x16xf32, #tpu.memory_space<vmem>>, vector<64x16xf32>,
    return
  }
  func.func @transform_0(%arg0: i32) -> (i32, i32) {
    %c0_i32 = arith.constant 0 : i32
    %c0_i32_0 = arith.constant 0 : i32
    return %arg0, %c0_i32 : i32, i32
  }
  func.func @transform_1(%arg0: i32) -> (i32, i32) {
    %c0_i32 = arith.constant 0 : i32
    %c0_i32_0 = arith.constant 0 : i32
    %c0_i32_1 = arith.constant 0 : i32
    return %c0_i32, %c0_i32_0 : i32, i32
  }
  func.func @transform_2(%arg0: i32) -> (i32, i32) {
    %c0_i32 = arith.constant 0 : i32
    %c0_i32_0 = arith.constant 0 : i32
    %c0_i32_1 = arith.constant 0 : i32
    return %c0_i32, %c0_i32_0 : i32, i32
  }
  func.func @transform_3(%arg0: i32) -> (i32, i32) {
    %c0_i32 = arith.constant 0 : i32
    %c0_i32_0 = arith.constant 0 : i32
    return %arg0, %c0_i32 : i32, i32
  }
}

module attributes {stable_mosaic.version = 11 : i64} {
  func.func @_mm_bias_kernel(%arg0: i32, %arg1: memref<64x144xbf16, #tpu.memory_space<vmem>>, %arg2: memref<144x32xbf16, #tpu.memory_space<vmem>>, %arg3: memref<1x32xf32, #tpu.memory_space<vmem>>, %arg4: memref<64x32xf32, #tpu.memory_space<vmem>>) attributes {dimension_semantics = [#tpu.dimension_semantics<parallel>], iteration_bounds = array<i64: 2>, scalar_prefetch = 0 : i64, scratch_operands = 0 : i64, tpu.core_type = #tpu.core_type<tc>, window_params = [{transform_indices = @transform_0, window_bounds = array<i64: 64, 144>}, {pipeline_mode = #tpu.pipeline_mode<synchronous>, transform_indices = @transform_1, window_bounds = array<i64: 144, 32>}, {pipeline_mode = #tpu.pipeline_mode<synchronous>, transform_indices = @transform_2, window_bounds = array<i64: 1, 32>}, {transform_indices = @transform_3, window_bounds = array<i64: 64, 32>}]} {
    %c0 = arith.constant 0 : index
    %c0_0 = arith.constant 0 : index
    %0 = vector.load %arg1[%c0, %c0_0] : memref<64x144xbf16, #tpu.memory_space<vmem>>, vector<64x144xbf16>
    %c0_1 = arith.constant 0 : index
    %c0_2 = arith.constant 0 : index
    %1 = vector.load %arg2[%c0_1, %c0_2] : memref<144x32xbf16, #tpu.memory_space<vmem>>, vector<144x32xbf16>
    %cst = arith.constant dense<0.000000e+00> : vector<64x32xf32>
    %2 = tpu.matmul %0, %1, %cst {dimension_numbers = #tpu.dot_dimension_numbers<[1], [0], [0], [1], [0, 0, 1, 1], [], []>} : vector<64x144xbf16>, vector<144x32xbf16>, vector<64x32xf32> -> vector<64x32xf32>
    %c0_3 = arith.constant 0 : index
    %c0_4 = arith.constant 0 : index
    %3 = vector.load %arg3[%c0_3, %c0_4] : memref<1x32xf32, #tpu.memory_space<vmem>>, vector<1x32xf32>
    %4 = vector.broadcast %3 : vector<1x32xf32> to vector<64x32xf32>
    %5 = arith.addf %2, %4 : vector<64x32xf32>
    %c0_5 = arith.constant 0 : index
    %c0_6 = arith.constant 0 : index
    %6 = vector.load %arg4[%c0_5, %c0_6] : memref<64x32xf32, #tpu.memory_space<vmem>>, vector<64x32xf32>
    tpu.vector_store %arg4[%c0_5, %c0_6], %5 {strides = array<i32>} : memref<64x32xf32, #tpu.memory_space<vmem>>, vector<64x32xf32>,
    return
  }
  func.func @transform_0(%arg0: i32) -> (i32, i32) {
    %c0_i32 = arith.constant 0 : i32
    %c0_i32_0 = arith.constant 0 : i32
    return %arg0, %c0_i32 : i32, i32
  }
  func.func @transform_1(%arg0: i32) -> (i32, i32) {
    %c0_i32 = arith.constant 0 : i32
    %c0_i32_0 = arith.constant 0 : i32
    %c0_i32_1 = arith.constant 0 : i32
    return %c0_i32, %c0_i32_0 : i32, i32
  }
  func.func @transform_2(%arg0: i32) -> (i32, i32) {
    %c0_i32 = arith.constant 0 : i32
    %c0_i32_0 = arith.constant 0 : i32
    %c0_i32_1 = arith.constant 0 : i32
    return %c0_i32, %c0_i32_0 : i32, i32
  }
  func.func @transform_3(%arg0: i32) -> (i32, i32) {
    %c0_i32 = arith.constant 0 : i32
    %c0_i32_0 = arith.constant 0 : i32
    return %arg0, %c0_i32 : i32, i32
  }
}

module attributes {stable_mosaic.version = 11 : i64} {
  func.func @_mm_bias_kernel(%arg0: i32, %arg1: memref<64x288xbf16, #tpu.memory_space<vmem>>, %arg2: memref<288x32xbf16, #tpu.memory_space<vmem>>, %arg3: memref<1x32xf32, #tpu.memory_space<vmem>>, %arg4: memref<64x32xf32, #tpu.memory_space<vmem>>) attributes {dimension_semantics = [#tpu.dimension_semantics<parallel>], iteration_bounds = array<i64: 2>, scalar_prefetch = 0 : i64, scratch_operands = 0 : i64, tpu.core_type = #tpu.core_type<tc>, window_params = [{transform_indices = @transform_0, window_bounds = array<i64: 64, 288>}, {pipeline_mode = #tpu.pipeline_mode<synchronous>, transform_indices = @transform_1, window_bounds = array<i64: 288, 32>}, {pipeline_mode = #tpu.pipeline_mode<synchronous>, transform_indices = @transform_2, window_bounds = array<i64: 1, 32>}, {transform_indices = @transform_3, window_bounds = array<i64: 64, 32>}]} {
    %c0 = arith.constant 0 : index
    %c0_0 = arith.constant 0 : index
    %0 = vector.load %arg1[%c0, %c0_0] : memref<64x288xbf16, #tpu.memory_space<vmem>>, vector<64x288xbf16>
    %c0_1 = arith.constant 0 : index
    %c0_2 = arith.constant 0 : index
    %1 = vector.load %arg2[%c0_1, %c0_2] : memref<288x32xbf16, #tpu.memory_space<vmem>>, vector<288x32xbf16>
    %cst = arith.constant dense<0.000000e+00> : vector<64x32xf32>
    %2 = tpu.matmul %0, %1, %cst {dimension_numbers = #tpu.dot_dimension_numbers<[1], [0], [0], [1], [0, 0, 1, 1], [], []>} : vector<64x288xbf16>, vector<288x32xbf16>, vector<64x32xf32> -> vector<64x32xf32>
    %c0_3 = arith.constant 0 : index
    %c0_4 = arith.constant 0 : index
    %3 = vector.load %arg3[%c0_3, %c0_4] : memref<1x32xf32, #tpu.memory_space<vmem>>, vector<1x32xf32>
    %4 = vector.broadcast %3 : vector<1x32xf32> to vector<64x32xf32>
    %5 = arith.addf %2, %4 : vector<64x32xf32>
    %c0_5 = arith.constant 0 : index
    %c0_6 = arith.constant 0 : index
    %6 = vector.load %arg4[%c0_5, %c0_6] : memref<64x32xf32, #tpu.memory_space<vmem>>, vector<64x32xf32>
    tpu.vector_store %arg4[%c0_5, %c0_6], %5 {strides = array<i32>} : memref<64x32xf32, #tpu.memory_space<vmem>>, vector<64x32xf32>,
    return
  }
  func.func @transform_0(%arg0: i32) -> (i32, i32) {
    %c0_i32 = arith.constant 0 : i32
    %c0_i32_0 = arith.constant 0 : i32
    return %arg0, %c0_i32 : i32, i32
  }
  func.func @transform_1(%arg0: i32) -> (i32, i32) {
    %c0_i32 = arith.constant 0 : i32
    %c0_i32_0 = arith.constant 0 : i32
    %c0_i32_1 = arith.constant 0 : i32
    return %c0_i32, %c0_i32_0 : i32, i32
  }
  func.func @transform_2(%arg0: i32) -> (i32, i32) {
    %c0_i32 = arith.constant 0 : i32
    %c0_i32_0 = arith.constant 0 : i32
    %c0_i32_1 = arith.constant 0 : i32
    return %c0_i32, %c0_i32_0 : i32, i32
  }
  func.func @transform_3(%arg0: i32) -> (i32, i32) {
    %c0_i32 = arith.constant 0 : i32
    %c0_i32_0 = arith.constant 0 : i32
    return %arg0, %c0_i32 : i32, i32
  }
}

module attributes {stable_mosaic.version = 11 : i64} {
  func.func @_bmm_kernel(%arg0: i32, %arg1: memref<4x64x32xbf16, #tpu.memory_space<vmem>>, %arg2: memref<4x32x64xbf16, #tpu.memory_space<vmem>>, %arg3: memref<4x64x64xf32, #tpu.memory_space<vmem>>) attributes {dimension_semantics = [#tpu.dimension_semantics<parallel>], iteration_bounds = array<i64: 2>, scalar_prefetch = 0 : i64, scratch_operands = 0 : i64, tpu.core_type = #tpu.core_type<tc>, window_params = [{transform_indices = @transform_0, window_bounds = array<i64: 4, 64, 32>}, {transform_indices = @transform_1, window_bounds = array<i64: 4, 32, 64>}, {transform_indices = @transform_2, window_bounds = array<i64: 4, 64, 64>}]} {
    %c0 = arith.constant 0 : index
    %c0_0 = arith.constant 0 : index
    %c0_1 = arith.constant 0 : index
    %0 = vector.load %arg1[%c0, %c0_0, %c0_1] : memref<4x64x32xbf16, #tpu.memory_space<vmem>>, vector<4x64x32xbf16>
    %c0_2 = arith.constant 0 : index
    %c0_3 = arith.constant 0 : index
    %c0_4 = arith.constant 0 : index
    %1 = vector.load %arg2[%c0_2, %c0_3, %c0_4] : memref<4x32x64xbf16, #tpu.memory_space<vmem>>, vector<4x32x64xbf16>
    "tpu.trace_start"() <{level = 10 : i32, message = "gmk,gkn->gmn"}> : () -> ()
    %cst = arith.constant dense<0.000000e+00> : vector<4x64x64xf32>
    %2 = tpu.matmul %0, %1, %cst {dimension_numbers = #tpu.dot_dimension_numbers<[2], [1], [1], [2], [0, 0, 0, 1, 1, 2], [0], [0]>} : vector<4x64x32xbf16>, vector<4x32x64xbf16>, vector<4x64x64xf32> -> vector<4x64x64xf32>
    "tpu.trace_stop"() : () -> ()
    %c0_5 = arith.constant 0 : index
    %c0_6 = arith.constant 0 : index
    %c0_7 = arith.constant 0 : index
    %3 = vector.load %arg3[%c0_5, %c0_6, %c0_7] : memref<4x64x64xf32, #tpu.memory_space<vmem>>, vector<4x64x64xf32>
    tpu.vector_store %arg3[%c0_5, %c0_6, %c0_7], %2 {strides = array<i32>} : memref<4x64x64xf32, #tpu.memory_space<vmem>>, vector<4x64x64xf32>,
    return
  }
  func.func @transform_0(%arg0: i32) -> (i32, i32, i32) {
    %c0_i32 = arith.constant 0 : i32
    %c0_i32_0 = arith.constant 0 : i32
    %c0_i32_1 = arith.constant 0 : i32
    return %arg0, %c0_i32, %c0_i32_0 : i32, i32, i32
  }
  func.func @transform_1(%arg0: i32) -> (i32, i32, i32) {
    %c0_i32 = arith.constant 0 : i32
    %c0_i32_0 = arith.constant 0 : i32
    %c0_i32_1 = arith.constant 0 : i32
    return %arg0, %c0_i32, %c0_i32_0 : i32, i32, i32
  }
  func.func @transform_2(%arg0: i32) -> (i32, i32, i32) {
    %c0_i32 = arith.constant 0 : i32
    %c0_i32_0 = arith.constant 0 : i32
    %c0_i32_1 = arith.constant 0 : i32
    return %arg0, %c0_i32, %c0_i32_0 : i32, i32, i32
  }
}

module attributes {stable_mosaic.version = 11 : i64} {
  func.func @_mm_bias_kernel(%arg0: i32, %arg1: memref<64x32xbf16, #tpu.memory_space<vmem>>, %arg2: memref<32x384xbf16, #tpu.memory_space<vmem>>, %arg3: memref<1x384xf32, #tpu.memory_space<vmem>>, %arg4: memref<64x384xf32, #tpu.memory_space<vmem>>) attributes {dimension_semantics = [#tpu.dimension_semantics<parallel>], iteration_bounds = array<i64: 2>, scalar_prefetch = 0 : i64, scratch_operands = 0 : i64, tpu.core_type = #tpu.core_type<tc>, window_params = [{transform_indices = @transform_0, window_bounds = array<i64: 64, 32>}, {pipeline_mode = #tpu.pipeline_mode<synchronous>, transform_indices = @transform_1, window_bounds = array<i64: 32, 384>}, {pipeline_mode = #tpu.pipeline_mode<synchronous>, transform_indices = @transform_2, window_bounds = array<i64: 1, 384>}, {transform_indices = @transform_3, window_bounds = array<i64: 64, 384>}]} {
    %c0 = arith.constant 0 : index
    %c0_0 = arith.constant 0 : index
    %0 = vector.load %arg1[%c0, %c0_0] : memref<64x32xbf16, #tpu.memory_space<vmem>>, vector<64x32xbf16>
    %c0_1 = arith.constant 0 : index
    %c0_2 = arith.constant 0 : index
    %1 = vector.load %arg2[%c0_1, %c0_2] : memref<32x384xbf16, #tpu.memory_space<vmem>>, vector<32x384xbf16>
    %cst = arith.constant dense<0.000000e+00> : vector<64x384xf32>
    %2 = tpu.matmul %0, %1, %cst {dimension_numbers = #tpu.dot_dimension_numbers<[1], [0], [0], [1], [0, 0, 1, 1], [], []>} : vector<64x32xbf16>, vector<32x384xbf16>, vector<64x384xf32> -> vector<64x384xf32>
    %c0_3 = arith.constant 0 : index
    %c0_4 = arith.constant 0 : index
    %3 = vector.load %arg3[%c0_3, %c0_4] : memref<1x384xf32, #tpu.memory_space<vmem>>, vector<1x384xf32>
    %4 = vector.broadcast %3 : vector<1x384xf32> to vector<64x384xf32>
    %5 = arith.addf %2, %4 : vector<64x384xf32>
    %c0_5 = arith.constant 0 : index
    %c0_6 = arith.constant 0 : index
    %6 = vector.load %arg4[%c0_5, %c0_6] : memref<64x384xf32, #tpu.memory_space<vmem>>, vector<64x384xf32>
    tpu.vector_store %arg4[%c0_5, %c0_6], %5 {strides = array<i32>} : memref<64x384xf32, #tpu.memory_space<vmem>>, vector<64x384xf32>,
    return
  }
  func.func @transform_0(%arg0: i32) -> (i32, i32) {
    %c0_i32 = arith.constant 0 : i32
    %c0_i32_0 = arith.constant 0 : i32
    return %arg0, %c0_i32 : i32, i32
  }
  func.func @transform_1(%arg0: i32) -> (i32, i32) {
    %c0_i32 = arith.constant 0 : i32
    %c0_i32_0 = arith.constant 0 : i32
    %c0_i32_1 = arith.constant 0 : i32
    return %c0_i32, %c0_i32_0 : i32, i32
  }
  func.func @transform_2(%arg0: i32) -> (i32, i32) {
    %c0_i32 = arith.constant 0 : i32
    %c0_i32_0 = arith.constant 0 : i32
    %c0_i32_1 = arith.constant 0 : i32
    return %c0_i32, %c0_i32_0 : i32, i32
  }
  func.func @transform_3(%arg0: i32) -> (i32, i32) {
    %c0_i32 = arith.constant 0 : i32
    %c0_i32_0 = arith.constant 0 : i32
    return %arg0, %c0_i32 : i32, i32
  }
}

module attributes {stable_mosaic.version = 11 : i64} {
  func.func @_bmm_kernel(%arg0: i32, %arg1: memref<4x64x64xbf16, #tpu.memory_space<vmem>>, %arg2: memref<4x64x32xbf16, #tpu.memory_space<vmem>>, %arg3: memref<4x64x32xf32, #tpu.memory_space<vmem>>) attributes {dimension_semantics = [#tpu.dimension_semantics<parallel>], iteration_bounds = array<i64: 2>, scalar_prefetch = 0 : i64, scratch_operands = 0 : i64, tpu.core_type = #tpu.core_type<tc>, window_params = [{transform_indices = @transform_0, window_bounds = array<i64: 4, 64, 64>}, {transform_indices = @transform_1, window_bounds = array<i64: 4, 64, 32>}, {transform_indices = @transform_2, window_bounds = array<i64: 4, 64, 32>}]} {
    %c0 = arith.constant 0 : index
    %c0_0 = arith.constant 0 : index
    %c0_1 = arith.constant 0 : index
    %0 = vector.load %arg1[%c0, %c0_0, %c0_1] : memref<4x64x64xbf16, #tpu.memory_space<vmem>>, vector<4x64x64xbf16>
    %c0_2 = arith.constant 0 : index
    %c0_3 = arith.constant 0 : index
    %c0_4 = arith.constant 0 : index
    %1 = vector.load %arg2[%c0_2, %c0_3, %c0_4] : memref<4x64x32xbf16, #tpu.memory_space<vmem>>, vector<4x64x32xbf16>
    "tpu.trace_start"() <{level = 10 : i32, message = "gmk,gkn->gmn"}> : () -> ()
    %cst = arith.constant dense<0.000000e+00> : vector<4x64x32xf32>
    %2 = tpu.matmul %0, %1, %cst {dimension_numbers = #tpu.dot_dimension_numbers<[2], [1], [1], [2], [0, 0, 0, 1, 1, 2], [0], [0]>} : vector<4x64x64xbf16>, vector<4x64x32xbf16>, vector<4x64x32xf32> -> vector<4x64x32xf32>
    "tpu.trace_stop"() : () -> ()
    %c0_5 = arith.constant 0 : index
    %c0_6 = arith.constant 0 : index
    %c0_7 = arith.constant 0 : index
    %3 = vector.load %arg3[%c0_5, %c0_6, %c0_7] : memref<4x64x32xf32, #tpu.memory_space<vmem>>, vector<4x64x32xf32>
    tpu.vector_store %arg3[%c0_5, %c0_6, %c0_7], %2 {strides = array<i32>} : memref<4x64x32xf32, #tpu.memory_space<vmem>>, vector<4x64x32xf32>,
    return
  }
  func.func @transform_0(%arg0: i32) -> (i32, i32, i32) {
    %c0_i32 = arith.constant 0 : i32
    %c0_i32_0 = arith.constant 0 : i32
    %c0_i32_1 = arith.constant 0 : i32
    return %arg0, %c0_i32, %c0_i32_0 : i32, i32, i32
  }
  func.func @transform_1(%arg0: i32) -> (i32, i32, i32) {
    %c0_i32 = arith.constant 0 : i32
    %c0_i32_0 = arith.constant 0 : i32
    %c0_i32_1 = arith.constant 0 : i32
    return %arg0, %c0_i32, %c0_i32_0 : i32, i32, i32
  }
  func.func @transform_2(%arg0: i32) -> (i32, i32, i32) {
    %c0_i32 = arith.constant 0 : i32
    %c0_i32_0 = arith.constant 0 : i32
    %c0_i32_1 = arith.constant 0 : i32
    return %arg0, %c0_i32, %c0_i32_0 : i32, i32, i32
  }
}

module attributes {stable_mosaic.version = 11 : i64} {
  func.func @_mm_bias_kernel(%arg0: i32, %arg1: memref<64x128xbf16, #tpu.memory_space<vmem>>, %arg2: memref<128x32xbf16, #tpu.memory_space<vmem>>, %arg3: memref<1x32xf32, #tpu.memory_space<vmem>>, %arg4: memref<64x32xf32, #tpu.memory_space<vmem>>) attributes {dimension_semantics = [#tpu.dimension_semantics<parallel>], iteration_bounds = array<i64: 2>, scalar_prefetch = 0 : i64, scratch_operands = 0 : i64, tpu.core_type = #tpu.core_type<tc>, window_params = [{transform_indices = @transform_0, window_bounds = array<i64: 64, 128>}, {pipeline_mode = #tpu.pipeline_mode<synchronous>, transform_indices = @transform_1, window_bounds = array<i64: 128, 32>}, {pipeline_mode = #tpu.pipeline_mode<synchronous>, transform_indices = @transform_2, window_bounds = array<i64: 1, 32>}, {transform_indices = @transform_3, window_bounds = array<i64: 64, 32>}]} {
    %c0 = arith.constant 0 : index
    %c0_0 = arith.constant 0 : index
    %0 = vector.load %arg1[%c0, %c0_0] : memref<64x128xbf16, #tpu.memory_space<vmem>>, vector<64x128xbf16>
    %c0_1 = arith.constant 0 : index
    %c0_2 = arith.constant 0 : index
    %1 = vector.load %arg2[%c0_1, %c0_2] : memref<128x32xbf16, #tpu.memory_space<vmem>>, vector<128x32xbf16>
    %cst = arith.constant dense<0.000000e+00> : vector<64x32xf32>
    %2 = tpu.matmul %0, %1, %cst {dimension_numbers = #tpu.dot_dimension_numbers<[1], [0], [0], [1], [0, 0, 1, 1], [], []>} : vector<64x128xbf16>, vector<128x32xbf16>, vector<64x32xf32> -> vector<64x32xf32>
    %c0_3 = arith.constant 0 : index
    %c0_4 = arith.constant 0 : index
    %3 = vector.load %arg3[%c0_3, %c0_4] : memref<1x32xf32, #tpu.memory_space<vmem>>, vector<1x32xf32>
    %4 = vector.broadcast %3 : vector<1x32xf32> to vector<64x32xf32>
    %5 = arith.addf %2, %4 : vector<64x32xf32>
    %c0_5 = arith.constant 0 : index
    %c0_6 = arith.constant 0 : index
    %6 = vector.load %arg4[%c0_5, %c0_6] : memref<64x32xf32, #tpu.memory_space<vmem>>, vector<64x32xf32>
    tpu.vector_store %arg4[%c0_5, %c0_6], %5 {strides = array<i32>} : memref<64x32xf32, #tpu.memory_space<vmem>>, vector<64x32xf32>,
    return
  }
  func.func @transform_0(%arg0: i32) -> (i32, i32) {
    %c0_i32 = arith.constant 0 : i32
    %c0_i32_0 = arith.constant 0 : i32
    return %arg0, %c0_i32 : i32, i32
  }
  func.func @transform_1(%arg0: i32) -> (i32, i32) {
    %c0_i32 = arith.constant 0 : i32
    %c0_i32_0 = arith.constant 0 : i32
    %c0_i32_1 = arith.constant 0 : i32
    return %c0_i32, %c0_i32_0 : i32, i32
  }
  func.func @transform_2(%arg0: i32) -> (i32, i32) {
    %c0_i32 = arith.constant 0 : i32
    %c0_i32_0 = arith.constant 0 : i32
    %c0_i32_1 = arith.constant 0 : i32
    return %c0_i32, %c0_i32_0 : i32, i32
  }
  func.func @transform_3(%arg0: i32) -> (i32, i32) {
    %c0_i32 = arith.constant 0 : i32
    %c0_i32_0 = arith.constant 0 : i32
    return %arg0, %c0_i32 : i32, i32
  }
}

module attributes {stable_mosaic.version = 11 : i64} {
  func.func @_mm_bias_kernel(%arg0: i32, %arg1: memref<64x432xbf16, #tpu.memory_space<vmem>>, %arg2: memref<432x32xbf16, #tpu.memory_space<vmem>>, %arg3: memref<1x32xf32, #tpu.memory_space<vmem>>, %arg4: memref<64x32xf32, #tpu.memory_space<vmem>>) attributes {dimension_semantics = [#tpu.dimension_semantics<parallel>], iteration_bounds = array<i64: 2>, scalar_prefetch = 0 : i64, scratch_operands = 0 : i64, tpu.core_type = #tpu.core_type<tc>, window_params = [{transform_indices = @transform_0, window_bounds = array<i64: 64, 432>}, {pipeline_mode = #tpu.pipeline_mode<synchronous>, transform_indices = @transform_1, window_bounds = array<i64: 432, 32>}, {pipeline_mode = #tpu.pipeline_mode<synchronous>, transform_indices = @transform_2, window_bounds = array<i64: 1, 32>}, {transform_indices = @transform_3, window_bounds = array<i64: 64, 32>}]} {
    %c0 = arith.constant 0 : index
    %c0_0 = arith.constant 0 : index
    %0 = vector.load %arg1[%c0, %c0_0] : memref<64x432xbf16, #tpu.memory_space<vmem>>, vector<64x432xbf16>
    %c0_1 = arith.constant 0 : index
    %c0_2 = arith.constant 0 : index
    %1 = vector.load %arg2[%c0_1, %c0_2] : memref<432x32xbf16, #tpu.memory_space<vmem>>, vector<432x32xbf16>
    %cst = arith.constant dense<0.000000e+00> : vector<64x32xf32>
    %2 = tpu.matmul %0, %1, %cst {dimension_numbers = #tpu.dot_dimension_numbers<[1], [0], [0], [1], [0, 0, 1, 1], [], []>} : vector<64x432xbf16>, vector<432x32xbf16>, vector<64x32xf32> -> vector<64x32xf32>
    %c0_3 = arith.constant 0 : index
    %c0_4 = arith.constant 0 : index
    %3 = vector.load %arg3[%c0_3, %c0_4] : memref<1x32xf32, #tpu.memory_space<vmem>>, vector<1x32xf32>
    %4 = vector.broadcast %3 : vector<1x32xf32> to vector<64x32xf32>
    %5 = arith.addf %2, %4 : vector<64x32xf32>
    %c0_5 = arith.constant 0 : index
    %c0_6 = arith.constant 0 : index
    %6 = vector.load %arg4[%c0_5, %c0_6] : memref<64x32xf32, #tpu.memory_space<vmem>>, vector<64x32xf32>
    tpu.vector_store %arg4[%c0_5, %c0_6], %5 {strides = array<i32>} : memref<64x32xf32, #tpu.memory_space<vmem>>, vector<64x32xf32>,
    return
  }
  func.func @transform_0(%arg0: i32) -> (i32, i32) {
    %c0_i32 = arith.constant 0 : i32
    %c0_i32_0 = arith.constant 0 : i32
    return %arg0, %c0_i32 : i32, i32
  }
  func.func @transform_1(%arg0: i32) -> (i32, i32) {
    %c0_i32 = arith.constant 0 : i32
    %c0_i32_0 = arith.constant 0 : i32
    %c0_i32_1 = arith.constant 0 : i32
    return %c0_i32, %c0_i32_0 : i32, i32
  }
  func.func @transform_2(%arg0: i32) -> (i32, i32) {
    %c0_i32 = arith.constant 0 : i32
    %c0_i32_0 = arith.constant 0 : i32
    %c0_i32_1 = arith.constant 0 : i32
    return %c0_i32, %c0_i32_0 : i32, i32
  }
  func.func @transform_3(%arg0: i32) -> (i32, i32) {
    %c0_i32 = arith.constant 0 : i32
    %c0_i32_0 = arith.constant 0 : i32
    return %arg0, %c0_i32 : i32, i32
  }
}

module attributes {stable_mosaic.version = 11 : i64} {
  func.func @_mm_bias_kernel(%arg0: i32, %arg1: memref<64x48xbf16, #tpu.memory_space<vmem>>, %arg2: memref<48x32xbf16, #tpu.memory_space<vmem>>, %arg3: memref<1x32xf32, #tpu.memory_space<vmem>>, %arg4: memref<64x32xf32, #tpu.memory_space<vmem>>) attributes {dimension_semantics = [#tpu.dimension_semantics<parallel>], iteration_bounds = array<i64: 2>, scalar_prefetch = 0 : i64, scratch_operands = 0 : i64, tpu.core_type = #tpu.core_type<tc>, window_params = [{transform_indices = @transform_0, window_bounds = array<i64: 64, 48>}, {pipeline_mode = #tpu.pipeline_mode<synchronous>, transform_indices = @transform_1, window_bounds = array<i64: 48, 32>}, {pipeline_mode = #tpu.pipeline_mode<synchronous>, transform_indices = @transform_2, window_bounds = array<i64: 1, 32>}, {transform_indices = @transform_3, window_bounds = array<i64: 64, 32>}]} {
    %c0 = arith.constant 0 : index
    %c0_0 = arith.constant 0 : index
    %0 = vector.load %arg1[%c0, %c0_0] : memref<64x48xbf16, #tpu.memory_space<vmem>>, vector<64x48xbf16>
    %c0_1 = arith.constant 0 : index
    %c0_2 = arith.constant 0 : index
    %1 = vector.load %arg2[%c0_1, %c0_2] : memref<48x32xbf16, #tpu.memory_space<vmem>>, vector<48x32xbf16>
    %cst = arith.constant dense<0.000000e+00> : vector<64x32xf32>
    %2 = tpu.matmul %0, %1, %cst {dimension_numbers = #tpu.dot_dimension_numbers<[1], [0], [0], [1], [0, 0, 1, 1], [], []>} : vector<64x48xbf16>, vector<48x32xbf16>, vector<64x32xf32> -> vector<64x32xf32>
    %c0_3 = arith.constant 0 : index
    %c0_4 = arith.constant 0 : index
    %3 = vector.load %arg3[%c0_3, %c0_4] : memref<1x32xf32, #tpu.memory_space<vmem>>, vector<1x32xf32>
    %4 = vector.broadcast %3 : vector<1x32xf32> to vector<64x32xf32>
    %5 = arith.addf %2, %4 : vector<64x32xf32>
    %c0_5 = arith.constant 0 : index
    %c0_6 = arith.constant 0 : index
    %6 = vector.load %arg4[%c0_5, %c0_6] : memref<64x32xf32, #tpu.memory_space<vmem>>, vector<64x32xf32>
    tpu.vector_store %arg4[%c0_5, %c0_6], %5 {strides = array<i32>} : memref<64x32xf32, #tpu.memory_space<vmem>>, vector<64x32xf32>,
    return
  }
  func.func @transform_0(%arg0: i32) -> (i32, i32) {
    %c0_i32 = arith.constant 0 : i32
    %c0_i32_0 = arith.constant 0 : i32
    return %arg0, %c0_i32 : i32, i32
  }
  func.func @transform_1(%arg0: i32) -> (i32, i32) {
    %c0_i32 = arith.constant 0 : i32
    %c0_i32_0 = arith.constant 0 : i32
    %c0_i32_1 = arith.constant 0 : i32
    return %c0_i32, %c0_i32_0 : i32, i32
  }
  func.func @transform_2(%arg0: i32) -> (i32, i32) {
    %c0_i32 = arith.constant 0 : i32
    %c0_i32_0 = arith.constant 0 : i32
    %c0_i32_1 = arith.constant 0 : i32
    return %c0_i32, %c0_i32_0 : i32, i32
  }
  func.func @transform_3(%arg0: i32) -> (i32, i32) {
    %c0_i32 = arith.constant 0 : i32
    %c0_i32_0 = arith.constant 0 : i32
    return %arg0, %c0_i32 : i32, i32
  }
}

module attributes {stable_mosaic.version = 11 : i64} {
  func.func @_mm_bias_kernel(%arg0: i32, %arg1: memref<256x288xbf16, #tpu.memory_space<vmem>>, %arg2: memref<288x16xbf16, #tpu.memory_space<vmem>>, %arg3: memref<1x16xf32, #tpu.memory_space<vmem>>, %arg4: memref<256x16xf32, #tpu.memory_space<vmem>>) attributes {dimension_semantics = [#tpu.dimension_semantics<parallel>], iteration_bounds = array<i64: 2>, scalar_prefetch = 0 : i64, scratch_operands = 0 : i64, tpu.core_type = #tpu.core_type<tc>, window_params = [{transform_indices = @transform_0, window_bounds = array<i64: 256, 288>}, {pipeline_mode = #tpu.pipeline_mode<synchronous>, transform_indices = @transform_1, window_bounds = array<i64: 288, 16>}, {pipeline_mode = #tpu.pipeline_mode<synchronous>, transform_indices = @transform_2, window_bounds = array<i64: 1, 16>}, {transform_indices = @transform_3, window_bounds = array<i64: 256, 16>}]} {
    %c0 = arith.constant 0 : index
    %c0_0 = arith.constant 0 : index
    %0 = vector.load %arg1[%c0, %c0_0] : memref<256x288xbf16, #tpu.memory_space<vmem>>, vector<256x288xbf16>
    %c0_1 = arith.constant 0 : index
    %c0_2 = arith.constant 0 : index
    %1 = vector.load %arg2[%c0_1, %c0_2] : memref<288x16xbf16, #tpu.memory_space<vmem>>, vector<288x16xbf16>
    %cst = arith.constant dense<0.000000e+00> : vector<256x16xf32>
    %2 = tpu.matmul %0, %1, %cst {dimension_numbers = #tpu.dot_dimension_numbers<[1], [0], [0], [1], [0, 0, 1, 1], [], []>} : vector<256x288xbf16>, vector<288x16xbf16>, vector<256x16xf32> -> vector<256x16xf32>
    %c0_3 = arith.constant 0 : index
    %c0_4 = arith.constant 0 : index
    %3 = vector.load %arg3[%c0_3, %c0_4] : memref<1x16xf32, #tpu.memory_space<vmem>>, vector<1x16xf32>
    %4 = vector.broadcast %3 : vector<1x16xf32> to vector<256x16xf32>
    %5 = arith.addf %2, %4 : vector<256x16xf32>
    %c0_5 = arith.constant 0 : index
    %c0_6 = arith.constant 0 : index
    %6 = vector.load %arg4[%c0_5, %c0_6] : memref<256x16xf32, #tpu.memory_space<vmem>>, vector<256x16xf32>
    tpu.vector_store %arg4[%c0_5, %c0_6], %5 {strides = array<i32>} : memref<256x16xf32, #tpu.memory_space<vmem>>, vector<256x16xf32>,
    return
  }
  func.func @transform_0(%arg0: i32) -> (i32, i32) {
    %c0_i32 = arith.constant 0 : i32
    %c0_i32_0 = arith.constant 0 : i32
    return %arg0, %c0_i32 : i32, i32
  }
  func.func @transform_1(%arg0: i32) -> (i32, i32) {
    %c0_i32 = arith.constant 0 : i32
    %c0_i32_0 = arith.constant 0 : i32
    %c0_i32_1 = arith.constant 0 : i32
    return %c0_i32, %c0_i32_0 : i32, i32
  }
  func.func @transform_2(%arg0: i32) -> (i32, i32) {
    %c0_i32 = arith.constant 0 : i32
    %c0_i32_0 = arith.constant 0 : i32
    %c0_i32_1 = arith.constant 0 : i32
    return %c0_i32, %c0_i32_0 : i32, i32
  }
  func.func @transform_3(%arg0: i32) -> (i32, i32) {
    %c0_i32 = arith.constant 0 : i32
    %c0_i32_0 = arith.constant 0 : i32
    return %arg0, %c0_i32 : i32, i32
  }
}

module attributes {stable_mosaic.version = 11 : i64} {
  func.func @_mm_bias_kernel(%arg0: i32, %arg1: memref<256x32xbf16, #tpu.memory_space<vmem>>, %arg2: memref<32x16xbf16, #tpu.memory_space<vmem>>, %arg3: memref<1x16xf32, #tpu.memory_space<vmem>>, %arg4: memref<256x16xf32, #tpu.memory_space<vmem>>) attributes {dimension_semantics = [#tpu.dimension_semantics<parallel>], iteration_bounds = array<i64: 2>, scalar_prefetch = 0 : i64, scratch_operands = 0 : i64, tpu.core_type = #tpu.core_type<tc>, window_params = [{transform_indices = @transform_0, window_bounds = array<i64: 256, 32>}, {pipeline_mode = #tpu.pipeline_mode<synchronous>, transform_indices = @transform_1, window_bounds = array<i64: 32, 16>}, {pipeline_mode = #tpu.pipeline_mode<synchronous>, transform_indices = @transform_2, window_bounds = array<i64: 1, 16>}, {transform_indices = @transform_3, window_bounds = array<i64: 256, 16>}]} {
    %c0 = arith.constant 0 : index
    %c0_0 = arith.constant 0 : index
    %0 = vector.load %arg1[%c0, %c0_0] : memref<256x32xbf16, #tpu.memory_space<vmem>>, vector<256x32xbf16>
    %c0_1 = arith.constant 0 : index
    %c0_2 = arith.constant 0 : index
    %1 = vector.load %arg2[%c0_1, %c0_2] : memref<32x16xbf16, #tpu.memory_space<vmem>>, vector<32x16xbf16>
    %cst = arith.constant dense<0.000000e+00> : vector<256x16xf32>
    %2 = tpu.matmul %0, %1, %cst {dimension_numbers = #tpu.dot_dimension_numbers<[1], [0], [0], [1], [0, 0, 1, 1], [], []>} : vector<256x32xbf16>, vector<32x16xbf16>, vector<256x16xf32> -> vector<256x16xf32>
    %c0_3 = arith.constant 0 : index
    %c0_4 = arith.constant 0 : index
    %3 = vector.load %arg3[%c0_3, %c0_4] : memref<1x16xf32, #tpu.memory_space<vmem>>, vector<1x16xf32>
    %4 = vector.broadcast %3 : vector<1x16xf32> to vector<256x16xf32>
    %5 = arith.addf %2, %4 : vector<256x16xf32>
    %c0_5 = arith.constant 0 : index
    %c0_6 = arith.constant 0 : index
    %6 = vector.load %arg4[%c0_5, %c0_6] : memref<256x16xf32, #tpu.memory_space<vmem>>, vector<256x16xf32>
    tpu.vector_store %arg4[%c0_5, %c0_6], %5 {strides = array<i32>} : memref<256x16xf32, #tpu.memory_space<vmem>>, vector<256x16xf32>,
    return
  }
  func.func @transform_0(%arg0: i32) -> (i32, i32) {
    %c0_i32 = arith.constant 0 : i32
    %c0_i32_0 = arith.constant 0 : i32
    return %arg0, %c0_i32 : i32, i32
  }
  func.func @transform_1(%arg0: i32) -> (i32, i32) {
    %c0_i32 = arith.constant 0 : i32
    %c0_i32_0 = arith.constant 0 : i32
    %c0_i32_1 = arith.constant 0 : i32
    return %c0_i32, %c0_i32_0 : i32, i32
  }
  func.func @transform_2(%arg0: i32) -> (i32, i32) {
    %c0_i32 = arith.constant 0 : i32
    %c0_i32_0 = arith.constant 0 : i32
    %c0_i32_1 = arith.constant 0 : i32
    return %c0_i32, %c0_i32_0 : i32, i32
  }
  func.func @transform_3(%arg0: i32) -> (i32, i32) {
    %c0_i32 = arith.constant 0 : i32
    %c0_i32_0 = arith.constant 0 : i32
    return %arg0, %c0_i32 : i32, i32
  }
}

module attributes {stable_mosaic.version = 11 : i64} {
  func.func @_mm_bias_kernel(%arg0: i32, %arg1: memref<256x16xbf16, #tpu.memory_space<vmem>>, %arg2: memref<16x3xbf16, #tpu.memory_space<vmem>>, %arg3: memref<1x3xf32, #tpu.memory_space<vmem>>, %arg4: memref<256x3xf32, #tpu.memory_space<vmem>>) attributes {dimension_semantics = [#tpu.dimension_semantics<parallel>], iteration_bounds = array<i64: 2>, scalar_prefetch = 0 : i64, scratch_operands = 0 : i64, tpu.core_type = #tpu.core_type<tc>, window_params = [{transform_indices = @transform_0, window_bounds = array<i64: 256, 16>}, {pipeline_mode = #tpu.pipeline_mode<synchronous>, transform_indices = @transform_1, window_bounds = array<i64: 16, 3>}, {pipeline_mode = #tpu.pipeline_mode<synchronous>, transform_indices = @transform_2, window_bounds = array<i64: 1, 3>}, {transform_indices = @transform_3, window_bounds = array<i64: 256, 3>}]} {
    %c0 = arith.constant 0 : index
    %c0_0 = arith.constant 0 : index
    %0 = vector.load %arg1[%c0, %c0_0] : memref<256x16xbf16, #tpu.memory_space<vmem>>, vector<256x16xbf16>
    %c0_1 = arith.constant 0 : index
    %c0_2 = arith.constant 0 : index
    %1 = vector.load %arg2[%c0_1, %c0_2] : memref<16x3xbf16, #tpu.memory_space<vmem>>, vector<16x3xbf16>
    %cst = arith.constant dense<0.000000e+00> : vector<256x3xf32>
    %2 = tpu.matmul %0, %1, %cst {dimension_numbers = #tpu.dot_dimension_numbers<[1], [0], [0], [1], [0, 0, 1, 1], [], []>} : vector<256x16xbf16>, vector<16x3xbf16>, vector<256x3xf32> -> vector<256x3xf32>
    %c0_3 = arith.constant 0 : index
    %c0_4 = arith.constant 0 : index
    %3 = vector.load %arg3[%c0_3, %c0_4] : memref<1x3xf32, #tpu.memory_space<vmem>>, vector<1x3xf32>
    %4 = vector.broadcast %3 : vector<1x3xf32> to vector<256x3xf32>
    %5 = arith.addf %2, %4 : vector<256x3xf32>
    %c0_5 = arith.constant 0 : index
    %c0_6 = arith.constant 0 : index
    %6 = vector.load %arg4[%c0_5, %c0_6] : memref<256x3xf32, #tpu.memory_space<vmem>>, vector<256x3xf32>
    tpu.vector_store %arg4[%c0_5, %c0_6], %5 {strides = array<i32>} : memref<256x3xf32, #tpu.memory_space<vmem>>, vector<256x3xf32>,
    return
  }
  func.func @transform_0(%arg0: i32) -> (i32, i32) {
    %c0_i32 = arith.constant 0 : i32
    %c0_i32_0 = arith.constant 0 : i32
    return %arg0, %c0_i32 : i32, i32
  }
  func.func @transform_1(%arg0: i32) -> (i32, i32) {
    %c0_i32 = arith.constant 0 : i32
    %c0_i32_0 = arith.constant 0 : i32
    %c0_i32_1 = arith.constant 0 : i32
    return %c0_i32, %c0_i32_0 : i32, i32
  }
  func.func @transform_2(%arg0: i32) -> (i32, i32) {
    %c0_i32 = arith.constant 0 : i32
    %c0_i32_0 = arith.constant 0 : i32
    %c0_i32_1 = arith.constant 0 : i32
    return %c0_i32, %c0_i32_0 : i32, i32
  }
  func.func @transform_3(%arg0: i32) -> (i32, i32) {
    %c0_i32 = arith.constant 0 : i32
    %c0_i32_0 = arith.constant 0 : i32
    return %arg0, %c0_i32 : i32, i32
  }
}

</mosaic_0001>

<bundles_post_ra>
// kernel: unet_forward.66
= control target key start
LH: loop header
LB: loop body
LE: loop exit
PB: predicated region body
PF: predicated region fallthrough
CT: control target
= control target key end

     0   :  { %s933_s12 = smov 0   ;;  %s1140_s0 = inlined_call_operand.vmem [shape: bf16[512,147], index: 0, kind: input, shape index: {}]   ;;  %s1141_s1 = inlined_call_operand.vmem [shape: bf16[147,16], index: 1, kind: input, shape index: {}]   ;;  %s1142_s2 = inlined_call_operand.vmem [shape: f32[1,16], index: 2, kind: input, shape index: {}]   ;;  %s1143_s3 = inlined_call_operand.vmem [shape: f32[512,16], index: 3, kind: output, shape index: {}]  }
   0x1 LB: > { %s743_s13 = sadd.s32 4294967295, %s909_s12   ;;  %p747_p0 = scmp.ge.s32.totalorder %s909_s12, 1  ;;  %s909_s12 = sphi %s933_s12, %s13_s12  }
   0x2   : > { %p139_p1 = scmp.lt.s32.totalorder %s909_s12, 3 }
   0x4   : > { %p140_p2 = pnand %p747_p0, %p139_p1 }
   0x5   : > { %v845_v0 = vld [vmem:[%s1141_s1] sm:$0xff] (!%p140_p2)   ;;  %v911_v1 = vmov (!%p140_p2), 0   ;;  %v846_v2 = vld [vmem:[%s1141_s1 + $0x8] sm:$0xff] (!%p140_p2)   ;;  %v847_v3 = vld [vmem:[%s1141_s1 + $0x10] sm:$0xff] (!%p140_p2)   ;;  %s748_s20 = sshll.u32 (!%p140_p2), %s743_s13, 5  ;;  %vm437_vm0 = vcmask (!%p140_p2), 154624  }
   0x6   : > { %143 = sbr.rel (%p140_p2) target bundleno = 319 (0x13f), region = 32  ;;  %493 = vmatprep.subr.bf16.mxu0 (!%p140_p2), %v911_v1  ;;  %815 = vmatprep.subr.bf16.mxu1 (!%p140_p2), %v911_v1  ;;  %p165_p3 = scmp.lt.s32.totalorder (!%p140_p2), %s748_s20, 63  ;;  %v848_v4 = vld [vmem:[%s1141_s1 + $0x18] sm:$0xff] (!%p140_p2)   ;;  %v849_v5 = vld [vmem:[%s1141_s1 + $0x20] sm:$0xff] (!%p140_p2)   ;;  %v850_v8 = vld [vmem:[%s1141_s1 + $0x28] sm:$0xff] (!%p140_p2)   ;;  %vm486_vm1 = vcmask (!%p140_p2), 1040384  }
   0x7   : > { %494 = vmatpush1.bf16.msra.mxu0 (!%p140_p2), %v845_v0  ;;  %825 = vmatpush1.bf16.msra.mxu1 (!%p140_p2), %v845_v0  ;;  %v851_v9 = vld [vmem:[%s1141_s1 + $0x30] sm:$0xff] (!%p140_p2)   ;;  %v852_v10 = vld [vmem:[%s1141_s1 + $0x38] sm:$0xff] (!%p140_p2)   ;;  %vm487_vm2 = vcmask (!%p140_p2), 1041408   ;;  %v912_v11 = vmov (!%p140_p2), 65535   ;;  %v853_v13 = vld [vmem:[%s1141_s1 + $0x40] sm:$0xff] (!%p140_p2)   ;;  %vm654_vm3 = vcmask (!%p140_p2), 130048  }
   0x8   : > { %495 = vmatprep.subr.bf16.mxu0 (!%p140_p2), %v911_v1  ;;  %816 = vmatprep.subr.bf16.mxu1 (!%p140_p2), %v911_v1  ;;  %v488_v12 = vsel (!%p140_p2), %vm486_vm1, 4294967295, %v912_v11  ;;  %v854_v14 = vld [vmem:[%s1141_s1 + $0x48] ss:$0 sps:$4 sm:$0x33] (!%p140_p2)   ;;  %v1032_v47 = vld [vmem:[%s1142_s2] ss:$0 sm:$0xff] (!%p140_p2) }
   0x9   : > { %v489_v15 = vsel (!%p140_p2), %vm487_vm2, %v488_v12, 0 }
   0xa   : > { %v491_v16 = vand.u32 (!%p140_p2), %v854_v14, %v489_v15 }
   0xb   : > { %496 = vmatpush1.bf16.msra.mxu0 (!%p140_p2), %v846_v2  ;;  %826 = vmatpush1.bf16.msra.mxu1 (!%p140_p2), %v846_v2 }
   0xc   : > { %497 = vmatprep.subr.bf16.mxu0 (!%p140_p2), %v911_v1  ;;  %817 = vmatprep.subr.bf16.mxu1 (!%p140_p2), %v911_v1 }
   0xd   : > { %s1145_s20 = smov (!%p165_p3, %s748_s20), 63 }
   0xe   : > { %s814_s23 = sshll.u32 %s1145_s20, 3 }
   0xf   : > { %498 = vmatpush1.bf16.msra.mxu0 %v847_v3  ;;  %827 = vmatpush1.bf16.msra.mxu1 %v847_v3  ;;  %s961_s26 = scalar_lea.vmem %s1140_s0, %s814_s23  ;;  %s1039_s17 = scalar_lea.vmem %s1143_s3, %s814_s23 }
  0x10   : > { %499 = vmatprep.subr.bf16.mxu0 %v911_v1  ;;  %818 = vmatprep.subr.bf16.mxu1 %v911_v1  ;;  %v857_v6 = vld [vmem:[%s961_s26 + $0x4] ss:$8 sps:$4 sm:$0xff]   ;;  %v855_v17 = vld [vmem:[%s961_s26] ss:$8 sps:$4 sm:$0xff]   ;;  %v861_v19 = vld [vmem:[%s961_s26 + $0x14] ss:$8 sps:$4 sm:$0xff]  }
  0x11   : > { %v860_v7 = vld [vmem:[%s961_s26 + $0x84] ss:$8 sps:$4 sm:$0xff]   ;;  %796 = vmatprep.mubr.msk.bf16.mxu0 %vm437_vm0, %v857_v6  ;;  %v858_v18 = vld [vmem:[%s961_s26 + $0x80] ss:$8 sps:$4 sm:$0xff]   ;;  %v863_v20 = vld [vmem:[%s961_s26 + $0x94] ss:$8 sps:$4 sm:$0xff]  }
  0x12   : > { %804 = vmatprep.mubr.msk.bf16.mxu1 %vm437_vm0, %v860_v7  ;;  %v865_v21 = vld [vmem:[%s961_s26 + $0x10] ss:$8 sps:$4 sm:$0xff]   ;;  %v867_v23 = vld [vmem:[%s961_s26 + $0x24] ss:$8 sps:$4 sm:$0xff]   ;;  %v871_v25 = vld [vmem:[%s961_s26 + $0x20] ss:$8 sps:$4 sm:$0xff]  }
  0x13   : > { %500 = vmatpush1.bf16.msra.mxu0 %v848_v4  ;;  %828 = vmatpush1.bf16.msra.mxu1 %v848_v4  ;;  %v866_v22 = vld [vmem:[%s961_s26 + $0x90] ss:$8 sps:$4 sm:$0xff]   ;;  %v869_v24 = vld [vmem:[%s961_s26 + $0xa4] ss:$8 sps:$4 sm:$0xff]   ;;  %v872_v26 = vld [vmem:[%s961_s26 + $0xa0] ss:$8 sps:$4 sm:$0xff]  }
  0x14   : > { %501 = vmatprep.subr.bf16.mxu0 %v911_v1  ;;  %819 = vmatprep.subr.bf16.mxu1 %v911_v1  ;;  %v873_v27 = vld [vmem:[%s961_s26 + $0x34] ss:$8 sps:$4 sm:$0xff]   ;;  %v877_v29 = vld [vmem:[%s961_s26 + $0x30] ss:$8 sps:$4 sm:$0xff]   ;;  %v879_v31 = vld [vmem:[%s961_s26 + $0x44] ss:$8 sps:$4 sm:$0xff]  }
  0x15   : > { %v875_v28 = vld [vmem:[%s961_s26 + $0xb4] ss:$8 sps:$4 sm:$0xff]   ;;  %v878_v30 = vld [vmem:[%s961_s26 + $0xb0] ss:$8 sps:$4 sm:$0xff]   ;;  %v881_v32 = vld [vmem:[%s961_s26 + $0xc4] ss:$8 sps:$4 sm:$0xff]  }
  0x16   : > { %v883_v33 = vld [vmem:[%s961_s26 + $0x40] ss:$8 sps:$4 sm:$0xff]   ;;  %v885_v35 = vld [vmem:[%s961_s26 + $0x54] ss:$8 sps:$4 sm:$0xff]   ;;  %v889_v37 = vld [vmem:[%s961_s26 + $0x50] ss:$8 sps:$4 sm:$0xff]  }
  0x17   : > { %502 = vmatpush1.bf16.msra.mxu0 %v849_v5  ;;  %829 = vmatpush1.bf16.msra.mxu1 %v849_v5  ;;  %v884_v34 = vld [vmem:[%s961_s26 + $0xc0] ss:$8 sps:$4 sm:$0xff]   ;;  %v887_v36 = vld [vmem:[%s961_s26 + $0xd4] ss:$8 sps:$4 sm:$0xff]   ;;  %v890_v38 = vld [vmem:[%s961_s26 + $0xd0] ss:$8 sps:$4 sm:$0xff]  }
  0x18   : > { %503 = vmatprep.subr.bf16.mxu0 %v911_v1  ;;  %820 = vmatprep.subr.bf16.mxu1 %v911_v1  ;;  %v891_v39 = vld [vmem:[%s961_s26 + $0x64] ss:$8 sps:$4 sm:$0xff]   ;;  %v895_v41 = vld [vmem:[%s961_s26 + $0x60] ss:$8 sps:$4 sm:$0xff]   ;;  %v897_v43 = vld [vmem:[%s961_s26 + $0x74] ss:$8 sps:$4 sm:$0xff]  }
  0x19   : > { %v893_v40 = vld [vmem:[%s961_s26 + $0xe4] ss:$8 sps:$4 sm:$0xff]   ;;  %v896_v42 = vld [vmem:[%s961_s26 + $0xe0] ss:$8 sps:$4 sm:$0xff]   ;;  %v899_v44 = vld [vmem:[%s961_s26 + $0xf4] ss:$8 sps:$4 sm:$0xff]  }
  0x1a   : > { %v901_v45 = vld [vmem:[%s961_s26 + $0x70] ss:$8 sps:$4 sm:$0xff]  }
  0x1b   : > { %504 = vmatpush1.bf16.msra.mxu0 %v850_v8  ;;  %830 = vmatpush1.bf16.msra.mxu1 %v850_v8  ;;  %v902_v46 = vld [vmem:[%s961_s26 + $0xf0] ss:$8 sps:$4 sm:$0xff]  }
  0x1c   : > { %505 = vmatprep.subr.bf16.mxu0 %v911_v1  ;;  %821 = vmatprep.subr.bf16.mxu1 %v911_v1 }
  0x1f   : > { %506 = vmatpush1.bf16.msra.mxu0 %v851_v9  ;;  %831 = vmatpush1.bf16.msra.mxu1 %v851_v9 }
  0x20   : > { %507 = vmatprep.subr.bf16.mxu0 %v911_v1  ;;  %822 = vmatprep.subr.bf16.mxu1 %v911_v1 }
  0x23   : > { %508 = vmatpush1.bf16.msra.mxu0 %v852_v10  ;;  %832 = vmatpush1.bf16.msra.mxu1 %v852_v10 }
  0x24   : > { %509 = vmatprep.subr.bf16.mxu0 %v911_v1  ;;  %823 = vmatprep.subr.bf16.mxu1 %v911_v1 }
  0x27   : > { %510 = vmatpush1.bf16.msra.mxu0 %v853_v13  ;;  %833 = vmatpush1.bf16.msra.mxu1 %v853_v13 }
  0x28   : > { %511 = vmatprep.subr.bf16.mxu0 %v911_v1  ;;  %824 = vmatprep.subr.bf16.mxu1 %v911_v1 }
  0x2b   : > { %512 = vmatpush1.bf16.msra.mxu0 %v491_v16  ;;  %834 = vmatpush1.bf16.msra.mxu1 %v491_v16 }
  0x2e   : > { %526 = vmatmul.mubr.bf16.vlgmr.msra.gmra.mrb[0].mxu0 %v855_v17  ;;  %590 = vmatmul.mubr.bf16.vlgmr.msra.gmra.mrb[0].mxu1 %v858_v18 }
  0x2f   : > { %797 = vmatprep.mubr.msk.bf16.mxu0 %vm437_vm0, %v861_v19  ;;  %805 = vmatprep.mubr.msk.bf16.mxu1 %vm437_vm0, %v863_v20 }
  0x36   : > { %534 = vmatmul.mubr.bf16.gmra.mrb[4].mxu0 %v865_v21  ;;  %598 = vmatmul.mubr.bf16.gmra.mrb[4].mxu1 %v866_v22 }
  0x37   : > { %798 = vmatprep.mubr.msk.bf16.mxu0 %vm437_vm0, %v867_v23  ;;  %806 = vmatprep.mubr.msk.bf16.mxu1 %vm437_vm0, %v869_v24 }
  0x3e   : > { %542 = vmatmul.mubr.bf16.gmra.mrb[8].mxu0 %v871_v25  ;;  %606 = vmatmul.mubr.bf16.gmra.mrb[8].mxu1 %v872_v26 }
  0x3f   : > { %799 = vmatprep.mubr.msk.bf16.mxu0 %vm437_vm0, %v873_v27  ;;  %807 = vmatprep.mubr.msk.bf16.mxu1 %vm437_vm0, %v875_v28 }
  0x46   : > { %550 = vmatmul.mubr.bf16.gmra.mrb[12].mxu0 %v877_v29  ;;  %614 = vmatmul.mubr.bf16.gmra.mrb[12].mxu1 %v878_v30 }
  0x47   : > { %800 = vmatprep.mubr.msk.bf16.mxu0 %vm437_vm0, %v879_v31  ;;  %808 = vmatprep.mubr.msk.bf16.mxu1 %vm437_vm0, %v881_v32 }
  0x4e   : > { %558 = vmatmul.mubr.bf16.gmra.mrb[16].mxu0 %v883_v33  ;;  %622 = vmatmul.mubr.bf16.gmra.mrb[16].mxu1 %v884_v34 }
  0x4f   : > { %801 = vmatprep.mubr.msk.bf16.mxu0 %vm437_vm0, %v885_v35  ;;  %809 = vmatprep.mubr.msk.bf16.mxu1 %vm437_vm0, %v887_v36 }
  0x56   : > { %566 = vmatmul.mubr.bf16.gmra.mrb[20].mxu0 %v889_v37  ;;  %630 = vmatmul.mubr.bf16.gmra.mrb[20].mxu1 %v890_v38 }
  0x57   : > { %802 = vmatprep.mubr.msk.bf16.mxu0 %vm437_vm0, %v891_v39  ;;  %810 = vmatprep.mubr.msk.bf16.mxu1 %vm437_vm0, %v893_v40 }
  0x5e   : > { %574 = vmatmul.mubr.bf16.gmra.mrb[24].mxu0 %v895_v41  ;;  %638 = vmatmul.mubr.bf16.gmra.mrb[24].mxu1 %v896_v42 }
  0x5f   : > { %803 = vmatprep.mubr.msk.bf16.mxu0 %vm437_vm0, %v897_v43  ;;  %811 = vmatprep.mubr.msk.bf16.mxu1 %vm437_vm0, %v899_v44 }
  0x66   : > { %582 = vmatmul.mubr.bf16.gmra.mrb[28].mxu0 %v901_v45  ;;  %646 = vmatmul.mubr.bf16.gmra.mrb[28].mxu1 %v902_v46 }
 0x101   : > { %v527_v48 = vpop.f32.mrb[0].mxu0  ;;  %v591_v49 = vpop.f32.mrb[0].mxu1 }
 0x102   : > { %v528_v50 = vadd.f32 %v1032_v47, %v527_v48  ;;  %v592_v51 = vadd.f32 %v1032_v47, %v591_v49  ;;  %v529_v52 = vpop.f32.mrb[1].mxu0  ;;  %v593_v53 = vpop.f32.mrb[1].mxu1 }
 0x103   : > { %v530_v54 = vpop.f32.mrb[2].mxu0  ;;  %v594_v55 = vpop.f32.mrb[2].mxu1 }
 0x104   : > { %655 = vst.msk [vmem:[%s1039_s17] sm:$0xff] %vm654_vm3, %v528_v50  ;;  %671 = vst.msk [vmem:[%s1039_s17 + $0x80] sm:$0xff] %vm654_vm3, %v592_v51  ;;  %v531_v56 = vadd.f32 %v1032_v47, %v530_v54  ;;  %v595_v57 = vadd.f32 %v1032_v47, %v594_v55  ;;  %v532_v58 = vpop.f32.mrb[3].mxu0  ;;  %v596_v59 = vpop.f32.mrb[3].mxu1 }
 0x106   : > { %656 = vst.msk [vmem:[%s1039_s17 + $0x8] sm:$0xff] %vm654_vm3, %v531_v56  ;;  %672 = vst.msk [vmem:[%s1039_s17 + $0x88] sm:$0xff] %vm654_vm3, %v595_v57 }
 0x109   : > { %v535_v60 = vpop.f32.mrb[4].mxu0  ;;  %v599_v61 = vpop.f32.mrb[4].mxu1 }
 0x10a   : > { %v536_v62 = vadd.f32 %v1032_v47, %v535_v60  ;;  %v600_v63 = vadd.f32 %v1032_v47, %v599_v61  ;;  %v537_v0 = vpop.f32.mrb[5].mxu0  ;;  %v601_v1 = vpop.f32.mrb[5].mxu1 }
 0x10b   : > { %v538_v2 = vpop.f32.mrb[6].mxu0  ;;  %v602_v3 = vpop.f32.mrb[6].mxu1 }
 0x10c   : > { %657 = vst.msk [vmem:[%s1039_s17 + $0x10] sm:$0xff] %vm654_vm3, %v536_v62  ;;  %673 = vst.msk [vmem:[%s1039_s17 + $0x90] sm:$0xff] %vm654_vm3, %v600_v63  ;;  %v539_v4 = vadd.f32 %v1032_v47, %v538_v2  ;;  %v603_v5 = vadd.f32 %v1032_v47, %v602_v3  ;;  %v540_v6 = vpop.f32.mrb[7].mxu0  ;;  %v604_v7 = vpop.f32.mrb[7].mxu1 }
 0x10e   : > { %658 = vst.msk [vmem:[%s1039_s17 + $0x18] sm:$0xff] %vm654_vm3, %v539_v4  ;;  %674 = vst.msk [vmem:[%s1039_s17 + $0x98] sm:$0xff] %vm654_vm3, %v603_v5 }
 0x111   : > { %v543_v8 = vpop.f32.mrb[8].mxu0  ;;  %v607_v9 = vpop.f32.mrb[8].mxu1 }
 0x112   : > { %v544_v10 = vadd.f32 %v1032_v47, %v543_v8  ;;  %v608_v11 = vadd.f32 %v1032_v47, %v607_v9  ;;  %v545_v12 = vpop.f32.mrb[9].mxu0  ;;  %v609_v13 = vpop.f32.mrb[9].mxu1 }
 0x113   : > { %v546_v14 = vpop.f32.mrb[10].mxu0  ;;  %v610_v15 = vpop.f32.mrb[10].mxu1 }
 0x114   : > { %659 = vst.msk [vmem:[%s1039_s17 + $0x20] sm:$0xff] %vm654_vm3, %v544_v10  ;;  %675 = vst.msk [vmem:[%s1039_s17 + $0xa0] sm:$0xff] %vm654_vm3, %v608_v11  ;;  %v547_v16 = vadd.f32 %v1032_v47, %v546_v14  ;;  %v611_v17 = vadd.f32 %v1032_v47, %v610_v15  ;;  %v548_v18 = vpop.f32.mrb[11].mxu0  ;;  %v612_v19 = vpop.f32.mrb[11].mxu1 }
 0x116   : > { %660 = vst.msk [vmem:[%s1039_s17 + $0x28] sm:$0xff] %vm654_vm3, %v547_v16  ;;  %676 = vst.msk [vmem:[%s1039_s17 + $0xa8] sm:$0xff] %vm654_vm3, %v611_v17 }
 0x119   : > { %v551_v20 = vpop.f32.mrb[12].mxu0  ;;  %v615_v21 = vpop.f32.mrb[12].mxu1 }
 0x11a   : > { %v552_v22 = vadd.f32 %v1032_v47, %v551_v20  ;;  %v616_v23 = vadd.f32 %v1032_v47, %v615_v21  ;;  %v553_v24 = vpop.f32.mrb[13].mxu0  ;;  %v617_v25 = vpop.f32.mrb[13].mxu1 }
 0x11b   : > { %v554_v26 = vpop.f32.mrb[14].mxu0  ;;  %v618_v27 = vpop.f32.mrb[14].mxu1 }
 0x11c   : > { %661 = vst.msk [vmem:[%s1039_s17 + $0x30] sm:$0xff] %vm654_vm3, %v552_v22  ;;  %677 = vst.msk [vmem:[%s1039_s17 + $0xb0] sm:$0xff] %vm654_vm3, %v616_v23  ;;  %v555_v28 = vadd.f32 %v1032_v47, %v554_v26  ;;  %v619_v29 = vadd.f32 %v1032_v47, %v618_v27  ;;  %v556_v30 = vpop.f32.mrb[15].mxu0  ;;  %v620_v31 = vpop.f32.mrb[15].mxu1 }
 0x11e   : > { %662 = vst.msk [vmem:[%s1039_s17 + $0x38] sm:$0xff] %vm654_vm3, %v555_v28  ;;  %678 = vst.msk [vmem:[%s1039_s17 + $0xb8] sm:$0xff] %vm654_vm3, %v619_v29 }
 0x121   : > { %v559_v32 = vpop.f32.mrb[16].mxu0  ;;  %v623_v33 = vpop.f32.mrb[16].mxu1 }
 0x122   : > { %v560_v34 = vadd.f32 %v1032_v47, %v559_v32  ;;  %v624_v35 = vadd.f32 %v1032_v47, %v623_v33  ;;  %v561_v36 = vpop.f32.mrb[17].mxu0  ;;  %v625_v37 = vpop.f32.mrb[17].mxu1 }
 0x123   : > { %v562_v38 = vpop.f32.mrb[18].mxu0  ;;  %v626_v39 = vpop.f32.mrb[18].mxu1 }
 0x124   : > { %663 = vst.msk [vmem:[%s1039_s17 + $0x40] sm:$0xff] %vm654_vm3, %v560_v34  ;;  %679 = vst.msk [vmem:[%s1039_s17 + $0xc0] sm:$0xff] %vm654_vm3, %v624_v35  ;;  %v563_v40 = vadd.f32 %v1032_v47, %v562_v38  ;;  %v627_v41 = vadd.f32 %v1032_v47, %v626_v39  ;;  %v564_v42 = vpop.f32.mrb[19].mxu0  ;;  %v628_v43 = vpop.f32.mrb[19].mxu1 }
 0x126   : > { %664 = vst.msk [vmem:[%s1039_s17 + $0x48] sm:$0xff] %vm654_vm3, %v563_v40  ;;  %680 = vst.msk [vmem:[%s1039_s17 + $0xc8] sm:$0xff] %vm654_vm3, %v627_v41 }
 0x129   : > { %v567_v44 = vpop.f32.mrb[20].mxu0  ;;  %v631_v45 = vpop.f32.mrb[20].mxu1 }
 0x12a   : > { %v568_v46 = vadd.f32 %v1032_v47, %v567_v44  ;;  %v632_v48 = vadd.f32 %v1032_v47, %v631_v45  ;;  %v569_v49 = vpop.f32.mrb[21].mxu0  ;;  %v633_v50 = vpop.f32.mrb[21].mxu1 }
 0x12b   : > { %v570_v51 = vpop.f32.mrb[22].mxu0  ;;  %v634_v52 = vpop.f32.mrb[22].mxu1 }
 0x12c   : > { %665 = vst.msk [vmem:[%s1039_s17 + $0x50] sm:$0xff] %vm654_vm3, %v568_v46  ;;  %681 = vst.msk [vmem:[%s1039_s17 + $0xd0] sm:$0xff] %vm654_vm3, %v632_v48  ;;  %v571_v53 = vadd.f32 %v1032_v47, %v570_v51  ;;  %v635_v54 = vadd.f32 %v1032_v47, %v634_v52  ;;  %v572_v55 = vpop.f32.mrb[23].mxu0  ;;  %v636_v56 = vpop.f32.mrb[23].mxu1 }
 0x12e   : > { %666 = vst.msk [vmem:[%s1039_s17 + $0x58] sm:$0xff] %vm654_vm3, %v571_v53  ;;  %682 = vst.msk [vmem:[%s1039_s17 + $0xd8] sm:$0xff] %vm654_vm3, %v635_v54 }
 0x131   : > { %v575_v57 = vpop.f32.mrb[24].mxu0  ;;  %v639_v58 = vpop.f32.mrb[24].mxu1 }
 0x132   : > { %v576_v59 = vadd.f32 %v1032_v47, %v575_v57  ;;  %v640_v60 = vadd.f32 %v1032_v47, %v639_v58  ;;  %v577_v61 = vpop.f32.mrb[25].mxu0  ;;  %v641_v62 = vpop.f32.mrb[25].mxu1 }
 0x133   : > { %v578_v63 = vpop.f32.mrb[26].mxu0  ;;  %v642_v0 = vpop.f32.mrb[26].mxu1 }
 0x134   : > { %667 = vst.msk [vmem:[%s1039_s17 + $0x60] sm:$0xff] %vm654_vm3, %v576_v59  ;;  %683 = vst.msk [vmem:[%s1039_s17 + $0xe0] sm:$0xff] %vm654_vm3, %v640_v60  ;;  %v579_v1 = vadd.f32 %v1032_v47, %v578_v63  ;;  %v643_v2 = vadd.f32 %v1032_v47, %v642_v0  ;;  %v580_v3 = vpop.f32.mrb[27].mxu0  ;;  %v644_v4 = vpop.f32.mrb[27].mxu1 }
 0x136   : > { %668 = vst.msk [vmem:[%s1039_s17 + $0x68] sm:$0xff] %vm654_vm3, %v579_v1  ;;  %684 = vst.msk [vmem:[%s1039_s17 + $0xe8] sm:$0xff] %vm654_vm3, %v643_v2 }
 0x139   : > { %v583_v5 = vpop.f32.mrb[28].mxu0  ;;  %v647_v6 = vpop.f32.mrb[28].mxu1 }
 0x13a   : > { %v584_v7 = vadd.f32 %v1032_v47, %v583_v5  ;;  %v648_v8 = vadd.f32 %v1032_v47, %v647_v6  ;;  %v585_v9 = vpop.f32.mrb[29].mxu0  ;;  %v649_v10 = vpop.f32.mrb[29].mxu1 }
 0x13b   : > { %v586_v11 = vpop.f32.mrb[30].mxu0  ;;  %v650_v12 = vpop.f32.mrb[30].mxu1 }
 0x13c   : > { %669 = vst.msk [vmem:[%s1039_s17 + $0x70] sm:$0xff] %vm654_vm3, %v584_v7  ;;  %685 = vst.msk [vmem:[%s1039_s17 + $0xf0] sm:$0xff] %vm654_vm3, %v648_v8  ;;  %v587_v13 = vadd.f32 %v1032_v47, %v586_v11  ;;  %v651_v14 = vadd.f32 %v1032_v47, %v650_v12  ;;  %v588_v15 = vpop.f32.mrb[31].mxu0  ;;  %v652_v16 = vpop.f32.mrb[31].mxu1 }
 0x13e   : > { %670 = vst.msk [vmem:[%s1039_s17 + $0x78] sm:$0xff] %vm654_vm3, %v587_v13  ;;  %686 = vst.msk [vmem:[%s1039_s17 + $0xf8] sm:$0xff] %vm654_vm3, %v651_v14 }
 0x13f PF: > { %s13_s12 = sadd.s32 1, %s909_s12  }
 0x140   : > { %p10_p4 = scmp.ge.s32.totalorder %s13_s12, 4  }
 0x142   :  { %12 = sbr.rel (!%p10_p4) target bundleno = 1 (0x1), region = 62 }

// kernel: unet_forward.70
= control target key start
LH: loop header
LB: loop body
LE: loop exit
PB: predicated region body
PF: predicated region fallthrough
CT: control target
= control target key end

     0   :  { %s915_s12 = smov 0   ;;  %s1119_s0 = inlined_call_operand.vmem [shape: bf16[512,144], index: 0, kind: input, shape index: {}]   ;;  %s1120_s1 = inlined_call_operand.vmem [shape: bf16[144,16], index: 1, kind: input, shape index: {}]   ;;  %s1121_s2 = inlined_call_operand.vmem [shape: f32[1,16], index: 2, kind: input, shape index: {}]   ;;  %s1122_s3 = inlined_call_operand.vmem [shape: f32[512,16], index: 3, kind: output, shape index: {}]  }
   0x1 LB: > { %s731_s13 = sadd.s32 4294967295, %s892_s12   ;;  %p735_p0 = scmp.ge.s32.totalorder %s892_s12, 1  ;;  %s892_s12 = sphi %s915_s12, %s13_s12  }
   0x2   : > { %p139_p1 = scmp.lt.s32.totalorder %s892_s12, 3 }
   0x4   : > { %p140_p2 = pnand %p735_p0, %p139_p1 }
   0x5   : > { %v829_v0 = vld [vmem:[%s1120_s1] sm:$0xff] (!%p140_p2)   ;;  %v894_v1 = vmov (!%p140_p2), 0   ;;  %s736_s16 = sshll.u32 (!%p140_p2), %s731_s13, 5  ;;  %v830_v2 = vld [vmem:[%s1120_s1 + $0x8] sm:$0xff] (!%p140_p2)   ;;  %v831_v3 = vld [vmem:[%s1120_s1 + $0x10] sm:$0xff] (!%p140_p2)   ;;  %vm433_vm0 = vcmask (!%p140_p2), 130048  }
   0x6   : > { %143 = sbr.rel (%p140_p2) target bundleno = 315 (0x13b), region = 32  ;;  %482 = vmatprep.subr.bf16.mxu0 (!%p140_p2), %v894_v1  ;;  %802 = vmatprep.subr.bf16.mxu1 (!%p140_p2), %v894_v1  ;;  %p165_p3 = scmp.lt.s32.totalorder (!%p140_p2), %s736_s16, 63  ;;  %v832_v4 = vld [vmem:[%s1120_s1 + $0x18] sm:$0xff] (!%p140_p2)   ;;  %v833_v7 = vld [vmem:[%s1120_s1 + $0x20] sm:$0xff] (!%p140_p2)   ;;  %v834_v8 = vld [vmem:[%s1120_s1 + $0x28] sm:$0xff] (!%p140_p2)  }
   0x7   : > { %483 = vmatpush1.bf16.msra.mxu0 (!%p140_p2), %v829_v0  ;;  %811 = vmatpush1.bf16.msra.mxu1 (!%p140_p2), %v829_v0  ;;  %v835_v9 = vld [vmem:[%s1120_s1 + $0x30] sm:$0xff] (!%p140_p2)   ;;  %v836_v10 = vld [vmem:[%s1120_s1 + $0x38] sm:$0xff] (!%p140_p2)   ;;  %v837_v11 = vld [vmem:[%s1120_s1 + $0x40] sm:$0xff] (!%p140_p2)  }
   0x8   : > { %484 = vmatprep.subr.bf16.mxu0 (!%p140_p2), %v894_v1  ;;  %803 = vmatprep.subr.bf16.mxu1 (!%p140_p2), %v894_v1  ;;  %v1011_v42 = vld [vmem:[%s1121_s2] ss:$0 sm:$0xff] (!%p140_p2) }
   0xb   : > { %485 = vmatpush1.bf16.msra.mxu0 (!%p140_p2), %v830_v2  ;;  %812 = vmatpush1.bf16.msra.mxu1 (!%p140_p2), %v830_v2 }
   0xc   : > { %486 = vmatprep.subr.bf16.mxu0 (!%p140_p2), %v894_v1  ;;  %804 = vmatprep.subr.bf16.mxu1 (!%p140_p2), %v894_v1 }
   0xd   : > { %s1124_s16 = smov (!%p165_p3, %s736_s16), 63 }
   0xe   : > { %s801_s21 = sshll.u32 %s1124_s16, 3 }
   0xf   : > { %s940_s24 = scalar_lea.vmem %s1119_s0, %s801_s21  ;;  %487 = vmatpush1.bf16.msra.mxu0 %v831_v3  ;;  %813 = vmatpush1.bf16.msra.mxu1 %v831_v3  ;;  %s1018_s15 = scalar_lea.vmem %s1122_s3, %s801_s21 }
  0x10   : > { %v840_v5 = vld [vmem:[%s940_s24 + $0x4] ss:$8 sps:$4 sm:$0xff]   ;;  %488 = vmatprep.subr.bf16.mxu0 %v894_v1  ;;  %805 = vmatprep.subr.bf16.mxu1 %v894_v1  ;;  %v838_v12 = vld [vmem:[%s940_s24] ss:$8 sps:$4 sm:$0xff]   ;;  %v844_v14 = vld [vmem:[%s940_s24 + $0x14] ss:$8 sps:$4 sm:$0xff]  }
  0x11   : > { %v843_v6 = vld [vmem:[%s940_s24 + $0x84] ss:$8 sps:$4 sm:$0xff]   ;;  %783 = vmatprep.mubr.msk.bf16.mxu0 %vm433_vm0, %v840_v5  ;;  %v841_v13 = vld [vmem:[%s940_s24 + $0x80] ss:$8 sps:$4 sm:$0xff]   ;;  %v846_v15 = vld [vmem:[%s940_s24 + $0x94] ss:$8 sps:$4 sm:$0xff]  }
  0x12   : > { %791 = vmatprep.mubr.msk.bf16.mxu1 %vm433_vm0, %v843_v6  ;;  %v848_v16 = vld [vmem:[%s940_s24 + $0x10] ss:$8 sps:$4 sm:$0xff]   ;;  %v850_v18 = vld [vmem:[%s940_s24 + $0x24] ss:$8 sps:$4 sm:$0xff]   ;;  %v854_v20 = vld [vmem:[%s940_s24 + $0x20] ss:$8 sps:$4 sm:$0xff]  }
  0x13   : > { %489 = vmatpush1.bf16.msra.mxu0 %v832_v4  ;;  %814 = vmatpush1.bf16.msra.mxu1 %v832_v4  ;;  %v849_v17 = vld [vmem:[%s940_s24 + $0x90] ss:$8 sps:$4 sm:$0xff]   ;;  %v852_v19 = vld [vmem:[%s940_s24 + $0xa4] ss:$8 sps:$4 sm:$0xff]   ;;  %v855_v21 = vld [vmem:[%s940_s24 + $0xa0] ss:$8 sps:$4 sm:$0xff]  }
  0x14   : > { %490 = vmatprep.subr.bf16.mxu0 %v894_v1  ;;  %806 = vmatprep.subr.bf16.mxu1 %v894_v1  ;;  %v856_v22 = vld [vmem:[%s940_s24 + $0x34] ss:$8 sps:$4 sm:$0xff]   ;;  %v860_v24 = vld [vmem:[%s940_s24 + $0x30] ss:$8 sps:$4 sm:$0xff]   ;;  %v862_v26 = vld [vmem:[%s940_s24 + $0x44] ss:$8 sps:$4 sm:$0xff]  }
  0x15   : > { %v858_v23 = vld [vmem:[%s940_s24 + $0xb4] ss:$8 sps:$4 sm:$0xff]   ;;  %v861_v25 = vld [vmem:[%s940_s24 + $0xb0] ss:$8 sps:$4 sm:$0xff]   ;;  %v864_v27 = vld [vmem:[%s940_s24 + $0xc4] ss:$8 sps:$4 sm:$0xff]  }
  0x16   : > { %v866_v28 = vld [vmem:[%s940_s24 + $0x40] ss:$8 sps:$4 sm:$0xff]   ;;  %v868_v30 = vld [vmem:[%s940_s24 + $0x54] ss:$8 sps:$4 sm:$0xff]   ;;  %v872_v32 = vld [vmem:[%s940_s24 + $0x50] ss:$8 sps:$4 sm:$0xff]  }
  0x17   : > { %491 = vmatpush1.bf16.msra.mxu0 %v833_v7  ;;  %815 = vmatpush1.bf16.msra.mxu1 %v833_v7  ;;  %v867_v29 = vld [vmem:[%s940_s24 + $0xc0] ss:$8 sps:$4 sm:$0xff]   ;;  %v870_v31 = vld [vmem:[%s940_s24 + $0xd4] ss:$8 sps:$4 sm:$0xff]   ;;  %v873_v33 = vld [vmem:[%s940_s24 + $0xd0] ss:$8 sps:$4 sm:$0xff]  }
  0x18   : > { %492 = vmatprep.subr.bf16.mxu0 %v894_v1  ;;  %807 = vmatprep.subr.bf16.mxu1 %v894_v1  ;;  %v874_v34 = vld [vmem:[%s940_s24 + $0x64] ss:$8 sps:$4 sm:$0xff]   ;;  %v878_v36 = vld [vmem:[%s940_s24 + $0x60] ss:$8 sps:$4 sm:$0xff]   ;;  %v880_v38 = vld [vmem:[%s940_s24 + $0x74] ss:$8 sps:$4 sm:$0xff]  }
  0x19   : > { %v876_v35 = vld [vmem:[%s940_s24 + $0xe4] ss:$8 sps:$4 sm:$0xff]   ;;  %v879_v37 = vld [vmem:[%s940_s24 + $0xe0] ss:$8 sps:$4 sm:$0xff]   ;;  %v882_v39 = vld [vmem:[%s940_s24 + $0xf4] ss:$8 sps:$4 sm:$0xff]  }
  0x1a   : > { %v884_v40 = vld [vmem:[%s940_s24 + $0x70] ss:$8 sps:$4 sm:$0xff]  }
  0x1b   : > { %493 = vmatpush1.bf16.msra.mxu0 %v834_v8  ;;  %816 = vmatpush1.bf16.msra.mxu1 %v834_v8  ;;  %v885_v41 = vld [vmem:[%s940_s24 + $0xf0] ss:$8 sps:$4 sm:$0xff]  }
  0x1c   : > { %494 = vmatprep.subr.bf16.mxu0 %v894_v1  ;;  %808 = vmatprep.subr.bf16.mxu1 %v894_v1 }
  0x1f   : > { %495 = vmatpush1.bf16.msra.mxu0 %v835_v9  ;;  %817 = vmatpush1.bf16.msra.mxu1 %v835_v9 }
  0x20   : > { %496 = vmatprep.subr.bf16.mxu0 %v894_v1  ;;  %809 = vmatprep.subr.bf16.mxu1 %v894_v1 }
  0x23   : > { %497 = vmatpush1.bf16.msra.mxu0 %v836_v10  ;;  %818 = vmatpush1.bf16.msra.mxu1 %v836_v10 }
  0x24   : > { %498 = vmatprep.subr.bf16.mxu0 %v894_v1  ;;  %810 = vmatprep.subr.bf16.mxu1 %v894_v1 }
  0x27   : > { %499 = vmatpush1.bf16.msra.mxu0 %v837_v11  ;;  %819 = vmatpush1.bf16.msra.mxu1 %v837_v11 }
  0x2a   : > { %515 = vmatmul.mubr.bf16.vlgmr.msra.gmra.mrb[0].mxu0 %v838_v12  ;;  %579 = vmatmul.mubr.bf16.vlgmr.msra.gmra.mrb[0].mxu1 %v841_v13 }
  0x2b   : > { %784 = vmatprep.mubr.msk.bf16.mxu0 %vm433_vm0, %v844_v14  ;;  %792 = vmatprep.mubr.msk.bf16.mxu1 %vm433_vm0, %v846_v15 }
  0x32   : > { %523 = vmatmul.mubr.bf16.gmra.mrb[4].mxu0 %v848_v16  ;;  %587 = vmatmul.mubr.bf16.gmra.mrb[4].mxu1 %v849_v17 }
  0x33   : > { %785 = vmatprep.mubr.msk.bf16.mxu0 %vm433_vm0, %v850_v18  ;;  %793 = vmatprep.mubr.msk.bf16.mxu1 %vm433_vm0, %v852_v19 }
  0x3a   : > { %531 = vmatmul.mubr.bf16.gmra.mrb[8].mxu0 %v854_v20  ;;  %595 = vmatmul.mubr.bf16.gmra.mrb[8].mxu1 %v855_v21 }
  0x3b   : > { %786 = vmatprep.mubr.msk.bf16.mxu0 %vm433_vm0, %v856_v22  ;;  %794 = vmatprep.mubr.msk.bf16.mxu1 %vm433_vm0, %v858_v23 }
  0x42   : > { %539 = vmatmul.mubr.bf16.gmra.mrb[12].mxu0 %v860_v24  ;;  %603 = vmatmul.mubr.bf16.gmra.mrb[12].mxu1 %v861_v25 }
  0x43   : > { %787 = vmatprep.mubr.msk.bf16.mxu0 %vm433_vm0, %v862_v26  ;;  %795 = vmatprep.mubr.msk.bf16.mxu1 %vm433_vm0, %v864_v27 }
  0x4a   : > { %547 = vmatmul.mubr.bf16.gmra.mrb[16].mxu0 %v866_v28  ;;  %611 = vmatmul.mubr.bf16.gmra.mrb[16].mxu1 %v867_v29 }
  0x4b   : > { %788 = vmatprep.mubr.msk.bf16.mxu0 %vm433_vm0, %v868_v30  ;;  %796 = vmatprep.mubr.msk.bf16.mxu1 %vm433_vm0, %v870_v31 }
  0x52   : > { %555 = vmatmul.mubr.bf16.gmra.mrb[20].mxu0 %v872_v32  ;;  %619 = vmatmul.mubr.bf16.gmra.mrb[20].mxu1 %v873_v33 }
  0x53   : > { %789 = vmatprep.mubr.msk.bf16.mxu0 %vm433_vm0, %v874_v34  ;;  %797 = vmatprep.mubr.msk.bf16.mxu1 %vm433_vm0, %v876_v35 }
  0x5a   : > { %563 = vmatmul.mubr.bf16.gmra.mrb[24].mxu0 %v878_v36  ;;  %627 = vmatmul.mubr.bf16.gmra.mrb[24].mxu1 %v879_v37 }
  0x5b   : > { %790 = vmatprep.mubr.msk.bf16.mxu0 %vm433_vm0, %v880_v38  ;;  %798 = vmatprep.mubr.msk.bf16.mxu1 %vm433_vm0, %v882_v39 }
  0x62   : > { %571 = vmatmul.mubr.bf16.gmra.mrb[28].mxu0 %v884_v40  ;;  %635 = vmatmul.mubr.bf16.gmra.mrb[28].mxu1 %v885_v41 }
  0xfd   : > { %v516_v43 = vpop.f32.mrb[0].mxu0  ;;  %v580_v44 = vpop.f32.mrb[0].mxu1 }
  0xfe   : > { %v517_v45 = vadd.f32 %v1011_v42, %v516_v43  ;;  %v581_v46 = vadd.f32 %v1011_v42, %v580_v44  ;;  %v518_v47 = vpop.f32.mrb[1].mxu0  ;;  %v582_v48 = vpop.f32.mrb[1].mxu1 }
  0xff   : > { %v519_v49 = vpop.f32.mrb[2].mxu0  ;;  %v583_v50 = vpop.f32.mrb[2].mxu1 }
 0x100   : > { %643 = vst.msk [vmem:[%s1018_s15] sm:$0xff] %vm433_vm0, %v517_v45  ;;  %659 = vst.msk [vmem:[%s1018_s15 + $0x80] sm:$0xff] %vm433_vm0, %v581_v46  ;;  %v520_v51 = vadd.f32 %v1011_v42, %v519_v49  ;;  %v584_v52 = vadd.f32 %v1011_v42, %v583_v50  ;;  %v521_v53 = vpop.f32.mrb[3].mxu0  ;;  %v585_v54 = vpop.f32.mrb[3].mxu1 }
 0x102   : > { %644 = vst.msk [vmem:[%s1018_s15 + $0x8] sm:$0xff] %vm433_vm0, %v520_v51  ;;  %660 = vst.msk [vmem:[%s1018_s15 + $0x88] sm:$0xff] %vm433_vm0, %v584_v52 }
 0x105   : > { %v524_v55 = vpop.f32.mrb[4].mxu0  ;;  %v588_v56 = vpop.f32.mrb[4].mxu1 }
 0x106   : > { %v525_v57 = vadd.f32 %v1011_v42, %v524_v55  ;;  %v589_v58 = vadd.f32 %v1011_v42, %v588_v56  ;;  %v526_v59 = vpop.f32.mrb[5].mxu0  ;;  %v590_v60 = vpop.f32.mrb[5].mxu1 }
 0x107   : > { %v527_v61 = vpop.f32.mrb[6].mxu0  ;;  %v591_v62 = vpop.f32.mrb[6].mxu1 }
 0x108   : > { %645 = vst.msk [vmem:[%s1018_s15 + $0x10] sm:$0xff] %vm433_vm0, %v525_v57  ;;  %661 = vst.msk [vmem:[%s1018_s15 + $0x90] sm:$0xff] %vm433_vm0, %v589_v58  ;;  %v528_v63 = vadd.f32 %v1011_v42, %v527_v61  ;;  %v592_v0 = vadd.f32 %v1011_v42, %v591_v62  ;;  %v529_v1 = vpop.f32.mrb[7].mxu0  ;;  %v593_v2 = vpop.f32.mrb[7].mxu1 }
 0x10a   : > { %646 = vst.msk [vmem:[%s1018_s15 + $0x18] sm:$0xff] %vm433_vm0, %v528_v63  ;;  %662 = vst.msk [vmem:[%s1018_s15 + $0x98] sm:$0xff] %vm433_vm0, %v592_v0 }
 0x10d   : > { %v532_v3 = vpop.f32.mrb[8].mxu0  ;;  %v596_v4 = vpop.f32.mrb[8].mxu1 }
 0x10e   : > { %v533_v5 = vadd.f32 %v1011_v42, %v532_v3  ;;  %v597_v6 = vadd.f32 %v1011_v42, %v596_v4  ;;  %v534_v7 = vpop.f32.mrb[9].mxu0  ;;  %v598_v8 = vpop.f32.mrb[9].mxu1 }
 0x10f   : > { %v535_v9 = vpop.f32.mrb[10].mxu0  ;;  %v599_v10 = vpop.f32.mrb[10].mxu1 }
 0x110   : > { %647 = vst.msk [vmem:[%s1018_s15 + $0x20] sm:$0xff] %vm433_vm0, %v533_v5  ;;  %663 = vst.msk [vmem:[%s1018_s15 + $0xa0] sm:$0xff] %vm433_vm0, %v597_v6  ;;  %v536_v11 = vadd.f32 %v1011_v42, %v535_v9  ;;  %v600_v12 = vadd.f32 %v1011_v42, %v599_v10  ;;  %v537_v13 = vpop.f32.mrb[11].mxu0  ;;  %v601_v14 = vpop.f32.mrb[11].mxu1 }
 0x112   : > { %648 = vst.msk [vmem:[%s1018_s15 + $0x28] sm:$0xff] %vm433_vm0, %v536_v11  ;;  %664 = vst.msk [vmem:[%s1018_s15 + $0xa8] sm:$0xff] %vm433_vm0, %v600_v12 }
 0x115   : > { %v540_v15 = vpop.f32.mrb[12].mxu0  ;;  %v604_v16 = vpop.f32.mrb[12].mxu1 }
 0x116   : > { %v541_v17 = vadd.f32 %v1011_v42, %v540_v15  ;;  %v605_v18 = vadd.f32 %v1011_v42, %v604_v16  ;;  %v542_v19 = vpop.f32.mrb[13].mxu0  ;;  %v606_v20 = vpop.f32.mrb[13].mxu1 }
 0x117   : > { %v543_v21 = vpop.f32.mrb[14].mxu0  ;;  %v607_v22 = vpop.f32.mrb[14].mxu1 }
 0x118   : > { %649 = vst.msk [vmem:[%s1018_s15 + $0x30] sm:$0xff] %vm433_vm0, %v541_v17  ;;  %665 = vst.msk [vmem:[%s1018_s15 + $0xb0] sm:$0xff] %vm433_vm0, %v605_v18  ;;  %v544_v23 = vadd.f32 %v1011_v42, %v543_v21  ;;  %v608_v24 = vadd.f32 %v1011_v42, %v607_v22  ;;  %v545_v25 = vpop.f32.mrb[15].mxu0  ;;  %v609_v26 = vpop.f32.mrb[15].mxu1 }
 0x11a   : > { %650 = vst.msk [vmem:[%s1018_s15 + $0x38] sm:$0xff] %vm433_vm0, %v544_v23  ;;  %666 = vst.msk [vmem:[%s1018_s15 + $0xb8] sm:$0xff] %vm433_vm0, %v608_v24 }
 0x11d   : > { %v548_v27 = vpop.f32.mrb[16].mxu0  ;;  %v612_v28 = vpop.f32.mrb[16].mxu1 }
 0x11e   : > { %v549_v29 = vadd.f32 %v1011_v42, %v548_v27  ;;  %v613_v30 = vadd.f32 %v1011_v42, %v612_v28  ;;  %v550_v31 = vpop.f32.mrb[17].mxu0  ;;  %v614_v32 = vpop.f32.mrb[17].mxu1 }
 0x11f   : > { %v551_v33 = vpop.f32.mrb[18].mxu0  ;;  %v615_v34 = vpop.f32.mrb[18].mxu1 }
 0x120   : > { %651 = vst.msk [vmem:[%s1018_s15 + $0x40] sm:$0xff] %vm433_vm0, %v549_v29  ;;  %667 = vst.msk [vmem:[%s1018_s15 + $0xc0] sm:$0xff] %vm433_vm0, %v613_v30  ;;  %v552_v35 = vadd.f32 %v1011_v42, %v551_v33  ;;  %v616_v36 = vadd.f32 %v1011_v42, %v615_v34  ;;  %v553_v37 = vpop.f32.mrb[19].mxu0  ;;  %v617_v38 = vpop.f32.mrb[19].mxu1 }
 0x122   : > { %652 = vst.msk [vmem:[%s1018_s15 + $0x48] sm:$0xff] %vm433_vm0, %v552_v35  ;;  %668 = vst.msk [vmem:[%s1018_s15 + $0xc8] sm:$0xff] %vm433_vm0, %v616_v36 }
 0x125   : > { %v556_v39 = vpop.f32.mrb[20].mxu0  ;;  %v620_v40 = vpop.f32.mrb[20].mxu1 }
 0x126   : > { %v557_v41 = vadd.f32 %v1011_v42, %v556_v39  ;;  %v621_v43 = vadd.f32 %v1011_v42, %v620_v40  ;;  %v558_v44 = vpop.f32.mrb[21].mxu0  ;;  %v622_v45 = vpop.f32.mrb[21].mxu1 }
 0x127   : > { %v559_v46 = vpop.f32.mrb[22].mxu0  ;;  %v623_v47 = vpop.f32.mrb[22].mxu1 }
 0x128   : > { %653 = vst.msk [vmem:[%s1018_s15 + $0x50] sm:$0xff] %vm433_vm0, %v557_v41  ;;  %669 = vst.msk [vmem:[%s1018_s15 + $0xd0] sm:$0xff] %vm433_vm0, %v621_v43  ;;  %v560_v48 = vadd.f32 %v1011_v42, %v559_v46  ;;  %v624_v49 = vadd.f32 %v1011_v42, %v623_v47  ;;  %v561_v50 = vpop.f32.mrb[23].mxu0  ;;  %v625_v51 = vpop.f32.mrb[23].mxu1 }
 0x12a   : > { %654 = vst.msk [vmem:[%s1018_s15 + $0x58] sm:$0xff] %vm433_vm0, %v560_v48  ;;  %670 = vst.msk [vmem:[%s1018_s15 + $0xd8] sm:$0xff] %vm433_vm0, %v624_v49 }
 0x12d   : > { %v564_v52 = vpop.f32.mrb[24].mxu0  ;;  %v628_v53 = vpop.f32.mrb[24].mxu1 }
 0x12e   : > { %v565_v54 = vadd.f32 %v1011_v42, %v564_v52  ;;  %v629_v55 = vadd.f32 %v1011_v42, %v628_v53  ;;  %v566_v56 = vpop.f32.mrb[25].mxu0  ;;  %v630_v57 = vpop.f32.mrb[25].mxu1 }
 0x12f   : > { %v567_v58 = vpop.f32.mrb[26].mxu0  ;;  %v631_v59 = vpop.f32.mrb[26].mxu1 }
 0x130   : > { %655 = vst.msk [vmem:[%s1018_s15 + $0x60] sm:$0xff] %vm433_vm0, %v565_v54  ;;  %671 = vst.msk [vmem:[%s1018_s15 + $0xe0] sm:$0xff] %vm433_vm0, %v629_v55  ;;  %v568_v60 = vadd.f32 %v1011_v42, %v567_v58  ;;  %v632_v61 = vadd.f32 %v1011_v42, %v631_v59  ;;  %v569_v62 = vpop.f32.mrb[27].mxu0  ;;  %v633_v63 = vpop.f32.mrb[27].mxu1 }
 0x132   : > { %656 = vst.msk [vmem:[%s1018_s15 + $0x68] sm:$0xff] %vm433_vm0, %v568_v60  ;;  %672 = vst.msk [vmem:[%s1018_s15 + $0xe8] sm:$0xff] %vm433_vm0, %v632_v61 }
 0x135   : > { %v572_v0 = vpop.f32.mrb[28].mxu0  ;;  %v636_v1 = vpop.f32.mrb[28].mxu1 }
 0x136   : > { %v573_v2 = vadd.f32 %v1011_v42, %v572_v0  ;;  %v637_v3 = vadd.f32 %v1011_v42, %v636_v1  ;;  %v574_v4 = vpop.f32.mrb[29].mxu0  ;;  %v638_v5 = vpop.f32.mrb[29].mxu1 }
 0x137   : > { %v575_v6 = vpop.f32.mrb[30].mxu0  ;;  %v639_v7 = vpop.f32.mrb[30].mxu1 }
 0x138   : > { %657 = vst.msk [vmem:[%s1018_s15 + $0x70] sm:$0xff] %vm433_vm0, %v573_v2  ;;  %673 = vst.msk [vmem:[%s1018_s15 + $0xf0] sm:$0xff] %vm433_vm0, %v637_v3  ;;  %v576_v8 = vadd.f32 %v1011_v42, %v575_v6  ;;  %v640_v9 = vadd.f32 %v1011_v42, %v639_v7  ;;  %v577_v10 = vpop.f32.mrb[31].mxu0  ;;  %v641_v11 = vpop.f32.mrb[31].mxu1 }
 0x13a   : > { %658 = vst.msk [vmem:[%s1018_s15 + $0x78] sm:$0xff] %vm433_vm0, %v576_v8  ;;  %674 = vst.msk [vmem:[%s1018_s15 + $0xf8] sm:$0xff] %vm433_vm0, %v640_v9 }
 0x13b PF: > { %s13_s12 = sadd.s32 1, %s892_s12  }
 0x13c   : > { %p10_p4 = scmp.ge.s32.totalorder %s13_s12, 4  }
 0x13e   :  { %12 = sbr.rel (!%p10_p4) target bundleno = 1 (0x1), region = 62 }

// kernel: unet_forward.67
= control target key start
LH: loop header
LB: loop body
LE: loop exit
PB: predicated region body
PF: predicated region fallthrough
CT: control target
= control target key end

     0   :  { %v95_v0 = vmov 0.0   ;;  %vm96_vm0 = vmmov 0   ;;  %vm31_vm1 = vcmask 130048   ;;  %vm75_vm2 = vcmask 517120   ;;  %s129_s1 = inlined_call_operand.vmem [shape: bf16[16,64], index: 1, kind: input, shape index: {}]   ;;  %s130_s0 = inlined_call_operand.vmem [shape: bf16[2,16], index: 0, kind: input, shape index: {}]   ;;  %s131_s2 = inlined_call_operand.vmem [shape: f32[1,64], index: 2, kind: input, shape index: {}]   ;;  %s132_s3 = inlined_call_operand.vmem [shape: f32[2,64], index: 3, kind: output, shape index: {}]  }
   0x1   :  { %86 = vmatprep.subr.bf16.mxu0 %v95_v0  ;;  %v94_v1 = vld [vmem:[%s129_s1] sm:$0xff]   ;;  %88 = vmatprep.mubr.msk.bf16.mxu0 %vm96_vm0, %v95_v0 }
   0x2   :  { %87 = vmatpush3.bf16.msra.mxu0 %v94_v1  ;;  %v15_v2 = vld [vmem:[%s130_s0] sm:$0x1] }
   0x3   :  { %v81_v3 = vld [vmem:[%s131_s2] ss:$0 sm:$0xff] }
   0x5   :  { %89 = vmatmul.mubr.msk.bf16.vlgmr.msra.gmra.mrb[0].mxu0 %vm31_vm1, %v15_v2 }
  0xd8   :  { %v69_v4 = vpop.f32.mrb[0].mxu0 }
  0xd9   :  { %v70_v5 = vadd.f32 %v81_v3, %v69_v4  ;;  %v90_v6 = vpop.f32.mrb[1].mxu0 }
  0xda   :  { %v72_v7 = vpop.f32.mrb[2].mxu0 }
  0xdb   :  { %76 = vst.msk [vmem:[%s132_s3] sm:$0x3] %vm75_vm2, %v70_v5  ;;  %v91_v8 = vpop.f32.mrb[3].mxu0 }

// kernel: unet_forward.68
= control target key start
LH: loop header
LB: loop body
LE: loop exit
PB: predicated region body
PF: predicated region fallthrough
CT: control target
= control target key end

     0   :  { %v134_v0 = vmov 0.0   ;;  %vm135_vm0 = vmmov 0   ;;  %vm55_vm1 = vcmask 523264   ;;  %vm99_vm2 = vcmask 517120   ;;  %s177_s1 = inlined_call_operand.vmem [shape: bf16[64,64], index: 1, kind: input, shape index: {}]   ;;  %s178_s0 = inlined_call_operand.vmem [shape: bf16[2,64], index: 0, kind: input, shape index: {}]   ;;  %s179_s2 = inlined_call_operand.vmem [shape: f32[1,64], index: 2, kind: input, shape index: {}]   ;;  %s180_s3 = inlined_call_operand.vmem [shape: f32[2,64], index: 3, kind: output, shape index: {}]  }
   0x1   :  { %116 = vmatprep.subr.bf16.mxu0 %v134_v0  ;;  %v130_v1 = vld [vmem:[%s177_s1] sm:$0xff]   ;;  %124 = vmatprep.mubr.msk.bf16.mxu0 %vm135_vm0, %v134_v0  ;;  %v131_v2 = vld [vmem:[%s177_s1 + $0x8] sm:$0xff]   ;;  %v132_v3 = vld [vmem:[%s177_s1 + $0x10] sm:$0xff]  }
   0x2   :  { %117 = vmatpush3.bf16.msra.mxu0 %v130_v1  ;;  %v133_v4 = vld [vmem:[%s177_s1 + $0x18] sm:$0xff]   ;;  %v15_v5 = vld [vmem:[%s178_s0] sm:$0x1] }
   0x3   :  { %118 = vmatprep.subr.bf16.mxu0 %v134_v0  ;;  %v105_v6 = vld [vmem:[%s179_s2] ss:$0 sm:$0xff] }
   0x6   :  { %119 = vmatpush3.bf16.msra.mxu0 %v131_v2 }
   0x7   :  { %120 = vmatprep.subr.bf16.mxu0 %v134_v0 }
   0xa   :  { %121 = vmatpush3.bf16.msra.mxu0 %v132_v3 }
   0xb   :  { %122 = vmatprep.subr.bf16.mxu0 %v134_v0 }
   0xe   :  { %123 = vmatpush3.bf16.msra.mxu0 %v133_v4 }
  0x11   :  { %125 = vmatmul.mubr.msk.bf16.vlgmr.msra.gmra.mrb[0].mxu0 %vm55_vm1, %v15_v5 }
  0xe4   :  { %v93_v7 = vpop.f32.mrb[0].mxu0 }
  0xe5   :  { %v94_v8 = vadd.f32 %v105_v6, %v93_v7  ;;  %v126_v9 = vpop.f32.mrb[1].mxu0 }
  0xe6   :  { %v96_v10 = vpop.f32.mrb[2].mxu0 }
  0xe7   :  { %100 = vst.msk [vmem:[%s180_s3] sm:$0x3] %vm99_vm2, %v94_v8  ;;  %v127_v11 = vpop.f32.mrb[3].mxu0 }

// kernel: unet_forward.69
= control target key start
LH: loop header
LB: loop body
LE: loop exit
PB: predicated region body
PF: predicated region fallthrough
CT: control target
= control target key end

     0   :  { %v134_v0 = vmov 0.0   ;;  %vm135_vm0 = vmmov 0   ;;  %vm55_vm1 = vcmask 523264   ;;  %vm99_vm2 = vcmask 254976   ;;  %s177_s1 = inlined_call_operand.vmem [shape: bf16[64,32], index: 1, kind: input, shape index: {}]   ;;  %s178_s0 = inlined_call_operand.vmem [shape: bf16[2,64], index: 0, kind: input, shape index: {}]   ;;  %s179_s2 = inlined_call_operand.vmem [shape: f32[1,32], index: 2, kind: input, shape index: {}]   ;;  %s180_s3 = inlined_call_operand.vmem [shape: f32[2,32], index: 3, kind: output, shape index: {}]  }
   0x1   :  { %116 = vmatprep.subr.bf16.mxu0 %v134_v0  ;;  %v130_v1 = vld [vmem:[%s177_s1] sm:$0xff]   ;;  %124 = vmatprep.mubr.msk.bf16.mxu0 %vm135_vm0, %v134_v0  ;;  %v131_v2 = vld [vmem:[%s177_s1 + $0x8] sm:$0xff]   ;;  %v132_v3 = vld [vmem:[%s177_s1 + $0x10] sm:$0xff]  }
   0x2   :  { %117 = vmatpush3.bf16.msra.mxu0 %v130_v1  ;;  %v133_v4 = vld [vmem:[%s177_s1 + $0x18] sm:$0xff]   ;;  %v15_v5 = vld [vmem:[%s178_s0] sm:$0x1] }
   0x3   :  { %118 = vmatprep.subr.bf16.mxu0 %v134_v0  ;;  %v105_v6 = vld [vmem:[%s179_s2] ss:$0 sm:$0xff] }
   0x6   :  { %119 = vmatpush3.bf16.msra.mxu0 %v131_v2 }
   0x7   :  { %120 = vmatprep.subr.bf16.mxu0 %v134_v0 }
   0xa   :  { %121 = vmatpush3.bf16.msra.mxu0 %v132_v3 }
   0xb   :  { %122 = vmatprep.subr.bf16.mxu0 %v134_v0 }
   0xe   :  { %123 = vmatpush3.bf16.msra.mxu0 %v133_v4 }
  0x11   :  { %125 = vmatmul.mubr.msk.bf16.vlgmr.msra.gmra.mrb[0].mxu0 %vm55_vm1, %v15_v5 }
  0xe4   :  { %v93_v7 = vpop.f32.mrb[0].mxu0 }
  0xe5   :  { %v94_v8 = vadd.f32 %v105_v6, %v93_v7  ;;  %v126_v9 = vpop.f32.mrb[1].mxu0 }
  0xe6   :  { %v96_v10 = vpop.f32.mrb[2].mxu0 }
  0xe7   :  { %100 = vst.msk [vmem:[%s180_s3] sm:$0x3] %vm99_vm2, %v94_v8  ;;  %v127_v11 = vpop.f32.mrb[3].mxu0 }

// kernel: unet_forward.75
= control target key start
LH: loop header
LB: loop body
LE: loop exit
PB: predicated region body
PF: predicated region fallthrough
CT: control target
= control target key end

     0   :  { %s1057_s12 = smov 0   ;;  %s1366_s0 = inlined_call_operand.vmem [shape: bf16[512,16], index: 0, kind: input, shape index: {}]   ;;  %s1367_s1 = inlined_call_operand.vmem [shape: bf16[16,384], index: 1, kind: input, shape index: {}]   ;;  %s1368_s2 = inlined_call_operand.vmem [shape: f32[1,384], index: 2, kind: input, shape index: {}]   ;;  %s1369_s3 = inlined_call_operand.vmem [shape: f32[512,384], index: 3, kind: output, shape index: {}]  }
   0x1 LB: > { %s883_s13 = sadd.s32 4294967295, %s1034_s12   ;;  %p887_p0 = scmp.ge.s32.totalorder %s1034_s12, 1  ;;  %s1034_s12 = sphi %s1057_s12, %s13_s12  }
   0x2   : > { %p138_p1 = scmp.lt.s32.totalorder %s1034_s12, 3 }
   0x4   : > { %p139_p2 = pnand %p887_p0, %p138_p1 }
   0x5   : > { %v1008_v0 = vld [vmem:[%s1367_s1 + $0x4] ss:$12 sps:$4 sm:$0xff] (!%p139_p2)   ;;  %s888_s16 = sshll.u32 (!%p139_p2), %s883_s13, 5  ;;  %v1010_v1 = vld [vmem:[%s1367_s1] ss:$12 sps:$4 sm:$0xff] (!%p139_p2)   ;;  %v1036_v2 = vmov (!%p139_p2), 0   ;;  %v215_v20 = vlaneseq (!%p139_p2) }
   0x6   : > { %142 = sbr.rel (%p139_p2) target bundleno = 324 (0x144), region = 32  ;;  %407 = vmatprep.mubr.bf16.mxu0 (!%p139_p2), %v1036_v2  ;;  %527 = vmatprep.mubr.bf16.mxu1 (!%p139_p2), %v1036_v2  ;;  %v1011_v3 = vld [vmem:[%s1367_s1 + $0x8] ss:$12 sps:$4 sm:$0xff] (!%p139_p2)   ;;  %p164_p3 = scmp.lt.s32.totalorder (!%p139_p2), %s888_s16, 63  ;;  %vm326_vm0 = vcmask (!%p139_p2), 130048  }
   0x7   : > { %996 = vmatprep.subr.bf16.mxu1 (!%p139_p2), %v1008_v0  ;;  %375 = vmatprep.subr.bf16.mxu0 (!%p139_p2), %v1008_v0  ;;  %v1146_v21 = vshrl.u32 (!%p139_p2), %v215_v20, 7  ;;  %v1152_v23 = vld [vmem:[%s1368_s2] sm:$0x7] (!%p139_p2) }
   0x8   : > { %997 = vmatpush1.bf16.msra.mxu1 (!%p139_p2), %v1010_v1  ;;  %376 = vmatpush1.bf16.msra.mxu0 (!%p139_p2), %v1010_v1 }
   0x9   : > { %962 = vmatprep.subr.bf16.mxu1 (!%p139_p2), %v1011_v3  ;;  %v217_v22 = vsub.s32 (!%p139_p2), 0, %v1146_v21  ;;  %v221_v24 = vsub.s32 (!%p139_p2), 1, %v1146_v21 }
   0xb   : > { %v1157_v25 = vrot.slane (!%p139_p2), %v1152_v23, %v217_v22  ;;  %v1160_v26 = vrot.slane (!%p139_p2), %v1152_v23, %v221_v24 }
   0xd   : > { %s1371_s16 = smov (!%p164_p3, %s888_s16), 63 }
   0xe   : > { %s889_s21 = sshll.u32 %s1371_s16, 2  ;;  %s998_s27 = smul.u32 24, %s1371_s16 }
   0xf   : > { %s1082_s24 = scalar_lea.vmem %s1366_s0, %s889_s21 }
  0x10   : > { %v1012_v4 = vld [vmem:[%s1082_s24] sm:$0xff]   ;;  %v1014_v6 = vld [vmem:[%s1082_s24 + $0x8] sm:$0xff]   ;;  %v1016_v8 = vld [vmem:[%s1082_s24 + $0x10] sm:$0xff]   ;;  %s1165_s30 = scalar_lea.vmem %s1369_s3, %s998_s27 }
  0x11   : > { %v1013_v5 = vld [vmem:[%s1082_s24 + $0x60] sm:$0xff]   ;;  %911 = vmatmul.mubr.msk.bf16.vlgmr.msra.gmra.mrb[0].mxu0 %vm326_vm0, %v1012_v4  ;;  %v1015_v7 = vld [vmem:[%s1082_s24 + $0x68] sm:$0xff]   ;;  %v1017_v9 = vld [vmem:[%s1082_s24 + $0x70] sm:$0xff]  }
  0x12   : > { %923 = vmatmul.mubr.msk.bf16.vlgmr.msra.gmra.mrb[0].mxu1 %vm326_vm0, %v1013_v5  ;;  %417 = vmatprep.mubr.bf16.mxu0 %v1036_v2  ;;  %v1018_v10 = vld [vmem:[%s1082_s24 + $0x18] sm:$0xff]   ;;  %v1020_v12 = vld [vmem:[%s1082_s24 + $0x20] sm:$0xff]   ;;  %v1021_v13 = vld [vmem:[%s1082_s24 + $0x28] sm:$0xff]  }
  0x13   : > { %963 = vmatpush3.bf16.msra.mxu1 %v1011_v3  ;;  %537 = vmatprep.mubr.bf16.mxu1 %v1036_v2  ;;  %v1019_v11 = vld [vmem:[%s1082_s24 + $0x78] sm:$0xff]   ;;  %v1022_v14 = vld [vmem:[%s1082_s24 + $0x30] sm:$0xff]   ;;  %v1024_v16 = vld [vmem:[%s1082_s24 + $0x40] sm:$0xff]  }
  0x14   : > { %v1023_v15 = vld [vmem:[%s1082_s24 + $0x38] sm:$0xff]   ;;  %v1025_v17 = vld [vmem:[%s1082_s24 + $0x48] sm:$0xff]   ;;  %v1026_v18 = vld [vmem:[%s1082_s24 + $0x50] sm:$0xff]  }
  0x15   : > { %v1027_v19 = vld [vmem:[%s1082_s24 + $0x58] sm:$0xff]  }
  0x19   : > { %912 = vmatmul.mubr.msk.bf16.gmra.mrb[4].mxu0 %vm326_vm0, %v1014_v6 }
  0x1a   : > { %924 = vmatmul.mubr.msk.bf16.gmra.mrb[4].mxu1 %vm326_vm0, %v1015_v7  ;;  %427 = vmatprep.mubr.bf16.mxu0 %v1036_v2 }
  0x1b   : > { %547 = vmatprep.mubr.bf16.mxu1 %v1036_v2 }
  0x21   : > { %913 = vmatmul.mubr.msk.bf16.gmra.mrb[8].mxu0 %vm326_vm0, %v1016_v8 }
  0x22   : > { %925 = vmatmul.mubr.msk.bf16.gmra.mrb[8].mxu1 %vm326_vm0, %v1017_v9  ;;  %437 = vmatprep.mubr.bf16.mxu0 %v1036_v2 }
  0x23   : > { %557 = vmatprep.mubr.bf16.mxu1 %v1036_v2 }
  0x29   : > { %914 = vmatmul.mubr.msk.bf16.gmra.mrb[12].mxu0 %vm326_vm0, %v1018_v10 }
  0x2a   : > { %926 = vmatmul.mubr.msk.bf16.gmra.mrb[12].mxu1 %vm326_vm0, %v1019_v11  ;;  %447 = vmatprep.mubr.bf16.mxu0 %v1036_v2 }
  0x2b   : > { %964 = vmatprep.mubr.msk.bf16.mxu1 %vm326_vm0, %v1012_v4 }
  0x31   : > { %915 = vmatmul.mubr.msk.bf16.gmra.mrb[16].mxu0 %vm326_vm0, %v1020_v12 }
  0x32   : > { %965 = vmatmul.mubr.msk.bf16.vlgmr.msra.gmra.mrb[16].mxu1 %vm326_vm0, %v1014_v6  ;;  %457 = vmatprep.mubr.bf16.mxu0 %v1036_v2 }
  0x33   : > { %968 = vmatprep.mubr.msk.bf16.mxu1 %vm326_vm0, %v1016_v8 }
  0x39   : > { %916 = vmatmul.mubr.msk.bf16.gmra.mrb[20].mxu0 %vm326_vm0, %v1021_v13 }
  0x3a   : > { %969 = vmatmul.mubr.msk.bf16.gmra.mrb[20].mxu1 %vm326_vm0, %v1018_v10  ;;  %467 = vmatprep.mubr.bf16.mxu0 %v1036_v2 }
  0x3b   : > { %972 = vmatprep.mubr.msk.bf16.mxu1 %vm326_vm0, %v1020_v12 }
  0x41   : > { %917 = vmatmul.mubr.msk.bf16.gmra.mrb[24].mxu0 %vm326_vm0, %v1022_v14 }
  0x42   : > { %973 = vmatmul.mubr.msk.bf16.gmra.mrb[24].mxu1 %vm326_vm0, %v1021_v13  ;;  %477 = vmatprep.mubr.bf16.mxu0 %v1036_v2 }
  0x43   : > { %976 = vmatprep.mubr.msk.bf16.mxu1 %vm326_vm0, %v1022_v14 }
  0x49   : > { %918 = vmatmul.mubr.msk.bf16.gmra.mrb[28].mxu0 %vm326_vm0, %v1023_v15 }
  0x4a   : > { %977 = vmatmul.mubr.msk.bf16.gmra.mrb[28].mxu1 %vm326_vm0, %v1023_v15  ;;  %487 = vmatprep.mubr.bf16.mxu0 %v1036_v2 }
  0x4b   : > { %980 = vmatprep.mubr.msk.bf16.mxu1 %vm326_vm0, %v1024_v16 }
  0x51   : > { %919 = vmatmul.mubr.msk.bf16.gmra.mrb[32].mxu0 %vm326_vm0, %v1024_v16 }
  0x52   : > { %981 = vmatmul.mubr.msk.bf16.gmra.mrb[32].mxu1 %vm326_vm0, %v1025_v17  ;;  %497 = vmatprep.mubr.bf16.mxu0 %v1036_v2 }
  0x53   : > { %984 = vmatprep.mubr.msk.bf16.mxu1 %vm326_vm0, %v1026_v18 }
  0x59   : > { %920 = vmatmul.mubr.msk.bf16.gmra.mrb[36].mxu0 %vm326_vm0, %v1025_v17 }
  0x5a   : > { %985 = vmatmul.mubr.msk.bf16.gmra.mrb[36].mxu1 %vm326_vm0, %v1027_v19  ;;  %507 = vmatprep.mubr.bf16.mxu0 %v1036_v2 }
  0x5b   : > { %988 = vmatprep.mubr.msk.bf16.mxu1 %vm326_vm0, %v1013_v5 }
  0x61   : > { %921 = vmatmul.mubr.msk.bf16.gmra.mrb[40].mxu0 %vm326_vm0, %v1026_v18 }
  0x62   : > { %989 = vmatmul.mubr.msk.bf16.gmra.mrb[40].mxu1 %vm326_vm0, %v1015_v7  ;;  %517 = vmatprep.mubr.bf16.mxu0 %v1036_v2 }
  0x63   : > { %992 = vmatprep.mubr.msk.bf16.mxu1 %vm326_vm0, %v1017_v9 }
  0x69   : > { %922 = vmatmul.mubr.msk.bf16.gmra.mrb[44].mxu0 %vm326_vm0, %v1027_v19  ;;  %v225_v19 = vsub.s32 2, %v1146_v21 }
  0x6a   : > { %993 = vmatmul.mubr.msk.bf16.gmra.mrb[44].mxu1 %vm326_vm0, %v1019_v11 }
  0xe4   : > { %v409_v27 = vpop.f32.mrb[0].mxu0 }
  0xe5   : > { %v410_v28 = vadd.f32 %v409_v27, %v1157_v25  ;;  %v529_v29 = vpop.f32.mrb[0].mxu1  ;;  %v411_v30 = vpop.f32.mrb[1].mxu0 }
  0xe6   : > { %v530_v31 = vadd.f32 %v529_v29, %v1157_v25  ;;  %v412_v32 = vadd.f32 %v411_v30, %v1160_v26  ;;  %v531_v33 = vpop.f32.mrb[1].mxu1  ;;  %v413_v34 = vpop.f32.mrb[2].mxu0 }
  0xe7   : > { %729 = vst [vmem:[%s1165_s30] sm:$0xff] %v410_v28  ;;  %v532_v35 = vadd.f32 %v531_v33, %v1160_v26  ;;  %v414_v36 = vadd.f32 %v413_v34, %v1157_v25  ;;  %v533_v37 = vpop.f32.mrb[2].mxu1  ;;  %v415_v38 = vpop.f32.mrb[3].mxu0 }
  0xe8   : > { %801 = vst [vmem:[%s1165_s30 + $0x240] sm:$0xff] %v530_v31  ;;  %730 = vst [vmem:[%s1165_s30 + $0x8] sm:$0xff] %v412_v32  ;;  %v534_v39 = vadd.f32 %v533_v37, %v1157_v25  ;;  %v416_v40 = vadd.f32 %v415_v38, %v1160_v26  ;;  %v535_v41 = vpop.f32.mrb[3].mxu1  ;;  %v1232_v31 = vrot.slane %v1152_v23, %v225_v19 }
  0xe9   : > { %802 = vst [vmem:[%s1165_s30 + $0x248] sm:$0xff] %v532_v35  ;;  %732 = vst [vmem:[%s1165_s30 + $0x18] sm:$0xff] %v414_v36  ;;  %v536_v42 = vadd.f32 %v535_v41, %v1160_v26 }
  0xea   : > { %804 = vst [vmem:[%s1165_s30 + $0x258] sm:$0xff] %v534_v39  ;;  %733 = vst [vmem:[%s1165_s30 + $0x20] sm:$0xff] %v416_v40 }
  0xeb   : > { %805 = vst [vmem:[%s1165_s30 + $0x260] sm:$0xff] %v536_v42 }
  0xec   : > { %v419_v43 = vpop.f32.mrb[4].mxu0 }
  0xed   : > { %v420_v44 = vadd.f32 %v419_v43, %v1157_v25  ;;  %v539_v45 = vpop.f32.mrb[4].mxu1  ;;  %v421_v46 = vpop.f32.mrb[5].mxu0 }
  0xee   : > { %v540_v47 = vadd.f32 %v539_v45, %v1157_v25  ;;  %v422_v48 = vadd.f32 %v421_v46, %v1160_v26  ;;  %v541_v49 = vpop.f32.mrb[5].mxu1  ;;  %v423_v50 = vpop.f32.mrb[6].mxu0 }
  0xef   : > { %735 = vst [vmem:[%s1165_s30 + $0x30] sm:$0xff] %v420_v44  ;;  %v542_v51 = vadd.f32 %v541_v49, %v1160_v26  ;;  %v424_v52 = vadd.f32 %v423_v50, %v1157_v25  ;;  %v543_v53 = vpop.f32.mrb[6].mxu1  ;;  %v425_v54 = vpop.f32.mrb[7].mxu0 }
  0xf0   : > { %807 = vst [vmem:[%s1165_s30 + $0x270] sm:$0xff] %v540_v47  ;;  %736 = vst [vmem:[%s1165_s30 + $0x38] sm:$0xff] %v422_v48  ;;  %v544_v55 = vadd.f32 %v543_v53, %v1157_v25  ;;  %v426_v56 = vadd.f32 %v425_v54, %v1160_v26  ;;  %v545_v57 = vpop.f32.mrb[7].mxu1 }
  0xf1   : > { %808 = vst [vmem:[%s1165_s30 + $0x278] sm:$0xff] %v542_v51  ;;  %738 = vst [vmem:[%s1165_s30 + $0x48] sm:$0xff] %v424_v52  ;;  %v546_v58 = vadd.f32 %v545_v57, %v1160_v26 }
  0xf2   : > { %810 = vst [vmem:[%s1165_s30 + $0x288] sm:$0xff] %v544_v55  ;;  %739 = vst [vmem:[%s1165_s30 + $0x50] sm:$0xff] %v426_v56 }
  0xf3   : > { %811 = vst [vmem:[%s1165_s30 + $0x290] sm:$0xff] %v546_v58 }
  0xf4   : > { %v429_v59 = vpop.f32.mrb[8].mxu0 }
  0xf5   : > { %v430_v60 = vadd.f32 %v429_v59, %v1157_v25  ;;  %v549_v61 = vpop.f32.mrb[8].mxu1  ;;  %v431_v62 = vpop.f32.mrb[9].mxu0 }
  0xf6   : > { %v550_v63 = vadd.f32 %v549_v61, %v1157_v25  ;;  %v432_v0 = vadd.f32 %v431_v62, %v1160_v26  ;;  %v551_v1 = vpop.f32.mrb[9].mxu1  ;;  %v433_v2 = vpop.f32.mrb[10].mxu0 }
  0xf7   : > { %741 = vst [vmem:[%s1165_s30 + $0x60] sm:$0xff] %v430_v60  ;;  %v552_v3 = vadd.f32 %v551_v1, %v1160_v26  ;;  %v434_v4 = vadd.f32 %v433_v2, %v1157_v25  ;;  %v553_v5 = vpop.f32.mrb[10].mxu1  ;;  %v435_v6 = vpop.f32.mrb[11].mxu0 }
  0xf8   : > { %813 = vst [vmem:[%s1165_s30 + $0x2a0] sm:$0xff] %v550_v63  ;;  %742 = vst [vmem:[%s1165_s30 + $0x68] sm:$0xff] %v432_v0  ;;  %v554_v7 = vadd.f32 %v553_v5, %v1157_v25  ;;  %v436_v8 = vadd.f32 %v435_v6, %v1160_v26  ;;  %v555_v9 = vpop.f32.mrb[11].mxu1 }
  0xf9   : > { %814 = vst [vmem:[%s1165_s30 + $0x2a8] sm:$0xff] %v552_v3  ;;  %744 = vst [vmem:[%s1165_s30 + $0x78] sm:$0xff] %v434_v4  ;;  %v556_v10 = vadd.f32 %v555_v9, %v1160_v26 }
  0xfa   : > { %816 = vst [vmem:[%s1165_s30 + $0x2b8] sm:$0xff] %v554_v7  ;;  %745 = vst [vmem:[%s1165_s30 + $0x80] sm:$0xff] %v436_v8 }
  0xfb   : > { %817 = vst [vmem:[%s1165_s30 + $0x2c0] sm:$0xff] %v556_v10 }
  0xfc   : > { %v439_v11 = vpop.f32.mrb[12].mxu0 }
  0xfd   : > { %v440_v12 = vadd.f32 %v439_v11, %v1157_v25  ;;  %v559_v13 = vpop.f32.mrb[12].mxu1  ;;  %v441_v14 = vpop.f32.mrb[13].mxu0 }
  0xfe   : > { %v560_v15 = vadd.f32 %v559_v13, %v1157_v25  ;;  %v442_v16 = vadd.f32 %v441_v14, %v1160_v26  ;;  %v561_v17 = vpop.f32.mrb[13].mxu1  ;;  %v443_v18 = vpop.f32.mrb[14].mxu0 }
  0xff   : > { %747 = vst [vmem:[%s1165_s30 + $0x90] sm:$0xff] %v440_v12  ;;  %v562_v20 = vadd.f32 %v561_v17, %v1160_v26  ;;  %v444_v22 = vadd.f32 %v443_v18, %v1157_v25  ;;  %v563_v24 = vpop.f32.mrb[14].mxu1  ;;  %v445_v27 = vpop.f32.mrb[15].mxu0 }
 0x100   : > { %819 = vst [vmem:[%s1165_s30 + $0x2d0] sm:$0xff] %v560_v15  ;;  %748 = vst [vmem:[%s1165_s30 + $0x98] sm:$0xff] %v442_v16  ;;  %v564_v28 = vadd.f32 %v563_v24, %v1157_v25  ;;  %v446_v29 = vadd.f32 %v445_v27, %v1160_v26  ;;  %v565_v30 = vpop.f32.mrb[15].mxu1 }
 0x101   : > { %820 = vst [vmem:[%s1165_s30 + $0x2d8] sm:$0xff] %v562_v20  ;;  %750 = vst [vmem:[%s1165_s30 + $0xa8] sm:$0xff] %v444_v22  ;;  %v566_v21 = vadd.f32 %v565_v30, %v1160_v26 }
 0x102   : > { %822 = vst [vmem:[%s1165_s30 + $0x2e8] sm:$0xff] %v564_v28  ;;  %751 = vst [vmem:[%s1165_s30 + $0xb0] sm:$0xff] %v446_v29 }
 0x103   : > { %823 = vst [vmem:[%s1165_s30 + $0x2f0] sm:$0xff] %v566_v21 }
 0x104   : > { %v449_v32 = vpop.f32.mrb[16].mxu0 }
 0x105   : > { %v450_v33 = vadd.f32 %v449_v32, %v1157_v25  ;;  %v966_v34 = vpop.f32.mrb[16].mxu1  ;;  %v451_v35 = vpop.f32.mrb[17].mxu0 }
 0x106   : > { %v611_v36 = vadd.f32 %v966_v34, %v1232_v31  ;;  %v452_v37 = vadd.f32 %v451_v35, %v1160_v26  ;;  %v602_v38 = vpop.f32.mrb[17].mxu1  ;;  %v453_v39 = vpop.f32.mrb[18].mxu0 }
 0x107   : > { %753 = vst [vmem:[%s1165_s30 + $0xc0] sm:$0xff] %v450_v33  ;;  %v603_v23 = vadd.f32 %v602_v38, %v1232_v31  ;;  %v454_v40 = vadd.f32 %v453_v39, %v1157_v25  ;;  %v967_v41 = vpop.f32.mrb[18].mxu1  ;;  %v455_v42 = vpop.f32.mrb[19].mxu0 }
 0x108   : > { %737 = vst [vmem:[%s1165_s30 + $0x40] sm:$0xff] %v611_v36  ;;  %754 = vst [vmem:[%s1165_s30 + $0xc8] sm:$0xff] %v452_v37  ;;  %v614_v43 = vadd.f32 %v967_v41, %v1232_v31  ;;  %v456_v44 = vadd.f32 %v455_v42, %v1160_v26  ;;  %v605_v45 = vpop.f32.mrb[19].mxu1 }
 0x109   : > { %731 = vst [vmem:[%s1165_s30 + $0x10] sm:$0xff] %v603_v23  ;;  %756 = vst [vmem:[%s1165_s30 + $0xd8] sm:$0xff] %v454_v40  ;;  %v606_v46 = vadd.f32 %v605_v45, %v1232_v31 }
 0x10a   : > { %740 = vst [vmem:[%s1165_s30 + $0x58] sm:$0xff] %v614_v43  ;;  %757 = vst [vmem:[%s1165_s30 + $0xe0] sm:$0xff] %v456_v44 }
 0x10b   : > { %734 = vst [vmem:[%s1165_s30 + $0x28] sm:$0xff] %v606_v46 }
 0x10c   : > { %v459_v47 = vpop.f32.mrb[20].mxu0 }
 0x10d   : > { %v460_v48 = vadd.f32 %v459_v47, %v1157_v25  ;;  %v970_v49 = vpop.f32.mrb[20].mxu1  ;;  %v461_v50 = vpop.f32.mrb[21].mxu0 }
 0x10e   : > { %v627_v51 = vadd.f32 %v970_v49, %v1232_v31  ;;  %v462_v52 = vadd.f32 %v461_v50, %v1160_v26  ;;  %v618_v53 = vpop.f32.mrb[21].mxu1  ;;  %v463_v54 = vpop.f32.mrb[22].mxu0 }
 0x10f   : > { %759 = vst [vmem:[%s1165_s30 + $0xf0] sm:$0xff] %v460_v48  ;;  %v619_v55 = vadd.f32 %v618_v53, %v1232_v31  ;;  %v464_v56 = vadd.f32 %v463_v54, %v1157_v25  ;;  %v971_v57 = vpop.f32.mrb[22].mxu1  ;;  %v465_v58 = vpop.f32.mrb[23].mxu0 }
 0x110   : > { %749 = vst [vmem:[%s1165_s30 + $0xa0] sm:$0xff] %v627_v51  ;;  %760 = vst [vmem:[%s1165_s30 + $0xf8] sm:$0xff] %v462_v52  ;;  %v630_v59 = vadd.f32 %v971_v57, %v1232_v31  ;;  %v466_v60 = vadd.f32 %v465_v58, %v1160_v26  ;;  %v621_v61 = vpop.f32.mrb[23].mxu1 }
 0x111   : > { %743 = vst [vmem:[%s1165_s30 + $0x70] sm:$0xff] %v619_v55  ;;  %762 = vst [vmem:[%s1165_s30 + $0x108] sm:$0xff] %v464_v56  ;;  %v622_v62 = vadd.f32 %v621_v61, %v1232_v31 }
 0x112   : > { %752 = vst [vmem:[%s1165_s30 + $0xb8] sm:$0xff] %v630_v59  ;;  %763 = vst [vmem:[%s1165_s30 + $0x110] sm:$0xff] %v466_v60 }
 0x113   : > { %746 = vst [vmem:[%s1165_s30 + $0x88] sm:$0xff] %v622_v62 }
 0x114   : > { %v469_v63 = vpop.f32.mrb[24].mxu0 }
 0x115   : > { %v470_v0 = vadd.f32 %v469_v63, %v1157_v25  ;;  %v974_v1 = vpop.f32.mrb[24].mxu1  ;;  %v471_v2 = vpop.f32.mrb[25].mxu0 }
 0x116   : > { %v643_v3 = vadd.f32 %v974_v1, %v1232_v31  ;;  %v472_v4 = vadd.f32 %v471_v2, %v1160_v26  ;;  %v634_v5 = vpop.f32.mrb[25].mxu1  ;;  %v473_v6 = vpop.f32.mrb[26].mxu0 }
 0x117   : > { %765 = vst [vmem:[%s1165_s30 + $0x120] sm:$0xff] %v470_v0  ;;  %v635_v7 = vadd.f32 %v634_v5, %v1232_v31  ;;  %v474_v8 = vadd.f32 %v473_v6, %v1157_v25  ;;  %v975_v9 = vpop.f32.mrb[26].mxu1  ;;  %v475_v10 = vpop.f32.mrb[27].mxu0 }
 0x118   : > { %761 = vst [vmem:[%s1165_s30 + $0x100] sm:$0xff] %v643_v3  ;;  %766 = vst [vmem:[%s1165_s30 + $0x128] sm:$0xff] %v472_v4  ;;  %v646_v11 = vadd.f32 %v975_v9, %v1232_v31  ;;  %v476_v12 = vadd.f32 %v475_v10, %v1160_v26  ;;  %v637_v13 = vpop.f32.mrb[27].mxu1 }
 0x119   : > { %755 = vst [vmem:[%s1165_s30 + $0xd0] sm:$0xff] %v635_v7  ;;  %768 = vst [vmem:[%s1165_s30 + $0x138] sm:$0xff] %v474_v8  ;;  %v638_v14 = vadd.f32 %v637_v13, %v1232_v31 }
 0x11a   : > { %764 = vst [vmem:[%s1165_s30 + $0x118] sm:$0xff] %v646_v11  ;;  %769 = vst [vmem:[%s1165_s30 + $0x140] sm:$0xff] %v476_v12 }
 0x11b   : > { %758 = vst [vmem:[%s1165_s30 + $0xe8] sm:$0xff] %v638_v14 }
 0x11c   : > { %v479_v15 = vpop.f32.mrb[28].mxu0 }
 0x11d   : > { %v480_v16 = vadd.f32 %v479_v15, %v1157_v25  ;;  %v978_v17 = vpop.f32.mrb[28].mxu1  ;;  %v481_v18 = vpop.f32.mrb[29].mxu0 }
 0x11e   : > { %v659_v19 = vadd.f32 %v978_v17, %v1232_v31  ;;  %v482_v20 = vadd.f32 %v481_v18, %v1160_v26  ;;  %v650_v22 = vpop.f32.mrb[29].mxu1  ;;  %v483_v24 = vpop.f32.mrb[30].mxu0 }
 0x11f   : > { %771 = vst [vmem:[%s1165_s30 + $0x150] sm:$0xff] %v480_v16  ;;  %v651_v27 = vadd.f32 %v650_v22, %v1232_v31  ;;  %v484_v28 = vadd.f32 %v483_v24, %v1157_v25  ;;  %v979_v29 = vpop.f32.mrb[30].mxu1  ;;  %v485_v30 = vpop.f32.mrb[31].mxu0 }
 0x120   : > { %773 = vst [vmem:[%s1165_s30 + $0x160] sm:$0xff] %v659_v19  ;;  %772 = vst [vmem:[%s1165_s30 + $0x158] sm:$0xff] %v482_v20  ;;  %v662_v21 = vadd.f32 %v979_v29, %v1232_v31  ;;  %v486_v32 = vadd.f32 %v485_v30, %v1160_v26  ;;  %v653_v33 = vpop.f32.mrb[31].mxu1 }
 0x121   : > { %767 = vst [vmem:[%s1165_s30 + $0x130] sm:$0xff] %v651_v27  ;;  %774 = vst [vmem:[%s1165_s30 + $0x168] sm:$0xff] %v484_v28  ;;  %v654_v34 = vadd.f32 %v653_v33, %v1232_v31 }
 0x122   : > { %776 = vst [vmem:[%s1165_s30 + $0x178] sm:$0xff] %v662_v21  ;;  %775 = vst [vmem:[%s1165_s30 + $0x170] sm:$0xff] %v486_v32 }
 0x123   : > { %770 = vst [vmem:[%s1165_s30 + $0x148] sm:$0xff] %v654_v34 }
 0x124   : > { %v489_v35 = vpop.f32.mrb[32].mxu0 }
 0x125   : > { %v490_v36 = vadd.f32 %v489_v35, %v1157_v25  ;;  %v982_v37 = vpop.f32.mrb[32].mxu1  ;;  %v491_v38 = vpop.f32.mrb[33].mxu0 }
 0x126   : > { %v675_v39 = vadd.f32 %v982_v37, %v1232_v31  ;;  %v492_v23 = vadd.f32 %v491_v38, %v1160_v26  ;;  %v666_v40 = vpop.f32.mrb[33].mxu1  ;;  %v493_v41 = vpop.f32.mrb[34].mxu0 }
 0x127   : > { %777 = vst [vmem:[%s1165_s30 + $0x180] sm:$0xff] %v490_v36  ;;  %v667_v42 = vadd.f32 %v666_v40, %v1232_v31  ;;  %v494_v43 = vadd.f32 %v493_v41, %v1157_v25  ;;  %v983_v44 = vpop.f32.mrb[34].mxu1  ;;  %v495_v45 = vpop.f32.mrb[35].mxu0 }
 0x128   : > { %785 = vst [vmem:[%s1165_s30 + $0x1c0] sm:$0xff] %v675_v39  ;;  %778 = vst [vmem:[%s1165_s30 + $0x188] sm:$0xff] %v492_v23  ;;  %v678_v46 = vadd.f32 %v983_v44, %v1232_v31  ;;  %v496_v47 = vadd.f32 %v495_v45, %v1160_v26  ;;  %v669_v48 = vpop.f32.mrb[35].mxu1 }
 0x129   : > { %779 = vst [vmem:[%s1165_s30 + $0x190] sm:$0xff] %v667_v42  ;;  %780 = vst [vmem:[%s1165_s30 + $0x198] sm:$0xff] %v494_v43  ;;  %v670_v49 = vadd.f32 %v669_v48, %v1232_v31 }
 0x12a   : > { %788 = vst [vmem:[%s1165_s30 + $0x1d8] sm:$0xff] %v678_v46  ;;  %781 = vst [vmem:[%s1165_s30 + $0x1a0] sm:$0xff] %v496_v47 }
 0x12b   : > { %782 = vst [vmem:[%s1165_s30 + $0x1a8] sm:$0xff] %v670_v49 }
 0x12c   : > { %v499_v50 = vpop.f32.mrb[36].mxu0 }
 0x12d   : > { %v500_v51 = vadd.f32 %v499_v50, %v1157_v25  ;;  %v986_v52 = vpop.f32.mrb[36].mxu1  ;;  %v501_v53 = vpop.f32.mrb[37].mxu0 }
 0x12e   : > { %v691_v54 = vadd.f32 %v986_v52, %v1232_v31  ;;  %v502_v55 = vadd.f32 %v501_v53, %v1160_v26  ;;  %v682_v56 = vpop.f32.mrb[37].mxu1  ;;  %v503_v57 = vpop.f32.mrb[38].mxu0 }
 0x12f   : > { %783 = vst [vmem:[%s1165_s30 + $0x1b0] sm:$0xff] %v500_v51  ;;  %v683_v58 = vadd.f32 %v682_v56, %v1232_v31  ;;  %v504_v59 = vadd.f32 %v503_v57, %v1157_v25  ;;  %v987_v60 = vpop.f32.mrb[38].mxu1  ;;  %v505_v61 = vpop.f32.mrb[39].mxu0 }
 0x130   : > { %797 = vst [vmem:[%s1165_s30 + $0x220] sm:$0xff] %v691_v54  ;;  %784 = vst [vmem:[%s1165_s30 + $0x1b8] sm:$0xff] %v502_v55  ;;  %v694_v62 = vadd.f32 %v987_v60, %v1232_v31  ;;  %v506_v63 = vadd.f32 %v505_v61, %v1160_v26  ;;  %v685_v0 = vpop.f32.mrb[39].mxu1 }
 0x131   : > { %791 = vst [vmem:[%s1165_s30 + $0x1f0] sm:$0xff] %v683_v58  ;;  %786 = vst [vmem:[%s1165_s30 + $0x1c8] sm:$0xff] %v504_v59  ;;  %v686_v1 = vadd.f32 %v685_v0, %v1232_v31 }
 0x132   : > { %800 = vst [vmem:[%s1165_s30 + $0x238] sm:$0xff] %v694_v62  ;;  %787 = vst [vmem:[%s1165_s30 + $0x1d0] sm:$0xff] %v506_v63 }
 0x133   : > { %794 = vst [vmem:[%s1165_s30 + $0x208] sm:$0xff] %v686_v1 }
 0x134   : > { %v509_v2 = vpop.f32.mrb[40].mxu0 }
 0x135   : > { %v510_v3 = vadd.f32 %v509_v2, %v1157_v25  ;;  %v990_v4 = vpop.f32.mrb[40].mxu1  ;;  %v511_v5 = vpop.f32.mrb[41].mxu0 }
 0x136   : > { %v707_v6 = vadd.f32 %v990_v4, %v1232_v31  ;;  %v512_v7 = vadd.f32 %v511_v5, %v1160_v26  ;;  %v698_v8 = vpop.f32.mrb[41].mxu1  ;;  %v513_v9 = vpop.f32.mrb[42].mxu0 }
 0x137   : > { %789 = vst [vmem:[%s1165_s30 + $0x1e0] sm:$0xff] %v510_v3  ;;  %v699_v10 = vadd.f32 %v698_v8, %v1232_v31  ;;  %v514_v11 = vadd.f32 %v513_v9, %v1157_v25  ;;  %v991_v12 = vpop.f32.mrb[42].mxu1  ;;  %v515_v13 = vpop.f32.mrb[43].mxu0 }
 0x138   : > { %809 = vst [vmem:[%s1165_s30 + $0x280] sm:$0xff] %v707_v6  ;;  %790 = vst [vmem:[%s1165_s30 + $0x1e8] sm:$0xff] %v512_v7  ;;  %v710_v14 = vadd.f32 %v991_v12, %v1232_v31  ;;  %v516_v15 = vadd.f32 %v515_v13, %v1160_v26  ;;  %v701_v16 = vpop.f32.mrb[43].mxu1 }
 0x139   : > { %803 = vst [vmem:[%s1165_s30 + $0x250] sm:$0xff] %v699_v10  ;;  %792 = vst [vmem:[%s1165_s30 + $0x1f8] sm:$0xff] %v514_v11  ;;  %v702_v17 = vadd.f32 %v701_v16, %v1232_v31 }
 0x13a   : > { %812 = vst [vmem:[%s1165_s30 + $0x298] sm:$0xff] %v710_v14  ;;  %793 = vst [vmem:[%s1165_s30 + $0x200] sm:$0xff] %v516_v15 }
 0x13b   : > { %806 = vst [vmem:[%s1165_s30 + $0x268] sm:$0xff] %v702_v17 }
 0x13c   : > { %v519_v18 = vpop.f32.mrb[44].mxu0 }
 0x13d   : > { %v520_v19 = vadd.f32 %v519_v18, %v1157_v25  ;;  %v994_v20 = vpop.f32.mrb[44].mxu1  ;;  %v521_v22 = vpop.f32.mrb[45].mxu0 }
 0x13e   : > { %v723_v24 = vadd.f32 %v994_v20, %v1232_v31  ;;  %v522_v27 = vadd.f32 %v521_v22, %v1160_v26  ;;  %v714_v28 = vpop.f32.mrb[45].mxu1  ;;  %v523_v29 = vpop.f32.mrb[46].mxu0 }
 0x13f   : > { %795 = vst [vmem:[%s1165_s30 + $0x210] sm:$0xff] %v520_v19  ;;  %v715_v30 = vadd.f32 %v714_v28, %v1232_v31  ;;  %v524_v21 = vadd.f32 %v523_v29, %v1157_v25  ;;  %v995_v32 = vpop.f32.mrb[46].mxu1  ;;  %v525_v33 = vpop.f32.mrb[47].mxu0 }
 0x140   : > { %821 = vst [vmem:[%s1165_s30 + $0x2e0] sm:$0xff] %v723_v24  ;;  %796 = vst [vmem:[%s1165_s30 + $0x218] sm:$0xff] %v522_v27  ;;  %v726_v34 = vadd.f32 %v995_v32, %v1232_v31  ;;  %v526_v35 = vadd.f32 %v525_v33, %v1160_v26  ;;  %v717_v36 = vpop.f32.mrb[47].mxu1 }
 0x141   : > { %815 = vst [vmem:[%s1165_s30 + $0x2b0] sm:$0xff] %v715_v30  ;;  %798 = vst [vmem:[%s1165_s30 + $0x228] sm:$0xff] %v524_v21  ;;  %v718_v37 = vadd.f32 %v717_v36, %v1232_v31 }
 0x142   : > { %824 = vst [vmem:[%s1165_s30 + $0x2f8] sm:$0xff] %v726_v34  ;;  %799 = vst [vmem:[%s1165_s30 + $0x230] sm:$0xff] %v526_v35 }
 0x143   : > { %818 = vst [vmem:[%s1165_s30 + $0x2c8] sm:$0xff] %v718_v37 }
 0x144 PF: > { %s13_s12 = sadd.s32 1, %s1034_s12  }
 0x145   : > { %p10_p4 = scmp.ge.s32.totalorder %s13_s12, 4  }
 0x147   :  { %12 = sbr.rel (!%p10_p4) target bundleno = 1 (0x1), region = 62 }

// kernel: div.204
= control target key start
LH: loop header
LB: loop body
LE: loop exit
PB: predicated region body
PF: predicated region fallthrough
CT: control target
= control target key end

     0   :  { %s76_s0 = inlined_call_operand.vmem [shape: f32[2,4,256], index: 0, kind: input, shape index: {}]   ;;  %s77_s1 = inlined_call_operand.vmem [shape: f32[8,256], index: 1, kind: output, shape index: {}]  }
   0x1   :  { %v36_v0 = vld [vmem:[%s76_s0 + $0xc] sm:$0xf]  ;;  %v37_v1 = vld [vmem:[%s76_s0 + $0x8] sm:$0xf]  ;;  %v38_v2 = vld [vmem:[%s76_s0 + $0x4] sm:$0xf] }
   0x2   :  { %8 = vst [vmem:[#allocation0 + $0x18] sm:$0xf] %v36_v0  ;;  %13 = vst [vmem:[#allocation0 + $0x10] sm:$0xf] %v37_v1  ;;  %v18_v3 = vld [vmem:[%s76_s0] sm:$0xf] }
   0x3   :  { %17 = vst [vmem:[#allocation0 + $0x8] sm:$0xf] %v38_v2  ;;  %19 = vst [vmem:[#allocation0] sm:$0xf] %v18_v3 }
   0x9   :  { %v27_v5 = vld [vmem:[#allocation0 + $0x10] sm:$0xf]   ;;  %v31_v6 = vld [vmem:[#allocation0 + $0x18] sm:$0xf]  }
   0xa   :  { %v23_v4 = vld [vmem:[#allocation0 + $0x8] sm:$0xf]   ;;  %v20_v7 = vld [vmem:[#allocation0] sm:$0xf]   ;;  %40 = vst [vmem:[%s77_s1 + $0x4] sm:$0xf] %v27_v5  }
   0xb   :  { %39 = vst [vmem:[%s77_s1 + $0x8] sm:$0xf] %v23_v4   ;;  %41 = vst [vmem:[%s77_s1 + $0xc] sm:$0xf] %v31_v6  }
   0xc   :  { %21 = vst [vmem:[%s77_s1] sm:$0xf] %v20_v7  }

// kernel: unet_forward.77
= control target key start
LH: loop header
LB: loop body
LE: loop exit
PB: predicated region body
PF: predicated region fallthrough
CT: control target
= control target key end

     0   :  { %s785_s9 = smov 0   ;;  %s880_s0 = inlined_call_operand.vmem [shape: bf16[8,32,32], index: 0, kind: input, shape index: {}]   ;;  %s881_s1 = inlined_call_operand.vmem [shape: bf16[8,32,256], index: 1, kind: input, shape index: {}]   ;;  %s882_s2 = inlined_call_operand.vmem [shape: f32[8,32,256], index: 2, kind: output, shape index: {}]  }
   0x1 LB: > { %s669_s10 = sadd.s32 4294967295, %s767_s9   ;;  %p673_p0 = scmp.ge.s32.totalorder %s767_s9, 1  ;;  %s767_s9 = sphi %s785_s9, %s12_s9  }
   0x2   : > { %p126_p1 = scmp.lt.s32.totalorder %s767_s9, 3 }
   0x4   : > { %p127_p2 = pnand %p673_p0, %p126_p1 }
   0x5   : > { %s674_s11 = sshll.u32 (!%p127_p2), %s669_s10, 2  ;;  %v769_v0 = vmov (!%p127_p2), 0   ;;  %vm240_vm0 = vcmask (!%p127_p2), 261120  }
   0x6   : > { %130 = sbr.rel (%p127_p2) target bundleno = 266 (0x10a), region = 28  ;;  %p157_p3 = scmp.lt.s32.totalorder (!%p127_p2), %s674_s11, 7  ;;  %279 = vmatprep.mubr.bf16.mxu0 (!%p127_p2), %v769_v0  ;;  %368 = vmatprep.mubr.bf16.mxu1 (!%p127_p2), %v769_v0 }
   0xd   : > { %s884_s11 = smov (!%p157_p3, %s674_s11), 7 }
   0xe   : > { %s718_s12 = sshll.u32 %s884_s11, 5  ;;  %s717_s16 = sshll.u32 %s884_s11, 4 }
   0xf   : > { %s799_s15 = scalar_lea.vmem %s881_s1, %s718_s12  ;;  %s810_s19 = scalar_lea.vmem %s880_s0, %s717_s16 }
  0x10   : > { %v729_v1 = vld [vmem:[%s799_s15 + $0x4] ss:$8 sps:$4 sm:$0xff]   ;;  %v733_v3 = vld [vmem:[%s799_s15] ss:$8 sps:$4 sm:$0xff]   ;;  %v735_v5 = vld [vmem:[%s799_s15 + $0x14] ss:$8 sps:$4 sm:$0xff]  }
  0x11   : > { %v731_v2 = vld [vmem:[%s799_s15 + $0x24] ss:$8 sps:$4 sm:$0xff]   ;;  %247 = vmatprep.subr.bf16.mxu0 %v729_v1  ;;  %v734_v4 = vld [vmem:[%s799_s15 + $0x20] ss:$8 sps:$4 sm:$0xff]   ;;  %v737_v6 = vld [vmem:[%s799_s15 + $0x34] ss:$8 sps:$4 sm:$0xff]  }
  0x12   : > { %336 = vmatprep.subr.bf16.mxu1 %v731_v2  ;;  %248 = vmatpush1.bf16.msra.mxu0 %v733_v3  ;;  %v739_v7 = vld [vmem:[%s799_s15 + $0x10] ss:$8 sps:$4 sm:$0xff]   ;;  %v741_v9 = vld [vmem:[%s810_s19] sm:$0xff]   ;;  %v749_v16 = vld [vmem:[%s810_s19 + $0x8] sm:$0xff]   ;;  %s719_s20 = sshll.u32 %s884_s11, 6 }
  0x13   : > { %337 = vmatpush1.bf16.msra.mxu1 %v734_v4  ;;  %249 = vmatprep.subr.bf16.mxu0 %v735_v5  ;;  %v740_v8 = vld [vmem:[%s799_s15 + $0x30] ss:$8 sps:$4 sm:$0xff]   ;;  %v743_v11 = vld [vmem:[%s799_s15 + $0x40] ss:$8 sps:$4 sm:$0xff]   ;;  %v745_v12 = vld [vmem:[%s799_s15 + $0x44] ss:$8 sps:$4 sm:$0xff]   ;;  %s843_s23 = scalar_lea.vmem %s882_s2, %s719_s20 }
  0x14   : > { %338 = vmatprep.subr.bf16.mxu1 %v737_v6  ;;  %v742_v10 = vld [vmem:[%s810_s19 + $0x10] sm:$0xff]   ;;  %v746_v13 = vld [vmem:[%s799_s15 + $0x60] ss:$8 sps:$4 sm:$0xff]   ;;  %v748_v14 = vld [vmem:[%s799_s15 + $0x64] ss:$8 sps:$4 sm:$0xff]  }
  0x15   : > { %v751_v15 = vld [vmem:[%s799_s15 + $0x50] ss:$8 sps:$4 sm:$0xff]   ;;  %v753_v17 = vld [vmem:[%s799_s15 + $0x54] ss:$8 sps:$4 sm:$0xff]   ;;  %v757_v21 = vld [vmem:[%s810_s19 + $0x20] sm:$0xff]  }
  0x16   : > { %250 = vmatpush1.bf16.msra.mxu0 %v739_v7  ;;  %v754_v18 = vld [vmem:[%s799_s15 + $0x70] ss:$8 sps:$4 sm:$0xff]   ;;  %v756_v19 = vld [vmem:[%s799_s15 + $0x74] ss:$8 sps:$4 sm:$0xff]   ;;  %v759_v23 = vld [vmem:[%s810_s19 + $0x28] sm:$0xff]  }
  0x17   : > { %339 = vmatpush1.bf16.msra.mxu1 %v740_v8  ;;  %425 = vmatprep.subr.bf16.mxu0 %v745_v12  ;;  %v750_v20 = vld [vmem:[%s810_s19 + $0x18] sm:$0xff]   ;;  %v758_v22 = vld [vmem:[%s810_s19 + $0x30] sm:$0xff]  }
  0x18   : > { %514 = vmatprep.subr.bf16.mxu1 %v748_v14  ;;  %v760_v24 = vld [vmem:[%s810_s19 + $0x38] sm:$0xff]  }
  0x19   : > { %689 = vmatmul.mubr.msk.bf16.vlgmr.msra.gmra.mrb[0].mxu0 %vm240_vm0, %v741_v9 }
  0x1a   : > { %697 = vmatmul.mubr.msk.bf16.vlgmr.msra.gmra.mrb[0].mxu1 %vm240_vm0, %v742_v10  ;;  %426 = vmatpush1.bf16.msra.mxu0 %v743_v11 }
  0x1b   : > { %515 = vmatpush1.bf16.msra.mxu1 %v746_v13  ;;  %289 = vmatprep.mubr.bf16.mxu0 %v769_v0 }
  0x1c   : > { %378 = vmatprep.mubr.bf16.mxu1 %v769_v0  ;;  %427 = vmatprep.subr.bf16.mxu0 %v753_v17 }
  0x1d   : > { %516 = vmatprep.subr.bf16.mxu1 %v756_v19 }
  0x1e   : > { %428 = vmatpush1.bf16.msra.mxu0 %v751_v15 }
  0x1f   : > { %517 = vmatpush1.bf16.msra.mxu1 %v754_v18 }
  0x21   : > { %690 = vmatmul.mubr.msk.bf16.gmra.mrb[4].mxu0 %vm240_vm0, %v749_v16 }
  0x22   : > { %698 = vmatmul.mubr.msk.bf16.gmra.mrb[4].mxu1 %vm240_vm0, %v750_v20  ;;  %457 = vmatprep.mubr.bf16.mxu0 %v769_v0 }
  0x23   : > { %546 = vmatprep.mubr.bf16.mxu1 %v769_v0 }
  0x29   : > { %705 = vmatmul.mubr.msk.bf16.vlgmr.msra.gmra.mrb[8].mxu0 %vm240_vm0, %v757_v21 }
  0x2a   : > { %713 = vmatmul.mubr.msk.bf16.vlgmr.msra.gmra.mrb[8].mxu1 %vm240_vm0, %v758_v22  ;;  %467 = vmatprep.mubr.bf16.mxu0 %v769_v0 }
  0x2b   : > { %556 = vmatprep.mubr.bf16.mxu1 %v769_v0 }
  0x31   : > { %706 = vmatmul.mubr.msk.bf16.gmra.mrb[12].mxu0 %vm240_vm0, %v759_v23 }
  0x32   : > { %714 = vmatmul.mubr.msk.bf16.gmra.mrb[12].mxu1 %vm240_vm0, %v760_v24 }
  0xec   : > { %v281_v25 = vpop.f32.mrb[0].mxu0 }
  0xed   : > { %v370_v26 = vpop.f32.mrb[0].mxu1  ;;  %567 = vst [vmem:[%s843_s23] sm:$0xff] %v281_v25  ;;  %v283_v27 = vpop.f32.mrb[1].mxu0 }
  0xee   : > { %v372_v28 = vpop.f32.mrb[1].mxu1  ;;  %575 = vst [vmem:[%s843_s23 + $0x40] sm:$0xff] %v370_v26  ;;  %568 = vst [vmem:[%s843_s23 + $0x8] sm:$0xff] %v283_v27  ;;  %v285_v29 = vpop.f32.mrb[2].mxu0 }
  0xef   : > { %v374_v30 = vpop.f32.mrb[2].mxu1  ;;  %576 = vst [vmem:[%s843_s23 + $0x48] sm:$0xff] %v372_v28  ;;  %569 = vst [vmem:[%s843_s23 + $0x10] sm:$0xff] %v285_v29  ;;  %v287_v31 = vpop.f32.mrb[3].mxu0 }
  0xf0   : > { %v376_v32 = vpop.f32.mrb[3].mxu1  ;;  %577 = vst [vmem:[%s843_s23 + $0x50] sm:$0xff] %v374_v30  ;;  %570 = vst [vmem:[%s843_s23 + $0x18] sm:$0xff] %v287_v31 }
  0xf1   : > { %578 = vst [vmem:[%s843_s23 + $0x58] sm:$0xff] %v376_v32 }
  0xf4   : > { %v291_v33 = vpop.f32.mrb[4].mxu0 }
  0xf5   : > { %v380_v34 = vpop.f32.mrb[4].mxu1  ;;  %571 = vst [vmem:[%s843_s23 + $0x20] sm:$0xff] %v291_v33  ;;  %v293_v35 = vpop.f32.mrb[5].mxu0 }
  0xf6   : > { %v382_v36 = vpop.f32.mrb[5].mxu1  ;;  %579 = vst [vmem:[%s843_s23 + $0x60] sm:$0xff] %v380_v34  ;;  %572 = vst [vmem:[%s843_s23 + $0x28] sm:$0xff] %v293_v35  ;;  %v295_v37 = vpop.f32.mrb[6].mxu0 }
  0xf7   : > { %v384_v38 = vpop.f32.mrb[6].mxu1  ;;  %580 = vst [vmem:[%s843_s23 + $0x68] sm:$0xff] %v382_v36  ;;  %573 = vst [vmem:[%s843_s23 + $0x30] sm:$0xff] %v295_v37  ;;  %v297_v39 = vpop.f32.mrb[7].mxu0 }
  0xf8   : > { %v386_v40 = vpop.f32.mrb[7].mxu1  ;;  %581 = vst [vmem:[%s843_s23 + $0x70] sm:$0xff] %v384_v38  ;;  %574 = vst [vmem:[%s843_s23 + $0x38] sm:$0xff] %v297_v39 }
  0xf9   : > { %582 = vst [vmem:[%s843_s23 + $0x78] sm:$0xff] %v386_v40 }
  0xfc   : > { %v459_v41 = vpop.f32.mrb[8].mxu0 }
  0xfd   : > { %v548_v42 = vpop.f32.mrb[8].mxu1  ;;  %583 = vst [vmem:[%s843_s23 + $0x80] sm:$0xff] %v459_v41  ;;  %v461_v43 = vpop.f32.mrb[9].mxu0 }
  0xfe   : > { %v550_v44 = vpop.f32.mrb[9].mxu1  ;;  %591 = vst [vmem:[%s843_s23 + $0xc0] sm:$0xff] %v548_v42  ;;  %584 = vst [vmem:[%s843_s23 + $0x88] sm:$0xff] %v461_v43  ;;  %v463_v45 = vpop.f32.mrb[10].mxu0 }
  0xff   : > { %v552_v46 = vpop.f32.mrb[10].mxu1  ;;  %592 = vst [vmem:[%s843_s23 + $0xc8] sm:$0xff] %v550_v44  ;;  %585 = vst [vmem:[%s843_s23 + $0x90] sm:$0xff] %v463_v45  ;;  %v465_v47 = vpop.f32.mrb[11].mxu0 }
 0x100   : > { %v554_v48 = vpop.f32.mrb[11].mxu1  ;;  %593 = vst [vmem:[%s843_s23 + $0xd0] sm:$0xff] %v552_v46  ;;  %586 = vst [vmem:[%s843_s23 + $0x98] sm:$0xff] %v465_v47 }
 0x101   : > { %594 = vst [vmem:[%s843_s23 + $0xd8] sm:$0xff] %v554_v48 }
 0x104   : > { %v469_v49 = vpop.f32.mrb[12].mxu0 }
 0x105   : > { %v558_v50 = vpop.f32.mrb[12].mxu1  ;;  %587 = vst [vmem:[%s843_s23 + $0xa0] sm:$0xff] %v469_v49  ;;  %v471_v51 = vpop.f32.mrb[13].mxu0 }
 0x106   : > { %v560_v52 = vpop.f32.mrb[13].mxu1  ;;  %595 = vst [vmem:[%s843_s23 + $0xe0] sm:$0xff] %v558_v50  ;;  %588 = vst [vmem:[%s843_s23 + $0xa8] sm:$0xff] %v471_v51  ;;  %v473_v53 = vpop.f32.mrb[14].mxu0 }
 0x107   : > { %v562_v54 = vpop.f32.mrb[14].mxu1  ;;  %596 = vst [vmem:[%s843_s23 + $0xe8] sm:$0xff] %v560_v52  ;;  %589 = vst [vmem:[%s843_s23 + $0xb0] sm:$0xff] %v473_v53  ;;  %v475_v55 = vpop.f32.mrb[15].mxu0 }
 0x108   : > { %v564_v56 = vpop.f32.mrb[15].mxu1  ;;  %597 = vst [vmem:[%s843_s23 + $0xf0] sm:$0xff] %v562_v54  ;;  %590 = vst [vmem:[%s843_s23 + $0xb8] sm:$0xff] %v475_v55 }
 0x109   : > { %598 = vst [vmem:[%s843_s23 + $0xf8] sm:$0xff] %v564_v56 }
 0x10a PF: > { %s12_s9 = sadd.s32 1, %s767_s9  }
 0x10b   : > { %p9_p4 = scmp.ge.s32.totalorder %s12_s9, 4  }
 0x10d   :  { %11 = sbr.rel (!%p9_p4) target bundleno = 1 (0x1), region = 61 }

// kernel: unet_forward.76
= control target key start
LH: loop header
LB: loop body
LE: loop exit
PB: predicated region body
PF: predicated region fallthrough
CT: control target
= control target key end

     0   :  { %s1399_s9 = smov 0   ;;  %s1545_s0 = inlined_call_operand.vmem [shape: bf16[8,32,256], index: 0, kind: input, shape index: {}]   ;;  %s1546_s1 = inlined_call_operand.vmem [shape: bf16[8,256,32], index: 1, kind: input, shape index: {}]   ;;  %s1547_s2 = inlined_call_operand.vmem [shape: f32[8,32,32], index: 2, kind: output, shape index: {}]  }
   0x1 LB: > { %s1069_s10 = sadd.s32 4294967295, %s1382_s9   ;;  %p1073_p0 = scmp.ge.s32.totalorder %s1382_s9, 1  ;;  %s1382_s9 = sphi %s1399_s9, %s12_s9  }
   0x2   : > { %p126_p1 = scmp.lt.s32.totalorder %s1382_s9, 3 }
   0x4   : > { %p127_p2 = pnand %p1073_p0, %p126_p1 }
   0x5   : > { %s1074_s11 = sshll.u32 (!%p127_p2), %s1069_s10, 2  ;;  %vm982_vm0 = vcmask (!%p127_p2), 261120  }
   0x6   : > { %130 = sbr.rel (%p127_p2) target bundleno = 309 (0x135), region = 28  ;;  %p157_p3 = scmp.lt.s32.totalorder (!%p127_p2), %s1074_s11, 7 }
   0xd   : > { %s1549_s11 = smov (!%p157_p3, %s1074_s11), 7 }
   0xe   : > { %s1166_s12 = sshll.u32 %s1549_s11, 7  ;;  %s1165_s16 = sshll.u32 %s1549_s11, 5 }
   0xf   : > { %s1413_s15 = scalar_lea.vmem %s1546_s1, %s1166_s12  ;;  %s1451_s19 = scalar_lea.vmem %s1545_s0, %s1165_s16 }
  0x10   : > { %v1288_v0 = vld [vmem:[%s1413_s15 + $0x40] sm:$0xff]   ;;  %v1292_v4 = vld [vmem:[%s1413_s15 + $0x48] sm:$0xff]   ;;  %v1296_v8 = vld [vmem:[%s1413_s15 + $0x50] sm:$0xff]   ;;  %s1508_s22 = scalar_lea.vmem %s1547_s2, %s1165_s16 }
  0x11   : > { %v1289_v1 = vld [vmem:[%s1413_s15 + $0xc0] sm:$0xff]   ;;  %1168 = vmatprep.subr.bf16.mxu0 %v1288_v0  ;;  %v1293_v5 = vld [vmem:[%s1413_s15 + $0xc8] sm:$0xff]   ;;  %v1297_v9 = vld [vmem:[%s1413_s15 + $0xd0] sm:$0xff]  }
  0x12   : > { %v1290_v2 = vld [vmem:[%s1413_s15] sm:$0xff]   ;;  %1196 = vmatprep.subr.bf16.mxu1 %v1289_v1  ;;  %v1294_v6 = vld [vmem:[%s1413_s15 + $0x8] sm:$0xff]   ;;  %v1298_v10 = vld [vmem:[%s1413_s15 + $0x10] sm:$0xff]  }
  0x13   : > { %v1291_v3 = vld [vmem:[%s1413_s15 + $0x80] sm:$0xff]   ;;  %1169 = vmatpush3.bf16.msra.mxu0 %v1290_v2  ;;  %v1295_v7 = vld [vmem:[%s1413_s15 + $0x88] sm:$0xff]   ;;  %v1299_v11 = vld [vmem:[%s1413_s15 + $0x90] sm:$0xff]  }
  0x14   : > { %1197 = vmatpush3.bf16.msra.mxu1 %v1291_v3  ;;  %1170 = vmatprep.subr.bf16.mxu0 %v1292_v4  ;;  %v1300_v12 = vld [vmem:[%s1413_s15 + $0x58] sm:$0xff]   ;;  %v1304_v16 = vld [vmem:[%s1413_s15 + $0x60] sm:$0xff]   ;;  %v1308_v20 = vld [vmem:[%s1413_s15 + $0x68] sm:$0xff]  }
  0x15   : > { %1198 = vmatprep.subr.bf16.mxu1 %v1293_v5  ;;  %v1301_v13 = vld [vmem:[%s1413_s15 + $0xd8] sm:$0xff]   ;;  %v1305_v17 = vld [vmem:[%s1413_s15 + $0xe0] sm:$0xff]   ;;  %v1309_v21 = vld [vmem:[%s1413_s15 + $0xe8] sm:$0xff]  }
  0x16   : > { %v1302_v14 = vld [vmem:[%s1413_s15 + $0x18] sm:$0xff]   ;;  %v1306_v18 = vld [vmem:[%s1413_s15 + $0x20] sm:$0xff]   ;;  %v1310_v22 = vld [vmem:[%s1413_s15 + $0x28] sm:$0xff]  }
  0x17   : > { %1171 = vmatpush3.bf16.msra.mxu0 %v1294_v6  ;;  %v1303_v15 = vld [vmem:[%s1413_s15 + $0x98] sm:$0xff]   ;;  %v1307_v19 = vld [vmem:[%s1413_s15 + $0xa0] sm:$0xff]   ;;  %v1311_v23 = vld [vmem:[%s1413_s15 + $0xa8] sm:$0xff]  }
  0x18   : > { %1199 = vmatpush3.bf16.msra.mxu1 %v1295_v7  ;;  %1172 = vmatprep.subr.bf16.mxu0 %v1296_v8  ;;  %v1312_v24 = vld [vmem:[%s1413_s15 + $0x70] sm:$0xff]   ;;  %v1316_v28 = vld [vmem:[%s1413_s15 + $0x78] sm:$0xff]   ;;  %v1320_v32 = vld [vmem:[%s1451_s19] ss:$8 sps:$4 sm:$0xff]  }
  0x19   : > { %1200 = vmatprep.subr.bf16.mxu1 %v1297_v9  ;;  %v1313_v25 = vld [vmem:[%s1413_s15 + $0xf0] sm:$0xff]   ;;  %v1317_v29 = vld [vmem:[%s1413_s15 + $0xf8] sm:$0xff]   ;;  %v1322_v33 = vld [vmem:[%s1451_s19 + $0x4] ss:$8 sps:$4 sm:$0xff]  }
  0x1a   : > { %v1314_v26 = vld [vmem:[%s1413_s15 + $0x30] sm:$0xff]   ;;  %v1318_v30 = vld [vmem:[%s1413_s15 + $0x38] sm:$0xff]   ;;  %v1323_v34 = vld [vmem:[%s1451_s19 + $0x20] ss:$8 sps:$4 sm:$0xff]   ;;  %470 = vmatprep.mubr.bf16.mxu0 %v1322_v33 }
  0x1b   : > { %1173 = vmatpush3.bf16.msra.mxu0 %v1298_v10  ;;  %v1315_v27 = vld [vmem:[%s1413_s15 + $0xb0] sm:$0xff]   ;;  %v1319_v31 = vld [vmem:[%s1413_s15 + $0xb8] sm:$0xff]   ;;  %v1325_v35 = vld [vmem:[%s1451_s19 + $0x24] ss:$8 sps:$4 sm:$0xff]  }
  0x1c   : > { %1201 = vmatpush3.bf16.msra.mxu1 %v1299_v11  ;;  %1174 = vmatprep.subr.bf16.mxu0 %v1300_v12  ;;  %v1326_v36 = vld [vmem:[%s1413_s15 + $0x140] sm:$0xff]   ;;  %v1330_v40 = vld [vmem:[%s1413_s15 + $0x148] sm:$0xff]   ;;  %v1334_v44 = vld [vmem:[%s1413_s15 + $0x150] sm:$0xff]  }
  0x1d   : > { %1202 = vmatprep.subr.bf16.mxu1 %v1301_v13  ;;  %635 = vmatprep.mubr.bf16.mxu1 %v1325_v35  ;;  %v1327_v37 = vld [vmem:[%s1413_s15 + $0x1c0] sm:$0xff]   ;;  %v1331_v41 = vld [vmem:[%s1413_s15 + $0x1c8] sm:$0xff]   ;;  %v1335_v45 = vld [vmem:[%s1413_s15 + $0x1d0] sm:$0xff]  }
  0x1e   : > { %v1328_v38 = vld [vmem:[%s1413_s15 + $0x100] sm:$0xff]   ;;  %v1332_v42 = vld [vmem:[%s1413_s15 + $0x108] sm:$0xff]   ;;  %v1336_v46 = vld [vmem:[%s1413_s15 + $0x110] sm:$0xff]  }
  0x1f   : > { %1175 = vmatpush3.bf16.msra.mxu0 %v1302_v14  ;;  %v1329_v39 = vld [vmem:[%s1413_s15 + $0x180] sm:$0xff]   ;;  %v1333_v43 = vld [vmem:[%s1413_s15 + $0x188] sm:$0xff]   ;;  %v1337_v47 = vld [vmem:[%s1413_s15 + $0x190] sm:$0xff]  }
  0x20   : > { %1203 = vmatpush3.bf16.msra.mxu1 %v1303_v15  ;;  %1176 = vmatprep.subr.bf16.mxu0 %v1304_v16  ;;  %v1338_v48 = vld [vmem:[%s1413_s15 + $0x158] sm:$0xff]   ;;  %v1342_v52 = vld [vmem:[%s1413_s15 + $0x160] sm:$0xff]   ;;  %v1348_v57 = vld [vmem:[%s1413_s15 + $0x168] sm:$0xff]  }
  0x21   : > { %1204 = vmatprep.subr.bf16.mxu1 %v1305_v17  ;;  %v1339_v49 = vld [vmem:[%s1413_s15 + $0x1d8] sm:$0xff]   ;;  %v1343_v53 = vld [vmem:[%s1413_s15 + $0x1e0] sm:$0xff]   ;;  %v1349_v58 = vld [vmem:[%s1413_s15 + $0x1e8] sm:$0xff]  }
  0x22   : > { %v1340_v50 = vld [vmem:[%s1413_s15 + $0x118] sm:$0xff]   ;;  %v1344_v54 = vld [vmem:[%s1413_s15 + $0x120] sm:$0xff]   ;;  %v1353_v61 = vld [vmem:[%s1413_s15 + $0x128] sm:$0xff]  }
  0x23   : > { %1177 = vmatpush3.bf16.msra.mxu0 %v1306_v18  ;;  %v1341_v51 = vld [vmem:[%s1413_s15 + $0x198] sm:$0xff]   ;;  %v1345_v55 = vld [vmem:[%s1413_s15 + $0x1a0] sm:$0xff]   ;;  %v1354_v62 = vld [vmem:[%s1413_s15 + $0x1a8] sm:$0xff]  }
  0x24   : > { %1205 = vmatpush3.bf16.msra.mxu1 %v1307_v19  ;;  %1178 = vmatprep.subr.bf16.mxu0 %v1308_v20  ;;  %v1346_v56 = vld [vmem:[%s1451_s19 + $0x14] ss:$8 sps:$4 sm:$0xff]   ;;  %v1350_v59 = vld [vmem:[%s1451_s19 + $0x10] ss:$8 sps:$4 sm:$0xff]   ;;  %v1364_v8 = vld [vmem:[%s1451_s19 + $0x40] ss:$8 sps:$4 sm:$0xff]  }
  0x25   : > { %1206 = vmatprep.subr.bf16.mxu1 %v1309_v21  ;;  %v1351_v60 = vld [vmem:[%s1451_s19 + $0x34] ss:$8 sps:$4 sm:$0xff]   ;;  %v1355_v63 = vld [vmem:[%s1451_s19 + $0x30] ss:$8 sps:$4 sm:$0xff]   ;;  %v1366_v9 = vld [vmem:[%s1451_s19 + $0x44] ss:$8 sps:$4 sm:$0xff]  }
  0x26   : > { %v1356_v0 = vld [vmem:[%s1413_s15 + $0x170] sm:$0xff]   ;;  %v1360_v4 = vld [vmem:[%s1413_s15 + $0x178] sm:$0xff]   ;;  %v1367_v10 = vld [vmem:[%s1451_s19 + $0x60] ss:$8 sps:$4 sm:$0xff]  }
  0x27   : > { %1179 = vmatpush3.bf16.msra.mxu0 %v1310_v22  ;;  %v1357_v1 = vld [vmem:[%s1413_s15 + $0x1f0] sm:$0xff]   ;;  %v1361_v5 = vld [vmem:[%s1413_s15 + $0x1f8] sm:$0xff]   ;;  %v1369_v11 = vld [vmem:[%s1451_s19 + $0x64] ss:$8 sps:$4 sm:$0xff]  }
  0x28   : > { %1207 = vmatpush3.bf16.msra.mxu1 %v1311_v23  ;;  %1180 = vmatprep.subr.bf16.mxu0 %v1312_v24  ;;  %v1358_v2 = vld [vmem:[%s1413_s15 + $0x130] sm:$0xff]   ;;  %v1362_v6 = vld [vmem:[%s1413_s15 + $0x138] sm:$0xff]  }
  0x29   : > { %1208 = vmatprep.subr.bf16.mxu1 %v1313_v25  ;;  %v1359_v3 = vld [vmem:[%s1413_s15 + $0x1b0] sm:$0xff]   ;;  %v1363_v7 = vld [vmem:[%s1413_s15 + $0x1b8] sm:$0xff]  }
  0x2a   : > { %v1370_v12 = vld [vmem:[%s1451_s19 + $0x54] ss:$8 sps:$4 sm:$0xff]   ;;  %v1374_v14 = vld [vmem:[%s1451_s19 + $0x50] ss:$8 sps:$4 sm:$0xff]  }
  0x2b   : > { %1181 = vmatpush3.bf16.msra.mxu0 %v1314_v26  ;;  %v1372_v13 = vld [vmem:[%s1451_s19 + $0x74] ss:$8 sps:$4 sm:$0xff]   ;;  %v1375_v15 = vld [vmem:[%s1451_s19 + $0x70] ss:$8 sps:$4 sm:$0xff]  }
  0x2c   : > { %1209 = vmatpush3.bf16.msra.mxu1 %v1315_v27  ;;  %1182 = vmatprep.subr.bf16.mxu0 %v1316_v28 }
  0x2d   : > { %1210 = vmatprep.subr.bf16.mxu1 %v1317_v29 }
  0x2f   : > { %1183 = vmatpush3.bf16.msra.mxu0 %v1318_v30 }
  0x30   : > { %1211 = vmatpush3.bf16.msra.mxu1 %v1319_v31  ;;  %1224 = vmatprep.subr.bf16.mxu0 %v1326_v36 }
  0x31   : > { %1252 = vmatprep.subr.bf16.mxu1 %v1327_v37 }
  0x32   : > { %471 = vmatmul.mubr.bf16.vlgmr.msra.gmra.mrb[0].mxu0 %v1320_v32 }
  0x33   : > { %636 = vmatmul.mubr.bf16.vlgmr.msra.gmra.mrb[0].mxu1 %v1323_v34  ;;  %1225 = vmatpush3.bf16.msra.mxu0 %v1328_v38 }
  0x34   : > { %1253 = vmatpush3.bf16.msra.mxu1 %v1329_v39  ;;  %1226 = vmatprep.subr.bf16.mxu0 %v1330_v40 }
  0x35   : > { %1254 = vmatprep.subr.bf16.mxu1 %v1331_v41  ;;  %478 = vmatprep.mubr.bf16.mxu0 %v1346_v56 }
  0x36   : > { %643 = vmatprep.mubr.bf16.mxu1 %v1351_v60 }
  0x37   : > { %1227 = vmatpush3.bf16.msra.mxu0 %v1332_v42 }
  0x38   : > { %1255 = vmatpush3.bf16.msra.mxu1 %v1333_v43  ;;  %1228 = vmatprep.subr.bf16.mxu0 %v1334_v44 }
  0x39   : > { %1256 = vmatprep.subr.bf16.mxu1 %v1335_v45 }
  0x3a   : > { %479 = vmatmul.mubr.bf16.gmra.mrb[4].mxu0 %v1350_v59 }
  0x3b   : > { %1229 = vmatpush3.bf16.msra.mxu0 %v1336_v46  ;;  %644 = vmatmul.mubr.bf16.gmra.mrb[4].mxu1 %v1355_v63 }
  0x3c   : > { %1257 = vmatpush3.bf16.msra.mxu1 %v1337_v47  ;;  %1230 = vmatprep.subr.bf16.mxu0 %v1338_v48 }
  0x3d   : > { %1258 = vmatprep.subr.bf16.mxu1 %v1339_v49  ;;  %800 = vmatprep.mubr.bf16.mxu0 %v1366_v9 }
  0x3e   : > { %965 = vmatprep.mubr.bf16.mxu1 %v1369_v11 }
  0x3f   : > { %1231 = vmatpush3.bf16.msra.mxu0 %v1340_v50 }
  0x40   : > { %1259 = vmatpush3.bf16.msra.mxu1 %v1341_v51  ;;  %1232 = vmatprep.subr.bf16.mxu0 %v1342_v52 }
  0x41   : > { %1260 = vmatprep.subr.bf16.mxu1 %v1343_v53 }
  0x43   : > { %1233 = vmatpush3.bf16.msra.mxu0 %v1344_v54 }
  0x44   : > { %1261 = vmatpush3.bf16.msra.mxu1 %v1345_v55  ;;  %1234 = vmatprep.subr.bf16.mxu0 %v1348_v57 }
  0x45   : > { %1262 = vmatprep.subr.bf16.mxu1 %v1349_v58 }
  0x47   : > { %1235 = vmatpush3.bf16.msra.mxu0 %v1353_v61 }
  0x48   : > { %1263 = vmatpush3.bf16.msra.mxu1 %v1354_v62  ;;  %1236 = vmatprep.subr.bf16.mxu0 %v1356_v0 }
  0x49   : > { %1264 = vmatprep.subr.bf16.mxu1 %v1357_v1 }
  0x4b   : > { %1237 = vmatpush3.bf16.msra.mxu0 %v1358_v2 }
  0x4c   : > { %1265 = vmatpush3.bf16.msra.mxu1 %v1359_v3  ;;  %1238 = vmatprep.subr.bf16.mxu0 %v1360_v4 }
  0x4d   : > { %1266 = vmatprep.subr.bf16.mxu1 %v1361_v5 }
  0x4f   : > { %1239 = vmatpush3.bf16.msra.mxu0 %v1362_v6 }
  0x50   : > { %1267 = vmatpush3.bf16.msra.mxu1 %v1363_v7 }
  0x52   : > { %801 = vmatmul.mubr.bf16.vlgmr.msra.gmra.mrb[8].mxu0 %v1364_v8 }
  0x53   : > { %966 = vmatmul.mubr.bf16.vlgmr.msra.gmra.mrb[8].mxu1 %v1367_v10  ;;  %808 = vmatprep.mubr.bf16.mxu0 %v1370_v12 }
  0x54   : > { %973 = vmatprep.mubr.bf16.mxu1 %v1372_v13 }
  0x5a   : > { %809 = vmatmul.mubr.bf16.gmra.mrb[12].mxu0 %v1374_v14 }
  0x5b   : > { %974 = vmatmul.mubr.bf16.gmra.mrb[12].mxu1 %v1375_v15 }
 0x105   : > { %v1184_v16 = vpop.f32.mrb[0].mxu0 }
 0x106   : > { %v1212_v17 = vpop.f32.mrb[0].mxu1  ;;  %v1185_v18 = vpop.f32.mrb[1].mxu0 }
 0x107   : > { %v1186_v19 = vadd.f32 %v1185_v18, %v1184_v16  ;;  %v1213_v20 = vpop.f32.mrb[1].mxu1  ;;  %v1187_v21 = vpop.f32.mrb[2].mxu0 }
 0x108   : > { %v1214_v22 = vadd.f32 %v1213_v20, %v1212_v17  ;;  %v1215_v23 = vpop.f32.mrb[2].mxu1  ;;  %v1188_v24 = vpop.f32.mrb[3].mxu0 }
 0x109   : > { %983 = vst.msk [vmem:[%s1508_s22] sm:$0xff] %vm982_vm0, %v1186_v19  ;;  %v1189_v25 = vadd.f32 %v1188_v24, %v1187_v21  ;;  %v1216_v26 = vpop.f32.mrb[3].mxu1 }
 0x10a   : > { %987 = vst.msk [vmem:[%s1508_s22 + $0x20] sm:$0xff] %vm982_vm0, %v1214_v22  ;;  %v1217_v27 = vadd.f32 %v1216_v26, %v1215_v23 }
 0x10b   : > { %984 = vst.msk [vmem:[%s1508_s22 + $0x8] sm:$0xff] %vm982_vm0, %v1189_v25 }
 0x10c   : > { %988 = vst.msk [vmem:[%s1508_s22 + $0x28] sm:$0xff] %vm982_vm0, %v1217_v27 }
 0x10d   : > { %v1190_v28 = vpop.f32.mrb[4].mxu0 }
 0x10e   : > { %v1191_v29 = vpop.f32.mrb[5].mxu0  ;;  %v1218_v33 = vpop.f32.mrb[4].mxu1 }
 0x10f   : > { %v1192_v30 = vadd.f32 %v1191_v29, %v1190_v28  ;;  %v1193_v31 = vpop.f32.mrb[6].mxu0  ;;  %v1219_v35 = vpop.f32.mrb[5].mxu1 }
 0x110   : > { %v1194_v32 = vpop.f32.mrb[7].mxu0  ;;  %v1220_v36 = vadd.f32 %v1219_v35, %v1218_v33  ;;  %v1221_v37 = vpop.f32.mrb[6].mxu1 }
 0x111   : > { %985 = vst.msk [vmem:[%s1508_s22 + $0x10] sm:$0xff] %vm982_vm0, %v1192_v30  ;;  %v1195_v34 = vadd.f32 %v1194_v32, %v1193_v31  ;;  %v1222_v38 = vpop.f32.mrb[7].mxu1 }
 0x112   : > { %989 = vst.msk [vmem:[%s1508_s22 + $0x30] sm:$0xff] %vm982_vm0, %v1220_v36  ;;  %v1223_v39 = vadd.f32 %v1222_v38, %v1221_v37 }
 0x113   : > { %986 = vst.msk [vmem:[%s1508_s22 + $0x18] sm:$0xff] %vm982_vm0, %v1195_v34 }
 0x114   : > { %990 = vst.msk [vmem:[%s1508_s22 + $0x38] sm:$0xff] %vm982_vm0, %v1223_v39 }
 0x125   : > { %v1240_v40 = vpop.f32.mrb[8].mxu0 }
 0x126   : > { %v1268_v41 = vpop.f32.mrb[8].mxu1  ;;  %v1241_v42 = vpop.f32.mrb[9].mxu0 }
 0x127   : > { %v1242_v43 = vadd.f32 %v1241_v42, %v1240_v40  ;;  %v1269_v44 = vpop.f32.mrb[9].mxu1  ;;  %v1243_v45 = vpop.f32.mrb[10].mxu0 }
 0x128   : > { %v1270_v46 = vadd.f32 %v1269_v44, %v1268_v41  ;;  %v1271_v47 = vpop.f32.mrb[10].mxu1  ;;  %v1244_v48 = vpop.f32.mrb[11].mxu0 }
 0x129   : > { %991 = vst.msk [vmem:[%s1508_s22 + $0x40] sm:$0xff] %vm982_vm0, %v1242_v43  ;;  %v1245_v49 = vadd.f32 %v1244_v48, %v1243_v45  ;;  %v1272_v50 = vpop.f32.mrb[11].mxu1 }
 0x12a   : > { %995 = vst.msk [vmem:[%s1508_s22 + $0x60] sm:$0xff] %vm982_vm0, %v1270_v46  ;;  %v1273_v51 = vadd.f32 %v1272_v50, %v1271_v47 }
 0x12b   : > { %992 = vst.msk [vmem:[%s1508_s22 + $0x48] sm:$0xff] %vm982_vm0, %v1245_v49 }
 0x12c   : > { %996 = vst.msk [vmem:[%s1508_s22 + $0x68] sm:$0xff] %vm982_vm0, %v1273_v51 }
 0x12d   : > { %v1246_v52 = vpop.f32.mrb[12].mxu0 }
 0x12e   : > { %v1274_v53 = vpop.f32.mrb[12].mxu1  ;;  %v1247_v54 = vpop.f32.mrb[13].mxu0 }
 0x12f   : > { %v1248_v55 = vadd.f32 %v1247_v54, %v1246_v52  ;;  %v1275_v56 = vpop.f32.mrb[13].mxu1  ;;  %v1249_v57 = vpop.f32.mrb[14].mxu0 }
 0x130   : > { %v1276_v58 = vadd.f32 %v1275_v56, %v1274_v53  ;;  %v1277_v59 = vpop.f32.mrb[14].mxu1  ;;  %v1250_v60 = vpop.f32.mrb[15].mxu0 }
 0x131   : > { %993 = vst.msk [vmem:[%s1508_s22 + $0x50] sm:$0xff] %vm982_vm0, %v1248_v55  ;;  %v1251_v61 = vadd.f32 %v1250_v60, %v1249_v57  ;;  %v1278_v62 = vpop.f32.mrb[15].mxu1 }
 0x132   : > { %997 = vst.msk [vmem:[%s1508_s22 + $0x70] sm:$0xff] %vm982_vm0, %v1276_v58  ;;  %v1279_v63 = vadd.f32 %v1278_v62, %v1277_v59 }
 0x133   : > { %994 = vst.msk [vmem:[%s1508_s22 + $0x58] sm:$0xff] %vm982_vm0, %v1251_v61 }
 0x134   : > { %998 = vst.msk [vmem:[%s1508_s22 + $0x78] sm:$0xff] %vm982_vm0, %v1279_v63 }
 0x135 PF: > { %s12_s9 = sadd.s32 1, %s1382_s9  }
 0x136   : > { %p9_p4 = scmp.ge.s32.totalorder %s12_s9, 4  }
 0x138   :  { %11 = sbr.rel (!%p9_p4) target bundleno = 1 (0x1), region = 61 }

// kernel: unet_forward.78
= control target key start
LH: loop header
LB: loop body
LE: loop exit
PB: predicated region body
PF: predicated region fallthrough
CT: control target
= control target key end

     0   :  { %s808_s12 = smov 0   ;;  %s974_s0 = inlined_call_operand.vmem [shape: bf16[512,128], index: 0, kind: input, shape index: {}]   ;;  %s975_s1 = inlined_call_operand.vmem [shape: bf16[128,16], index: 1, kind: input, shape index: {}]   ;;  %s976_s2 = inlined_call_operand.vmem [shape: f32[1,16], index: 2, kind: input, shape index: {}]   ;;  %s977_s3 = inlined_call_operand.vmem [shape: f32[512,16], index: 3, kind: output, shape index: {}]  }
   0x1 LB: > { %s624_s13 = sadd.s32 4294967295, %s786_s12   ;;  %p628_p0 = scmp.ge.s32.totalorder %s786_s12, 1  ;;  %s786_s12 = sphi %s808_s12, %s13_s12  }
   0x2   : > { %p138_p1 = scmp.lt.s32.totalorder %s786_s12, 3 }
   0x4   : > { %p139_p2 = pnand %p628_p0, %p138_p1 }
   0x5   : > { %v756_v0 = vld [vmem:[%s975_s1] sm:$0xff] (!%p139_p2)   ;;  %s629_s16 = sshll.u32 (!%p139_p2), %s624_s13, 5  ;;  %v757_v1 = vld [vmem:[%s975_s1 + $0x8] sm:$0xff] (!%p139_p2)   ;;  %v758_v2 = vld [vmem:[%s975_s1 + $0x10] sm:$0xff] (!%p139_p2)   ;;  %vm535_vm0 = vcmask (!%p139_p2), 130048  }
   0x6   : > { %142 = sbr.rel (%p139_p2) target bundleno = 280 (0x118), region = 32  ;;  %p163_p3 = scmp.lt.s32.totalorder (!%p139_p2), %s629_s16, 63  ;;  %684 = vmatprep.subr.bf16.mxu0 (!%p139_p2), %v756_v0  ;;  %732 = vmatprep.subr.bf16.mxu1 (!%p139_p2), %v756_v0  ;;  %v759_v3 = vld [vmem:[%s975_s1 + $0x18] sm:$0xff] (!%p139_p2)   ;;  %v760_v6 = vld [vmem:[%s975_s1 + $0x20] sm:$0xff] (!%p139_p2)   ;;  %v761_v7 = vld [vmem:[%s975_s1 + $0x28] sm:$0xff] (!%p139_p2)  }
   0x7   : > { %685 = vmatpush3.bf16.msra.mxu0 (!%p139_p2), %v756_v0  ;;  %740 = vmatpush3.bf16.msra.mxu1 (!%p139_p2), %v756_v0  ;;  %v762_v8 = vld [vmem:[%s975_s1 + $0x30] sm:$0xff] (!%p139_p2)   ;;  %v763_v9 = vld [vmem:[%s975_s1 + $0x38] sm:$0xff] (!%p139_p2)   ;;  %v868_v24 = vld [vmem:[%s976_s2] ss:$0 sm:$0xff] (!%p139_p2) }
   0x8   : > { %686 = vmatprep.subr.bf16.mxu0 (!%p139_p2), %v757_v1  ;;  %733 = vmatprep.subr.bf16.mxu1 (!%p139_p2), %v757_v1 }
   0xb   : > { %687 = vmatpush3.bf16.msra.mxu0 (!%p139_p2), %v757_v1  ;;  %741 = vmatpush3.bf16.msra.mxu1 (!%p139_p2), %v757_v1 }
   0xc   : > { %688 = vmatprep.subr.bf16.mxu0 (!%p139_p2), %v758_v2  ;;  %734 = vmatprep.subr.bf16.mxu1 (!%p139_p2), %v758_v2 }
   0xd   : > { %s979_s16 = smov (!%p163_p3, %s629_s16), 63 }
   0xe   : > { %s630_s21 = sshll.u32 %s979_s16, 2  ;;  %s632_s8 = sshll.u32 %s979_s16, 3 }
   0xf   : > { %s831_s24 = scalar_lea.vmem %s974_s0, %s630_s21  ;;  %689 = vmatpush3.bf16.msra.mxu0 %v758_v2  ;;  %742 = vmatpush3.bf16.msra.mxu1 %v758_v2  ;;  %s873_s14 = scalar_lea.vmem %s977_s3, %s632_s8 }
  0x10   : > { %v764_v4 = vld [vmem:[%s831_s24] sm:$0xff]   ;;  %690 = vmatprep.subr.bf16.mxu0 %v759_v3  ;;  %735 = vmatprep.subr.bf16.mxu1 %v759_v3  ;;  %v766_v10 = vld [vmem:[%s831_s24 + $0x8] sm:$0xff]   ;;  %v768_v12 = vld [vmem:[%s831_s24 + $0x10] sm:$0xff]  }
  0x11   : > { %v765_v5 = vld [vmem:[%s831_s24 + $0x40] sm:$0xff]   ;;  %700 = vmatprep.mubr.bf16.mxu0 %v764_v4  ;;  %v767_v11 = vld [vmem:[%s831_s24 + $0x48] sm:$0xff]   ;;  %v769_v13 = vld [vmem:[%s831_s24 + $0x50] sm:$0xff]  }
  0x12   : > { %716 = vmatprep.mubr.bf16.mxu1 %v765_v5  ;;  %v770_v14 = vld [vmem:[%s831_s24 + $0x18] sm:$0xff]   ;;  %v772_v16 = vld [vmem:[%s831_s24 + $0x20] sm:$0xff]   ;;  %v774_v18 = vld [vmem:[%s831_s24 + $0x28] sm:$0xff]  }
  0x13   : > { %691 = vmatpush3.bf16.msra.mxu0 %v759_v3  ;;  %743 = vmatpush3.bf16.msra.mxu1 %v759_v3  ;;  %v771_v15 = vld [vmem:[%s831_s24 + $0x58] sm:$0xff]   ;;  %v773_v17 = vld [vmem:[%s831_s24 + $0x60] sm:$0xff]   ;;  %v775_v19 = vld [vmem:[%s831_s24 + $0x68] sm:$0xff]  }
  0x14   : > { %692 = vmatprep.subr.bf16.mxu0 %v760_v6  ;;  %736 = vmatprep.subr.bf16.mxu1 %v760_v6  ;;  %v776_v20 = vld [vmem:[%s831_s24 + $0x30] sm:$0xff]   ;;  %v778_v22 = vld [vmem:[%s831_s24 + $0x38] sm:$0xff]  }
  0x15   : > { %v777_v21 = vld [vmem:[%s831_s24 + $0x70] sm:$0xff]   ;;  %v779_v23 = vld [vmem:[%s831_s24 + $0x78] sm:$0xff]  }
  0x17   : > { %693 = vmatpush3.bf16.msra.mxu0 %v760_v6  ;;  %744 = vmatpush3.bf16.msra.mxu1 %v760_v6 }
  0x18   : > { %694 = vmatprep.subr.bf16.mxu0 %v761_v7  ;;  %737 = vmatprep.subr.bf16.mxu1 %v761_v7 }
  0x1b   : > { %695 = vmatpush3.bf16.msra.mxu0 %v761_v7  ;;  %745 = vmatpush3.bf16.msra.mxu1 %v761_v7 }
  0x1c   : > { %696 = vmatprep.subr.bf16.mxu0 %v762_v8  ;;  %738 = vmatprep.subr.bf16.mxu1 %v762_v8 }
  0x1f   : > { %697 = vmatpush3.bf16.msra.mxu0 %v762_v8  ;;  %746 = vmatpush3.bf16.msra.mxu1 %v762_v8 }
  0x20   : > { %698 = vmatprep.subr.bf16.mxu0 %v763_v9  ;;  %739 = vmatprep.subr.bf16.mxu1 %v763_v9 }
  0x23   : > { %699 = vmatpush3.bf16.msra.mxu0 %v763_v9  ;;  %747 = vmatpush3.bf16.msra.mxu1 %v763_v9 }
  0x26   : > { %701 = vmatmul.mubr.bf16.vlgmr.msra.gmra.mrb[0].mxu0 %v766_v10  ;;  %717 = vmatmul.mubr.bf16.vlgmr.msra.gmra.mrb[0].mxu1 %v767_v11 }
  0x27   : > { %704 = vmatprep.mubr.bf16.mxu0 %v768_v12  ;;  %720 = vmatprep.mubr.bf16.mxu1 %v769_v13 }
  0x2e   : > { %705 = vmatmul.mubr.bf16.gmra.mrb[4].mxu0 %v770_v14  ;;  %721 = vmatmul.mubr.bf16.gmra.mrb[4].mxu1 %v771_v15 }
  0x2f   : > { %708 = vmatprep.mubr.bf16.mxu0 %v772_v16  ;;  %724 = vmatprep.mubr.bf16.mxu1 %v773_v17 }
  0x36   : > { %709 = vmatmul.mubr.bf16.gmra.mrb[8].mxu0 %v774_v18  ;;  %725 = vmatmul.mubr.bf16.gmra.mrb[8].mxu1 %v775_v19 }
  0x37   : > { %712 = vmatprep.mubr.bf16.mxu0 %v776_v20  ;;  %728 = vmatprep.mubr.bf16.mxu1 %v777_v21 }
  0x3e   : > { %713 = vmatmul.mubr.bf16.gmra.mrb[12].mxu0 %v778_v22  ;;  %729 = vmatmul.mubr.bf16.gmra.mrb[12].mxu1 %v779_v23 }
  0xf9   : > { %v702_v25 = vpop.f32.mrb[0].mxu0  ;;  %v718_v26 = vpop.f32.mrb[0].mxu1 }
  0xfa   : > { %v417_v27 = vadd.f32 %v702_v25, %v868_v24  ;;  %v481_v28 = vadd.f32 %v718_v26, %v868_v24  ;;  %v408_v29 = vpop.f32.mrb[1].mxu0  ;;  %v472_v30 = vpop.f32.mrb[1].mxu1 }
  0xfb   : > { %v409_v31 = vadd.f32 %v868_v24, %v408_v29  ;;  %v473_v32 = vadd.f32 %v868_v24, %v472_v30  ;;  %v703_v33 = vpop.f32.mrb[2].mxu0  ;;  %v719_v34 = vpop.f32.mrb[2].mxu1 }
  0xfc   : > { %538 = vst.msk [vmem:[%s873_s14 + $0x10] sm:$0xff] %vm535_vm0, %v417_v27  ;;  %554 = vst.msk [vmem:[%s873_s14 + $0x90] sm:$0xff] %vm535_vm0, %v481_v28  ;;  %v420_v35 = vadd.f32 %v703_v33, %v868_v24  ;;  %v484_v36 = vadd.f32 %v719_v34, %v868_v24  ;;  %v411_v37 = vpop.f32.mrb[3].mxu0  ;;  %v475_v38 = vpop.f32.mrb[3].mxu1 }
  0xfd   : > { %536 = vst.msk [vmem:[%s873_s14] sm:$0xff] %vm535_vm0, %v409_v31  ;;  %552 = vst.msk [vmem:[%s873_s14 + $0x80] sm:$0xff] %vm535_vm0, %v473_v32  ;;  %v412_v39 = vadd.f32 %v868_v24, %v411_v37  ;;  %v476_v40 = vadd.f32 %v868_v24, %v475_v38 }
  0xfe   : > { %539 = vst.msk [vmem:[%s873_s14 + $0x18] sm:$0xff] %vm535_vm0, %v420_v35  ;;  %555 = vst.msk [vmem:[%s873_s14 + $0x98] sm:$0xff] %vm535_vm0, %v484_v36 }
  0xff   : > { %537 = vst.msk [vmem:[%s873_s14 + $0x8] sm:$0xff] %vm535_vm0, %v412_v39  ;;  %553 = vst.msk [vmem:[%s873_s14 + $0x88] sm:$0xff] %vm535_vm0, %v476_v40 }
 0x101   : > { %v706_v41 = vpop.f32.mrb[4].mxu0  ;;  %v722_v42 = vpop.f32.mrb[4].mxu1 }
 0x102   : > { %v433_v43 = vadd.f32 %v706_v41, %v868_v24  ;;  %v497_v44 = vadd.f32 %v722_v42, %v868_v24  ;;  %v424_v45 = vpop.f32.mrb[5].mxu0  ;;  %v488_v46 = vpop.f32.mrb[5].mxu1 }
 0x103   : > { %v425_v47 = vadd.f32 %v868_v24, %v424_v45  ;;  %v489_v48 = vadd.f32 %v868_v24, %v488_v46  ;;  %v707_v49 = vpop.f32.mrb[6].mxu0  ;;  %v723_v50 = vpop.f32.mrb[6].mxu1 }
 0x104   : > { %542 = vst.msk [vmem:[%s873_s14 + $0x30] sm:$0xff] %vm535_vm0, %v433_v43  ;;  %558 = vst.msk [vmem:[%s873_s14 + $0xb0] sm:$0xff] %vm535_vm0, %v497_v44  ;;  %v436_v51 = vadd.f32 %v707_v49, %v868_v24  ;;  %v500_v52 = vadd.f32 %v723_v50, %v868_v24  ;;  %v427_v53 = vpop.f32.mrb[7].mxu0  ;;  %v491_v54 = vpop.f32.mrb[7].mxu1 }
 0x105   : > { %540 = vst.msk [vmem:[%s873_s14 + $0x20] sm:$0xff] %vm535_vm0, %v425_v47  ;;  %556 = vst.msk [vmem:[%s873_s14 + $0xa0] sm:$0xff] %vm535_vm0, %v489_v48  ;;  %v428_v55 = vadd.f32 %v868_v24, %v427_v53  ;;  %v492_v56 = vadd.f32 %v868_v24, %v491_v54 }
 0x106   : > { %543 = vst.msk [vmem:[%s873_s14 + $0x38] sm:$0xff] %vm535_vm0, %v436_v51  ;;  %559 = vst.msk [vmem:[%s873_s14 + $0xb8] sm:$0xff] %vm535_vm0, %v500_v52 }
 0x107   : > { %541 = vst.msk [vmem:[%s873_s14 + $0x28] sm:$0xff] %vm535_vm0, %v428_v55  ;;  %557 = vst.msk [vmem:[%s873_s14 + $0xa8] sm:$0xff] %vm535_vm0, %v492_v56 }
 0x109   : > { %v710_v57 = vpop.f32.mrb[8].mxu0  ;;  %v726_v58 = vpop.f32.mrb[8].mxu1 }
 0x10a   : > { %v449_v59 = vadd.f32 %v710_v57, %v868_v24  ;;  %v513_v60 = vadd.f32 %v726_v58, %v868_v24  ;;  %v440_v61 = vpop.f32.mrb[9].mxu0  ;;  %v504_v62 = vpop.f32.mrb[9].mxu1 }
 0x10b   : > { %v441_v63 = vadd.f32 %v868_v24, %v440_v61  ;;  %v505_v0 = vadd.f32 %v868_v24, %v504_v62  ;;  %v711_v1 = vpop.f32.mrb[10].mxu0  ;;  %v727_v2 = vpop.f32.mrb[10].mxu1 }
 0x10c   : > { %546 = vst.msk [vmem:[%s873_s14 + $0x50] sm:$0xff] %vm535_vm0, %v449_v59  ;;  %562 = vst.msk [vmem:[%s873_s14 + $0xd0] sm:$0xff] %vm535_vm0, %v513_v60  ;;  %v452_v3 = vadd.f32 %v711_v1, %v868_v24  ;;  %v516_v4 = vadd.f32 %v727_v2, %v868_v24  ;;  %v443_v5 = vpop.f32.mrb[11].mxu0  ;;  %v507_v6 = vpop.f32.mrb[11].mxu1 }
 0x10d   : > { %544 = vst.msk [vmem:[%s873_s14 + $0x40] sm:$0xff] %vm535_vm0, %v441_v63  ;;  %560 = vst.msk [vmem:[%s873_s14 + $0xc0] sm:$0xff] %vm535_vm0, %v505_v0  ;;  %v444_v7 = vadd.f32 %v868_v24, %v443_v5  ;;  %v508_v8 = vadd.f32 %v868_v24, %v507_v6 }
 0x10e   : > { %547 = vst.msk [vmem:[%s873_s14 + $0x58] sm:$0xff] %vm535_vm0, %v452_v3  ;;  %563 = vst.msk [vmem:[%s873_s14 + $0xd8] sm:$0xff] %vm535_vm0, %v516_v4 }
 0x10f   : > { %545 = vst.msk [vmem:[%s873_s14 + $0x48] sm:$0xff] %vm535_vm0, %v444_v7  ;;  %561 = vst.msk [vmem:[%s873_s14 + $0xc8] sm:$0xff] %vm535_vm0, %v508_v8 }
 0x111   : > { %v714_v9 = vpop.f32.mrb[12].mxu0  ;;  %v730_v10 = vpop.f32.mrb[12].mxu1 }
 0x112   : > { %v465_v11 = vadd.f32 %v714_v9, %v868_v24  ;;  %v529_v12 = vadd.f32 %v730_v10, %v868_v24  ;;  %v456_v13 = vpop.f32.mrb[13].mxu0  ;;  %v520_v14 = vpop.f32.mrb[13].mxu1 }
 0x113   : > { %v457_v15 = vadd.f32 %v868_v24, %v456_v13  ;;  %v521_v16 = vadd.f32 %v868_v24, %v520_v14  ;;  %v715_v17 = vpop.f32.mrb[14].mxu0  ;;  %v731_v18 = vpop.f32.mrb[14].mxu1 }
 0x114   : > { %550 = vst.msk [vmem:[%s873_s14 + $0x70] sm:$0xff] %vm535_vm0, %v465_v11  ;;  %566 = vst.msk [vmem:[%s873_s14 + $0xf0] sm:$0xff] %vm535_vm0, %v529_v12  ;;  %v468_v19 = vadd.f32 %v715_v17, %v868_v24  ;;  %v532_v20 = vadd.f32 %v731_v18, %v868_v24  ;;  %v459_v21 = vpop.f32.mrb[15].mxu0  ;;  %v523_v22 = vpop.f32.mrb[15].mxu1 }
 0x115   : > { %548 = vst.msk [vmem:[%s873_s14 + $0x60] sm:$0xff] %vm535_vm0, %v457_v15  ;;  %564 = vst.msk [vmem:[%s873_s14 + $0xe0] sm:$0xff] %vm535_vm0, %v521_v16  ;;  %v460_v23 = vadd.f32 %v868_v24, %v459_v21  ;;  %v524_v25 = vadd.f32 %v868_v24, %v523_v22 }
 0x116   : > { %551 = vst.msk [vmem:[%s873_s14 + $0x78] sm:$0xff] %vm535_vm0, %v468_v19  ;;  %567 = vst.msk [vmem:[%s873_s14 + $0xf8] sm:$0xff] %vm535_vm0, %v532_v20 }
 0x117   : > { %549 = vst.msk [vmem:[%s873_s14 + $0x68] sm:$0xff] %vm535_vm0, %v460_v23  ;;  %565 = vst.msk [vmem:[%s873_s14 + $0xe8] sm:$0xff] %vm535_vm0, %v524_v25 }
 0x118 PF: > { %s13_s12 = sadd.s32 1, %s786_s12  }
 0x119   : > { %p10_p4 = scmp.ge.s32.totalorder %s13_s12, 4  }
 0x11b   :  { %12 = sbr.rel (!%p10_p4) target bundleno = 1 (0x1), region = 62 }

// kernel: unet_forward.79
= control target key start
LH: loop header
LB: loop body
LE: loop exit
PB: predicated region body
PF: predicated region fallthrough
CT: control target
= control target key end

     0   :  { %s485_s12 = smov 0   ;;  %s533_s0 = inlined_call_operand.vmem [shape: bf16[128,64], index: 0, kind: input, shape index: {}]   ;;  %s534_s1 = inlined_call_operand.vmem [shape: bf16[64,16], index: 1, kind: input, shape index: {}]   ;;  %s535_s2 = inlined_call_operand.vmem [shape: f32[1,16], index: 2, kind: input, shape index: {}]   ;;  %s536_s3 = inlined_call_operand.vmem [shape: f32[128,16], index: 3, kind: output, shape index: {}]  }
   0x1 LB: > { %s385_s13 = sadd.s32 4294967295, %s463_s12   ;;  %p389_p0 = scmp.ge.s32.totalorder %s463_s12, 1  ;;  %s463_s12 = sphi %s485_s12, %s13_s12  }
   0x2   : > { %p138_p1 = scmp.lt.s32.totalorder %s463_s12, 3 }
   0x4   : > { %p139_p2 = pnand %p389_p0, %p138_p1 }
   0x5   : > { %v449_v0 = vld [vmem:[%s534_s1] sm:$0xff] (!%p139_p2)   ;;  %s390_s16 = sshll.u32 (!%p139_p2), %s385_s13, 3  ;;  %v450_v1 = vld [vmem:[%s534_s1 + $0x8] sm:$0xff] (!%p139_p2)   ;;  %v451_v2 = vld [vmem:[%s534_s1 + $0x10] sm:$0xff] (!%p139_p2)   ;;  %vm242_vm0 = vcmask (!%p139_p2), 523264   ;;  %vm320_vm1 = vcmask (!%p139_p2), 130048  }
   0x6   : > { %142 = sbr.rel (%p139_p2) target bundleno = 240 (0xf0), region = 32  ;;  %p163_p3 = scmp.lt.s32.totalorder (!%p139_p2), %s390_s16, 15  ;;  %417 = vmatprep.subr.bf16.mxu0 (!%p139_p2), %v449_v0  ;;  %433 = vmatprep.subr.bf16.mxu1 (!%p139_p2), %v449_v0  ;;  %v452_v3 = vld [vmem:[%s534_s1 + $0x18] sm:$0xff] (!%p139_p2)   ;;  %v394_v8 = vld [vmem:[%s535_s2] ss:$0 sm:$0xff] (!%p139_p2) }
   0x7   : > { %418 = vmatpush3.bf16.msra.mxu0 (!%p139_p2), %v449_v0  ;;  %437 = vmatpush3.bf16.msra.mxu1 (!%p139_p2), %v449_v0 }
   0x8   : > { %419 = vmatprep.subr.bf16.mxu0 (!%p139_p2), %v450_v1  ;;  %434 = vmatprep.subr.bf16.mxu1 (!%p139_p2), %v450_v1 }
   0xb   : > { %420 = vmatpush3.bf16.msra.mxu0 (!%p139_p2), %v450_v1  ;;  %438 = vmatpush3.bf16.msra.mxu1 (!%p139_p2), %v450_v1 }
   0xc   : > { %421 = vmatprep.subr.bf16.mxu0 (!%p139_p2), %v451_v2  ;;  %435 = vmatprep.subr.bf16.mxu1 (!%p139_p2), %v451_v2 }
   0xd   : > { %s538_s16 = smov (!%p163_p3, %s390_s16), 15 }
   0xe   : > { %s391_s21 = sshll.u32 %s538_s16, 2  ;;  %s393_s27 = sshll.u32 %s538_s16, 3 }
   0xf   : > { %s166_s26 = scalar_lea.vmem %s533_s0, %s391_s21  ;;  %422 = vmatpush3.bf16.msra.mxu0 %v451_v2  ;;  %439 = vmatpush3.bf16.msra.mxu1 %v451_v2  ;;  %s172_s5 = scalar_lea.vmem %s536_s3, %s393_s27 }
  0x10   : > { %v453_v4 = vld [vmem:[%s166_s26] sm:$0xff]   ;;  %v454_v5 = vld [vmem:[%s166_s26 + $0x10] sm:$0xff]   ;;  %423 = vmatprep.subr.bf16.mxu0 %v452_v3  ;;  %436 = vmatprep.subr.bf16.mxu1 %v452_v3  ;;  %v455_v6 = vld [vmem:[%s166_s26 + $0x8] sm:$0xff]  }
  0x11   : > { %425 = vmatprep.mubr.msk.bf16.mxu0 %vm242_vm0, %v453_v4  ;;  %429 = vmatprep.mubr.msk.bf16.mxu1 %vm242_vm0, %v454_v5  ;;  %v456_v7 = vld [vmem:[%s166_s26 + $0x18] sm:$0xff]  }
  0x13   : > { %424 = vmatpush3.bf16.msra.mxu0 %v452_v3  ;;  %440 = vmatpush3.bf16.msra.mxu1 %v452_v3 }
  0x16   : > { %426 = vmatmul.mubr.msk.bf16.vlgmr.msra.gmra.mrb[0].mxu0 %vm242_vm0, %v455_v6  ;;  %430 = vmatmul.mubr.msk.bf16.vlgmr.msra.gmra.mrb[0].mxu1 %vm242_vm0, %v456_v7 }
  0xe9   : > { %v427_v9 = vpop.f32.mrb[0].mxu0  ;;  %v431_v10 = vpop.f32.mrb[0].mxu1 }
  0xea   : > { %v298_v11 = vadd.f32 %v427_v9, %v394_v8  ;;  %v314_v12 = vadd.f32 %v431_v10, %v394_v8  ;;  %v289_v13 = vpop.f32.mrb[1].mxu0  ;;  %v305_v14 = vpop.f32.mrb[1].mxu1 }
  0xeb   : > { %v290_v15 = vadd.f32 %v394_v8, %v289_v13  ;;  %v306_v16 = vadd.f32 %v394_v8, %v305_v14  ;;  %v428_v17 = vpop.f32.mrb[2].mxu0  ;;  %v432_v18 = vpop.f32.mrb[2].mxu1 }
  0xec   : > { %323 = vst.msk [vmem:[%s172_s5 + $0x10] sm:$0xff] %vm320_vm1, %v298_v11  ;;  %327 = vst.msk [vmem:[%s172_s5 + $0x30] sm:$0xff] %vm320_vm1, %v314_v12  ;;  %v301_v19 = vadd.f32 %v428_v17, %v394_v8  ;;  %v317_v20 = vadd.f32 %v432_v18, %v394_v8  ;;  %v292_v21 = vpop.f32.mrb[3].mxu0  ;;  %v308_v22 = vpop.f32.mrb[3].mxu1 }
  0xed   : > { %321 = vst.msk [vmem:[%s172_s5] sm:$0xff] %vm320_vm1, %v290_v15  ;;  %325 = vst.msk [vmem:[%s172_s5 + $0x20] sm:$0xff] %vm320_vm1, %v306_v16  ;;  %v293_v23 = vadd.f32 %v394_v8, %v292_v21  ;;  %v309_v24 = vadd.f32 %v394_v8, %v308_v22 }
  0xee   : > { %324 = vst.msk [vmem:[%s172_s5 + $0x18] sm:$0xff] %vm320_vm1, %v301_v19  ;;  %328 = vst.msk [vmem:[%s172_s5 + $0x38] sm:$0xff] %vm320_vm1, %v317_v20 }
  0xef   : > { %322 = vst.msk [vmem:[%s172_s5 + $0x8] sm:$0xff] %vm320_vm1, %v293_v23  ;;  %326 = vst.msk [vmem:[%s172_s5 + $0x28] sm:$0xff] %vm320_vm1, %v309_v24 }
  0xf0 PF: > { %s13_s12 = sadd.s32 1, %s463_s12  }
  0xf1   : > { %p10_p4 = scmp.ge.s32.totalorder %s13_s12, 4  }
  0xf3   :  { %12 = sbr.rel (!%p10_p4) target bundleno = 1 (0x1), region = 62 }

// kernel: unet_forward.81
= control target key start
LH: loop header
LB: loop body
LE: loop exit
PB: predicated region body
PF: predicated region fallthrough
CT: control target
= control target key end

     0   :  { %s555_s12 = smov 0   ;;  %s641_s0 = inlined_call_operand.vmem [shape: bf16[128,144], index: 0, kind: input, shape index: {}]   ;;  %s642_s1 = inlined_call_operand.vmem [shape: bf16[144,16], index: 1, kind: input, shape index: {}]   ;;  %s643_s2 = inlined_call_operand.vmem [shape: f32[1,16], index: 2, kind: input, shape index: {}]   ;;  %s644_s3 = inlined_call_operand.vmem [shape: f32[128,16], index: 3, kind: output, shape index: {}]  }
   0x1 LB: > { %s443_s13 = sadd.s32 4294967295, %s532_s12   ;;  %p447_p0 = scmp.ge.s32.totalorder %s532_s12, 1  ;;  %s532_s12 = sphi %s555_s12, %s13_s12  }
   0x2   : > { %p139_p1 = scmp.lt.s32.totalorder %s532_s12, 3 }
   0x4   : > { %p140_p2 = pnand %p447_p0, %p139_p1 }
   0x5   : > { %v505_v0 = vld [vmem:[%s642_s1] sm:$0xff] (!%p140_p2)   ;;  %v534_v1 = vmov (!%p140_p2), 0   ;;  %s448_s16 = sshll.u32 (!%p140_p2), %s443_s13, 3  ;;  %v506_v2 = vld [vmem:[%s642_s1 + $0x8] sm:$0xff] (!%p140_p2)   ;;  %v507_v3 = vld [vmem:[%s642_s1 + $0x10] sm:$0xff] (!%p140_p2)   ;;  %vm301_vm0 = vcmask (!%p140_p2), 130048  }
   0x6   : > { %143 = sbr.rel (%p140_p2) target bundleno = 267 (0x10b), region = 32  ;;  %314 = vmatprep.subr.bf16.mxu0 (!%p140_p2), %v534_v1  ;;  %478 = vmatprep.subr.bf16.mxu1 (!%p140_p2), %v534_v1  ;;  %p165_p3 = scmp.lt.s32.totalorder (!%p140_p2), %s448_s16, 15  ;;  %v508_v4 = vld [vmem:[%s642_s1 + $0x18] sm:$0xff] (!%p140_p2)   ;;  %v509_v7 = vld [vmem:[%s642_s1 + $0x20] sm:$0xff] (!%p140_p2)   ;;  %v510_v8 = vld [vmem:[%s642_s1 + $0x28] sm:$0xff] (!%p140_p2)  }
   0x7   : > { %315 = vmatpush1.bf16.msra.mxu0 (!%p140_p2), %v505_v0  ;;  %487 = vmatpush1.bf16.msra.mxu1 (!%p140_p2), %v505_v0  ;;  %v511_v9 = vld [vmem:[%s642_s1 + $0x30] sm:$0xff] (!%p140_p2)   ;;  %v512_v10 = vld [vmem:[%s642_s1 + $0x38] sm:$0xff] (!%p140_p2)   ;;  %v513_v11 = vld [vmem:[%s642_s1 + $0x40] sm:$0xff] (!%p140_p2)  }
   0x8   : > { %316 = vmatprep.subr.bf16.mxu0 (!%p140_p2), %v534_v1  ;;  %479 = vmatprep.subr.bf16.mxu1 (!%p140_p2), %v534_v1  ;;  %v453_v18 = vld [vmem:[%s643_s2] ss:$0 sm:$0xff] (!%p140_p2) }
   0xb   : > { %317 = vmatpush1.bf16.msra.mxu0 (!%p140_p2), %v506_v2  ;;  %488 = vmatpush1.bf16.msra.mxu1 (!%p140_p2), %v506_v2 }
   0xc   : > { %318 = vmatprep.subr.bf16.mxu0 (!%p140_p2), %v534_v1  ;;  %480 = vmatprep.subr.bf16.mxu1 (!%p140_p2), %v534_v1 }
   0xd   : > { %s646_s16 = smov (!%p165_p3, %s448_s16), 15 }
   0xe   : > { %s477_s21 = sshll.u32 %s646_s16, 3 }
   0xf   : > { %s580_s24 = scalar_lea.vmem %s641_s0, %s477_s21  ;;  %319 = vmatpush1.bf16.msra.mxu0 %v507_v3  ;;  %489 = vmatpush1.bf16.msra.mxu1 %v507_v3  ;;  %s620_s15 = scalar_lea.vmem %s644_s3, %s477_s21 }
  0x10   : > { %v516_v5 = vld [vmem:[%s580_s24 + $0x4] ss:$8 sps:$4 sm:$0xff]   ;;  %320 = vmatprep.subr.bf16.mxu0 %v534_v1  ;;  %481 = vmatprep.subr.bf16.mxu1 %v534_v1  ;;  %v514_v12 = vld [vmem:[%s580_s24] ss:$8 sps:$4 sm:$0xff]   ;;  %v520_v14 = vld [vmem:[%s580_s24 + $0x14] ss:$8 sps:$4 sm:$0xff]  }
  0x11   : > { %v519_v6 = vld [vmem:[%s580_s24 + $0x24] ss:$8 sps:$4 sm:$0xff]   ;;  %471 = vmatprep.mubr.msk.bf16.mxu0 %vm301_vm0, %v516_v5  ;;  %v517_v13 = vld [vmem:[%s580_s24 + $0x20] ss:$8 sps:$4 sm:$0xff]   ;;  %v522_v15 = vld [vmem:[%s580_s24 + $0x34] ss:$8 sps:$4 sm:$0xff]  }
  0x12   : > { %473 = vmatprep.mubr.msk.bf16.mxu1 %vm301_vm0, %v519_v6  ;;  %v524_v16 = vld [vmem:[%s580_s24 + $0x10] ss:$8 sps:$4 sm:$0xff]  }
  0x13   : > { %321 = vmatpush1.bf16.msra.mxu0 %v508_v4  ;;  %490 = vmatpush1.bf16.msra.mxu1 %v508_v4  ;;  %v525_v17 = vld [vmem:[%s580_s24 + $0x30] ss:$8 sps:$4 sm:$0xff]  }
  0x14   : > { %322 = vmatprep.subr.bf16.mxu0 %v534_v1  ;;  %482 = vmatprep.subr.bf16.mxu1 %v534_v1 }
  0x17   : > { %323 = vmatpush1.bf16.msra.mxu0 %v509_v7  ;;  %491 = vmatpush1.bf16.msra.mxu1 %v509_v7 }
  0x18   : > { %324 = vmatprep.subr.bf16.mxu0 %v534_v1  ;;  %483 = vmatprep.subr.bf16.mxu1 %v534_v1 }
  0x1b   : > { %325 = vmatpush1.bf16.msra.mxu0 %v510_v8  ;;  %492 = vmatpush1.bf16.msra.mxu1 %v510_v8 }
  0x1c   : > { %326 = vmatprep.subr.bf16.mxu0 %v534_v1  ;;  %484 = vmatprep.subr.bf16.mxu1 %v534_v1 }
  0x1f   : > { %327 = vmatpush1.bf16.msra.mxu0 %v511_v9  ;;  %493 = vmatpush1.bf16.msra.mxu1 %v511_v9 }
  0x20   : > { %328 = vmatprep.subr.bf16.mxu0 %v534_v1  ;;  %485 = vmatprep.subr.bf16.mxu1 %v534_v1 }
  0x23   : > { %329 = vmatpush1.bf16.msra.mxu0 %v512_v10  ;;  %494 = vmatpush1.bf16.msra.mxu1 %v512_v10 }
  0x24   : > { %330 = vmatprep.subr.bf16.mxu0 %v534_v1  ;;  %486 = vmatprep.subr.bf16.mxu1 %v534_v1 }
  0x27   : > { %331 = vmatpush1.bf16.msra.mxu0 %v513_v11  ;;  %495 = vmatpush1.bf16.msra.mxu1 %v513_v11 }
  0x2a   : > { %347 = vmatmul.mubr.bf16.vlgmr.msra.gmra.mrb[0].mxu0 %v514_v12  ;;  %363 = vmatmul.mubr.bf16.vlgmr.msra.gmra.mrb[0].mxu1 %v517_v13 }
  0x2b   : > { %472 = vmatprep.mubr.msk.bf16.mxu0 %vm301_vm0, %v520_v14  ;;  %474 = vmatprep.mubr.msk.bf16.mxu1 %vm301_vm0, %v522_v15 }
  0x32   : > { %355 = vmatmul.mubr.bf16.gmra.mrb[4].mxu0 %v524_v16  ;;  %371 = vmatmul.mubr.bf16.gmra.mrb[4].mxu1 %v525_v17 }
  0xfd   : > { %v348_v19 = vpop.f32.mrb[0].mxu0  ;;  %v364_v20 = vpop.f32.mrb[0].mxu1 }
  0xfe   : > { %v349_v21 = vadd.f32 %v453_v18, %v348_v19  ;;  %v365_v22 = vadd.f32 %v453_v18, %v364_v20  ;;  %v350_v23 = vpop.f32.mrb[1].mxu0  ;;  %v366_v24 = vpop.f32.mrb[1].mxu1 }
  0xff   : > { %v351_v25 = vpop.f32.mrb[2].mxu0  ;;  %v367_v26 = vpop.f32.mrb[2].mxu1 }
 0x100   : > { %379 = vst.msk [vmem:[%s620_s15] sm:$0xff] %vm301_vm0, %v349_v21  ;;  %383 = vst.msk [vmem:[%s620_s15 + $0x20] sm:$0xff] %vm301_vm0, %v365_v22  ;;  %v352_v27 = vadd.f32 %v453_v18, %v351_v25  ;;  %v368_v28 = vadd.f32 %v453_v18, %v367_v26  ;;  %v353_v29 = vpop.f32.mrb[3].mxu0  ;;  %v369_v30 = vpop.f32.mrb[3].mxu1 }
 0x102   : > { %380 = vst.msk [vmem:[%s620_s15 + $0x8] sm:$0xff] %vm301_vm0, %v352_v27  ;;  %384 = vst.msk [vmem:[%s620_s15 + $0x28] sm:$0xff] %vm301_vm0, %v368_v28 }
 0x105   : > { %v356_v31 = vpop.f32.mrb[4].mxu0  ;;  %v372_v32 = vpop.f32.mrb[4].mxu1 }
 0x106   : > { %v357_v33 = vadd.f32 %v453_v18, %v356_v31  ;;  %v373_v34 = vadd.f32 %v453_v18, %v372_v32  ;;  %v358_v35 = vpop.f32.mrb[5].mxu0  ;;  %v374_v36 = vpop.f32.mrb[5].mxu1 }
 0x107   : > { %v359_v37 = vpop.f32.mrb[6].mxu0  ;;  %v375_v38 = vpop.f32.mrb[6].mxu1 }
 0x108   : > { %381 = vst.msk [vmem:[%s620_s15 + $0x10] sm:$0xff] %vm301_vm0, %v357_v33  ;;  %385 = vst.msk [vmem:[%s620_s15 + $0x30] sm:$0xff] %vm301_vm0, %v373_v34  ;;  %v360_v39 = vadd.f32 %v453_v18, %v359_v37  ;;  %v376_v40 = vadd.f32 %v453_v18, %v375_v38  ;;  %v361_v41 = vpop.f32.mrb[7].mxu0  ;;  %v377_v42 = vpop.f32.mrb[7].mxu1 }
 0x10a   : > { %382 = vst.msk [vmem:[%s620_s15 + $0x18] sm:$0xff] %vm301_vm0, %v360_v39  ;;  %386 = vst.msk [vmem:[%s620_s15 + $0x38] sm:$0xff] %vm301_vm0, %v376_v40 }
 0x10b PF: > { %s13_s12 = sadd.s32 1, %s532_s12  }
 0x10c   : > { %p10_p4 = scmp.ge.s32.totalorder %s13_s12, 4  }
 0x10e   :  { %12 = sbr.rel (!%p10_p4) target bundleno = 1 (0x1), region = 62 }

// kernel: unet_forward.86
= control target key start
LH: loop header
LB: loop body
LE: loop exit
PB: predicated region body
PF: predicated region fallthrough
CT: control target
= control target key end

     0   :  { %s565_s12 = smov 0   ;;  %s640_s0 = inlined_call_operand.vmem [shape: bf16[128,16], index: 0, kind: input, shape index: {}]   ;;  %s641_s1 = inlined_call_operand.vmem [shape: bf16[16,384], index: 1, kind: input, shape index: {}]   ;;  %s642_s2 = inlined_call_operand.vmem [shape: f32[1,384], index: 2, kind: input, shape index: {}]   ;;  %s643_s3 = inlined_call_operand.vmem [shape: f32[128,384], index: 3, kind: output, shape index: {}]  }
   0x1 LB: > { %s475_s13 = sadd.s32 4294967295, %s542_s12   ;;  %p479_p0 = scmp.ge.s32.totalorder %s542_s12, 1  ;;  %s542_s12 = sphi %s565_s12, %s13_s12  }
   0x2   : > { %p138_p1 = scmp.lt.s32.totalorder %s542_s12, 3 }
   0x4   : > { %p139_p2 = pnand %p479_p0, %p138_p1 }
   0x5   : > { %v528_v0 = vld [vmem:[%s641_s1 + $0x4] ss:$12 sps:$4 sm:$0xff] (!%p139_p2)   ;;  %s480_s16 = sshll.u32 (!%p139_p2), %s475_s13, 3  ;;  %v530_v1 = vld [vmem:[%s641_s1] ss:$12 sps:$4 sm:$0xff] (!%p139_p2)   ;;  %v544_v2 = vmov (!%p139_p2), 0   ;;  %v191_v8 = vlaneseq (!%p139_p2) }
   0x6   : > { %142 = sbr.rel (%p139_p2) target bundleno = 251 (0xfb), region = 32  ;;  %287 = vmatprep.mubr.bf16.mxu0 (!%p139_p2), %v544_v2  ;;  %317 = vmatprep.mubr.bf16.mxu1 (!%p139_p2), %v544_v2  ;;  %v531_v3 = vld [vmem:[%s641_s1 + $0x8] ss:$12 sps:$4 sm:$0xff] (!%p139_p2)   ;;  %p164_p3 = scmp.lt.s32.totalorder (!%p139_p2), %s480_s16, 15  ;;  %vm242_vm0 = vcmask (!%p139_p2), 130048  }
   0x7   : > { %516 = vmatprep.subr.bf16.mxu1 (!%p139_p2), %v528_v0  ;;  %255 = vmatprep.subr.bf16.mxu0 (!%p139_p2), %v528_v0  ;;  %v192_v9 = vshrl.u32 (!%p139_p2), %v191_v8, 7  ;;  %v189_v11 = vld [vmem:[%s642_s2] sm:$0x7] (!%p139_p2) }
   0x8   : > { %517 = vmatpush1.bf16.msra.mxu1 (!%p139_p2), %v530_v1  ;;  %256 = vmatpush1.bf16.msra.mxu0 (!%p139_p2), %v530_v1 }
   0x9   : > { %506 = vmatprep.subr.bf16.mxu1 (!%p139_p2), %v531_v3  ;;  %v193_v10 = vsub.s32 (!%p139_p2), 0, %v192_v9  ;;  %v197_v12 = vsub.s32 (!%p139_p2), 1, %v192_v9  ;;  %v201_v23 = vsub.s32 (!%p139_p2), 2, %v192_v9 }
   0xb   : > { %v588_v13 = vrot.slane (!%p139_p2), %v189_v11, %v193_v10  ;;  %v590_v14 = vrot.slane (!%p139_p2), %v189_v11, %v197_v12  ;;  %v202_v32 = vrot.slane (!%p139_p2), %v189_v11, %v201_v23 }
   0xd   : > { %s645_s16 = smov (!%p164_p3, %s480_s16), 15 }
   0xe   : > { %s481_s21 = sshll.u32 %s645_s16, 2  ;;  %s518_s27 = smul.u32 24, %s645_s16 }
   0xf   : > { %s167_s24 = scalar_lea.vmem %s640_s0, %s481_s21 }
  0x10   : > { %v532_v4 = vld [vmem:[%s167_s24] sm:$0xff]   ;;  %v533_v5 = vld [vmem:[%s167_s24 + $0x18] sm:$0xff]   ;;  %v534_v6 = vld [vmem:[%s167_s24 + $0x8] sm:$0xff]   ;;  %s595_s30 = scalar_lea.vmem %s643_s3, %s518_s27 }
  0x11   : > { %491 = vmatmul.mubr.msk.bf16.vlgmr.msra.gmra.mrb[0].mxu0 %vm242_vm0, %v532_v4  ;;  %494 = vmatmul.mubr.msk.bf16.vlgmr.msra.gmra.mrb[0].mxu1 %vm242_vm0, %v533_v5  ;;  %v535_v7 = vld [vmem:[%s167_s24 + $0x10] sm:$0xff]  }
  0x12   : > { %297 = vmatprep.mubr.bf16.mxu0 %v544_v2  ;;  %507 = vmatpush3.bf16.msra.mxu1 %v531_v3 }
  0x13   : > { %508 = vmatprep.mubr.msk.bf16.mxu1 %vm242_vm0, %v532_v4 }
  0x19   : > { %492 = vmatmul.mubr.msk.bf16.gmra.mrb[4].mxu0 %vm242_vm0, %v534_v6  ;;  %509 = vmatmul.mubr.msk.bf16.vlgmr.msra.gmra.mrb[4].mxu1 %vm242_vm0, %v534_v6 }
  0x1a   : > { %307 = vmatprep.mubr.bf16.mxu0 %v544_v2  ;;  %512 = vmatprep.mubr.msk.bf16.mxu1 %vm242_vm0, %v535_v7 }
  0x21   : > { %493 = vmatmul.mubr.msk.bf16.gmra.mrb[8].mxu0 %vm242_vm0, %v535_v7  ;;  %513 = vmatmul.mubr.msk.bf16.gmra.mrb[8].mxu1 %vm242_vm0, %v533_v5 }
  0xe4   : > { %v289_v15 = vpop.f32.mrb[0].mxu0  ;;  %v319_v17 = vpop.f32.mrb[0].mxu1 }
  0xe5   : > { %v290_v16 = vadd.f32 %v289_v15, %v588_v13  ;;  %v291_v18 = vpop.f32.mrb[1].mxu0  ;;  %v320_v19 = vadd.f32 %v319_v17, %v588_v13  ;;  %v321_v21 = vpop.f32.mrb[1].mxu1 }
  0xe6   : > { %v292_v20 = vadd.f32 %v291_v18, %v590_v14  ;;  %v293_v22 = vpop.f32.mrb[2].mxu0  ;;  %v322_v24 = vadd.f32 %v321_v21, %v590_v14  ;;  %v323_v26 = vpop.f32.mrb[2].mxu1 }
  0xe7   : > { %393 = vst [vmem:[%s595_s30] sm:$0xff] %v290_v16  ;;  %v294_v25 = vadd.f32 %v293_v22, %v588_v13  ;;  %v295_v27 = vpop.f32.mrb[3].mxu0  ;;  %411 = vst [vmem:[%s595_s30 + $0x90] sm:$0xff] %v320_v19  ;;  %v324_v28 = vadd.f32 %v323_v26, %v588_v13  ;;  %v325_v30 = vpop.f32.mrb[3].mxu1 }
  0xe8   : > { %394 = vst [vmem:[%s595_s30 + $0x8] sm:$0xff] %v292_v20  ;;  %v296_v29 = vadd.f32 %v295_v27, %v590_v14  ;;  %412 = vst [vmem:[%s595_s30 + $0x98] sm:$0xff] %v322_v24  ;;  %v326_v31 = vadd.f32 %v325_v30, %v590_v14 }
  0xe9   : > { %396 = vst [vmem:[%s595_s30 + $0x18] sm:$0xff] %v294_v25  ;;  %414 = vst [vmem:[%s595_s30 + $0xa8] sm:$0xff] %v324_v28 }
  0xea   : > { %397 = vst [vmem:[%s595_s30 + $0x20] sm:$0xff] %v296_v29  ;;  %415 = vst [vmem:[%s595_s30 + $0xb0] sm:$0xff] %v326_v31 }
  0xec   : > { %v299_v33 = vpop.f32.mrb[4].mxu0  ;;  %v510_v35 = vpop.f32.mrb[4].mxu1 }
  0xed   : > { %v300_v34 = vadd.f32 %v299_v33, %v588_v13  ;;  %v301_v36 = vpop.f32.mrb[5].mxu0  ;;  %v371_v37 = vadd.f32 %v510_v35, %v202_v32  ;;  %v362_v39 = vpop.f32.mrb[5].mxu1 }
  0xee   : > { %v302_v38 = vadd.f32 %v301_v36, %v590_v14  ;;  %v303_v40 = vpop.f32.mrb[6].mxu0  ;;  %v363_v41 = vadd.f32 %v362_v39, %v202_v32  ;;  %v511_v43 = vpop.f32.mrb[6].mxu1 }
  0xef   : > { %399 = vst [vmem:[%s595_s30 + $0x30] sm:$0xff] %v300_v34  ;;  %v304_v42 = vadd.f32 %v303_v40, %v588_v13  ;;  %v305_v44 = vpop.f32.mrb[7].mxu0  ;;  %401 = vst [vmem:[%s595_s30 + $0x40] sm:$0xff] %v371_v37  ;;  %v374_v45 = vadd.f32 %v511_v43, %v202_v32  ;;  %v365_v47 = vpop.f32.mrb[7].mxu1 }
  0xf0   : > { %400 = vst [vmem:[%s595_s30 + $0x38] sm:$0xff] %v302_v38  ;;  %v306_v46 = vadd.f32 %v305_v44, %v590_v14  ;;  %395 = vst [vmem:[%s595_s30 + $0x10] sm:$0xff] %v363_v41  ;;  %v366_v48 = vadd.f32 %v365_v47, %v202_v32 }
  0xf1   : > { %402 = vst [vmem:[%s595_s30 + $0x48] sm:$0xff] %v304_v42  ;;  %404 = vst [vmem:[%s595_s30 + $0x58] sm:$0xff] %v374_v45 }
  0xf2   : > { %403 = vst [vmem:[%s595_s30 + $0x50] sm:$0xff] %v306_v46  ;;  %398 = vst [vmem:[%s595_s30 + $0x28] sm:$0xff] %v366_v48 }
  0xf4   : > { %v309_v49 = vpop.f32.mrb[8].mxu0  ;;  %v514_v51 = vpop.f32.mrb[8].mxu1 }
  0xf5   : > { %v310_v50 = vadd.f32 %v309_v49, %v588_v13  ;;  %v311_v52 = vpop.f32.mrb[9].mxu0  ;;  %v387_v53 = vadd.f32 %v514_v51, %v202_v32  ;;  %v378_v55 = vpop.f32.mrb[9].mxu1 }
  0xf6   : > { %v312_v54 = vadd.f32 %v311_v52, %v590_v14  ;;  %v313_v56 = vpop.f32.mrb[10].mxu0  ;;  %v379_v57 = vadd.f32 %v378_v55, %v202_v32  ;;  %v515_v59 = vpop.f32.mrb[10].mxu1 }
  0xf7   : > { %405 = vst [vmem:[%s595_s30 + $0x60] sm:$0xff] %v310_v50  ;;  %v314_v58 = vadd.f32 %v313_v56, %v588_v13  ;;  %v315_v60 = vpop.f32.mrb[11].mxu0  ;;  %413 = vst [vmem:[%s595_s30 + $0xa0] sm:$0xff] %v387_v53  ;;  %v390_v61 = vadd.f32 %v515_v59, %v202_v32  ;;  %v381_v63 = vpop.f32.mrb[11].mxu1 }
  0xf8   : > { %406 = vst [vmem:[%s595_s30 + $0x68] sm:$0xff] %v312_v54  ;;  %v316_v62 = vadd.f32 %v315_v60, %v590_v14  ;;  %407 = vst [vmem:[%s595_s30 + $0x70] sm:$0xff] %v379_v57  ;;  %v382_v0 = vadd.f32 %v381_v63, %v202_v32 }
  0xf9   : > { %408 = vst [vmem:[%s595_s30 + $0x78] sm:$0xff] %v314_v58  ;;  %416 = vst [vmem:[%s595_s30 + $0xb8] sm:$0xff] %v390_v61 }
  0xfa   : > { %409 = vst [vmem:[%s595_s30 + $0x80] sm:$0xff] %v316_v62  ;;  %410 = vst [vmem:[%s595_s30 + $0x88] sm:$0xff] %v382_v0 }
  0xfb PF: > { %s13_s12 = sadd.s32 1, %s542_s12  }
  0xfc   : > { %p10_p4 = scmp.ge.s32.totalorder %s13_s12, 4  }
  0xfe   :  { %12 = sbr.rel (!%p10_p4) target bundleno = 1 (0x1), region = 62 }

// kernel: unet_forward.87
= control target key start
LH: loop header
LB: loop body
LE: loop exit
PB: predicated region body
PF: predicated region fallthrough
CT: control target
= control target key end

     0   :  { %s848_s9 = smov 0   ;;  %s946_s0 = inlined_call_operand.vmem [shape: bf16[8,32,64], index: 0, kind: input, shape index: {}]   ;;  %s947_s1 = inlined_call_operand.vmem [shape: bf16[8,64,32], index: 1, kind: input, shape index: {}]   ;;  %s948_s2 = inlined_call_operand.vmem [shape: f32[8,32,32], index: 2, kind: output, shape index: {}]  }
   0x1 LB: > { %s670_s10 = sadd.s32 4294967295, %s831_s9   ;;  %p674_p0 = scmp.ge.s32.totalorder %s831_s9, 1  ;;  %s831_s9 = sphi %s848_s9, %s12_s9  }
   0x2   : > { %p126_p1 = scmp.lt.s32.totalorder %s831_s9, 3 }
   0x4   : > { %p127_p2 = pnand %p674_p0, %p126_p1 }
   0x5   : > { %s675_s11 = sshll.u32 (!%p127_p2), %s670_s10, 2  ;;  %vm260_vm0 = vcmask (!%p127_p2), 523264   ;;  %vm583_vm1 = vcmask (!%p127_p2), 261120  }
   0x6   : > { %130 = sbr.rel (%p127_p2) target bundleno = 266 (0x10a), region = 28  ;;  %p157_p3 = scmp.lt.s32.totalorder (!%p127_p2), %s675_s11, 7 }
   0xd   : > { %s950_s11 = smov (!%p157_p3, %s675_s11), 7 }
   0xe   : > { %s719_s12 = sshll.u32 %s950_s11, 5  ;;  %s718_s16 = sshll.u32 %s950_s11, 4 }
   0xf   : > { %s864_s15 = scalar_lea.vmem %s947_s1, %s719_s12  ;;  %s876_s19 = scalar_lea.vmem %s946_s0, %s718_s16 }
  0x10   : > { %v801_v0 = vld [vmem:[%s864_s15] sm:$0xff]   ;;  %v803_v2 = vld [vmem:[%s864_s15 + $0x8] sm:$0xff]   ;;  %v805_v4 = vld [vmem:[%s864_s15 + $0x10] sm:$0xff]   ;;  %s909_s22 = scalar_lea.vmem %s948_s2, %s719_s12 }
  0x11   : > { %v802_v1 = vld [vmem:[%s864_s15 + $0x20] sm:$0xff]   ;;  %745 = vmatprep.subr.bf16.mxu0 %v801_v0  ;;  %v804_v3 = vld [vmem:[%s864_s15 + $0x28] sm:$0xff]   ;;  %v806_v5 = vld [vmem:[%s864_s15 + $0x30] sm:$0xff]  }
  0x12   : > { %757 = vmatprep.subr.bf16.mxu1 %v802_v1  ;;  %746 = vmatpush3.bf16.msra.mxu0 %v801_v0  ;;  %v807_v6 = vld [vmem:[%s864_s15 + $0x18] sm:$0xff]   ;;  %v809_v8 = vld [vmem:[%s876_s19] sm:$0xff]   ;;  %v810_v9 = vld [vmem:[%s876_s19 + $0x10] sm:$0xff]  }
  0x13   : > { %758 = vmatpush3.bf16.msra.mxu1 %v802_v1  ;;  %747 = vmatprep.subr.bf16.mxu0 %v803_v2  ;;  %v808_v7 = vld [vmem:[%s864_s15 + $0x38] sm:$0xff]   ;;  %v813_v10 = vld [vmem:[%s864_s15 + $0x40] sm:$0xff]   ;;  %v811_v12 = vld [vmem:[%s876_s19 + $0x8] sm:$0xff]  }
  0x14   : > { %759 = vmatprep.subr.bf16.mxu1 %v804_v3  ;;  %753 = vmatprep.mubr.msk.bf16.mxu0 %vm260_vm0, %v809_v8  ;;  %v814_v11 = vld [vmem:[%s864_s15 + $0x60] sm:$0xff]   ;;  %v812_v13 = vld [vmem:[%s876_s19 + $0x18] sm:$0xff]   ;;  %v815_v14 = vld [vmem:[%s864_s15 + $0x48] sm:$0xff]  }
  0x15   : > { %765 = vmatprep.mubr.msk.bf16.mxu1 %vm260_vm0, %v810_v9  ;;  %v816_v15 = vld [vmem:[%s864_s15 + $0x68] sm:$0xff]   ;;  %v817_v16 = vld [vmem:[%s864_s15 + $0x50] sm:$0xff]   ;;  %v821_v18 = vld [vmem:[%s876_s19 + $0x20] sm:$0xff]  }
  0x16   : > { %748 = vmatpush3.bf16.msra.mxu0 %v803_v2  ;;  %v818_v17 = vld [vmem:[%s864_s15 + $0x70] sm:$0xff]   ;;  %v819_v20 = vld [vmem:[%s864_s15 + $0x58] sm:$0xff]   ;;  %v823_v22 = vld [vmem:[%s876_s19 + $0x28] sm:$0xff]  }
  0x17   : > { %760 = vmatpush3.bf16.msra.mxu1 %v804_v3  ;;  %749 = vmatprep.subr.bf16.mxu0 %v805_v4  ;;  %v822_v19 = vld [vmem:[%s876_s19 + $0x30] sm:$0xff]   ;;  %v820_v21 = vld [vmem:[%s864_s15 + $0x78] sm:$0xff]  }
  0x18   : > { %761 = vmatprep.subr.bf16.mxu1 %v806_v5  ;;  %v824_v23 = vld [vmem:[%s876_s19 + $0x38] sm:$0xff]  }
  0x1a   : > { %750 = vmatpush3.bf16.msra.mxu0 %v805_v4 }
  0x1b   : > { %762 = vmatpush3.bf16.msra.mxu1 %v806_v5  ;;  %751 = vmatprep.subr.bf16.mxu0 %v807_v6 }
  0x1c   : > { %763 = vmatprep.subr.bf16.mxu1 %v808_v7 }
  0x1e   : > { %752 = vmatpush3.bf16.msra.mxu0 %v807_v6 }
  0x1f   : > { %764 = vmatpush3.bf16.msra.mxu1 %v808_v7  ;;  %769 = vmatprep.subr.bf16.mxu0 %v813_v10 }
  0x20   : > { %781 = vmatprep.subr.bf16.mxu1 %v814_v11 }
  0x21   : > { %754 = vmatmul.mubr.msk.bf16.vlgmr.msra.gmra.mrb[0].mxu0 %vm260_vm0, %v811_v12 }
  0x22   : > { %766 = vmatmul.mubr.msk.bf16.vlgmr.msra.gmra.mrb[0].mxu1 %vm260_vm0, %v812_v13  ;;  %770 = vmatpush3.bf16.msra.mxu0 %v813_v10 }
  0x23   : > { %782 = vmatpush3.bf16.msra.mxu1 %v814_v11  ;;  %771 = vmatprep.subr.bf16.mxu0 %v815_v14 }
  0x24   : > { %783 = vmatprep.subr.bf16.mxu1 %v816_v15  ;;  %777 = vmatprep.mubr.msk.bf16.mxu0 %vm260_vm0, %v821_v18 }
  0x25   : > { %789 = vmatprep.mubr.msk.bf16.mxu1 %vm260_vm0, %v822_v19 }
  0x26   : > { %772 = vmatpush3.bf16.msra.mxu0 %v815_v14 }
  0x27   : > { %784 = vmatpush3.bf16.msra.mxu1 %v816_v15  ;;  %773 = vmatprep.subr.bf16.mxu0 %v817_v16 }
  0x28   : > { %785 = vmatprep.subr.bf16.mxu1 %v818_v17 }
  0x2a   : > { %774 = vmatpush3.bf16.msra.mxu0 %v817_v16 }
  0x2b   : > { %786 = vmatpush3.bf16.msra.mxu1 %v818_v17  ;;  %775 = vmatprep.subr.bf16.mxu0 %v819_v20 }
  0x2c   : > { %787 = vmatprep.subr.bf16.mxu1 %v820_v21 }
  0x2e   : > { %776 = vmatpush3.bf16.msra.mxu0 %v819_v20 }
  0x2f   : > { %788 = vmatpush3.bf16.msra.mxu1 %v820_v21 }
  0x31   : > { %778 = vmatmul.mubr.msk.bf16.vlgmr.msra.gmra.mrb[4].mxu0 %vm260_vm0, %v823_v22 }
  0x32   : > { %790 = vmatmul.mubr.msk.bf16.vlgmr.msra.gmra.mrb[4].mxu1 %vm260_vm0, %v824_v23 }
  0xf4   : > { %v755_v24 = vpop.f32.mrb[0].mxu0 }
  0xf5   : > { %586 = vst.msk [vmem:[%s909_s22 + $0x10] sm:$0xff] %vm583_vm1, %v755_v24  ;;  %v767_v25 = vpop.f32.mrb[0].mxu1  ;;  %v301_v26 = vpop.f32.mrb[1].mxu0 }
  0xf6   : > { %590 = vst.msk [vmem:[%s909_s22 + $0x30] sm:$0xff] %vm583_vm1, %v767_v25  ;;  %584 = vst.msk [vmem:[%s909_s22] sm:$0xff] %vm583_vm1, %v301_v26  ;;  %v390_v27 = vpop.f32.mrb[1].mxu1  ;;  %v756_v28 = vpop.f32.mrb[2].mxu0 }
  0xf7   : > { %588 = vst.msk [vmem:[%s909_s22 + $0x20] sm:$0xff] %vm583_vm1, %v390_v27  ;;  %587 = vst.msk [vmem:[%s909_s22 + $0x18] sm:$0xff] %vm583_vm1, %v756_v28  ;;  %v768_v29 = vpop.f32.mrb[2].mxu1  ;;  %v304_v30 = vpop.f32.mrb[3].mxu0 }
  0xf8   : > { %591 = vst.msk [vmem:[%s909_s22 + $0x38] sm:$0xff] %vm583_vm1, %v768_v29  ;;  %585 = vst.msk [vmem:[%s909_s22 + $0x8] sm:$0xff] %vm583_vm1, %v304_v30  ;;  %v393_v31 = vpop.f32.mrb[3].mxu1 }
  0xf9   : > { %589 = vst.msk [vmem:[%s909_s22 + $0x28] sm:$0xff] %vm583_vm1, %v393_v31 }
 0x104   : > { %v779_v32 = vpop.f32.mrb[4].mxu0 }
 0x105   : > { %594 = vst.msk [vmem:[%s909_s22 + $0x50] sm:$0xff] %vm583_vm1, %v779_v32  ;;  %v791_v33 = vpop.f32.mrb[4].mxu1  ;;  %v479_v34 = vpop.f32.mrb[5].mxu0 }
 0x106   : > { %598 = vst.msk [vmem:[%s909_s22 + $0x70] sm:$0xff] %vm583_vm1, %v791_v33  ;;  %592 = vst.msk [vmem:[%s909_s22 + $0x40] sm:$0xff] %vm583_vm1, %v479_v34  ;;  %v568_v35 = vpop.f32.mrb[5].mxu1  ;;  %v780_v36 = vpop.f32.mrb[6].mxu0 }
 0x107   : > { %596 = vst.msk [vmem:[%s909_s22 + $0x60] sm:$0xff] %vm583_vm1, %v568_v35  ;;  %595 = vst.msk [vmem:[%s909_s22 + $0x58] sm:$0xff] %vm583_vm1, %v780_v36  ;;  %v792_v37 = vpop.f32.mrb[6].mxu1  ;;  %v482_v38 = vpop.f32.mrb[7].mxu0 }
 0x108   : > { %599 = vst.msk [vmem:[%s909_s22 + $0x78] sm:$0xff] %vm583_vm1, %v792_v37  ;;  %593 = vst.msk [vmem:[%s909_s22 + $0x48] sm:$0xff] %vm583_vm1, %v482_v38  ;;  %v571_v39 = vpop.f32.mrb[7].mxu1 }
 0x109   : > { %597 = vst.msk [vmem:[%s909_s22 + $0x68] sm:$0xff] %vm583_vm1, %v571_v39 }
 0x10a PF: > { %s12_s9 = sadd.s32 1, %s831_s9  }
 0x10b   : > { %p9_p4 = scmp.ge.s32.totalorder %s12_s9, 4  }
 0x10d   :  { %11 = sbr.rel (!%p9_p4) target bundleno = 1 (0x1), region = 61 }

// kernel: unet_forward.88
= control target key start
LH: loop header
LB: loop body
LE: loop exit
PB: predicated region body
PF: predicated region fallthrough
CT: control target
= control target key end

     0   :  { %s744_s9 = smov 0   ;;  %s820_s0 = inlined_call_operand.vmem [shape: bf16[8,32,32], index: 0, kind: input, shape index: {}]   ;;  %s821_s1 = inlined_call_operand.vmem [shape: bf16[8,32,64], index: 1, kind: input, shape index: {}]   ;;  %s822_s2 = inlined_call_operand.vmem [shape: f32[8,32,64], index: 2, kind: output, shape index: {}]  }
   0x1 LB: > { %s606_s10 = sadd.s32 4294967295, %s727_s9   ;;  %p610_p0 = scmp.ge.s32.totalorder %s727_s9, 1  ;;  %s727_s9 = sphi %s744_s9, %s12_s9  }
   0x2   : > { %p126_p1 = scmp.lt.s32.totalorder %s727_s9, 3 }
   0x4   : > { %p127_p2 = pnand %p610_p0, %p126_p1 }
   0x5   : > { %s611_s11 = sshll.u32 (!%p127_p2), %s606_s10, 2  ;;  %vm232_vm0 = vcmask (!%p127_p2), 261120   ;;  %vm519_vm1 = vcmask (!%p127_p2), 523264  }
   0x6   : > { %130 = sbr.rel (%p127_p2) target bundleno = 249 (0xf9), region = 28  ;;  %p157_p3 = scmp.lt.s32.totalorder (!%p127_p2), %s611_s11, 7 }
   0xd   : > { %s824_s11 = smov (!%p157_p3, %s611_s11), 7 }
   0xe   : > { %s646_s12 = sshll.u32 %s824_s11, 4  ;;  %s648_s19 = sshll.u32 %s824_s11, 5 }
   0xf   : > { %s168_s15 = scalar_lea.vmem %s821_s1, %s646_s12  ;;  %s761_s18 = scalar_lea.vmem %s820_s0, %s646_s12 }
  0x10   : > { %v705_v0 = vld [vmem:[%s168_s15] sm:$0xff]   ;;  %v706_v1 = vld [vmem:[%s168_s15 + $0x10] sm:$0xff]   ;;  %v707_v2 = vld [vmem:[%s168_s15 + $0x8] sm:$0xff]   ;;  %s783_s22 = scalar_lea.vmem %s822_s2, %s648_s19 }
  0x11   : > { %665 = vmatprep.subr.bf16.mxu0 %v705_v0  ;;  %673 = vmatprep.subr.bf16.mxu1 %v706_v1  ;;  %v708_v3 = vld [vmem:[%s168_s15 + $0x18] sm:$0xff]   ;;  %v709_v4 = vld [vmem:[%s761_s18] sm:$0xff]   ;;  %v710_v5 = vld [vmem:[%s761_s18 + $0x10] sm:$0xff]  }
  0x12   : > { %666 = vmatpush3.bf16.msra.mxu0 %v705_v0  ;;  %674 = vmatpush3.bf16.msra.mxu1 %v706_v1  ;;  %v711_v6 = vld [vmem:[%s761_s18 + $0x8] sm:$0xff]   ;;  %v712_v7 = vld [vmem:[%s761_s18 + $0x18] sm:$0xff]   ;;  %v713_v8 = vld [vmem:[%s168_s15 + $0x20] sm:$0xff]  }
  0x13   : > { %667 = vmatprep.subr.bf16.mxu0 %v707_v2  ;;  %675 = vmatprep.subr.bf16.mxu1 %v708_v3  ;;  %v714_v9 = vld [vmem:[%s168_s15 + $0x30] sm:$0xff]   ;;  %v715_v10 = vld [vmem:[%s168_s15 + $0x28] sm:$0xff]   ;;  %v716_v11 = vld [vmem:[%s168_s15 + $0x38] sm:$0xff]  }
  0x14   : > { %669 = vmatprep.mubr.msk.bf16.mxu0 %vm232_vm0, %v709_v4  ;;  %677 = vmatprep.mubr.msk.bf16.mxu1 %vm232_vm0, %v710_v5  ;;  %v717_v12 = vld [vmem:[%s761_s18 + $0x20] sm:$0xff]   ;;  %v718_v13 = vld [vmem:[%s761_s18 + $0x30] sm:$0xff]   ;;  %v719_v14 = vld [vmem:[%s761_s18 + $0x28] sm:$0xff]  }
  0x15   : > { %v720_v15 = vld [vmem:[%s761_s18 + $0x38] sm:$0xff]  }
  0x16   : > { %668 = vmatpush3.bf16.msra.mxu0 %v707_v2  ;;  %676 = vmatpush3.bf16.msra.mxu1 %v708_v3 }
  0x17   : > { %681 = vmatprep.subr.bf16.mxu0 %v713_v8  ;;  %689 = vmatprep.subr.bf16.mxu1 %v714_v9 }
  0x19   : > { %670 = vmatmul.mubr.msk.bf16.vlgmr.msra.gmra.mrb[0].mxu0 %vm232_vm0, %v711_v6  ;;  %678 = vmatmul.mubr.msk.bf16.vlgmr.msra.gmra.mrb[0].mxu1 %vm232_vm0, %v712_v7 }
  0x1a   : > { %682 = vmatpush3.bf16.msra.mxu0 %v713_v8  ;;  %690 = vmatpush3.bf16.msra.mxu1 %v714_v9 }
  0x1b   : > { %683 = vmatprep.subr.bf16.mxu0 %v715_v10  ;;  %691 = vmatprep.subr.bf16.mxu1 %v716_v11 }
  0x1c   : > { %685 = vmatprep.mubr.msk.bf16.mxu0 %vm232_vm0, %v717_v12  ;;  %693 = vmatprep.mubr.msk.bf16.mxu1 %vm232_vm0, %v718_v13 }
  0x1e   : > { %684 = vmatpush3.bf16.msra.mxu0 %v715_v10  ;;  %692 = vmatpush3.bf16.msra.mxu1 %v716_v11 }
  0x21   : > { %686 = vmatmul.mubr.msk.bf16.vlgmr.msra.gmra.mrb[4].mxu0 %vm232_vm0, %v719_v14  ;;  %694 = vmatmul.mubr.msk.bf16.vlgmr.msra.gmra.mrb[4].mxu1 %vm232_vm0, %v720_v15 }
  0xec   : > { %v671_v16 = vpop.f32.mrb[0].mxu0  ;;  %v679_v17 = vpop.f32.mrb[0].mxu1 }
  0xed   : > { %522 = vst.msk [vmem:[%s783_s22 + $0x10] sm:$0xff] %vm519_vm1, %v671_v16  ;;  %v273_v18 = vpop.f32.mrb[1].mxu0  ;;  %526 = vst.msk [vmem:[%s783_s22 + $0x30] sm:$0xff] %vm519_vm1, %v679_v17  ;;  %v350_v19 = vpop.f32.mrb[1].mxu1 }
  0xee   : > { %520 = vst.msk [vmem:[%s783_s22] sm:$0xff] %vm519_vm1, %v273_v18  ;;  %v672_v20 = vpop.f32.mrb[2].mxu0  ;;  %524 = vst.msk [vmem:[%s783_s22 + $0x20] sm:$0xff] %vm519_vm1, %v350_v19  ;;  %v680_v21 = vpop.f32.mrb[2].mxu1 }
  0xef   : > { %523 = vst.msk [vmem:[%s783_s22 + $0x18] sm:$0xff] %vm519_vm1, %v672_v20  ;;  %v276_v22 = vpop.f32.mrb[3].mxu0  ;;  %527 = vst.msk [vmem:[%s783_s22 + $0x38] sm:$0xff] %vm519_vm1, %v680_v21  ;;  %v353_v23 = vpop.f32.mrb[3].mxu1 }
  0xf0   : > { %521 = vst.msk [vmem:[%s783_s22 + $0x8] sm:$0xff] %vm519_vm1, %v276_v22  ;;  %525 = vst.msk [vmem:[%s783_s22 + $0x28] sm:$0xff] %vm519_vm1, %v353_v23 }
  0xf4   : > { %v687_v24 = vpop.f32.mrb[4].mxu0  ;;  %v695_v25 = vpop.f32.mrb[4].mxu1 }
  0xf5   : > { %530 = vst.msk [vmem:[%s783_s22 + $0x50] sm:$0xff] %vm519_vm1, %v687_v24  ;;  %v427_v26 = vpop.f32.mrb[5].mxu0  ;;  %v504_v27 = vpop.f32.mrb[5].mxu1  ;;  %534 = vst.msk [vmem:[%s783_s22 + $0x70] sm:$0xff] %vm519_vm1, %v695_v25 }
  0xf6   : > { %528 = vst.msk [vmem:[%s783_s22 + $0x40] sm:$0xff] %vm519_vm1, %v427_v26  ;;  %v688_v28 = vpop.f32.mrb[6].mxu0  ;;  %v696_v29 = vpop.f32.mrb[6].mxu1  ;;  %532 = vst.msk [vmem:[%s783_s22 + $0x60] sm:$0xff] %vm519_vm1, %v504_v27 }
  0xf7   : > { %531 = vst.msk [vmem:[%s783_s22 + $0x58] sm:$0xff] %vm519_vm1, %v688_v28  ;;  %v430_v30 = vpop.f32.mrb[7].mxu0  ;;  %v507_v31 = vpop.f32.mrb[7].mxu1  ;;  %535 = vst.msk [vmem:[%s783_s22 + $0x78] sm:$0xff] %vm519_vm1, %v696_v29 }
  0xf8   : > { %529 = vst.msk [vmem:[%s783_s22 + $0x48] sm:$0xff] %vm519_vm1, %v430_v30  ;;  %533 = vst.msk [vmem:[%s783_s22 + $0x68] sm:$0xff] %vm519_vm1, %v507_v31 }
  0xf9 PF: > { %s12_s9 = sadd.s32 1, %s727_s9  }
  0xfa   : > { %p9_p4 = scmp.ge.s32.totalorder %s12_s9, 4  }
  0xfc   :  { %11 = sbr.rel (!%p9_p4) target bundleno = 1 (0x1), region = 61 }

// kernel: unet_forward.89
= control target key start
LH: loop header
LB: loop body
LE: loop exit
PB: predicated region body
PF: predicated region fallthrough
CT: control target
= control target key end

     0   :  { %s532_s12 = smov 0   ;;  %s594_s0 = inlined_call_operand.vmem [shape: bf16[128,128], index: 0, kind: input, shape index: {}]   ;;  %s595_s1 = inlined_call_operand.vmem [shape: bf16[128,16], index: 1, kind: input, shape index: {}]   ;;  %s596_s2 = inlined_call_operand.vmem [shape: f32[1,16], index: 2, kind: input, shape index: {}]   ;;  %s597_s3 = inlined_call_operand.vmem [shape: f32[128,16], index: 3, kind: output, shape index: {}]  }
   0x1 LB: > { %s408_s13 = sadd.s32 4294967295, %s510_s12   ;;  %p412_p0 = scmp.ge.s32.totalorder %s510_s12, 1  ;;  %s510_s12 = sphi %s532_s12, %s13_s12  }
   0x2   : > { %p138_p1 = scmp.lt.s32.totalorder %s510_s12, 3 }
   0x4   : > { %p139_p2 = pnand %p412_p0, %p138_p1 }
   0x5   : > { %v492_v0 = vld [vmem:[%s595_s1] sm:$0xff] (!%p139_p2)   ;;  %s413_s16 = sshll.u32 (!%p139_p2), %s408_s13, 3  ;;  %v493_v1 = vld [vmem:[%s595_s1 + $0x8] sm:$0xff] (!%p139_p2)   ;;  %v494_v2 = vld [vmem:[%s595_s1 + $0x10] sm:$0xff] (!%p139_p2)   ;;  %vm343_vm0 = vcmask (!%p139_p2), 130048  }
   0x6   : > { %142 = sbr.rel (%p139_p2) target bundleno = 256 (0x100), region = 32  ;;  %p163_p3 = scmp.lt.s32.totalorder (!%p139_p2), %s413_s16, 15  ;;  %444 = vmatprep.subr.bf16.mxu0 (!%p139_p2), %v492_v0  ;;  %468 = vmatprep.subr.bf16.mxu1 (!%p139_p2), %v492_v0  ;;  %v495_v3 = vld [vmem:[%s595_s1 + $0x18] sm:$0xff] (!%p139_p2)   ;;  %v496_v6 = vld [vmem:[%s595_s1 + $0x20] sm:$0xff] (!%p139_p2)   ;;  %v497_v7 = vld [vmem:[%s595_s1 + $0x28] sm:$0xff] (!%p139_p2)  }
   0x7   : > { %445 = vmatpush3.bf16.msra.mxu0 (!%p139_p2), %v492_v0  ;;  %476 = vmatpush3.bf16.msra.mxu1 (!%p139_p2), %v492_v0  ;;  %v498_v8 = vld [vmem:[%s595_s1 + $0x30] sm:$0xff] (!%p139_p2)   ;;  %v499_v9 = vld [vmem:[%s595_s1 + $0x38] sm:$0xff] (!%p139_p2)   ;;  %v417_v12 = vld [vmem:[%s596_s2] ss:$0 sm:$0xff] (!%p139_p2) }
   0x8   : > { %446 = vmatprep.subr.bf16.mxu0 (!%p139_p2), %v493_v1  ;;  %469 = vmatprep.subr.bf16.mxu1 (!%p139_p2), %v493_v1 }
   0xb   : > { %447 = vmatpush3.bf16.msra.mxu0 (!%p139_p2), %v493_v1  ;;  %477 = vmatpush3.bf16.msra.mxu1 (!%p139_p2), %v493_v1 }
   0xc   : > { %448 = vmatprep.subr.bf16.mxu0 (!%p139_p2), %v494_v2  ;;  %470 = vmatprep.subr.bf16.mxu1 (!%p139_p2), %v494_v2 }
   0xd   : > { %s599_s16 = smov (!%p163_p3, %s413_s16), 15 }
   0xe   : > { %s414_s21 = sshll.u32 %s599_s16, 2  ;;  %s416_s8 = sshll.u32 %s599_s16, 3 }
   0xf   : > { %s555_s24 = scalar_lea.vmem %s594_s0, %s414_s21  ;;  %449 = vmatpush3.bf16.msra.mxu0 %v494_v2  ;;  %478 = vmatpush3.bf16.msra.mxu1 %v494_v2  ;;  %s172_s14 = scalar_lea.vmem %s597_s3, %s416_s8 }
  0x10   : > { %v500_v4 = vld [vmem:[%s555_s24] sm:$0xff]   ;;  %v501_v5 = vld [vmem:[%s555_s24 + $0x10] sm:$0xff]   ;;  %450 = vmatprep.subr.bf16.mxu0 %v495_v3  ;;  %471 = vmatprep.subr.bf16.mxu1 %v495_v3  ;;  %v502_v10 = vld [vmem:[%s555_s24 + $0x8] sm:$0xff]  }
  0x11   : > { %460 = vmatprep.mubr.bf16.mxu0 %v500_v4  ;;  %464 = vmatprep.mubr.bf16.mxu1 %v501_v5  ;;  %v503_v11 = vld [vmem:[%s555_s24 + $0x18] sm:$0xff]  }
  0x13   : > { %451 = vmatpush3.bf16.msra.mxu0 %v495_v3  ;;  %479 = vmatpush3.bf16.msra.mxu1 %v495_v3 }
  0x14   : > { %452 = vmatprep.subr.bf16.mxu0 %v496_v6  ;;  %472 = vmatprep.subr.bf16.mxu1 %v496_v6 }
  0x17   : > { %453 = vmatpush3.bf16.msra.mxu0 %v496_v6  ;;  %480 = vmatpush3.bf16.msra.mxu1 %v496_v6 }
  0x18   : > { %454 = vmatprep.subr.bf16.mxu0 %v497_v7  ;;  %473 = vmatprep.subr.bf16.mxu1 %v497_v7 }
  0x1b   : > { %455 = vmatpush3.bf16.msra.mxu0 %v497_v7  ;;  %481 = vmatpush3.bf16.msra.mxu1 %v497_v7 }
  0x1c   : > { %456 = vmatprep.subr.bf16.mxu0 %v498_v8  ;;  %474 = vmatprep.subr.bf16.mxu1 %v498_v8 }
  0x1f   : > { %457 = vmatpush3.bf16.msra.mxu0 %v498_v8  ;;  %482 = vmatpush3.bf16.msra.mxu1 %v498_v8 }
  0x20   : > { %458 = vmatprep.subr.bf16.mxu0 %v499_v9  ;;  %475 = vmatprep.subr.bf16.mxu1 %v499_v9 }
  0x23   : > { %459 = vmatpush3.bf16.msra.mxu0 %v499_v9  ;;  %483 = vmatpush3.bf16.msra.mxu1 %v499_v9 }
  0x26   : > { %461 = vmatmul.mubr.bf16.vlgmr.msra.gmra.mrb[0].mxu0 %v502_v10  ;;  %465 = vmatmul.mubr.bf16.vlgmr.msra.gmra.mrb[0].mxu1 %v503_v11 }
  0xf9   : > { %v462_v13 = vpop.f32.mrb[0].mxu0  ;;  %v466_v14 = vpop.f32.mrb[0].mxu1 }
  0xfa   : > { %v321_v15 = vadd.f32 %v462_v13, %v417_v12  ;;  %v337_v16 = vadd.f32 %v466_v14, %v417_v12  ;;  %v312_v17 = vpop.f32.mrb[1].mxu0  ;;  %v328_v18 = vpop.f32.mrb[1].mxu1 }
  0xfb   : > { %v313_v19 = vadd.f32 %v417_v12, %v312_v17  ;;  %v329_v20 = vadd.f32 %v417_v12, %v328_v18  ;;  %v463_v21 = vpop.f32.mrb[2].mxu0  ;;  %v467_v22 = vpop.f32.mrb[2].mxu1 }
  0xfc   : > { %346 = vst.msk [vmem:[%s172_s14 + $0x10] sm:$0xff] %vm343_vm0, %v321_v15  ;;  %350 = vst.msk [vmem:[%s172_s14 + $0x30] sm:$0xff] %vm343_vm0, %v337_v16  ;;  %v324_v23 = vadd.f32 %v463_v21, %v417_v12  ;;  %v340_v24 = vadd.f32 %v467_v22, %v417_v12  ;;  %v315_v25 = vpop.f32.mrb[3].mxu0  ;;  %v331_v26 = vpop.f32.mrb[3].mxu1 }
  0xfd   : > { %344 = vst.msk [vmem:[%s172_s14] sm:$0xff] %vm343_vm0, %v313_v19  ;;  %348 = vst.msk [vmem:[%s172_s14 + $0x20] sm:$0xff] %vm343_vm0, %v329_v20  ;;  %v316_v27 = vadd.f32 %v417_v12, %v315_v25  ;;  %v332_v28 = vadd.f32 %v417_v12, %v331_v26 }
  0xfe   : > { %347 = vst.msk [vmem:[%s172_s14 + $0x18] sm:$0xff] %vm343_vm0, %v324_v23  ;;  %351 = vst.msk [vmem:[%s172_s14 + $0x38] sm:$0xff] %vm343_vm0, %v340_v24 }
  0xff   : > { %345 = vst.msk [vmem:[%s172_s14 + $0x8] sm:$0xff] %vm343_vm0, %v316_v27  ;;  %349 = vst.msk [vmem:[%s172_s14 + $0x28] sm:$0xff] %vm343_vm0, %v332_v28 }
 0x100 PF: > { %s13_s12 = sadd.s32 1, %s510_s12  }
 0x101   : > { %p10_p4 = scmp.ge.s32.totalorder %s13_s12, 4  }
 0x103   :  { %12 = sbr.rel (!%p10_p4) target bundleno = 1 (0x1), region = 62 }

// kernel: unet_forward.90
= control target key start
LH: loop header
LB: loop body
LE: loop exit
PB: predicated region body
PF: predicated region fallthrough
CT: control target
= control target key end

     0   :  { %s556_s12 = smov 0   ;;  %s642_s0 = inlined_call_operand.vmem [shape: bf16[128,144], index: 0, kind: input, shape index: {}]   ;;  %s643_s1 = inlined_call_operand.vmem [shape: bf16[144,32], index: 1, kind: input, shape index: {}]   ;;  %s644_s2 = inlined_call_operand.vmem [shape: f32[1,32], index: 2, kind: input, shape index: {}]   ;;  %s645_s3 = inlined_call_operand.vmem [shape: f32[128,32], index: 3, kind: output, shape index: {}]  }
   0x1 LB: > { %s444_s13 = sadd.s32 4294967295, %s533_s12   ;;  %p448_p0 = scmp.ge.s32.totalorder %s533_s12, 1  ;;  %s533_s12 = sphi %s556_s12, %s13_s12  }
   0x2   : > { %p139_p1 = scmp.lt.s32.totalorder %s533_s12, 3 }
   0x4   : > { %p140_p2 = pnand %p448_p0, %p139_p1 }
   0x5   : > { %v506_v0 = vld [vmem:[%s643_s1] sm:$0xff] (!%p140_p2)   ;;  %v535_v1 = vmov (!%p140_p2), 0   ;;  %s449_s16 = sshll.u32 (!%p140_p2), %s444_s13, 3  ;;  %v507_v2 = vld [vmem:[%s643_s1 + $0x8] sm:$0xff] (!%p140_p2)   ;;  %v508_v3 = vld [vmem:[%s643_s1 + $0x10] sm:$0xff] (!%p140_p2)   ;;  %vm301_vm0 = vcmask (!%p140_p2), 130048  }
   0x6   : > { %143 = sbr.rel (%p140_p2) target bundleno = 267 (0x10b), region = 32  ;;  %314 = vmatprep.subr.bf16.mxu0 (!%p140_p2), %v535_v1  ;;  %479 = vmatprep.subr.bf16.mxu1 (!%p140_p2), %v535_v1  ;;  %p165_p3 = scmp.lt.s32.totalorder (!%p140_p2), %s449_s16, 15  ;;  %v509_v4 = vld [vmem:[%s643_s1 + $0x18] sm:$0xff] (!%p140_p2)   ;;  %v510_v7 = vld [vmem:[%s643_s1 + $0x20] sm:$0xff] (!%p140_p2)   ;;  %v511_v8 = vld [vmem:[%s643_s1 + $0x28] sm:$0xff] (!%p140_p2)   ;;  %vm379_vm1 = vcmask (!%p140_p2), 261120  }
   0x7   : > { %315 = vmatpush1.bf16.msra.mxu0 (!%p140_p2), %v506_v0  ;;  %488 = vmatpush1.bf16.msra.mxu1 (!%p140_p2), %v506_v0  ;;  %v512_v9 = vld [vmem:[%s643_s1 + $0x30] sm:$0xff] (!%p140_p2)   ;;  %v513_v10 = vld [vmem:[%s643_s1 + $0x38] sm:$0xff] (!%p140_p2)   ;;  %v514_v11 = vld [vmem:[%s643_s1 + $0x40] sm:$0xff] (!%p140_p2)  }
   0x8   : > { %316 = vmatprep.subr.bf16.mxu0 (!%p140_p2), %v535_v1  ;;  %480 = vmatprep.subr.bf16.mxu1 (!%p140_p2), %v535_v1  ;;  %v454_v18 = vld [vmem:[%s644_s2] ss:$0 sm:$0xff] (!%p140_p2) }
   0xb   : > { %317 = vmatpush1.bf16.msra.mxu0 (!%p140_p2), %v507_v2  ;;  %489 = vmatpush1.bf16.msra.mxu1 (!%p140_p2), %v507_v2 }
   0xc   : > { %318 = vmatprep.subr.bf16.mxu0 (!%p140_p2), %v535_v1  ;;  %481 = vmatprep.subr.bf16.mxu1 (!%p140_p2), %v535_v1 }
   0xd   : > { %s647_s16 = smov (!%p165_p3, %s449_s16), 15 }
   0xe   : > { %s478_s21 = sshll.u32 %s647_s16, 3 }
   0xf   : > { %s581_s24 = scalar_lea.vmem %s642_s0, %s478_s21  ;;  %319 = vmatpush1.bf16.msra.mxu0 %v508_v3  ;;  %490 = vmatpush1.bf16.msra.mxu1 %v508_v3  ;;  %s621_s15 = scalar_lea.vmem %s645_s3, %s478_s21 }
  0x10   : > { %v517_v5 = vld [vmem:[%s581_s24 + $0x4] ss:$8 sps:$4 sm:$0xff]   ;;  %320 = vmatprep.subr.bf16.mxu0 %v535_v1  ;;  %482 = vmatprep.subr.bf16.mxu1 %v535_v1  ;;  %v515_v12 = vld [vmem:[%s581_s24] ss:$8 sps:$4 sm:$0xff]   ;;  %v521_v14 = vld [vmem:[%s581_s24 + $0x14] ss:$8 sps:$4 sm:$0xff]  }
  0x11   : > { %v520_v6 = vld [vmem:[%s581_s24 + $0x24] ss:$8 sps:$4 sm:$0xff]   ;;  %472 = vmatprep.mubr.msk.bf16.mxu0 %vm301_vm0, %v517_v5  ;;  %v518_v13 = vld [vmem:[%s581_s24 + $0x20] ss:$8 sps:$4 sm:$0xff]   ;;  %v523_v15 = vld [vmem:[%s581_s24 + $0x34] ss:$8 sps:$4 sm:$0xff]  }
  0x12   : > { %474 = vmatprep.mubr.msk.bf16.mxu1 %vm301_vm0, %v520_v6  ;;  %v525_v16 = vld [vmem:[%s581_s24 + $0x10] ss:$8 sps:$4 sm:$0xff]  }
  0x13   : > { %321 = vmatpush1.bf16.msra.mxu0 %v509_v4  ;;  %491 = vmatpush1.bf16.msra.mxu1 %v509_v4  ;;  %v526_v17 = vld [vmem:[%s581_s24 + $0x30] ss:$8 sps:$4 sm:$0xff]  }
  0x14   : > { %322 = vmatprep.subr.bf16.mxu0 %v535_v1  ;;  %483 = vmatprep.subr.bf16.mxu1 %v535_v1 }
  0x17   : > { %323 = vmatpush1.bf16.msra.mxu0 %v510_v7  ;;  %492 = vmatpush1.bf16.msra.mxu1 %v510_v7 }
  0x18   : > { %324 = vmatprep.subr.bf16.mxu0 %v535_v1  ;;  %484 = vmatprep.subr.bf16.mxu1 %v535_v1 }
  0x1b   : > { %325 = vmatpush1.bf16.msra.mxu0 %v511_v8  ;;  %493 = vmatpush1.bf16.msra.mxu1 %v511_v8 }
  0x1c   : > { %326 = vmatprep.subr.bf16.mxu0 %v535_v1  ;;  %485 = vmatprep.subr.bf16.mxu1 %v535_v1 }
  0x1f   : > { %327 = vmatpush1.bf16.msra.mxu0 %v512_v9  ;;  %494 = vmatpush1.bf16.msra.mxu1 %v512_v9 }
  0x20   : > { %328 = vmatprep.subr.bf16.mxu0 %v535_v1  ;;  %486 = vmatprep.subr.bf16.mxu1 %v535_v1 }
  0x23   : > { %329 = vmatpush1.bf16.msra.mxu0 %v513_v10  ;;  %495 = vmatpush1.bf16.msra.mxu1 %v513_v10 }
  0x24   : > { %330 = vmatprep.subr.bf16.mxu0 %v535_v1  ;;  %487 = vmatprep.subr.bf16.mxu1 %v535_v1 }
  0x27   : > { %331 = vmatpush1.bf16.msra.mxu0 %v514_v11  ;;  %496 = vmatpush1.bf16.msra.mxu1 %v514_v11 }
  0x2a   : > { %347 = vmatmul.mubr.bf16.vlgmr.msra.gmra.mrb[0].mxu0 %v515_v12  ;;  %363 = vmatmul.mubr.bf16.vlgmr.msra.gmra.mrb[0].mxu1 %v518_v13 }
  0x2b   : > { %473 = vmatprep.mubr.msk.bf16.mxu0 %vm301_vm0, %v521_v14  ;;  %475 = vmatprep.mubr.msk.bf16.mxu1 %vm301_vm0, %v523_v15 }
  0x32   : > { %355 = vmatmul.mubr.bf16.gmra.mrb[4].mxu0 %v525_v16  ;;  %371 = vmatmul.mubr.bf16.gmra.mrb[4].mxu1 %v526_v17 }
  0xfd   : > { %v348_v19 = vpop.f32.mrb[0].mxu0  ;;  %v364_v20 = vpop.f32.mrb[0].mxu1 }
  0xfe   : > { %v349_v21 = vadd.f32 %v454_v18, %v348_v19  ;;  %v365_v22 = vadd.f32 %v454_v18, %v364_v20  ;;  %v350_v23 = vpop.f32.mrb[1].mxu0  ;;  %v366_v24 = vpop.f32.mrb[1].mxu1 }
  0xff   : > { %v351_v25 = vpop.f32.mrb[2].mxu0  ;;  %v367_v26 = vpop.f32.mrb[2].mxu1 }
 0x100   : > { %380 = vst.msk [vmem:[%s621_s15] sm:$0xff] %vm379_vm1, %v349_v21  ;;  %384 = vst.msk [vmem:[%s621_s15 + $0x20] sm:$0xff] %vm379_vm1, %v365_v22  ;;  %v352_v27 = vadd.f32 %v454_v18, %v351_v25  ;;  %v368_v28 = vadd.f32 %v454_v18, %v367_v26  ;;  %v353_v29 = vpop.f32.mrb[3].mxu0  ;;  %v369_v30 = vpop.f32.mrb[3].mxu1 }
 0x102   : > { %381 = vst.msk [vmem:[%s621_s15 + $0x8] sm:$0xff] %vm379_vm1, %v352_v27  ;;  %385 = vst.msk [vmem:[%s621_s15 + $0x28] sm:$0xff] %vm379_vm1, %v368_v28 }
 0x105   : > { %v356_v31 = vpop.f32.mrb[4].mxu0  ;;  %v372_v32 = vpop.f32.mrb[4].mxu1 }
 0x106   : > { %v357_v33 = vadd.f32 %v454_v18, %v356_v31  ;;  %v373_v34 = vadd.f32 %v454_v18, %v372_v32  ;;  %v358_v35 = vpop.f32.mrb[5].mxu0  ;;  %v374_v36 = vpop.f32.mrb[5].mxu1 }
 0x107   : > { %v359_v37 = vpop.f32.mrb[6].mxu0  ;;  %v375_v38 = vpop.f32.mrb[6].mxu1 }
 0x108   : > { %382 = vst.msk [vmem:[%s621_s15 + $0x10] sm:$0xff] %vm379_vm1, %v357_v33  ;;  %386 = vst.msk [vmem:[%s621_s15 + $0x30] sm:$0xff] %vm379_vm1, %v373_v34  ;;  %v360_v39 = vadd.f32 %v454_v18, %v359_v37  ;;  %v376_v40 = vadd.f32 %v454_v18, %v375_v38  ;;  %v361_v41 = vpop.f32.mrb[7].mxu0  ;;  %v377_v42 = vpop.f32.mrb[7].mxu1 }
 0x10a   : > { %383 = vst.msk [vmem:[%s621_s15 + $0x18] sm:$0xff] %vm379_vm1, %v360_v39  ;;  %387 = vst.msk [vmem:[%s621_s15 + $0x38] sm:$0xff] %vm379_vm1, %v376_v40 }
 0x10b PF: > { %s13_s12 = sadd.s32 1, %s533_s12  }
 0x10c   : > { %p10_p4 = scmp.ge.s32.totalorder %s13_s12, 4  }
 0x10e   :  { %12 = sbr.rel (!%p10_p4) target bundleno = 1 (0x1), region = 62 }

// kernel: unet_forward.92
= control target key start
LH: loop header
LB: loop body
LE: loop exit
PB: predicated region body
PF: predicated region fallthrough
CT: control target
= control target key end

     0   :  { %s803_s12 = smov 0   ;;  %s917_s0 = inlined_call_operand.vmem [shape: bf16[128,288], index: 0, kind: input, shape index: {}]   ;;  %s918_s1 = inlined_call_operand.vmem [shape: bf16[288,32], index: 1, kind: input, shape index: {}]   ;;  %s919_s2 = inlined_call_operand.vmem [shape: f32[1,32], index: 2, kind: input, shape index: {}]   ;;  %s920_s3 = inlined_call_operand.vmem [shape: f32[128,32], index: 3, kind: output, shape index: {}]  }
   0x1 LB: > { %s612_s13 = sadd.s32 4294967295, %s781_s12   ;;  %p616_p0 = scmp.ge.s32.totalorder %s781_s12, 1  ;;  %s781_s12 = sphi %s803_s12, %s13_s12  }
   0x2   : > { %p139_p1 = scmp.lt.s32.totalorder %s781_s12, 3 }
   0x4   : > { %p140_p2 = pnand %p616_p0, %p139_p1 }
   0x5   : > { %v741_v0 = vld [vmem:[%s918_s1 + $0x40] sm:$0xff] (!%p140_p2)   ;;  %s617_s16 = sshll.u32 (!%p140_p2), %s612_s13, 3  ;;  %v743_v2 = vld [vmem:[%s918_s1 + $0x48] sm:$0xff] (!%p140_p2)   ;;  %v745_v4 = vld [vmem:[%s918_s1 + $0x50] sm:$0xff] (!%p140_p2)   ;;  %vm405_vm0 = vcmask (!%p140_p2), 261120  }
   0x6   : > { %143 = sbr.rel (%p140_p2) target bundleno = 276 (0x114), region = 32  ;;  %v742_v1 = vld [vmem:[%s918_s1] sm:$0xff] (!%p140_p2)   ;;  %658 = vmatprep.subr.bf16.mxu0 (!%p140_p2), %v741_v0  ;;  %716 = vmatprep.subr.bf16.mxu1 (!%p140_p2), %v741_v0  ;;  %p165_p3 = scmp.lt.s32.totalorder (!%p140_p2), %s617_s16, 15  ;;  %v744_v3 = vld [vmem:[%s918_s1 + $0x8] sm:$0xff] (!%p140_p2)   ;;  %v746_v5 = vld [vmem:[%s918_s1 + $0x10] sm:$0xff] (!%p140_p2)  }
   0x7   : > { %659 = vmatpush3.bf16.msra.mxu0 (!%p140_p2), %v742_v1  ;;  %724 = vmatpush3.bf16.msra.mxu1 (!%p140_p2), %v742_v1  ;;  %v747_v6 = vld [vmem:[%s918_s1 + $0x58] sm:$0xff] (!%p140_p2)   ;;  %v749_v8 = vld [vmem:[%s918_s1 + $0x60] sm:$0xff] (!%p140_p2)   ;;  %v751_v10 = vld [vmem:[%s918_s1 + $0x68] sm:$0xff] (!%p140_p2)  }
   0x8   : > { %660 = vmatprep.subr.bf16.mxu0 (!%p140_p2), %v743_v2  ;;  %717 = vmatprep.subr.bf16.mxu1 (!%p140_p2), %v743_v2  ;;  %v748_v7 = vld [vmem:[%s918_s1 + $0x18] sm:$0xff] (!%p140_p2)   ;;  %v750_v9 = vld [vmem:[%s918_s1 + $0x20] sm:$0xff] (!%p140_p2)   ;;  %v752_v13 = vld [vmem:[%s918_s1 + $0x28] sm:$0xff] (!%p140_p2)  }
   0x9   : > { %v753_v14 = vld [vmem:[%s918_s1 + $0x70] sm:$0xff] (!%p140_p2)   ;;  %v755_v16 = vld [vmem:[%s918_s1 + $0x78] sm:$0xff] (!%p140_p2)   ;;  %v763_v18 = vld [vmem:[%s918_s1 + $0x80] sm:$0xff] (!%p140_p2)  }
   0xa   : > { %v754_v15 = vld [vmem:[%s918_s1 + $0x30] sm:$0xff] (!%p140_p2)   ;;  %v756_v17 = vld [vmem:[%s918_s1 + $0x38] sm:$0xff] (!%p140_p2)   ;;  %v764_v22 = vld [vmem:[%s918_s1 + $0x88] sm:$0xff] (!%p140_p2)  }
   0xb   : > { %661 = vmatpush3.bf16.msra.mxu0 (!%p140_p2), %v744_v3  ;;  %725 = vmatpush3.bf16.msra.mxu1 (!%p140_p2), %v744_v3  ;;  %v621_v42 = vld [vmem:[%s919_s2] ss:$0 sm:$0xff] (!%p140_p2) }
   0xc   : > { %662 = vmatprep.subr.bf16.mxu0 (!%p140_p2), %v745_v4  ;;  %718 = vmatprep.subr.bf16.mxu1 (!%p140_p2), %v745_v4 }
   0xd   : > { %s922_s16 = smov (!%p165_p3, %s617_s16), 15 }
   0xe   : > { %s732_s29 = smul.u32 12, %s922_s16  ;;  %s620_s5 = sshll.u32 %s922_s16, 3 }
   0xf   : > { %663 = vmatpush3.bf16.msra.mxu0 %v746_v5  ;;  %726 = vmatpush3.bf16.msra.mxu1 %v746_v5  ;;  %s896_s8 = scalar_lea.vmem %s920_s3, %s620_s5 }
  0x10   : > { %664 = vmatprep.subr.bf16.mxu0 %v747_v6  ;;  %719 = vmatprep.subr.bf16.mxu1 %v747_v6  ;;  %s844_s9 = scalar_lea.vmem %s917_s0, %s732_s29 }
  0x11   : > { %v759_v11 = vld [vmem:[%s844_s9 + $0x4] ss:$12 sps:$4 sm:$0xff]   ;;  %v762_v12 = vld [vmem:[%s844_s9 + $0x4c] ss:$12 sps:$4 sm:$0xff]   ;;  %v760_v20 = vld [vmem:[%s844_s9 + $0x48] ss:$12 sps:$4 sm:$0xff]  }
  0x12   : > { %450 = vmatprep.mubr.bf16.mxu0 %v759_v11  ;;  %474 = vmatprep.mubr.bf16.mxu1 %v762_v12  ;;  %v757_v19 = vld [vmem:[%s844_s9] ss:$12 sps:$4 sm:$0xff]   ;;  %v765_v21 = vld [vmem:[%s844_s9 + $0x1c] ss:$12 sps:$4 sm:$0xff]   ;;  %v768_v24 = vld [vmem:[%s844_s9 + $0x18] ss:$12 sps:$4 sm:$0xff]  }
  0x13   : > { %665 = vmatpush3.bf16.msra.mxu0 %v748_v7  ;;  %727 = vmatpush3.bf16.msra.mxu1 %v748_v7  ;;  %v767_v23 = vld [vmem:[%s844_s9 + $0x8] ss:$12 sps:$4 sm:$0xff]   ;;  %v769_v25 = vld [vmem:[%s844_s9 + $0x20] ss:$12 sps:$4 sm:$0xff]   ;;  %v772_v27 = vld [vmem:[%s844_s9 + $0x38] ss:$12 sps:$4 sm:$0xff]  }
  0x14   : > { %666 = vmatprep.subr.bf16.mxu0 %v749_v8  ;;  %720 = vmatprep.subr.bf16.mxu1 %v749_v8  ;;  %v770_v26 = vld [vmem:[%s844_s9 + $0x34] ss:$12 sps:$4 sm:$0xff]   ;;  %v773_v28 = vld [vmem:[%s844_s9 + $0x30] ss:$12 sps:$4 sm:$0xff]  }
  0x15   : > { %v774_v29 = vld [vmem:[%s844_s9 + $0x50] ss:$12 sps:$4 sm:$0xff]  }
  0x17   : > { %667 = vmatpush3.bf16.msra.mxu0 %v750_v9  ;;  %728 = vmatpush3.bf16.msra.mxu1 %v750_v9 }
  0x18   : > { %668 = vmatprep.subr.bf16.mxu0 %v751_v10  ;;  %721 = vmatprep.subr.bf16.mxu1 %v751_v10 }
  0x1b   : > { %669 = vmatpush3.bf16.msra.mxu0 %v752_v13  ;;  %729 = vmatpush3.bf16.msra.mxu1 %v752_v13 }
  0x1c   : > { %670 = vmatprep.subr.bf16.mxu0 %v753_v14  ;;  %722 = vmatprep.subr.bf16.mxu1 %v753_v14 }
  0x1f   : > { %671 = vmatpush3.bf16.msra.mxu0 %v754_v15  ;;  %730 = vmatpush3.bf16.msra.mxu1 %v754_v15 }
  0x20   : > { %672 = vmatprep.subr.bf16.mxu0 %v755_v16  ;;  %723 = vmatprep.subr.bf16.mxu1 %v755_v16 }
  0x23   : > { %673 = vmatpush3.bf16.msra.mxu0 %v756_v17  ;;  %731 = vmatpush3.bf16.msra.mxu1 %v756_v17 }
  0x24   : > { %704 = vmatprep.subr.bf16.mxu1 %v763_v18 }
  0x26   : > { %451 = vmatmul.mubr.bf16.vlgmr.msra.gmra.mrb[0].mxu0 %v757_v19  ;;  %475 = vmatmul.mubr.bf16.vlgmr.msra.gmra.mrb[0].mxu1 %v760_v20 }
  0x27   : > { %705 = vmatpush3.bf16.msra.mxu1 %v763_v18  ;;  %458 = vmatprep.mubr.bf16.mxu0 %v765_v21 }
  0x28   : > { %706 = vmatprep.subr.bf16.mxu1 %v764_v22  ;;  %708 = vmatprep.mubr.msk.bf16.mxu1 %vm405_vm0, %v767_v23 }
  0x2b   : > { %707 = vmatpush3.bf16.msra.mxu1 %v764_v22 }
  0x2e   : > { %459 = vmatmul.mubr.bf16.gmra.mrb[4].mxu0 %v768_v24  ;;  %709 = vmatmul.mubr.msk.bf16.vlgmr.msra.gmra.mrb[4].mxu1 %vm405_vm0, %v769_v25 }
  0x2f   : > { %466 = vmatprep.mubr.bf16.mxu0 %v770_v26  ;;  %712 = vmatprep.mubr.msk.bf16.mxu1 %vm405_vm0, %v772_v27 }
  0x36   : > { %467 = vmatmul.mubr.bf16.gmra.mrb[8].mxu0 %v773_v28  ;;  %713 = vmatmul.mubr.msk.bf16.gmra.mrb[8].mxu1 %vm405_vm0, %v774_v29 }
  0xf9   : > { %v674_v30 = vpop.f32.mrb[0].mxu0  ;;  %v692_v31 = vpop.f32.mrb[0].mxu1 }
  0xfa   : > { %v675_v32 = vpop.f32.mrb[1].mxu0  ;;  %v693_v33 = vpop.f32.mrb[1].mxu1 }
  0xfb   : > { %v676_v34 = vadd.f32 %v675_v32, %v674_v30  ;;  %v677_v35 = vpop.f32.mrb[2].mxu0  ;;  %v694_v36 = vadd.f32 %v693_v33, %v692_v31  ;;  %v695_v37 = vpop.f32.mrb[2].mxu1 }
  0xfc   : > { %v678_v38 = vpop.f32.mrb[3].mxu0  ;;  %v696_v39 = vpop.f32.mrb[3].mxu1 }
  0xfd   : > { %v679_v40 = vadd.f32 %v678_v38, %v677_v35  ;;  %v697_v41 = vadd.f32 %v696_v39, %v695_v37  ;;  %v453_v45 = vadd.f32 %v676_v34, %v621_v42  ;;  %v477_v60 = vadd.f32 %v694_v36, %v621_v42 }
  0xff   : > { %v456_v52 = vadd.f32 %v679_v40, %v621_v42  ;;  %v480_v3 = vadd.f32 %v697_v41, %v621_v42 }
 0x101   : > { %v680_v43 = vpop.f32.mrb[4].mxu0  ;;  %v710_v44 = vpop.f32.mrb[4].mxu1 }
 0x102   : > { %v681_v46 = vpop.f32.mrb[5].mxu0  ;;  %v517_v47 = vpop.f32.mrb[5].mxu1 }
 0x103   : > { %v682_v48 = vadd.f32 %v681_v46, %v680_v43  ;;  %v518_v49 = vadd.f32 %v517_v47, %v453_v45  ;;  %v683_v50 = vpop.f32.mrb[6].mxu0  ;;  %v711_v51 = vpop.f32.mrb[6].mxu1 }
 0x104   : > { %v684_v53 = vpop.f32.mrb[7].mxu0  ;;  %v520_v54 = vpop.f32.mrb[7].mxu1 }
 0x105   : > { %v461_v55 = vadd.f32 %v682_v48, %v621_v42  ;;  %548 = vst.msk [vmem:[%s896_s8] sm:$0xff] %vm405_vm0, %v518_v49  ;;  %v685_v56 = vadd.f32 %v684_v53, %v683_v50  ;;  %v521_v57 = vadd.f32 %v520_v54, %v456_v52 }
 0x107   : > { %v526_v58 = vadd.f32 %v710_v44, %v461_v55  ;;  %v464_v59 = vadd.f32 %v685_v56, %v621_v42  ;;  %549 = vst.msk [vmem:[%s896_s8 + $0x8] sm:$0xff] %vm405_vm0, %v521_v57 }
 0x109   : > { %550 = vst.msk [vmem:[%s896_s8 + $0x10] sm:$0xff] %vm405_vm0, %v526_v58  ;;  %v529_v61 = vadd.f32 %v711_v51, %v464_v59  ;;  %v686_v62 = vpop.f32.mrb[8].mxu0  ;;  %v714_v63 = vpop.f32.mrb[8].mxu1 }
 0x10a   : > { %v542_v0 = vadd.f32 %v714_v63, %v477_v60  ;;  %v687_v1 = vpop.f32.mrb[9].mxu0  ;;  %v533_v2 = vpop.f32.mrb[9].mxu1 }
 0x10b   : > { %551 = vst.msk [vmem:[%s896_s8 + $0x18] sm:$0xff] %vm405_vm0, %v529_v61  ;;  %v688_v4 = vadd.f32 %v687_v1, %v686_v62  ;;  %v689_v5 = vpop.f32.mrb[10].mxu0  ;;  %v715_v6 = vpop.f32.mrb[10].mxu1 }
 0x10c   : > { %554 = vst.msk [vmem:[%s896_s8 + $0x30] sm:$0xff] %vm405_vm0, %v542_v0  ;;  %v545_v7 = vadd.f32 %v715_v6, %v480_v3  ;;  %v690_v8 = vpop.f32.mrb[11].mxu0  ;;  %v536_v9 = vpop.f32.mrb[11].mxu1 }
 0x10d   : > { %v469_v10 = vadd.f32 %v688_v4, %v621_v42  ;;  %v691_v11 = vadd.f32 %v690_v8, %v689_v5 }
 0x10e   : > { %555 = vst.msk [vmem:[%s896_s8 + $0x38] sm:$0xff] %vm405_vm0, %v545_v7 }
 0x10f   : > { %v534_v12 = vadd.f32 %v533_v2, %v469_v10  ;;  %v472_v13 = vadd.f32 %v691_v11, %v621_v42 }
 0x111   : > { %552 = vst.msk [vmem:[%s896_s8 + $0x20] sm:$0xff] %vm405_vm0, %v534_v12  ;;  %v537_v14 = vadd.f32 %v536_v9, %v472_v13 }
 0x113   : > { %553 = vst.msk [vmem:[%s896_s8 + $0x28] sm:$0xff] %vm405_vm0, %v537_v14 }
 0x114 PF: > { %s13_s12 = sadd.s32 1, %s781_s12  }
 0x115   : > { %p10_p4 = scmp.ge.s32.totalorder %s13_s12, 4  }
 0x117   :  { %12 = sbr.rel (!%p10_p4) target bundleno = 1 (0x1), region = 62 }

// kernel: unet_forward.95
= control target key start
LH: loop header
LB: loop body
LE: loop exit
PB: predicated region body
PF: predicated region fallthrough
CT: control target
= control target key end

     0   :  { %s952_s9 = smov 0   ;;  %s1087_s0 = inlined_call_operand.vmem [shape: bf16[8,64,32], index: 0, kind: input, shape index: {}]   ;;  %s1088_s1 = inlined_call_operand.vmem [shape: bf16[8,32,64], index: 1, kind: input, shape index: {}]   ;;  %s1089_s2 = inlined_call_operand.vmem [shape: f32[8,64,64], index: 2, kind: output, shape index: {}]  }
   0x1 LB: > { %s766_s10 = sadd.s32 4294967295, %s935_s9   ;;  %p770_p0 = scmp.ge.s32.totalorder %s935_s9, 1  ;;  %s935_s9 = sphi %s952_s9, %s12_s9  }
   0x2   : > { %p126_p1 = scmp.lt.s32.totalorder %s935_s9, 3 }
   0x4   : > { %p127_p2 = pnand %p770_p0, %p126_p1 }
   0x5   : > { %s771_s11 = sshll.u32 (!%p127_p2), %s766_s10, 2  ;;  %vm258_vm0 = vcmask (!%p127_p2), 261120   ;;  %vm663_vm1 = vcmask (!%p127_p2), 523264  }
   0x6   : > { %130 = sbr.rel (%p127_p2) target bundleno = 265 (0x109), region = 28  ;;  %p157_p3 = scmp.lt.s32.totalorder (!%p127_p2), %s771_s11, 7 }
   0xd   : > { %s1091_s11 = smov (!%p157_p3, %s771_s11), 7 }
   0xe   : > { %s822_s12 = sshll.u32 %s1091_s11, 5  ;;  %s823_s13 = sshll.u32 %s1091_s11, 4 }
   0xf   : > { %s967_s16 = scalar_lea.vmem %s1088_s1, %s823_s13  ;;  %s973_s19 = scalar_lea.vmem %s1087_s0, %s822_s12 }
  0x10   : > { %v905_v0 = vld [vmem:[%s967_s16] sm:$0xff]   ;;  %v906_v1 = vld [vmem:[%s967_s16 + $0x10] sm:$0xff]   ;;  %v907_v2 = vld [vmem:[%s967_s16 + $0x8] sm:$0xff]   ;;  %s824_s20 = sshll.u32 %s1091_s11, 6 }
  0x11   : > { %849 = vmatprep.subr.bf16.mxu0 %v905_v0  ;;  %861 = vmatprep.subr.bf16.mxu1 %v906_v1  ;;  %v908_v3 = vld [vmem:[%s967_s16 + $0x18] sm:$0xff]   ;;  %v909_v4 = vld [vmem:[%s973_s19] sm:$0xff]   ;;  %v911_v6 = vld [vmem:[%s973_s19 + $0x8] sm:$0xff]   ;;  %s1018_s23 = scalar_lea.vmem %s1089_s2, %s824_s20 }
  0x12   : > { %850 = vmatpush3.bf16.msra.mxu0 %v905_v0  ;;  %862 = vmatpush3.bf16.msra.mxu1 %v906_v1  ;;  %v910_v5 = vld [vmem:[%s973_s19 + $0x20] sm:$0xff]   ;;  %v912_v7 = vld [vmem:[%s973_s19 + $0x28] sm:$0xff]   ;;  %v914_v9 = vld [vmem:[%s967_s16 + $0x30] sm:$0xff]  }
  0x13   : > { %851 = vmatprep.subr.bf16.mxu0 %v907_v2  ;;  %863 = vmatprep.subr.bf16.mxu1 %v908_v3  ;;  %v913_v8 = vld [vmem:[%s967_s16 + $0x20] sm:$0xff]   ;;  %v915_v10 = vld [vmem:[%s973_s19 + $0x10] sm:$0xff]   ;;  %v917_v12 = vld [vmem:[%s973_s19 + $0x18] sm:$0xff]  }
  0x14   : > { %853 = vmatprep.mubr.msk.bf16.mxu0 %vm258_vm0, %v909_v4  ;;  %865 = vmatprep.mubr.msk.bf16.mxu1 %vm258_vm0, %v910_v5  ;;  %v916_v11 = vld [vmem:[%s973_s19 + $0x30] sm:$0xff]   ;;  %v918_v13 = vld [vmem:[%s973_s19 + $0x38] sm:$0xff]   ;;  %v919_v14 = vld [vmem:[%s967_s16 + $0x28] sm:$0xff]  }
  0x15   : > { %v920_v15 = vld [vmem:[%s967_s16 + $0x38] sm:$0xff]   ;;  %v921_v16 = vld [vmem:[%s973_s19 + $0x40] sm:$0xff]   ;;  %v923_v18 = vld [vmem:[%s973_s19 + $0x48] sm:$0xff]  }
  0x16   : > { %852 = vmatpush3.bf16.msra.mxu0 %v907_v2  ;;  %864 = vmatpush3.bf16.msra.mxu1 %v908_v3  ;;  %v922_v17 = vld [vmem:[%s973_s19 + $0x60] sm:$0xff]   ;;  %v924_v19 = vld [vmem:[%s973_s19 + $0x68] sm:$0xff]   ;;  %v925_v20 = vld [vmem:[%s973_s19 + $0x50] sm:$0xff]  }
  0x17   : > { %873 = vmatprep.subr.bf16.mxu0 %v913_v8  ;;  %885 = vmatprep.subr.bf16.mxu1 %v914_v9  ;;  %v926_v21 = vld [vmem:[%s973_s19 + $0x70] sm:$0xff]   ;;  %v927_v22 = vld [vmem:[%s973_s19 + $0x58] sm:$0xff]  }
  0x18   : > { %v928_v23 = vld [vmem:[%s973_s19 + $0x78] sm:$0xff]  }
  0x19   : > { %854 = vmatmul.mubr.msk.bf16.vlgmr.msra.gmra.mrb[0].mxu0 %vm258_vm0, %v911_v6  ;;  %866 = vmatmul.mubr.msk.bf16.vlgmr.msra.gmra.mrb[0].mxu1 %vm258_vm0, %v912_v7 }
  0x1a   : > { %874 = vmatpush3.bf16.msra.mxu0 %v913_v8  ;;  %857 = vmatprep.mubr.msk.bf16.mxu0 %vm258_vm0, %v915_v10 }
  0x1b   : > { %886 = vmatpush3.bf16.msra.mxu1 %v914_v9  ;;  %869 = vmatprep.mubr.msk.bf16.mxu1 %vm258_vm0, %v916_v11 }
  0x1c   : > { %875 = vmatprep.subr.bf16.mxu0 %v919_v14  ;;  %887 = vmatprep.subr.bf16.mxu1 %v920_v15 }
  0x1e   : > { %876 = vmatpush3.bf16.msra.mxu0 %v919_v14 }
  0x1f   : > { %888 = vmatpush3.bf16.msra.mxu1 %v920_v15 }
  0x21   : > { %858 = vmatmul.mubr.msk.bf16.gmra.mrb[4].mxu0 %vm258_vm0, %v917_v12  ;;  %870 = vmatmul.mubr.msk.bf16.gmra.mrb[4].mxu1 %vm258_vm0, %v918_v13 }
  0x22   : > { %877 = vmatprep.mubr.msk.bf16.mxu0 %vm258_vm0, %v921_v16  ;;  %889 = vmatprep.mubr.msk.bf16.mxu1 %vm258_vm0, %v922_v17 }
  0x29   : > { %878 = vmatmul.mubr.msk.bf16.vlgmr.msra.gmra.mrb[8].mxu0 %vm258_vm0, %v923_v18  ;;  %890 = vmatmul.mubr.msk.bf16.vlgmr.msra.gmra.mrb[8].mxu1 %vm258_vm0, %v924_v19 }
  0x2a   : > { %881 = vmatprep.mubr.msk.bf16.mxu0 %vm258_vm0, %v925_v20  ;;  %893 = vmatprep.mubr.msk.bf16.mxu1 %vm258_vm0, %v926_v21 }
  0x31   : > { %882 = vmatmul.mubr.msk.bf16.gmra.mrb[12].mxu0 %vm258_vm0, %v927_v22  ;;  %894 = vmatmul.mubr.msk.bf16.gmra.mrb[12].mxu1 %vm258_vm0, %v928_v23 }
  0xec   : > { %v855_v24 = vpop.f32.mrb[0].mxu0  ;;  %v867_v25 = vpop.f32.mrb[0].mxu1 }
  0xed   : > { %666 = vst.msk [vmem:[%s1018_s23 + $0x10] sm:$0xff] %vm663_vm1, %v855_v24  ;;  %v305_v26 = vpop.f32.mrb[1].mxu0  ;;  %674 = vst.msk [vmem:[%s1018_s23 + $0x50] sm:$0xff] %vm663_vm1, %v867_v25  ;;  %v414_v27 = vpop.f32.mrb[1].mxu1 }
  0xee   : > { %664 = vst.msk [vmem:[%s1018_s23] sm:$0xff] %vm663_vm1, %v305_v26  ;;  %v856_v28 = vpop.f32.mrb[2].mxu0  ;;  %672 = vst.msk [vmem:[%s1018_s23 + $0x40] sm:$0xff] %vm663_vm1, %v414_v27  ;;  %v868_v29 = vpop.f32.mrb[2].mxu1 }
  0xef   : > { %667 = vst.msk [vmem:[%s1018_s23 + $0x18] sm:$0xff] %vm663_vm1, %v856_v28  ;;  %v308_v30 = vpop.f32.mrb[3].mxu0  ;;  %675 = vst.msk [vmem:[%s1018_s23 + $0x58] sm:$0xff] %vm663_vm1, %v868_v29  ;;  %v417_v31 = vpop.f32.mrb[3].mxu1 }
  0xf0   : > { %665 = vst.msk [vmem:[%s1018_s23 + $0x8] sm:$0xff] %vm663_vm1, %v308_v30  ;;  %673 = vst.msk [vmem:[%s1018_s23 + $0x48] sm:$0xff] %vm663_vm1, %v417_v31 }
  0xf4   : > { %v859_v32 = vpop.f32.mrb[4].mxu0  ;;  %v871_v33 = vpop.f32.mrb[4].mxu1 }
  0xf5   : > { %670 = vst.msk [vmem:[%s1018_s23 + $0x30] sm:$0xff] %vm663_vm1, %v859_v32  ;;  %v321_v34 = vpop.f32.mrb[5].mxu0  ;;  %678 = vst.msk [vmem:[%s1018_s23 + $0x70] sm:$0xff] %vm663_vm1, %v871_v33  ;;  %v430_v35 = vpop.f32.mrb[5].mxu1 }
  0xf6   : > { %668 = vst.msk [vmem:[%s1018_s23 + $0x20] sm:$0xff] %vm663_vm1, %v321_v34  ;;  %v860_v36 = vpop.f32.mrb[6].mxu0  ;;  %676 = vst.msk [vmem:[%s1018_s23 + $0x60] sm:$0xff] %vm663_vm1, %v430_v35  ;;  %v872_v37 = vpop.f32.mrb[6].mxu1 }
  0xf7   : > { %671 = vst.msk [vmem:[%s1018_s23 + $0x38] sm:$0xff] %vm663_vm1, %v860_v36  ;;  %v324_v38 = vpop.f32.mrb[7].mxu0  ;;  %679 = vst.msk [vmem:[%s1018_s23 + $0x78] sm:$0xff] %vm663_vm1, %v872_v37  ;;  %v433_v39 = vpop.f32.mrb[7].mxu1 }
  0xf8   : > { %669 = vst.msk [vmem:[%s1018_s23 + $0x28] sm:$0xff] %vm663_vm1, %v324_v38  ;;  %677 = vst.msk [vmem:[%s1018_s23 + $0x68] sm:$0xff] %vm663_vm1, %v433_v39 }
  0xfc   : > { %v879_v40 = vpop.f32.mrb[8].mxu0  ;;  %v891_v41 = vpop.f32.mrb[8].mxu1 }
  0xfd   : > { %682 = vst.msk [vmem:[%s1018_s23 + $0x90] sm:$0xff] %vm663_vm1, %v879_v40  ;;  %v523_v42 = vpop.f32.mrb[9].mxu0  ;;  %690 = vst.msk [vmem:[%s1018_s23 + $0xd0] sm:$0xff] %vm663_vm1, %v891_v41  ;;  %v632_v43 = vpop.f32.mrb[9].mxu1 }
  0xfe   : > { %680 = vst.msk [vmem:[%s1018_s23 + $0x80] sm:$0xff] %vm663_vm1, %v523_v42  ;;  %v880_v44 = vpop.f32.mrb[10].mxu0  ;;  %688 = vst.msk [vmem:[%s1018_s23 + $0xc0] sm:$0xff] %vm663_vm1, %v632_v43  ;;  %v892_v45 = vpop.f32.mrb[10].mxu1 }
  0xff   : > { %683 = vst.msk [vmem:[%s1018_s23 + $0x98] sm:$0xff] %vm663_vm1, %v880_v44  ;;  %v526_v46 = vpop.f32.mrb[11].mxu0  ;;  %691 = vst.msk [vmem:[%s1018_s23 + $0xd8] sm:$0xff] %vm663_vm1, %v892_v45  ;;  %v635_v47 = vpop.f32.mrb[11].mxu1 }
 0x100   : > { %681 = vst.msk [vmem:[%s1018_s23 + $0x88] sm:$0xff] %vm663_vm1, %v526_v46  ;;  %689 = vst.msk [vmem:[%s1018_s23 + $0xc8] sm:$0xff] %vm663_vm1, %v635_v47 }
 0x104   : > { %v883_v48 = vpop.f32.mrb[12].mxu0  ;;  %v895_v49 = vpop.f32.mrb[12].mxu1 }
 0x105   : > { %686 = vst.msk [vmem:[%s1018_s23 + $0xb0] sm:$0xff] %vm663_vm1, %v883_v48  ;;  %v539_v50 = vpop.f32.mrb[13].mxu0  ;;  %694 = vst.msk [vmem:[%s1018_s23 + $0xf0] sm:$0xff] %vm663_vm1, %v895_v49  ;;  %v648_v51 = vpop.f32.mrb[13].mxu1 }
 0x106   : > { %684 = vst.msk [vmem:[%s1018_s23 + $0xa0] sm:$0xff] %vm663_vm1, %v539_v50  ;;  %v884_v52 = vpop.f32.mrb[14].mxu0  ;;  %692 = vst.msk [vmem:[%s1018_s23 + $0xe0] sm:$0xff] %vm663_vm1, %v648_v51  ;;  %v896_v53 = vpop.f32.mrb[14].mxu1 }
 0x107   : > { %687 = vst.msk [vmem:[%s1018_s23 + $0xb8] sm:$0xff] %vm663_vm1, %v884_v52  ;;  %v542_v54 = vpop.f32.mrb[15].mxu0  ;;  %695 = vst.msk [vmem:[%s1018_s23 + $0xf8] sm:$0xff] %vm663_vm1, %v896_v53  ;;  %v651_v55 = vpop.f32.mrb[15].mxu1 }
 0x108   : > { %685 = vst.msk [vmem:[%s1018_s23 + $0xa8] sm:$0xff] %vm663_vm1, %v542_v54  ;;  %693 = vst.msk [vmem:[%s1018_s23 + $0xe8] sm:$0xff] %vm663_vm1, %v651_v55 }
 0x109 PF: > { %s12_s9 = sadd.s32 1, %s935_s9  }
 0x10a   : > { %p9_p4 = scmp.ge.s32.totalorder %s12_s9, 4  }
 0x10c   :  { %11 = sbr.rel (!%p9_p4) target bundleno = 1 (0x1), region = 61 }

// kernel: unet_forward.94
= control target key start
LH: loop header
LB: loop body
LE: loop exit
PB: predicated region body
PF: predicated region fallthrough
CT: control target
= control target key end

     0   :  { %s597_s12 = smov 0   ;;  %s693_s0 = inlined_call_operand.vmem [shape: bf16[128,32], index: 0, kind: input, shape index: {}]   ;;  %s694_s1 = inlined_call_operand.vmem [shape: bf16[32,384], index: 1, kind: input, shape index: {}]   ;;  %s695_s2 = inlined_call_operand.vmem [shape: f32[1,384], index: 2, kind: input, shape index: {}]   ;;  %s696_s3 = inlined_call_operand.vmem [shape: f32[128,384], index: 3, kind: output, shape index: {}]  }
   0x1 LB: > { %s495_s13 = sadd.s32 4294967295, %s574_s12   ;;  %p499_p0 = scmp.ge.s32.totalorder %s574_s12, 1  ;;  %s574_s12 = sphi %s597_s12, %s13_s12  }
   0x2   : > { %p138_p1 = scmp.lt.s32.totalorder %s574_s12, 3 }
   0x4   : > { %p139_p2 = pnand %p499_p0, %p138_p1 }
   0x5   : > { %v556_v0 = vld [vmem:[%s694_s1 + $0x4] ss:$12 sps:$4 sm:$0xff] (!%p139_p2)   ;;  %s500_s16 = sshll.u32 (!%p139_p2), %s495_s13, 3  ;;  %v558_v1 = vld [vmem:[%s694_s1] ss:$12 sps:$4 sm:$0xff] (!%p139_p2)   ;;  %v576_v2 = vmov (!%p139_p2), 0   ;;  %v195_v11 = vlaneseq (!%p139_p2) }
   0x6   : > { %142 = sbr.rel (%p139_p2) target bundleno = 251 (0xfb), region = 32  ;;  %307 = vmatprep.mubr.bf16.mxu0 (!%p139_p2), %v576_v2  ;;  %337 = vmatprep.mubr.bf16.mxu1 (!%p139_p2), %v576_v2  ;;  %p164_p3 = scmp.lt.s32.totalorder (!%p139_p2), %s500_s16, 15  ;;  %v559_v3 = vld [vmem:[%s694_s1 + $0x1c] ss:$12 sps:$4 sm:$0xff] (!%p139_p2)   ;;  %v561_v4 = vld [vmem:[%s694_s1 + $0x18] ss:$12 sps:$4 sm:$0xff] (!%p139_p2)  }
   0x7   : > { %275 = vmatprep.subr.bf16.mxu0 (!%p139_p2), %v556_v0  ;;  %542 = vmatprep.subr.bf16.mxu1 (!%p139_p2), %v556_v0  ;;  %v564_v5 = vld [vmem:[%s694_s1 + $0x8] ss:$12 sps:$4 sm:$0xff] (!%p139_p2)   ;;  %v565_v6 = vld [vmem:[%s694_s1 + $0x20] ss:$12 sps:$4 sm:$0xff] (!%p139_p2)   ;;  %vm262_vm0 = vcmask (!%p139_p2), 261120   ;;  %v196_v12 = vshrl.u32 (!%p139_p2), %v195_v11, 7 }
   0x8   : > { %276 = vmatpush1.bf16.msra.mxu0 (!%p139_p2), %v558_v1  ;;  %544 = vmatpush1.bf16.msra.mxu1 (!%p139_p2), %v558_v1  ;;  %v193_v14 = vld [vmem:[%s695_s2] sm:$0x7] (!%p139_p2) }
   0x9   : > { %277 = vmatprep.subr.bf16.mxu0 (!%p139_p2), %v559_v3  ;;  %543 = vmatprep.subr.bf16.mxu1 (!%p139_p2), %v559_v3  ;;  %v197_v13 = vsub.s32 (!%p139_p2), 0, %v196_v12  ;;  %v201_v15 = vsub.s32 (!%p139_p2), 1, %v196_v12  ;;  %v205_v24 = vsub.s32 (!%p139_p2), 2, %v196_v12 }
   0xb   : > { %v641_v16 = vrot.slane (!%p139_p2), %v193_v14, %v197_v13  ;;  %v643_v17 = vrot.slane (!%p139_p2), %v193_v14, %v201_v15  ;;  %v206_v35 = vrot.slane (!%p139_p2), %v193_v14, %v205_v24 }
   0xc   : > { %278 = vmatpush1.bf16.msra.mxu0 (!%p139_p2), %v561_v4  ;;  %545 = vmatpush1.bf16.msra.mxu1 (!%p139_p2), %v561_v4 }
   0xd   : > { %s698_s16 = smov (!%p164_p3, %s500_s16), 15  ;;  %530 = vmatprep.subr.bf16.mxu1 %v564_v5 }
   0xe   : > { %s501_s25 = sshll.u32 %s698_s16, 2  ;;  %s546_s6 = smul.u32 24, %s698_s16 }
   0xf   : > { %s167_s28 = scalar_lea.vmem %s693_s0, %s501_s25 }
  0x10   : > { %v562_v7 = vld [vmem:[%s167_s28] sm:$0xff]   ;;  %v563_v8 = vld [vmem:[%s167_s28 + $0x18] sm:$0xff]   ;;  %v566_v9 = vld [vmem:[%s167_s28 + $0x8] sm:$0xff]   ;;  %s648_s9 = scalar_lea.vmem %s696_s3, %s546_s6 }
  0x11   : > { %514 = vmatmul.mubr.msk.bf16.vlgmr.msra.gmra.mrb[0].mxu0 %vm262_vm0, %v562_v7  ;;  %517 = vmatmul.mubr.msk.bf16.vlgmr.msra.gmra.mrb[0].mxu1 %vm262_vm0, %v563_v8  ;;  %v567_v10 = vld [vmem:[%s167_s28 + $0x10] sm:$0xff]  }
  0x12   : > { %531 = vmatpush3.bf16.msra.mxu1 %v564_v5  ;;  %317 = vmatprep.mubr.bf16.mxu0 %v576_v2 }
  0x13   : > { %532 = vmatprep.subr.bf16.mxu1 %v565_v6  ;;  %534 = vmatprep.mubr.msk.bf16.mxu1 %vm262_vm0, %v562_v7 }
  0x16   : > { %533 = vmatpush3.bf16.msra.mxu1 %v565_v6 }
  0x19   : > { %515 = vmatmul.mubr.msk.bf16.gmra.mrb[4].mxu0 %vm262_vm0, %v566_v9  ;;  %535 = vmatmul.mubr.msk.bf16.vlgmr.msra.gmra.mrb[4].mxu1 %vm262_vm0, %v566_v9 }
  0x1a   : > { %327 = vmatprep.mubr.bf16.mxu0 %v576_v2  ;;  %538 = vmatprep.mubr.msk.bf16.mxu1 %vm262_vm0, %v567_v10 }
  0x21   : > { %516 = vmatmul.mubr.msk.bf16.gmra.mrb[8].mxu0 %vm262_vm0, %v567_v10  ;;  %539 = vmatmul.mubr.msk.bf16.gmra.mrb[8].mxu1 %vm262_vm0, %v563_v8 }
  0xe4   : > { %v309_v18 = vpop.f32.mrb[0].mxu0  ;;  %v339_v19 = vpop.f32.mrb[0].mxu1 }
  0xe5   : > { %v310_v20 = vadd.f32 %v309_v18, %v641_v16  ;;  %v340_v21 = vadd.f32 %v339_v19, %v641_v16  ;;  %v311_v22 = vpop.f32.mrb[1].mxu0  ;;  %v341_v23 = vpop.f32.mrb[1].mxu1 }
  0xe6   : > { %v312_v25 = vadd.f32 %v311_v22, %v643_v17  ;;  %v342_v26 = vadd.f32 %v341_v23, %v643_v17  ;;  %v313_v27 = vpop.f32.mrb[2].mxu0  ;;  %v343_v28 = vpop.f32.mrb[2].mxu1 }
  0xe7   : > { %413 = vst [vmem:[%s648_s9] sm:$0xff] %v310_v20  ;;  %431 = vst [vmem:[%s648_s9 + $0x90] sm:$0xff] %v340_v21  ;;  %v314_v29 = vadd.f32 %v313_v27, %v641_v16  ;;  %v344_v30 = vadd.f32 %v343_v28, %v641_v16  ;;  %v315_v31 = vpop.f32.mrb[3].mxu0  ;;  %v345_v32 = vpop.f32.mrb[3].mxu1 }
  0xe8   : > { %414 = vst [vmem:[%s648_s9 + $0x8] sm:$0xff] %v312_v25  ;;  %432 = vst [vmem:[%s648_s9 + $0x98] sm:$0xff] %v342_v26  ;;  %v316_v33 = vadd.f32 %v315_v31, %v643_v17  ;;  %v346_v34 = vadd.f32 %v345_v32, %v643_v17 }
  0xe9   : > { %416 = vst [vmem:[%s648_s9 + $0x18] sm:$0xff] %v314_v29  ;;  %434 = vst [vmem:[%s648_s9 + $0xa8] sm:$0xff] %v344_v30 }
  0xea   : > { %417 = vst [vmem:[%s648_s9 + $0x20] sm:$0xff] %v316_v33  ;;  %435 = vst [vmem:[%s648_s9 + $0xb0] sm:$0xff] %v346_v34 }
  0xec   : > { %v319_v36 = vpop.f32.mrb[4].mxu0  ;;  %v536_v37 = vpop.f32.mrb[4].mxu1 }
  0xed   : > { %v320_v38 = vadd.f32 %v319_v36, %v641_v16  ;;  %v391_v39 = vadd.f32 %v536_v37, %v206_v35  ;;  %v321_v40 = vpop.f32.mrb[5].mxu0  ;;  %v382_v41 = vpop.f32.mrb[5].mxu1 }
  0xee   : > { %v322_v42 = vadd.f32 %v321_v40, %v643_v17  ;;  %v383_v43 = vadd.f32 %v382_v41, %v206_v35  ;;  %v323_v44 = vpop.f32.mrb[6].mxu0  ;;  %v537_v45 = vpop.f32.mrb[6].mxu1 }
  0xef   : > { %419 = vst [vmem:[%s648_s9 + $0x30] sm:$0xff] %v320_v38  ;;  %421 = vst [vmem:[%s648_s9 + $0x40] sm:$0xff] %v391_v39  ;;  %v324_v46 = vadd.f32 %v323_v44, %v641_v16  ;;  %v394_v47 = vadd.f32 %v537_v45, %v206_v35  ;;  %v325_v48 = vpop.f32.mrb[7].mxu0  ;;  %v385_v49 = vpop.f32.mrb[7].mxu1 }
  0xf0   : > { %420 = vst [vmem:[%s648_s9 + $0x38] sm:$0xff] %v322_v42  ;;  %415 = vst [vmem:[%s648_s9 + $0x10] sm:$0xff] %v383_v43  ;;  %v326_v50 = vadd.f32 %v325_v48, %v643_v17  ;;  %v386_v51 = vadd.f32 %v385_v49, %v206_v35 }
  0xf1   : > { %422 = vst [vmem:[%s648_s9 + $0x48] sm:$0xff] %v324_v46  ;;  %424 = vst [vmem:[%s648_s9 + $0x58] sm:$0xff] %v394_v47 }
  0xf2   : > { %423 = vst [vmem:[%s648_s9 + $0x50] sm:$0xff] %v326_v50  ;;  %418 = vst [vmem:[%s648_s9 + $0x28] sm:$0xff] %v386_v51 }
  0xf4   : > { %v329_v52 = vpop.f32.mrb[8].mxu0  ;;  %v540_v53 = vpop.f32.mrb[8].mxu1 }
  0xf5   : > { %v330_v54 = vadd.f32 %v329_v52, %v641_v16  ;;  %v407_v55 = vadd.f32 %v540_v53, %v206_v35  ;;  %v331_v56 = vpop.f32.mrb[9].mxu0  ;;  %v398_v57 = vpop.f32.mrb[9].mxu1 }
  0xf6   : > { %v332_v58 = vadd.f32 %v331_v56, %v643_v17  ;;  %v399_v59 = vadd.f32 %v398_v57, %v206_v35  ;;  %v333_v60 = vpop.f32.mrb[10].mxu0  ;;  %v541_v61 = vpop.f32.mrb[10].mxu1 }
  0xf7   : > { %425 = vst [vmem:[%s648_s9 + $0x60] sm:$0xff] %v330_v54  ;;  %433 = vst [vmem:[%s648_s9 + $0xa0] sm:$0xff] %v407_v55  ;;  %v334_v62 = vadd.f32 %v333_v60, %v641_v16  ;;  %v410_v63 = vadd.f32 %v541_v61, %v206_v35  ;;  %v335_v0 = vpop.f32.mrb[11].mxu0  ;;  %v401_v1 = vpop.f32.mrb[11].mxu1 }
  0xf8   : > { %426 = vst [vmem:[%s648_s9 + $0x68] sm:$0xff] %v332_v58  ;;  %427 = vst [vmem:[%s648_s9 + $0x70] sm:$0xff] %v399_v59  ;;  %v336_v2 = vadd.f32 %v335_v0, %v643_v17  ;;  %v402_v3 = vadd.f32 %v401_v1, %v206_v35 }
  0xf9   : > { %428 = vst [vmem:[%s648_s9 + $0x78] sm:$0xff] %v334_v62  ;;  %436 = vst [vmem:[%s648_s9 + $0xb8] sm:$0xff] %v410_v63 }
  0xfa   : > { %429 = vst [vmem:[%s648_s9 + $0x80] sm:$0xff] %v336_v2  ;;  %430 = vst [vmem:[%s648_s9 + $0x88] sm:$0xff] %v402_v3 }
  0xfb PF: > { %s13_s12 = sadd.s32 1, %s574_s12  }
  0xfc   : > { %p10_p4 = scmp.ge.s32.totalorder %s13_s12, 4  }
  0xfe   :  { %12 = sbr.rel (!%p10_p4) target bundleno = 1 (0x1), region = 62 }

// kernel: unet_forward.96
= control target key start
LH: loop header
LB: loop body
LE: loop exit
PB: predicated region body
PF: predicated region fallthrough
CT: control target
= control target key end

     0   :  { %s1056_s9 = smov 0   ;;  %s1198_s0 = inlined_call_operand.vmem [shape: bf16[8,64,64], index: 0, kind: input, shape index: {}]   ;;  %s1199_s1 = inlined_call_operand.vmem [shape: bf16[8,64,32], index: 1, kind: input, shape index: {}]   ;;  %s1200_s2 = inlined_call_operand.vmem [shape: f32[8,64,32], index: 2, kind: output, shape index: {}]  }
   0x1 LB: > { %s830_s10 = sadd.s32 4294967295, %s1039_s9   ;;  %p834_p0 = scmp.ge.s32.totalorder %s1039_s9, 1  ;;  %s1039_s9 = sphi %s1056_s9, %s12_s9  }
   0x2   : > { %p126_p1 = scmp.lt.s32.totalorder %s1039_s9, 3 }
   0x4   : > { %p127_p2 = pnand %p834_p0, %p126_p1 }
   0x5   : > { %s835_s11 = sshll.u32 (!%p127_p2), %s830_s10, 2  ;;  %vm286_vm0 = vcmask (!%p127_p2), 523264   ;;  %vm727_vm1 = vcmask (!%p127_p2), 261120  }
   0x6   : > { %130 = sbr.rel (%p127_p2) target bundleno = 274 (0x112), region = 28  ;;  %p157_p3 = scmp.lt.s32.totalorder (!%p127_p2), %s835_s11, 7 }
   0xd   : > { %s1202_s11 = smov (!%p157_p3, %s835_s11), 7 }
   0xe   : > { %s894_s12 = sshll.u32 %s1202_s11, 5  ;;  %s896_s19 = sshll.u32 %s1202_s11, 6 }
   0xf   : > { %s1070_s15 = scalar_lea.vmem %s1199_s1, %s894_s12  ;;  %s1081_s18 = scalar_lea.vmem %s1198_s0, %s894_s12 }
  0x10   : > { %v1001_v0 = vld [vmem:[%s1070_s15] sm:$0xff]   ;;  %v1003_v2 = vld [vmem:[%s1070_s15 + $0x8] sm:$0xff]   ;;  %v1005_v4 = vld [vmem:[%s1070_s15 + $0x10] sm:$0xff]   ;;  %s1129_s22 = scalar_lea.vmem %s1200_s2, %s896_s19 }
  0x11   : > { %v1002_v1 = vld [vmem:[%s1070_s15 + $0x20] sm:$0xff]   ;;  %929 = vmatprep.subr.bf16.mxu0 %v1001_v0  ;;  %v1004_v3 = vld [vmem:[%s1070_s15 + $0x28] sm:$0xff]   ;;  %v1006_v5 = vld [vmem:[%s1070_s15 + $0x30] sm:$0xff]  }
  0x12   : > { %945 = vmatprep.subr.bf16.mxu1 %v1002_v1  ;;  %930 = vmatpush3.bf16.msra.mxu0 %v1001_v0  ;;  %v1007_v6 = vld [vmem:[%s1070_s15 + $0x18] sm:$0xff]   ;;  %v1009_v8 = vld [vmem:[%s1081_s18] sm:$0xff]   ;;  %v1011_v10 = vld [vmem:[%s1081_s18 + $0x8] sm:$0xff]  }
  0x13   : > { %946 = vmatpush3.bf16.msra.mxu1 %v1002_v1  ;;  %931 = vmatprep.subr.bf16.mxu0 %v1003_v2  ;;  %v1008_v7 = vld [vmem:[%s1070_s15 + $0x38] sm:$0xff]   ;;  %v1010_v9 = vld [vmem:[%s1081_s18 + $0x20] sm:$0xff]   ;;  %v1012_v13 = vld [vmem:[%s1081_s18 + $0x28] sm:$0xff]  }
  0x14   : > { %947 = vmatprep.subr.bf16.mxu1 %v1004_v3  ;;  %937 = vmatprep.mubr.msk.bf16.mxu0 %vm286_vm0, %v1009_v8  ;;  %v1013_v11 = vld [vmem:[%s1070_s15 + $0x40] sm:$0xff]   ;;  %v1015_v14 = vld [vmem:[%s1070_s15 + $0x48] sm:$0xff]   ;;  %v1017_v16 = vld [vmem:[%s1081_s18 + $0x10] sm:$0xff]  }
  0x15   : > { %953 = vmatprep.mubr.msk.bf16.mxu1 %vm286_vm0, %v1010_v9  ;;  %v1014_v12 = vld [vmem:[%s1070_s15 + $0x60] sm:$0xff]   ;;  %v1016_v15 = vld [vmem:[%s1070_s15 + $0x68] sm:$0xff]   ;;  %v1018_v17 = vld [vmem:[%s1081_s18 + $0x30] sm:$0xff]  }
  0x16   : > { %932 = vmatpush3.bf16.msra.mxu0 %v1003_v2  ;;  %v1019_v18 = vld [vmem:[%s1081_s18 + $0x18] sm:$0xff]   ;;  %v1021_v19 = vld [vmem:[%s1070_s15 + $0x50] sm:$0xff]   ;;  %v1025_v24 = vld [vmem:[%s1081_s18 + $0x40] sm:$0xff]  }
  0x17   : > { %948 = vmatpush3.bf16.msra.mxu1 %v1004_v3  ;;  %933 = vmatprep.subr.bf16.mxu0 %v1005_v4  ;;  %v1022_v20 = vld [vmem:[%s1070_s15 + $0x70] sm:$0xff]   ;;  %v1020_v21 = vld [vmem:[%s1081_s18 + $0x38] sm:$0xff]   ;;  %v1026_v25 = vld [vmem:[%s1081_s18 + $0x60] sm:$0xff]  }
  0x18   : > { %949 = vmatprep.subr.bf16.mxu1 %v1006_v5  ;;  %v1023_v22 = vld [vmem:[%s1070_s15 + $0x58] sm:$0xff]   ;;  %v1027_v26 = vld [vmem:[%s1081_s18 + $0x48] sm:$0xff]   ;;  %v1029_v28 = vld [vmem:[%s1081_s18 + $0x50] sm:$0xff]  }
  0x19   : > { %v1024_v23 = vld [vmem:[%s1070_s15 + $0x78] sm:$0xff]   ;;  %v1028_v27 = vld [vmem:[%s1081_s18 + $0x68] sm:$0xff]   ;;  %v1030_v29 = vld [vmem:[%s1081_s18 + $0x70] sm:$0xff]  }
  0x1a   : > { %934 = vmatpush3.bf16.msra.mxu0 %v1005_v4  ;;  %v1031_v30 = vld [vmem:[%s1081_s18 + $0x58] sm:$0xff]  }
  0x1b   : > { %950 = vmatpush3.bf16.msra.mxu1 %v1006_v5  ;;  %935 = vmatprep.subr.bf16.mxu0 %v1007_v6  ;;  %v1032_v31 = vld [vmem:[%s1081_s18 + $0x78] sm:$0xff]  }
  0x1c   : > { %951 = vmatprep.subr.bf16.mxu1 %v1008_v7 }
  0x1e   : > { %936 = vmatpush3.bf16.msra.mxu0 %v1007_v6 }
  0x1f   : > { %952 = vmatpush3.bf16.msra.mxu1 %v1008_v7  ;;  %961 = vmatprep.subr.bf16.mxu0 %v1013_v11 }
  0x20   : > { %977 = vmatprep.subr.bf16.mxu1 %v1014_v12 }
  0x21   : > { %938 = vmatmul.mubr.msk.bf16.vlgmr.msra.gmra.mrb[0].mxu0 %vm286_vm0, %v1011_v10 }
  0x22   : > { %954 = vmatmul.mubr.msk.bf16.vlgmr.msra.gmra.mrb[0].mxu1 %vm286_vm0, %v1012_v13  ;;  %962 = vmatpush3.bf16.msra.mxu0 %v1013_v11 }
  0x23   : > { %978 = vmatpush3.bf16.msra.mxu1 %v1014_v12  ;;  %963 = vmatprep.subr.bf16.mxu0 %v1015_v14 }
  0x24   : > { %979 = vmatprep.subr.bf16.mxu1 %v1016_v15  ;;  %941 = vmatprep.mubr.msk.bf16.mxu0 %vm286_vm0, %v1017_v16 }
  0x25   : > { %957 = vmatprep.mubr.msk.bf16.mxu1 %vm286_vm0, %v1018_v17 }
  0x26   : > { %964 = vmatpush3.bf16.msra.mxu0 %v1015_v14 }
  0x27   : > { %980 = vmatpush3.bf16.msra.mxu1 %v1016_v15  ;;  %965 = vmatprep.subr.bf16.mxu0 %v1021_v19 }
  0x28   : > { %981 = vmatprep.subr.bf16.mxu1 %v1022_v20 }
  0x29   : > { %942 = vmatmul.mubr.msk.bf16.gmra.mrb[4].mxu0 %vm286_vm0, %v1019_v18 }
  0x2a   : > { %958 = vmatmul.mubr.msk.bf16.gmra.mrb[4].mxu1 %vm286_vm0, %v1020_v21  ;;  %966 = vmatpush3.bf16.msra.mxu0 %v1021_v19 }
  0x2b   : > { %982 = vmatpush3.bf16.msra.mxu1 %v1022_v20  ;;  %967 = vmatprep.subr.bf16.mxu0 %v1023_v22 }
  0x2c   : > { %983 = vmatprep.subr.bf16.mxu1 %v1024_v23  ;;  %969 = vmatprep.mubr.msk.bf16.mxu0 %vm286_vm0, %v1025_v24 }
  0x2d   : > { %985 = vmatprep.mubr.msk.bf16.mxu1 %vm286_vm0, %v1026_v25 }
  0x2e   : > { %968 = vmatpush3.bf16.msra.mxu0 %v1023_v22 }
  0x2f   : > { %984 = vmatpush3.bf16.msra.mxu1 %v1024_v23 }
  0x31   : > { %970 = vmatmul.mubr.msk.bf16.vlgmr.msra.gmra.mrb[8].mxu0 %vm286_vm0, %v1027_v26 }
  0x32   : > { %986 = vmatmul.mubr.msk.bf16.vlgmr.msra.gmra.mrb[8].mxu1 %vm286_vm0, %v1028_v27  ;;  %973 = vmatprep.mubr.msk.bf16.mxu0 %vm286_vm0, %v1029_v28 }
  0x33   : > { %989 = vmatprep.mubr.msk.bf16.mxu1 %vm286_vm0, %v1030_v29 }
  0x39   : > { %974 = vmatmul.mubr.msk.bf16.gmra.mrb[12].mxu0 %vm286_vm0, %v1031_v30 }
  0x3a   : > { %990 = vmatmul.mubr.msk.bf16.gmra.mrb[12].mxu1 %vm286_vm0, %v1032_v31 }
  0xf4   : > { %v939_v32 = vpop.f32.mrb[0].mxu0 }
  0xf5   : > { %730 = vst.msk [vmem:[%s1129_s22 + $0x10] sm:$0xff] %vm727_vm1, %v939_v32  ;;  %v955_v33 = vpop.f32.mrb[0].mxu1  ;;  %v333_v34 = vpop.f32.mrb[1].mxu0 }
  0xf6   : > { %738 = vst.msk [vmem:[%s1129_s22 + $0x50] sm:$0xff] %vm727_vm1, %v955_v33  ;;  %728 = vst.msk [vmem:[%s1129_s22] sm:$0xff] %vm727_vm1, %v333_v34  ;;  %v454_v35 = vpop.f32.mrb[1].mxu1  ;;  %v940_v36 = vpop.f32.mrb[2].mxu0 }
  0xf7   : > { %736 = vst.msk [vmem:[%s1129_s22 + $0x40] sm:$0xff] %vm727_vm1, %v454_v35  ;;  %731 = vst.msk [vmem:[%s1129_s22 + $0x18] sm:$0xff] %vm727_vm1, %v940_v36  ;;  %v956_v37 = vpop.f32.mrb[2].mxu1  ;;  %v336_v38 = vpop.f32.mrb[3].mxu0 }
  0xf8   : > { %739 = vst.msk [vmem:[%s1129_s22 + $0x58] sm:$0xff] %vm727_vm1, %v956_v37  ;;  %729 = vst.msk [vmem:[%s1129_s22 + $0x8] sm:$0xff] %vm727_vm1, %v336_v38  ;;  %v457_v39 = vpop.f32.mrb[3].mxu1 }
  0xf9   : > { %737 = vst.msk [vmem:[%s1129_s22 + $0x48] sm:$0xff] %vm727_vm1, %v457_v39 }
  0xfc   : > { %v943_v40 = vpop.f32.mrb[4].mxu0 }
  0xfd   : > { %734 = vst.msk [vmem:[%s1129_s22 + $0x30] sm:$0xff] %vm727_vm1, %v943_v40  ;;  %v959_v41 = vpop.f32.mrb[4].mxu1  ;;  %v349_v42 = vpop.f32.mrb[5].mxu0 }
  0xfe   : > { %742 = vst.msk [vmem:[%s1129_s22 + $0x70] sm:$0xff] %vm727_vm1, %v959_v41  ;;  %732 = vst.msk [vmem:[%s1129_s22 + $0x20] sm:$0xff] %vm727_vm1, %v349_v42  ;;  %v470_v43 = vpop.f32.mrb[5].mxu1  ;;  %v944_v44 = vpop.f32.mrb[6].mxu0 }
  0xff   : > { %740 = vst.msk [vmem:[%s1129_s22 + $0x60] sm:$0xff] %vm727_vm1, %v470_v43  ;;  %735 = vst.msk [vmem:[%s1129_s22 + $0x38] sm:$0xff] %vm727_vm1, %v944_v44  ;;  %v960_v45 = vpop.f32.mrb[6].mxu1  ;;  %v352_v46 = vpop.f32.mrb[7].mxu0 }
 0x100   : > { %743 = vst.msk [vmem:[%s1129_s22 + $0x78] sm:$0xff] %vm727_vm1, %v960_v45  ;;  %733 = vst.msk [vmem:[%s1129_s22 + $0x28] sm:$0xff] %vm727_vm1, %v352_v46  ;;  %v473_v47 = vpop.f32.mrb[7].mxu1 }
 0x101   : > { %741 = vst.msk [vmem:[%s1129_s22 + $0x68] sm:$0xff] %vm727_vm1, %v473_v47 }
 0x104   : > { %v971_v48 = vpop.f32.mrb[8].mxu0 }
 0x105   : > { %746 = vst.msk [vmem:[%s1129_s22 + $0x90] sm:$0xff] %vm727_vm1, %v971_v48  ;;  %v987_v49 = vpop.f32.mrb[8].mxu1  ;;  %v575_v50 = vpop.f32.mrb[9].mxu0 }
 0x106   : > { %754 = vst.msk [vmem:[%s1129_s22 + $0xd0] sm:$0xff] %vm727_vm1, %v987_v49  ;;  %744 = vst.msk [vmem:[%s1129_s22 + $0x80] sm:$0xff] %vm727_vm1, %v575_v50  ;;  %v696_v51 = vpop.f32.mrb[9].mxu1  ;;  %v972_v52 = vpop.f32.mrb[10].mxu0 }
 0x107   : > { %752 = vst.msk [vmem:[%s1129_s22 + $0xc0] sm:$0xff] %vm727_vm1, %v696_v51  ;;  %747 = vst.msk [vmem:[%s1129_s22 + $0x98] sm:$0xff] %vm727_vm1, %v972_v52  ;;  %v988_v53 = vpop.f32.mrb[10].mxu1  ;;  %v578_v54 = vpop.f32.mrb[11].mxu0 }
 0x108   : > { %755 = vst.msk [vmem:[%s1129_s22 + $0xd8] sm:$0xff] %vm727_vm1, %v988_v53  ;;  %745 = vst.msk [vmem:[%s1129_s22 + $0x88] sm:$0xff] %vm727_vm1, %v578_v54  ;;  %v699_v55 = vpop.f32.mrb[11].mxu1 }
 0x109   : > { %753 = vst.msk [vmem:[%s1129_s22 + $0xc8] sm:$0xff] %vm727_vm1, %v699_v55 }
 0x10c   : > { %v975_v56 = vpop.f32.mrb[12].mxu0 }
 0x10d   : > { %750 = vst.msk [vmem:[%s1129_s22 + $0xb0] sm:$0xff] %vm727_vm1, %v975_v56  ;;  %v991_v57 = vpop.f32.mrb[12].mxu1  ;;  %v591_v58 = vpop.f32.mrb[13].mxu0 }
 0x10e   : > { %758 = vst.msk [vmem:[%s1129_s22 + $0xf0] sm:$0xff] %vm727_vm1, %v991_v57  ;;  %748 = vst.msk [vmem:[%s1129_s22 + $0xa0] sm:$0xff] %vm727_vm1, %v591_v58  ;;  %v712_v59 = vpop.f32.mrb[13].mxu1  ;;  %v976_v60 = vpop.f32.mrb[14].mxu0 }
 0x10f   : > { %756 = vst.msk [vmem:[%s1129_s22 + $0xe0] sm:$0xff] %vm727_vm1, %v712_v59  ;;  %751 = vst.msk [vmem:[%s1129_s22 + $0xb8] sm:$0xff] %vm727_vm1, %v976_v60  ;;  %v992_v61 = vpop.f32.mrb[14].mxu1  ;;  %v594_v62 = vpop.f32.mrb[15].mxu0 }
 0x110   : > { %759 = vst.msk [vmem:[%s1129_s22 + $0xf8] sm:$0xff] %vm727_vm1, %v992_v61  ;;  %749 = vst.msk [vmem:[%s1129_s22 + $0xa8] sm:$0xff] %vm727_vm1, %v594_v62  ;;  %v715_v63 = vpop.f32.mrb[15].mxu1 }
 0x111   : > { %757 = vst.msk [vmem:[%s1129_s22 + $0xe8] sm:$0xff] %vm727_vm1, %v715_v63 }
 0x112 PF: > { %s12_s9 = sadd.s32 1, %s1039_s9  }
 0x113   : > { %p9_p4 = scmp.ge.s32.totalorder %s12_s9, 4  }
 0x115   :  { %11 = sbr.rel (!%p9_p4) target bundleno = 1 (0x1), region = 61 }

// kernel: unet_forward.97
= control target key start
LH: loop header
LB: loop body
LE: loop exit
PB: predicated region body
PF: predicated region fallthrough
CT: control target
= control target key end

     0   :  { %s532_s12 = smov 0   ;;  %s594_s0 = inlined_call_operand.vmem [shape: bf16[128,128], index: 0, kind: input, shape index: {}]   ;;  %s595_s1 = inlined_call_operand.vmem [shape: bf16[128,32], index: 1, kind: input, shape index: {}]   ;;  %s596_s2 = inlined_call_operand.vmem [shape: f32[1,32], index: 2, kind: input, shape index: {}]   ;;  %s597_s3 = inlined_call_operand.vmem [shape: f32[128,32], index: 3, kind: output, shape index: {}]  }
   0x1 LB: > { %s408_s13 = sadd.s32 4294967295, %s510_s12   ;;  %p412_p0 = scmp.ge.s32.totalorder %s510_s12, 1  ;;  %s510_s12 = sphi %s532_s12, %s13_s12  }
   0x2   : > { %p138_p1 = scmp.lt.s32.totalorder %s510_s12, 3 }
   0x4   : > { %p139_p2 = pnand %p412_p0, %p138_p1 }
   0x5   : > { %v492_v0 = vld [vmem:[%s595_s1] sm:$0xff] (!%p139_p2)   ;;  %s413_s16 = sshll.u32 (!%p139_p2), %s408_s13, 3  ;;  %v493_v1 = vld [vmem:[%s595_s1 + $0x8] sm:$0xff] (!%p139_p2)   ;;  %v494_v2 = vld [vmem:[%s595_s1 + $0x10] sm:$0xff] (!%p139_p2)   ;;  %vm343_vm0 = vcmask (!%p139_p2), 261120  }
   0x6   : > { %142 = sbr.rel (%p139_p2) target bundleno = 256 (0x100), region = 32  ;;  %p163_p3 = scmp.lt.s32.totalorder (!%p139_p2), %s413_s16, 15  ;;  %444 = vmatprep.subr.bf16.mxu0 (!%p139_p2), %v492_v0  ;;  %468 = vmatprep.subr.bf16.mxu1 (!%p139_p2), %v492_v0  ;;  %v495_v3 = vld [vmem:[%s595_s1 + $0x18] sm:$0xff] (!%p139_p2)   ;;  %v496_v6 = vld [vmem:[%s595_s1 + $0x20] sm:$0xff] (!%p139_p2)   ;;  %v497_v7 = vld [vmem:[%s595_s1 + $0x28] sm:$0xff] (!%p139_p2)  }
   0x7   : > { %445 = vmatpush3.bf16.msra.mxu0 (!%p139_p2), %v492_v0  ;;  %476 = vmatpush3.bf16.msra.mxu1 (!%p139_p2), %v492_v0  ;;  %v498_v8 = vld [vmem:[%s595_s1 + $0x30] sm:$0xff] (!%p139_p2)   ;;  %v499_v9 = vld [vmem:[%s595_s1 + $0x38] sm:$0xff] (!%p139_p2)   ;;  %v417_v12 = vld [vmem:[%s596_s2] ss:$0 sm:$0xff] (!%p139_p2) }
   0x8   : > { %446 = vmatprep.subr.bf16.mxu0 (!%p139_p2), %v493_v1  ;;  %469 = vmatprep.subr.bf16.mxu1 (!%p139_p2), %v493_v1 }
   0xb   : > { %447 = vmatpush3.bf16.msra.mxu0 (!%p139_p2), %v493_v1  ;;  %477 = vmatpush3.bf16.msra.mxu1 (!%p139_p2), %v493_v1 }
   0xc   : > { %448 = vmatprep.subr.bf16.mxu0 (!%p139_p2), %v494_v2  ;;  %470 = vmatprep.subr.bf16.mxu1 (!%p139_p2), %v494_v2 }
   0xd   : > { %s599_s16 = smov (!%p163_p3, %s413_s16), 15 }
   0xe   : > { %s414_s21 = sshll.u32 %s599_s16, 2  ;;  %s416_s8 = sshll.u32 %s599_s16, 3 }
   0xf   : > { %s555_s24 = scalar_lea.vmem %s594_s0, %s414_s21  ;;  %449 = vmatpush3.bf16.msra.mxu0 %v494_v2  ;;  %478 = vmatpush3.bf16.msra.mxu1 %v494_v2  ;;  %s172_s14 = scalar_lea.vmem %s597_s3, %s416_s8 }
  0x10   : > { %v500_v4 = vld [vmem:[%s555_s24] sm:$0xff]   ;;  %v501_v5 = vld [vmem:[%s555_s24 + $0x10] sm:$0xff]   ;;  %450 = vmatprep.subr.bf16.mxu0 %v495_v3  ;;  %471 = vmatprep.subr.bf16.mxu1 %v495_v3  ;;  %v502_v10 = vld [vmem:[%s555_s24 + $0x8] sm:$0xff]  }
  0x11   : > { %460 = vmatprep.mubr.bf16.mxu0 %v500_v4  ;;  %464 = vmatprep.mubr.bf16.mxu1 %v501_v5  ;;  %v503_v11 = vld [vmem:[%s555_s24 + $0x18] sm:$0xff]  }
  0x13   : > { %451 = vmatpush3.bf16.msra.mxu0 %v495_v3  ;;  %479 = vmatpush3.bf16.msra.mxu1 %v495_v3 }
  0x14   : > { %452 = vmatprep.subr.bf16.mxu0 %v496_v6  ;;  %472 = vmatprep.subr.bf16.mxu1 %v496_v6 }
  0x17   : > { %453 = vmatpush3.bf16.msra.mxu0 %v496_v6  ;;  %480 = vmatpush3.bf16.msra.mxu1 %v496_v6 }
  0x18   : > { %454 = vmatprep.subr.bf16.mxu0 %v497_v7  ;;  %473 = vmatprep.subr.bf16.mxu1 %v497_v7 }
  0x1b   : > { %455 = vmatpush3.bf16.msra.mxu0 %v497_v7  ;;  %481 = vmatpush3.bf16.msra.mxu1 %v497_v7 }
  0x1c   : > { %456 = vmatprep.subr.bf16.mxu0 %v498_v8  ;;  %474 = vmatprep.subr.bf16.mxu1 %v498_v8 }
  0x1f   : > { %457 = vmatpush3.bf16.msra.mxu0 %v498_v8  ;;  %482 = vmatpush3.bf16.msra.mxu1 %v498_v8 }
  0x20   : > { %458 = vmatprep.subr.bf16.mxu0 %v499_v9  ;;  %475 = vmatprep.subr.bf16.mxu1 %v499_v9 }
  0x23   : > { %459 = vmatpush3.bf16.msra.mxu0 %v499_v9  ;;  %483 = vmatpush3.bf16.msra.mxu1 %v499_v9 }
  0x26   : > { %461 = vmatmul.mubr.bf16.vlgmr.msra.gmra.mrb[0].mxu0 %v502_v10  ;;  %465 = vmatmul.mubr.bf16.vlgmr.msra.gmra.mrb[0].mxu1 %v503_v11 }
  0xf9   : > { %v462_v13 = vpop.f32.mrb[0].mxu0  ;;  %v466_v14 = vpop.f32.mrb[0].mxu1 }
  0xfa   : > { %v321_v15 = vadd.f32 %v462_v13, %v417_v12  ;;  %v337_v16 = vadd.f32 %v466_v14, %v417_v12  ;;  %v312_v17 = vpop.f32.mrb[1].mxu0  ;;  %v328_v18 = vpop.f32.mrb[1].mxu1 }
  0xfb   : > { %v313_v19 = vadd.f32 %v417_v12, %v312_v17  ;;  %v329_v20 = vadd.f32 %v417_v12, %v328_v18  ;;  %v463_v21 = vpop.f32.mrb[2].mxu0  ;;  %v467_v22 = vpop.f32.mrb[2].mxu1 }
  0xfc   : > { %346 = vst.msk [vmem:[%s172_s14 + $0x10] sm:$0xff] %vm343_vm0, %v321_v15  ;;  %350 = vst.msk [vmem:[%s172_s14 + $0x30] sm:$0xff] %vm343_vm0, %v337_v16  ;;  %v324_v23 = vadd.f32 %v463_v21, %v417_v12  ;;  %v340_v24 = vadd.f32 %v467_v22, %v417_v12  ;;  %v315_v25 = vpop.f32.mrb[3].mxu0  ;;  %v331_v26 = vpop.f32.mrb[3].mxu1 }
  0xfd   : > { %344 = vst.msk [vmem:[%s172_s14] sm:$0xff] %vm343_vm0, %v313_v19  ;;  %348 = vst.msk [vmem:[%s172_s14 + $0x20] sm:$0xff] %vm343_vm0, %v329_v20  ;;  %v316_v27 = vadd.f32 %v417_v12, %v315_v25  ;;  %v332_v28 = vadd.f32 %v417_v12, %v331_v26 }
  0xfe   : > { %347 = vst.msk [vmem:[%s172_s14 + $0x18] sm:$0xff] %vm343_vm0, %v324_v23  ;;  %351 = vst.msk [vmem:[%s172_s14 + $0x38] sm:$0xff] %vm343_vm0, %v340_v24 }
  0xff   : > { %345 = vst.msk [vmem:[%s172_s14 + $0x8] sm:$0xff] %vm343_vm0, %v316_v27  ;;  %349 = vst.msk [vmem:[%s172_s14 + $0x28] sm:$0xff] %vm343_vm0, %v332_v28 }
 0x100 PF: > { %s13_s12 = sadd.s32 1, %s510_s12  }
 0x101   : > { %p10_p4 = scmp.ge.s32.totalorder %s13_s12, 4  }
 0x103   :  { %12 = sbr.rel (!%p10_p4) target bundleno = 1 (0x1), region = 62 }

// kernel: unet_forward.104
= control target key start
LH: loop header
LB: loop body
LE: loop exit
PB: predicated region body
PF: predicated region fallthrough
CT: control target
= control target key end

     0   :  { %s470_s12 = smov 0   ;;  %s507_s0 = inlined_call_operand.vmem [shape: bf16[128,48], index: 0, kind: input, shape index: {}]   ;;  %s508_s1 = inlined_call_operand.vmem [shape: bf16[48,32], index: 1, kind: input, shape index: {}]   ;;  %s509_s2 = inlined_call_operand.vmem [shape: f32[1,32], index: 2, kind: input, shape index: {}]   ;;  %s510_s3 = inlined_call_operand.vmem [shape: f32[128,32], index: 3, kind: output, shape index: {}]  }
   0x1 LB: > { %s377_s13 = sadd.s32 4294967295, %s448_s12   ;;  %p381_p0 = scmp.ge.s32.totalorder %s448_s12, 1  ;;  %s448_s12 = sphi %s470_s12, %s13_s12  }
   0x2   : > { %p138_p1 = scmp.lt.s32.totalorder %s448_s12, 3 }
   0x4   : > { %p139_p2 = pnand %p381_p0, %p138_p1 }
   0x5   : > { %v435_v0 = vld [vmem:[%s508_s1] sm:$0xff] (!%p139_p2)   ;;  %s382_s16 = sshll.u32 (!%p139_p2), %s377_s13, 3  ;;  %v436_v1 = vld [vmem:[%s508_s1 + $0x8] sm:$0xff] (!%p139_p2)   ;;  %v437_v2 = vld [vmem:[%s508_s1 + $0x10] sm:$0xff] (!%p139_p2)   ;;  %vm234_vm0 = vcmask (!%p139_p2), 392192   ;;  %vm312_vm1 = vcmask (!%p139_p2), 261120  }
   0x6   : > { %142 = sbr.rel (%p139_p2) target bundleno = 236 (0xec), region = 32  ;;  %p163_p3 = scmp.lt.s32.totalorder (!%p139_p2), %s382_s16, 15  ;;  %407 = vmatprep.subr.bf16.mxu0 (!%p139_p2), %v435_v0  ;;  %421 = vmatprep.subr.bf16.mxu1 (!%p139_p2), %v435_v0  ;;  %v386_v7 = vld [vmem:[%s509_s2] ss:$0 sm:$0xff] (!%p139_p2) }
   0x7   : > { %408 = vmatpush3.bf16.msra.mxu0 (!%p139_p2), %v435_v0  ;;  %424 = vmatpush3.bf16.msra.mxu1 (!%p139_p2), %v435_v0 }
   0x8   : > { %409 = vmatprep.subr.bf16.mxu0 (!%p139_p2), %v436_v1  ;;  %422 = vmatprep.subr.bf16.mxu1 (!%p139_p2), %v436_v1 }
   0xb   : > { %410 = vmatpush3.bf16.msra.mxu0 (!%p139_p2), %v436_v1  ;;  %425 = vmatpush3.bf16.msra.mxu1 (!%p139_p2), %v436_v1 }
   0xc   : > { %411 = vmatprep.subr.bf16.mxu0 (!%p139_p2), %v437_v2  ;;  %423 = vmatprep.subr.bf16.mxu1 (!%p139_p2), %v437_v2 }
   0xd   : > { %s512_s16 = smov (!%p163_p3, %s382_s16), 15 }
   0xe   : > { %s383_s21 = sshll.u32 %s512_s16, 2  ;;  %s385_s25 = sshll.u32 %s512_s16, 3 }
   0xf   : > { %s166_s24 = scalar_lea.vmem %s507_s0, %s383_s21  ;;  %412 = vmatpush3.bf16.msra.mxu0 %v437_v2  ;;  %426 = vmatpush3.bf16.msra.mxu1 %v437_v2  ;;  %s172_s30 = scalar_lea.vmem %s510_s3, %s385_s25 }
  0x10   : > { %v438_v3 = vld [vmem:[%s166_s24] sm:$0xff]   ;;  %v439_v4 = vld [vmem:[%s166_s24 + $0x10] sm:$0xff]   ;;  %v440_v5 = vld [vmem:[%s166_s24 + $0x8] sm:$0xff]  }
  0x11   : > { %413 = vmatprep.mubr.msk.bf16.mxu0 %vm234_vm0, %v438_v3  ;;  %417 = vmatprep.mubr.msk.bf16.mxu1 %vm234_vm0, %v439_v4  ;;  %v441_v6 = vld [vmem:[%s166_s24 + $0x18] sm:$0xff]  }
  0x12   : > { %414 = vmatmul.mubr.msk.bf16.vlgmr.msra.gmra.mrb[0].mxu0 %vm234_vm0, %v440_v5  ;;  %418 = vmatmul.mubr.msk.bf16.vlgmr.msra.gmra.mrb[0].mxu1 %vm234_vm0, %v441_v6 }
  0xe5   : > { %v415_v8 = vpop.f32.mrb[0].mxu0  ;;  %v419_v9 = vpop.f32.mrb[0].mxu1 }
  0xe6   : > { %v290_v10 = vadd.f32 %v415_v8, %v386_v7  ;;  %v306_v11 = vadd.f32 %v419_v9, %v386_v7  ;;  %v281_v12 = vpop.f32.mrb[1].mxu0  ;;  %v297_v13 = vpop.f32.mrb[1].mxu1 }
  0xe7   : > { %v282_v14 = vadd.f32 %v386_v7, %v281_v12  ;;  %v298_v15 = vadd.f32 %v386_v7, %v297_v13  ;;  %v416_v16 = vpop.f32.mrb[2].mxu0  ;;  %v420_v17 = vpop.f32.mrb[2].mxu1 }
  0xe8   : > { %315 = vst.msk [vmem:[%s172_s30 + $0x10] sm:$0xff] %vm312_vm1, %v290_v10  ;;  %319 = vst.msk [vmem:[%s172_s30 + $0x30] sm:$0xff] %vm312_vm1, %v306_v11  ;;  %v293_v18 = vadd.f32 %v416_v16, %v386_v7  ;;  %v309_v19 = vadd.f32 %v420_v17, %v386_v7  ;;  %v284_v20 = vpop.f32.mrb[3].mxu0  ;;  %v300_v21 = vpop.f32.mrb[3].mxu1 }
  0xe9   : > { %313 = vst.msk [vmem:[%s172_s30] sm:$0xff] %vm312_vm1, %v282_v14  ;;  %317 = vst.msk [vmem:[%s172_s30 + $0x20] sm:$0xff] %vm312_vm1, %v298_v15  ;;  %v285_v22 = vadd.f32 %v386_v7, %v284_v20  ;;  %v301_v23 = vadd.f32 %v386_v7, %v300_v21 }
  0xea   : > { %316 = vst.msk [vmem:[%s172_s30 + $0x18] sm:$0xff] %vm312_vm1, %v293_v18  ;;  %320 = vst.msk [vmem:[%s172_s30 + $0x38] sm:$0xff] %vm312_vm1, %v309_v19 }
  0xeb   : > { %314 = vst.msk [vmem:[%s172_s30 + $0x8] sm:$0xff] %vm312_vm1, %v285_v22  ;;  %318 = vst.msk [vmem:[%s172_s30 + $0x28] sm:$0xff] %vm312_vm1, %v301_v23 }
  0xec PF: > { %s13_s12 = sadd.s32 1, %s448_s12  }
  0xed   : > { %p10_p4 = scmp.ge.s32.totalorder %s13_s12, 4  }
  0xef   :  { %12 = sbr.rel (!%p10_p4) target bundleno = 1 (0x1), region = 62 }

// kernel: unet_forward.102
= control target key start
LH: loop header
LB: loop body
LE: loop exit
PB: predicated region body
PF: predicated region fallthrough
CT: control target
= control target key end

     0   :  { %s891_s12 = smov 0   ;;  %s1047_s0 = inlined_call_operand.vmem [shape: bf16[128,432], index: 0, kind: input, shape index: {}]   ;;  %s1048_s1 = inlined_call_operand.vmem [shape: bf16[432,32], index: 1, kind: input, shape index: {}]   ;;  %s1049_s2 = inlined_call_operand.vmem [shape: f32[1,32], index: 2, kind: input, shape index: {}]   ;;  %s1050_s3 = inlined_call_operand.vmem [shape: f32[128,32], index: 3, kind: output, shape index: {}]  }
   0x1 LB: > { %s701_s13 = sadd.s32 4294967295, %s868_s12   ;;  %p705_p0 = scmp.ge.s32.totalorder %s868_s12, 1  ;;  %s868_s12 = sphi %s891_s12, %s13_s12  }
   0x2   : > { %p139_p1 = scmp.lt.s32.totalorder %s868_s12, 3 }
   0x4   : > { %p140_p2 = pnand %p705_p0, %p139_p1 }
   0x5   : > { %v811_v0 = vld [vmem:[%s1048_s1 + $0x80] sm:$0xff] (!%p140_p2)   ;;  %v870_v1 = vmov (!%p140_p2), 0   ;;  %v814_v4 = vld [vmem:[%s1048_s1 + $0x88] sm:$0xff] (!%p140_p2)   ;;  %v817_v7 = vld [vmem:[%s1048_s1 + $0x90] sm:$0xff] (!%p140_p2)   ;;  %s706_s7 = sshll.u32 (!%p140_p2), %s701_s13, 3  ;;  %vm493_vm0 = vcmask (!%p140_p2), 392192  }
   0x6   : > { %143 = sbr.rel (%p140_p2) target bundleno = 291 (0x123), region = 32  ;;  %571 = vmatprep.subr.bf16.mxu1 (!%p140_p2), %v870_v1  ;;  %v812_v2 = vld [vmem:[%s1048_s1 + $0x40] sm:$0xff] (!%p140_p2)   ;;  %v815_v5 = vld [vmem:[%s1048_s1 + $0x48] sm:$0xff] (!%p140_p2)   ;;  %v818_v8 = vld [vmem:[%s1048_s1 + $0x50] sm:$0xff] (!%p140_p2)   ;;  %p165_p3 = scmp.lt.s32.totalorder (!%p140_p2), %s706_s7, 15  ;;  %vm636_vm1 = vcmask (!%p140_p2), 261120  }
   0x7   : > { %572 = vmatpush1.bf16.msra.mxu1 (!%p140_p2), %v811_v0  ;;  %v813_v3 = vld [vmem:[%s1048_s1] sm:$0xff] (!%p140_p2)   ;;  %762 = vmatprep.subr.bf16.mxu0 (!%p140_p2), %v812_v2  ;;  %v816_v6 = vld [vmem:[%s1048_s1 + $0x8] sm:$0xff] (!%p140_p2)   ;;  %v819_v9 = vld [vmem:[%s1048_s1 + $0x10] sm:$0xff] (!%p140_p2)  }
   0x8   : > { %573 = vmatprep.subr.bf16.mxu1 (!%p140_p2), %v870_v1  ;;  %763 = vmatpush3.bf16.msra.mxu0 (!%p140_p2), %v813_v3  ;;  %v820_v10 = vld [vmem:[%s1048_s1 + $0x98] sm:$0xff] (!%p140_p2)   ;;  %v824_v13 = vld [vmem:[%s1048_s1 + $0x60] sm:$0xff] (!%p140_p2)   ;;  %v827_v16 = vld [vmem:[%s1048_s1 + $0x68] sm:$0xff] (!%p140_p2)  }
   0x9   : > { %764 = vmatprep.subr.bf16.mxu0 (!%p140_p2), %v815_v5  ;;  %v821_v11 = vld [vmem:[%s1048_s1 + $0x58] sm:$0xff] (!%p140_p2)   ;;  %v823_v14 = vld [vmem:[%s1048_s1 + $0xa0] sm:$0xff] (!%p140_p2)   ;;  %v826_v17 = vld [vmem:[%s1048_s1 + $0xa8] sm:$0xff] (!%p140_p2)  }
   0xa   : > { %v822_v12 = vld [vmem:[%s1048_s1 + $0x18] sm:$0xff] (!%p140_p2)   ;;  %v825_v15 = vld [vmem:[%s1048_s1 + $0x20] sm:$0xff] (!%p140_p2)   ;;  %v828_v18 = vld [vmem:[%s1048_s1 + $0x28] sm:$0xff] (!%p140_p2)  }
   0xb   : > { %574 = vmatpush1.bf16.msra.mxu1 (!%p140_p2), %v814_v4  ;;  %v830_v19 = vld [vmem:[%s1048_s1 + $0x70] sm:$0xff] (!%p140_p2)   ;;  %v832_v22 = vld [vmem:[%s1048_s1 + $0xb8] sm:$0xff] (!%p140_p2)   ;;  %v835_v26 = vld [vmem:[%s1048_s1 + $0xc0] sm:$0xff] (!%p140_p2)  }
   0xc   : > { %575 = vmatprep.subr.bf16.mxu1 (!%p140_p2), %v870_v1  ;;  %765 = vmatpush3.bf16.msra.mxu0 (!%p140_p2), %v816_v6  ;;  %v829_v20 = vld [vmem:[%s1048_s1 + $0xb0] sm:$0xff] (!%p140_p2)   ;;  %v833_v23 = vld [vmem:[%s1048_s1 + $0x78] sm:$0xff] (!%p140_p2)   ;;  %v839_v30 = vld [vmem:[%s1048_s1 + $0xc8] sm:$0xff] (!%p140_p2)  }
   0xd   : > { %766 = vmatprep.subr.bf16.mxu0 %v818_v8  ;;  %s1052_s7 = smov (!%p165_p3, %s706_s7), 15  ;;  %v831_v21 = vld [vmem:[%s1048_s1 + $0x30] sm:$0xff]   ;;  %v834_v25 = vld [vmem:[%s1048_s1 + $0x38] sm:$0xff]   ;;  %v711_v50 = vld [vmem:[%s1049_s2] ss:$0 sm:$0xff] }
   0xe   : > { %s761_s25 = sshll.u32 %s1052_s7, 4  ;;  %v840_v31 = vld [vmem:[%s1048_s1 + $0xd0] sm:$0xff]   ;;  %s710_s24 = sshll.u32 %s1052_s7, 3 }
   0xf   : > { %576 = vmatpush1.bf16.msra.mxu1 %v817_v7  ;;  %s975_s8 = scalar_lea.vmem %s1047_s0, %s761_s25  ;;  %s1026_s27 = scalar_lea.vmem %s1050_s3, %s710_s24 }
  0x10   : > { %577 = vmatprep.subr.bf16.mxu1 %v870_v1  ;;  %767 = vmatpush3.bf16.msra.mxu0 %v819_v9  ;;  %v838_v24 = vld [vmem:[%s975_s8 + $0x4] ss:$16 sps:$4 sm:$0xff]   ;;  %v845_v27 = vld [vmem:[%s975_s8 + $0xc] ss:$16 sps:$4 sm:$0xff]   ;;  %v836_v28 = vld [vmem:[%s975_s8] ss:$16 sps:$4 sm:$0xff]  }
  0x11   : > { %768 = vmatprep.subr.bf16.mxu0 %v821_v11  ;;  %538 = vmatprep.mubr.bf16.mxu0 %v838_v24  ;;  %v841_v29 = vld [vmem:[%s975_s8 + $0x24] ss:$16 sps:$4 sm:$0xff]   ;;  %v846_v32 = vld [vmem:[%s975_s8 + $0x20] ss:$16 sps:$4 sm:$0xff]   ;;  %v843_v34 = vld [vmem:[%s975_s8 + $0x8] ss:$16 sps:$4 sm:$0xff]  }
  0x12   : > { %755 = vmatprep.mubr.msk.bf16.mxu1 %vm493_vm0, %v845_v27  ;;  %v847_v33 = vld [vmem:[%s975_s8 + $0x44] ss:$16 sps:$4 sm:$0xff]   ;;  %v849_v35 = vld [vmem:[%s975_s8 + $0x2c] ss:$16 sps:$4 sm:$0xff]   ;;  %v851_v36 = vld [vmem:[%s975_s8 + $0x40] ss:$16 sps:$4 sm:$0xff]  }
  0x13   : > { %578 = vmatpush1.bf16.msra.mxu1 %v820_v10  ;;  %v853_v37 = vld [vmem:[%s975_s8 + $0x64] ss:$16 sps:$4 sm:$0xff]   ;;  %v852_v38 = vld [vmem:[%s975_s8 + $0x28] ss:$16 sps:$4 sm:$0xff]   ;;  %v855_v39 = vld [vmem:[%s975_s8 + $0x4c] ss:$16 sps:$4 sm:$0xff]  }
  0x14   : > { %579 = vmatprep.subr.bf16.mxu1 %v870_v1  ;;  %769 = vmatpush3.bf16.msra.mxu0 %v822_v12  ;;  %v857_v40 = vld [vmem:[%s975_s8 + $0x60] ss:$16 sps:$4 sm:$0xff]   ;;  %v858_v41 = vld [vmem:[%s975_s8 + $0x48] ss:$16 sps:$4 sm:$0xff]   ;;  %v859_v42 = vld [vmem:[%s975_s8 + $0x6c] ss:$16 sps:$4 sm:$0xff]  }
  0x15   : > { %770 = vmatprep.subr.bf16.mxu0 %v824_v13  ;;  %v861_v43 = vld [vmem:[%s975_s8 + $0x68] ss:$16 sps:$4 sm:$0xff]  }
  0x17   : > { %580 = vmatpush1.bf16.msra.mxu1 %v823_v14 }
  0x18   : > { %581 = vmatprep.subr.bf16.mxu1 %v870_v1  ;;  %771 = vmatpush3.bf16.msra.mxu0 %v825_v15 }
  0x19   : > { %772 = vmatprep.subr.bf16.mxu0 %v827_v16 }
  0x1b   : > { %582 = vmatpush1.bf16.msra.mxu1 %v826_v17 }
  0x1c   : > { %583 = vmatprep.subr.bf16.mxu1 %v870_v1  ;;  %773 = vmatpush3.bf16.msra.mxu0 %v828_v18 }
  0x1d   : > { %774 = vmatprep.subr.bf16.mxu0 %v830_v19 }
  0x1f   : > { %584 = vmatpush1.bf16.msra.mxu1 %v829_v20 }
  0x20   : > { %585 = vmatprep.subr.bf16.mxu1 %v870_v1  ;;  %775 = vmatpush3.bf16.msra.mxu0 %v831_v21 }
  0x21   : > { %776 = vmatprep.subr.bf16.mxu0 %v833_v23 }
  0x23   : > { %586 = vmatpush1.bf16.msra.mxu1 %v832_v22 }
  0x24   : > { %587 = vmatprep.subr.bf16.mxu1 %v870_v1  ;;  %777 = vmatpush3.bf16.msra.mxu0 %v834_v25 }
  0x27   : > { %588 = vmatpush1.bf16.msra.mxu1 %v835_v26  ;;  %539 = vmatmul.mubr.bf16.vlgmr.msra.gmra.mrb[0].mxu0 %v836_v28 }
  0x28   : > { %589 = vmatprep.subr.bf16.mxu1 %v870_v1  ;;  %546 = vmatprep.mubr.bf16.mxu0 %v841_v29 }
  0x2b   : > { %590 = vmatpush1.bf16.msra.mxu1 %v839_v30 }
  0x2c   : > { %591 = vmatprep.subr.bf16.mxu1 %v870_v1 }
  0x2f   : > { %592 = vmatpush1.bf16.msra.mxu1 %v840_v31  ;;  %547 = vmatmul.mubr.bf16.gmra.mrb[4].mxu0 %v846_v32 }
  0x30   : > { %554 = vmatprep.mubr.bf16.mxu0 %v847_v33 }
  0x32   : > { %604 = vmatmul.mubr.bf16.vlgmr.msra.gmra.mrb[0].mxu1 %v843_v34 }
  0x33   : > { %756 = vmatprep.mubr.msk.bf16.mxu1 %vm493_vm0, %v849_v35 }
  0x37   : > { %555 = vmatmul.mubr.bf16.gmra.mrb[8].mxu0 %v851_v36 }
  0x38   : > { %562 = vmatprep.mubr.bf16.mxu0 %v853_v37 }
  0x3a   : > { %612 = vmatmul.mubr.bf16.gmra.mrb[4].mxu1 %v852_v38 }
  0x3b   : > { %757 = vmatprep.mubr.msk.bf16.mxu1 %vm493_vm0, %v855_v39 }
  0x3f   : > { %563 = vmatmul.mubr.bf16.gmra.mrb[12].mxu0 %v857_v40 }
  0x42   : > { %620 = vmatmul.mubr.bf16.gmra.mrb[8].mxu1 %v858_v41 }
  0x43   : > { %758 = vmatprep.mubr.msk.bf16.mxu1 %vm493_vm0, %v859_v42 }
  0x4a   : > { %628 = vmatmul.mubr.bf16.gmra.mrb[12].mxu1 %v861_v43 }
  0xfa   : > { %v778_v44 = vpop.f32.mrb[0].mxu0 }
  0xfb   : > { %v779_v45 = vpop.f32.mrb[1].mxu0 }
  0xfc   : > { %v780_v46 = vadd.f32 %v779_v45, %v778_v44  ;;  %v781_v47 = vpop.f32.mrb[2].mxu0 }
  0xfd   : > { %v782_v48 = vpop.f32.mrb[3].mxu0 }
  0xfe   : > { %v783_v49 = vadd.f32 %v782_v48, %v781_v47  ;;  %v541_v51 = vadd.f32 %v780_v46, %v711_v50 }
 0x100   : > { %v544_v59 = vadd.f32 %v783_v49, %v711_v50 }
 0x102   : > { %v784_v52 = vpop.f32.mrb[4].mxu0 }
 0x103   : > { %v785_v53 = vpop.f32.mrb[5].mxu0 }
 0x104   : > { %v786_v55 = vadd.f32 %v785_v53, %v784_v52  ;;  %v787_v56 = vpop.f32.mrb[6].mxu0 }
 0x105   : > { %v605_v54 = vpop.f32.mrb[0].mxu1  ;;  %v788_v60 = vpop.f32.mrb[7].mxu0 }
 0x106   : > { %v606_v57 = vadd.f32 %v605_v54, %v541_v51  ;;  %v607_v58 = vpop.f32.mrb[1].mxu1  ;;  %v789_v62 = vadd.f32 %v788_v60, %v787_v56  ;;  %v549_v1 = vadd.f32 %v786_v55, %v711_v50 }
 0x107   : > { %v608_v61 = vpop.f32.mrb[2].mxu1 }
 0x108   : > { %637 = vst.msk [vmem:[%s1026_s27] sm:$0xff] %vm636_vm1, %v606_v57  ;;  %v609_v63 = vadd.f32 %v608_v61, %v544_v59  ;;  %v610_v0 = vpop.f32.mrb[3].mxu1  ;;  %v552_v9 = vadd.f32 %v789_v62, %v711_v50 }
 0x10a   : > { %638 = vst.msk [vmem:[%s1026_s27 + $0x8] sm:$0xff] %vm636_vm1, %v609_v63  ;;  %v790_v2 = vpop.f32.mrb[8].mxu0 }
 0x10b   : > { %v791_v3 = vpop.f32.mrb[9].mxu0 }
 0x10c   : > { %v792_v5 = vadd.f32 %v791_v3, %v790_v2  ;;  %v793_v6 = vpop.f32.mrb[10].mxu0 }
 0x10d   : > { %v613_v4 = vpop.f32.mrb[4].mxu1  ;;  %v794_v10 = vpop.f32.mrb[11].mxu0 }
 0x10e   : > { %v614_v7 = vadd.f32 %v613_v4, %v549_v1  ;;  %v615_v8 = vpop.f32.mrb[5].mxu1  ;;  %v795_v12 = vadd.f32 %v794_v10, %v793_v6  ;;  %v557_v15 = vadd.f32 %v792_v5, %v711_v50 }
 0x10f   : > { %v616_v11 = vpop.f32.mrb[6].mxu1 }
 0x110   : > { %639 = vst.msk [vmem:[%s1026_s27 + $0x10] sm:$0xff] %vm636_vm1, %v614_v7  ;;  %v617_v13 = vadd.f32 %v616_v11, %v552_v9  ;;  %v618_v14 = vpop.f32.mrb[7].mxu1  ;;  %v560_v23 = vadd.f32 %v795_v12, %v711_v50 }
 0x112   : > { %640 = vst.msk [vmem:[%s1026_s27 + $0x18] sm:$0xff] %vm636_vm1, %v617_v13  ;;  %v796_v16 = vpop.f32.mrb[12].mxu0 }
 0x113   : > { %v797_v17 = vpop.f32.mrb[13].mxu0 }
 0x114   : > { %v798_v19 = vadd.f32 %v797_v17, %v796_v16  ;;  %v799_v20 = vpop.f32.mrb[14].mxu0 }
 0x115   : > { %v621_v18 = vpop.f32.mrb[8].mxu1  ;;  %v800_v24 = vpop.f32.mrb[15].mxu0 }
 0x116   : > { %v622_v21 = vadd.f32 %v621_v18, %v557_v15  ;;  %v623_v22 = vpop.f32.mrb[9].mxu1  ;;  %v801_v26 = vadd.f32 %v800_v24, %v799_v20  ;;  %v565_v29 = vadd.f32 %v798_v19, %v711_v50 }
 0x117   : > { %v624_v25 = vpop.f32.mrb[10].mxu1 }
 0x118   : > { %641 = vst.msk [vmem:[%s1026_s27 + $0x20] sm:$0xff] %vm636_vm1, %v622_v21  ;;  %v625_v27 = vadd.f32 %v624_v25, %v560_v23  ;;  %v626_v28 = vpop.f32.mrb[11].mxu1  ;;  %v568_v33 = vadd.f32 %v801_v26, %v711_v50 }
 0x11a   : > { %642 = vst.msk [vmem:[%s1026_s27 + $0x28] sm:$0xff] %vm636_vm1, %v625_v27 }
 0x11d   : > { %v629_v30 = vpop.f32.mrb[12].mxu1 }
 0x11e   : > { %v630_v31 = vadd.f32 %v629_v30, %v565_v29  ;;  %v631_v32 = vpop.f32.mrb[13].mxu1 }
 0x11f   : > { %v632_v34 = vpop.f32.mrb[14].mxu1 }
 0x120   : > { %643 = vst.msk [vmem:[%s1026_s27 + $0x30] sm:$0xff] %vm636_vm1, %v630_v31  ;;  %v633_v35 = vadd.f32 %v632_v34, %v568_v33  ;;  %v634_v36 = vpop.f32.mrb[15].mxu1 }
 0x122   : > { %644 = vst.msk [vmem:[%s1026_s27 + $0x38] sm:$0xff] %vm636_vm1, %v633_v35 }
 0x123 PF: > { %s13_s12 = sadd.s32 1, %s868_s12  }
 0x124   : > { %p10_p4 = scmp.ge.s32.totalorder %s13_s12, 4  }
 0x126   :  { %12 = sbr.rel (!%p10_p4) target bundleno = 1 (0x1), region = 62 }

// kernel: unet_forward.113
= control target key start
LH: loop header
LB: loop body
LE: loop exit
PB: predicated region body
PF: predicated region fallthrough
CT: control target
= control target key end

     0   :  { %s1488_s12 = smov 0   ;;  %s1762_s0 = inlined_call_operand.vmem [shape: bf16[512,288], index: 0, kind: input, shape index: {}]   ;;  %s1763_s1 = inlined_call_operand.vmem [shape: bf16[288,16], index: 1, kind: input, shape index: {}]   ;;  %s1764_s2 = inlined_call_operand.vmem [shape: f32[1,16], index: 2, kind: input, shape index: {}]   ;;  %s1765_s3 = inlined_call_operand.vmem [shape: f32[512,16], index: 3, kind: output, shape index: {}]  }
   0x1 LB: > { %s1093_s13 = sadd.s32 4294967295, %s1466_s12   ;;  %p1097_p0 = scmp.ge.s32.totalorder %s1466_s12, 1  ;;  %s1466_s12 = sphi %s1488_s12, %s13_s12  }
   0x2   : > { %p139_p1 = scmp.lt.s32.totalorder %s1466_s12, 3 }
   0x4   : > { %p140_p2 = pnand %p1097_p0, %p139_p1 }
   0x5   : > { %v1378_v0 = vld [vmem:[%s1763_s1 + $0x40] sm:$0xff] (!%p140_p2)   ;;  %s1098_s16 = sshll.u32 (!%p140_p2), %s1093_s13, 5  ;;  %v1380_v2 = vld [vmem:[%s1763_s1 + $0x48] sm:$0xff] (!%p140_p2)   ;;  %v1382_v4 = vld [vmem:[%s1763_s1 + $0x50] sm:$0xff] (!%p140_p2)   ;;  %vm633_vm0 = vcmask (!%p140_p2), 261120   ;;  %vm1004_vm1 = vcmask (!%p140_p2), 130048  }
   0x6   : > { %143 = sbr.rel (%p140_p2) target bundleno = 348 (0x15c), region = 32  ;;  %v1379_v1 = vld [vmem:[%s1763_s1] sm:$0xff] (!%p140_p2)   ;;  %1187 = vmatprep.subr.bf16.mxu0 (!%p140_p2), %v1378_v0  ;;  %1353 = vmatprep.subr.bf16.mxu1 (!%p140_p2), %v1378_v0  ;;  %p165_p3 = scmp.lt.s32.totalorder (!%p140_p2), %s1098_s16, 63  ;;  %v1381_v3 = vld [vmem:[%s1763_s1 + $0x8] sm:$0xff] (!%p140_p2)   ;;  %v1383_v5 = vld [vmem:[%s1763_s1 + $0x10] sm:$0xff] (!%p140_p2)  }
   0x7   : > { %1188 = vmatpush3.bf16.msra.mxu0 (!%p140_p2), %v1379_v1  ;;  %1361 = vmatpush3.bf16.msra.mxu1 (!%p140_p2), %v1379_v1  ;;  %v1384_v6 = vld [vmem:[%s1763_s1 + $0x58] sm:$0xff] (!%p140_p2)   ;;  %v1386_v8 = vld [vmem:[%s1763_s1 + $0x60] sm:$0xff] (!%p140_p2)   ;;  %v1388_v10 = vld [vmem:[%s1763_s1 + $0x68] sm:$0xff] (!%p140_p2)  }
   0x8   : > { %1189 = vmatprep.subr.bf16.mxu0 (!%p140_p2), %v1380_v2  ;;  %1354 = vmatprep.subr.bf16.mxu1 (!%p140_p2), %v1380_v2  ;;  %v1385_v7 = vld [vmem:[%s1763_s1 + $0x18] sm:$0xff] (!%p140_p2)   ;;  %v1387_v9 = vld [vmem:[%s1763_s1 + $0x20] sm:$0xff] (!%p140_p2)   ;;  %v1389_v13 = vld [vmem:[%s1763_s1 + $0x28] sm:$0xff] (!%p140_p2)  }
   0x9   : > { %v1390_v14 = vld [vmem:[%s1763_s1 + $0x70] sm:$0xff] (!%p140_p2)   ;;  %v1392_v16 = vld [vmem:[%s1763_s1 + $0x78] sm:$0xff] (!%p140_p2)   ;;  %v1400_v18 = vld [vmem:[%s1763_s1 + $0x80] sm:$0xff] (!%p140_p2)  }
   0xa   : > { %v1391_v15 = vld [vmem:[%s1763_s1 + $0x30] sm:$0xff] (!%p140_p2)   ;;  %v1393_v17 = vld [vmem:[%s1763_s1 + $0x38] sm:$0xff] (!%p140_p2)   ;;  %v1413_v23 = vld [vmem:[%s1763_s1 + $0x88] sm:$0xff] (!%p140_p2)  }
   0xb   : > { %1190 = vmatpush3.bf16.msra.mxu0 (!%p140_p2), %v1381_v3  ;;  %1362 = vmatpush3.bf16.msra.mxu1 (!%p140_p2), %v1381_v3 }
   0xc   : > { %1191 = vmatprep.subr.bf16.mxu0 (!%p140_p2), %v1382_v4  ;;  %1355 = vmatprep.subr.bf16.mxu1 (!%p140_p2), %v1382_v4 }
   0xd   : > { %s1767_s16 = smov (!%p165_p3, %s1098_s16), 63 }
   0xe   : > { %s1369_s29 = smul.u32 12, %s1767_s16  ;;  %s1101_s30 = sshll.u32 %s1767_s16, 3 }
   0xf   : > { %1192 = vmatpush3.bf16.msra.mxu0 %v1383_v5  ;;  %1363 = vmatpush3.bf16.msra.mxu1 %v1383_v5  ;;  %s1648_s8 = scalar_lea.vmem %s1765_s3, %s1101_s30 }
  0x10   : > { %1193 = vmatprep.subr.bf16.mxu0 %v1384_v6  ;;  %1356 = vmatprep.subr.bf16.mxu1 %v1384_v6  ;;  %s1529_s9 = scalar_lea.vmem %s1762_s0, %s1369_s29 }
  0x11   : > { %v1396_v11 = vld [vmem:[%s1529_s9 + $0x4] ss:$12 sps:$4 sm:$0xff]   ;;  %v1394_v19 = vld [vmem:[%s1529_s9] ss:$12 sps:$4 sm:$0xff]   ;;  %v1401_v21 = vld [vmem:[%s1529_s9 + $0x1c] ss:$12 sps:$4 sm:$0xff]  }
  0x12   : > { %v1399_v12 = vld [vmem:[%s1529_s9 + $0x124] ss:$12 sps:$4 sm:$0xff]   ;;  %714 = vmatprep.mubr.bf16.mxu0 %v1396_v11  ;;  %v1397_v20 = vld [vmem:[%s1529_s9 + $0x120] ss:$12 sps:$4 sm:$0xff]   ;;  %v1403_v22 = vld [vmem:[%s1529_s9 + $0x13c] ss:$12 sps:$4 sm:$0xff]  }
  0x13   : > { %1194 = vmatpush3.bf16.msra.mxu0 %v1385_v7  ;;  %1364 = vmatpush3.bf16.msra.mxu1 %v1385_v7  ;;  %v1405_v24 = vld [vmem:[%s1529_s9 + $0x18] ss:$12 sps:$4 sm:$0xff]   ;;  %v1407_v26 = vld [vmem:[%s1529_s9 + $0x34] ss:$12 sps:$4 sm:$0xff]   ;;  %v1411_v28 = vld [vmem:[%s1529_s9 + $0x30] ss:$12 sps:$4 sm:$0xff]  }
  0x14   : > { %1195 = vmatprep.subr.bf16.mxu0 %v1386_v8  ;;  %1357 = vmatprep.subr.bf16.mxu1 %v1386_v8  ;;  %v1406_v25 = vld [vmem:[%s1529_s9 + $0x138] ss:$12 sps:$4 sm:$0xff]   ;;  %v1409_v27 = vld [vmem:[%s1529_s9 + $0x154] ss:$12 sps:$4 sm:$0xff]   ;;  %v1412_v29 = vld [vmem:[%s1529_s9 + $0x150] ss:$12 sps:$4 sm:$0xff]  }
  0x15   : > { %810 = vmatprep.mubr.bf16.mxu1 %v1399_v12  ;;  %v1414_v30 = vld [vmem:[%s1529_s9 + $0x4c] ss:$12 sps:$4 sm:$0xff]   ;;  %v1418_v32 = vld [vmem:[%s1529_s9 + $0x48] ss:$12 sps:$4 sm:$0xff]   ;;  %v1420_v34 = vld [vmem:[%s1529_s9 + $0x64] ss:$12 sps:$4 sm:$0xff]  }
  0x16   : > { %v1416_v31 = vld [vmem:[%s1529_s9 + $0x16c] ss:$12 sps:$4 sm:$0xff]   ;;  %v1419_v33 = vld [vmem:[%s1529_s9 + $0x168] ss:$12 sps:$4 sm:$0xff]   ;;  %v1429_v41 = vld [vmem:[%s1529_s9 + $0x50] ss:$12 sps:$4 sm:$0xff]  }
  0x17   : > { %1196 = vmatpush3.bf16.msra.mxu0 %v1387_v9  ;;  %1365 = vmatpush3.bf16.msra.mxu1 %v1387_v9  ;;  %v1422_v35 = vld [vmem:[%s1529_s9 + $0x8] ss:$12 sps:$4 sm:$0xff]   ;;  %v1423_v36 = vld [vmem:[%s1529_s9 + $0x60] ss:$12 sps:$4 sm:$0xff]   ;;  %v1427_v39 = vld [vmem:[%s1529_s9 + $0x38] ss:$12 sps:$4 sm:$0xff]  }
  0x18   : > { %1197 = vmatprep.subr.bf16.mxu0 %v1388_v10  ;;  %1358 = vmatprep.subr.bf16.mxu1 %v1388_v10  ;;  %v1424_v37 = vld [vmem:[%s1529_s9 + $0x20] ss:$12 sps:$4 sm:$0xff]   ;;  %v1425_v38 = vld [vmem:[%s1529_s9 + $0x7c] ss:$12 sps:$4 sm:$0xff]   ;;  %v1428_v40 = vld [vmem:[%s1529_s9 + $0x78] ss:$12 sps:$4 sm:$0xff]  }
  0x19   : > { %v1430_v42 = vld [vmem:[%s1529_s9 + $0x94] ss:$12 sps:$4 sm:$0xff]   ;;  %v1433_v44 = vld [vmem:[%s1529_s9 + $0x90] ss:$12 sps:$4 sm:$0xff]   ;;  %v1435_v46 = vld [vmem:[%s1529_s9 + $0xac] ss:$12 sps:$4 sm:$0xff]  }
  0x1a   : > { %v1432_v43 = vld [vmem:[%s1529_s9 + $0x68] ss:$12 sps:$4 sm:$0xff]   ;;  %v1434_v45 = vld [vmem:[%s1529_s9 + $0x80] ss:$12 sps:$4 sm:$0xff]   ;;  %v1437_v47 = vld [vmem:[%s1529_s9 + $0x98] ss:$12 sps:$4 sm:$0xff]  }
  0x1b   : > { %1198 = vmatpush3.bf16.msra.mxu0 %v1389_v13  ;;  %1366 = vmatpush3.bf16.msra.mxu1 %v1389_v13  ;;  %v1438_v48 = vld [vmem:[%s1529_s9 + $0xa8] ss:$12 sps:$4 sm:$0xff]   ;;  %v1439_v49 = vld [vmem:[%s1529_s9 + $0xb0] ss:$12 sps:$4 sm:$0xff]   ;;  %v1443_v52 = vld [vmem:[%s1529_s9 + $0xc0] ss:$12 sps:$4 sm:$0xff]  }
  0x1c   : > { %1199 = vmatprep.subr.bf16.mxu0 %v1390_v14  ;;  %1359 = vmatprep.subr.bf16.mxu1 %v1390_v14  ;;  %v1440_v50 = vld [vmem:[%s1529_s9 + $0xc4] ss:$12 sps:$4 sm:$0xff]   ;;  %v1442_v51 = vld [vmem:[%s1529_s9 + $0xc8] ss:$12 sps:$4 sm:$0xff]   ;;  %v1444_v53 = vld [vmem:[%s1529_s9 + $0xe0] ss:$12 sps:$4 sm:$0xff]  }
  0x1d   : > { %v1445_v54 = vld [vmem:[%s1529_s9 + $0xdc] ss:$12 sps:$4 sm:$0xff]   ;;  %v1447_v55 = vld [vmem:[%s1529_s9 + $0xf8] ss:$12 sps:$4 sm:$0xff]   ;;  %v1450_v58 = vld [vmem:[%s1529_s9 + $0xf4] ss:$12 sps:$4 sm:$0xff]  }
  0x1e   : > { %v1448_v56 = vld [vmem:[%s1529_s9 + $0xd8] ss:$12 sps:$4 sm:$0xff]   ;;  %v1449_v57 = vld [vmem:[%s1529_s9 + $0x110] ss:$12 sps:$4 sm:$0xff]   ;;  %v1452_v59 = vld [vmem:[%s1529_s9 + $0x128] ss:$12 sps:$4 sm:$0xff]  }
  0x1f   : > { %1200 = vmatpush3.bf16.msra.mxu0 %v1391_v15  ;;  %1367 = vmatpush3.bf16.msra.mxu1 %v1391_v15  ;;  %v1453_v60 = vld [vmem:[%s1529_s9 + $0xf0] ss:$12 sps:$4 sm:$0xff]   ;;  %v1454_v61 = vld [vmem:[%s1529_s9 + $0x140] ss:$12 sps:$4 sm:$0xff]   ;;  %v1457_v63 = vld [vmem:[%s1529_s9 + $0x158] ss:$12 sps:$4 sm:$0xff]  }
  0x20   : > { %1201 = vmatprep.subr.bf16.mxu0 %v1392_v16  ;;  %1360 = vmatprep.subr.bf16.mxu1 %v1392_v16  ;;  %v1455_v62 = vld [vmem:[%s1529_s9 + $0x10c] ss:$12 sps:$4 sm:$0xff]   ;;  %v1458_v0 = vld [vmem:[%s1529_s9 + $0x108] ss:$12 sps:$4 sm:$0xff]   ;;  %v1459_v1 = vld [vmem:[%s1529_s9 + $0x170] ss:$12 sps:$4 sm:$0xff]  }
  0x23   : > { %1202 = vmatpush3.bf16.msra.mxu0 %v1393_v17  ;;  %1368 = vmatpush3.bf16.msra.mxu1 %v1393_v17 }
  0x24   : > { %1317 = vmatprep.subr.bf16.mxu1 %v1400_v18 }
  0x26   : > { %715 = vmatmul.mubr.bf16.vlgmr.msra.gmra.mrb[0].mxu0 %v1394_v19  ;;  %811 = vmatmul.mubr.bf16.vlgmr.msra.gmra.mrb[0].mxu1 %v1397_v20 }
  0x27   : > { %1318 = vmatpush3.bf16.msra.mxu1 %v1400_v18  ;;  %722 = vmatprep.mubr.bf16.mxu0 %v1401_v21 }
  0x28   : > { %818 = vmatprep.mubr.bf16.mxu1 %v1403_v22  ;;  %1319 = vmatprep.subr.bf16.mxu1 %v1413_v23 }
  0x2b   : > { %1320 = vmatpush3.bf16.msra.mxu1 %v1413_v23 }
  0x2e   : > { %723 = vmatmul.mubr.bf16.gmra.mrb[4].mxu0 %v1405_v24  ;;  %819 = vmatmul.mubr.bf16.gmra.mrb[4].mxu1 %v1406_v25 }
  0x2f   : > { %730 = vmatprep.mubr.bf16.mxu0 %v1407_v26  ;;  %826 = vmatprep.mubr.bf16.mxu1 %v1409_v27 }
  0x36   : > { %731 = vmatmul.mubr.bf16.gmra.mrb[8].mxu0 %v1411_v28  ;;  %827 = vmatmul.mubr.bf16.gmra.mrb[8].mxu1 %v1412_v29 }
  0x37   : > { %738 = vmatprep.mubr.bf16.mxu0 %v1414_v30  ;;  %834 = vmatprep.mubr.bf16.mxu1 %v1416_v31 }
  0x3e   : > { %739 = vmatmul.mubr.bf16.gmra.mrb[12].mxu0 %v1418_v32  ;;  %835 = vmatmul.mubr.bf16.gmra.mrb[12].mxu1 %v1419_v33 }
  0x3f   : > { %746 = vmatprep.mubr.bf16.mxu0 %v1420_v34  ;;  %1321 = vmatprep.mubr.msk.bf16.mxu1 %vm633_vm0, %v1422_v35 }
  0x46   : > { %747 = vmatmul.mubr.bf16.gmra.mrb[16].mxu0 %v1423_v36  ;;  %1322 = vmatmul.mubr.msk.bf16.vlgmr.msra.gmra.mrb[16].mxu1 %vm633_vm0, %v1424_v37 }
  0x47   : > { %754 = vmatprep.mubr.bf16.mxu0 %v1425_v38  ;;  %1325 = vmatprep.mubr.msk.bf16.mxu1 %vm633_vm0, %v1427_v39 }
  0x4e   : > { %755 = vmatmul.mubr.bf16.gmra.mrb[20].mxu0 %v1428_v40  ;;  %1326 = vmatmul.mubr.msk.bf16.gmra.mrb[20].mxu1 %vm633_vm0, %v1429_v41 }
  0x4f   : > { %762 = vmatprep.mubr.bf16.mxu0 %v1430_v42  ;;  %1329 = vmatprep.mubr.msk.bf16.mxu1 %vm633_vm0, %v1432_v43 }
  0x56   : > { %763 = vmatmul.mubr.bf16.gmra.mrb[24].mxu0 %v1433_v44  ;;  %1330 = vmatmul.mubr.msk.bf16.gmra.mrb[24].mxu1 %vm633_vm0, %v1434_v45 }
  0x57   : > { %770 = vmatprep.mubr.bf16.mxu0 %v1435_v46  ;;  %1333 = vmatprep.mubr.msk.bf16.mxu1 %vm633_vm0, %v1437_v47 }
  0x5e   : > { %771 = vmatmul.mubr.bf16.gmra.mrb[28].mxu0 %v1438_v48  ;;  %1334 = vmatmul.mubr.msk.bf16.gmra.mrb[28].mxu1 %vm633_vm0, %v1439_v49 }
  0x5f   : > { %778 = vmatprep.mubr.bf16.mxu0 %v1440_v50  ;;  %1337 = vmatprep.mubr.msk.bf16.mxu1 %vm633_vm0, %v1442_v51  ;;  %v1642_v50 = vld [vmem:[%s1764_s2] ss:$0 sm:$0xff] }
  0x66   : > { %779 = vmatmul.mubr.bf16.gmra.mrb[32].mxu0 %v1443_v52  ;;  %1338 = vmatmul.mubr.msk.bf16.gmra.mrb[32].mxu1 %vm633_vm0, %v1444_v53 }
  0x67   : > { %786 = vmatprep.mubr.bf16.mxu0 %v1445_v54  ;;  %1341 = vmatprep.mubr.msk.bf16.mxu1 %vm633_vm0, %v1447_v55 }
  0x6e   : > { %787 = vmatmul.mubr.bf16.gmra.mrb[36].mxu0 %v1448_v56  ;;  %1342 = vmatmul.mubr.msk.bf16.gmra.mrb[36].mxu1 %vm633_vm0, %v1449_v57 }
  0x6f   : > { %794 = vmatprep.mubr.bf16.mxu0 %v1450_v58  ;;  %1345 = vmatprep.mubr.msk.bf16.mxu1 %vm633_vm0, %v1452_v59 }
  0x76   : > { %795 = vmatmul.mubr.bf16.gmra.mrb[40].mxu0 %v1453_v60  ;;  %1346 = vmatmul.mubr.msk.bf16.gmra.mrb[40].mxu1 %vm633_vm0, %v1454_v61 }
  0x77   : > { %802 = vmatprep.mubr.bf16.mxu0 %v1455_v62  ;;  %1349 = vmatprep.mubr.msk.bf16.mxu1 %vm633_vm0, %v1457_v63 }
  0x7e   : > { %803 = vmatmul.mubr.bf16.gmra.mrb[44].mxu0 %v1458_v0  ;;  %1350 = vmatmul.mubr.msk.bf16.gmra.mrb[44].mxu1 %vm633_vm0, %v1459_v1 }
  0xf9   : > { %v1203_v2 = vpop.f32.mrb[0].mxu0  ;;  %v1275_v3 = vpop.f32.mrb[0].mxu1 }
  0xfa   : > { %v1204_v4 = vpop.f32.mrb[1].mxu0  ;;  %v1276_v5 = vpop.f32.mrb[1].mxu1 }
  0xfb   : > { %v1205_v6 = vadd.f32 %v1204_v4, %v1203_v2  ;;  %v1206_v7 = vpop.f32.mrb[2].mxu0  ;;  %v1622_v8 = vadd.f32 %v1276_v5, %v1275_v3  ;;  %v1278_v9 = vpop.f32.mrb[2].mxu1 }
  0xfc   : > { %v1207_v10 = vpop.f32.mrb[3].mxu0  ;;  %v1279_v11 = vpop.f32.mrb[3].mxu1 }
  0xfd   : > { %v1208_v12 = vadd.f32 %v1207_v10, %v1206_v7  ;;  %v1624_v13 = vadd.f32 %v1279_v11, %v1278_v9  ;;  %v717_v54 = vadd.f32 %v1205_v6, %v1642_v50 }
  0xff   : > { %v720_v63 = vadd.f32 %v1208_v12, %v1642_v50 }
 0x101   : > { %v1209_v14 = vpop.f32.mrb[4].mxu0  ;;  %v1281_v15 = vpop.f32.mrb[4].mxu1 }
 0x102   : > { %v1210_v16 = vpop.f32.mrb[5].mxu0  ;;  %v1282_v17 = vpop.f32.mrb[5].mxu1 }
 0x103   : > { %v1211_v18 = vadd.f32 %v1210_v16, %v1209_v14  ;;  %v1212_v19 = vpop.f32.mrb[6].mxu0  ;;  %v1626_v20 = vadd.f32 %v1282_v17, %v1281_v15  ;;  %v1284_v21 = vpop.f32.mrb[6].mxu1 }
 0x104   : > { %v1213_v22 = vpop.f32.mrb[7].mxu0  ;;  %v1285_v23 = vpop.f32.mrb[7].mxu1 }
 0x105   : > { %v1214_v24 = vadd.f32 %v1213_v22, %v1212_v19  ;;  %v1628_v25 = vadd.f32 %v1285_v23, %v1284_v21  ;;  %v725_v51 = vadd.f32 %v1211_v18, %v1642_v50 }
 0x107   : > { %v728_v58 = vadd.f32 %v1214_v24, %v1642_v50 }
 0x109   : > { %v1215_v26 = vpop.f32.mrb[8].mxu0  ;;  %v1287_v27 = vpop.f32.mrb[8].mxu1 }
 0x10a   : > { %v1216_v28 = vpop.f32.mrb[9].mxu0  ;;  %v1288_v29 = vpop.f32.mrb[9].mxu1 }
 0x10b   : > { %v1217_v30 = vadd.f32 %v1216_v28, %v1215_v26  ;;  %v1218_v31 = vpop.f32.mrb[10].mxu0  ;;  %v1630_v32 = vadd.f32 %v1288_v29, %v1287_v27  ;;  %v1290_v33 = vpop.f32.mrb[10].mxu1 }
 0x10c   : > { %v1219_v34 = vpop.f32.mrb[11].mxu0  ;;  %v1291_v35 = vpop.f32.mrb[11].mxu1 }
 0x10d   : > { %v1220_v36 = vadd.f32 %v1219_v34, %v1218_v31  ;;  %v1632_v37 = vadd.f32 %v1291_v35, %v1290_v33  ;;  %v733_v9 = vadd.f32 %v1217_v30, %v1642_v50 }
 0x10f   : > { %v736_v19 = vadd.f32 %v1220_v36, %v1642_v50 }
 0x111   : > { %v1221_v38 = vpop.f32.mrb[12].mxu0  ;;  %v1293_v39 = vpop.f32.mrb[12].mxu1 }
 0x112   : > { %v1222_v40 = vpop.f32.mrb[13].mxu0  ;;  %v1294_v41 = vpop.f32.mrb[13].mxu1 }
 0x113   : > { %v1223_v42 = vadd.f32 %v1222_v40, %v1221_v38  ;;  %v1224_v43 = vpop.f32.mrb[14].mxu0  ;;  %v1634_v44 = vadd.f32 %v1294_v41, %v1293_v39  ;;  %v1296_v45 = vpop.f32.mrb[14].mxu1 }
 0x114   : > { %v1225_v46 = vpop.f32.mrb[15].mxu0  ;;  %v1297_v47 = vpop.f32.mrb[15].mxu1 }
 0x115   : > { %v1226_v48 = vadd.f32 %v1225_v46, %v1224_v43  ;;  %v1636_v49 = vadd.f32 %v1297_v47, %v1296_v45  ;;  %v741_v5 = vadd.f32 %v1223_v42, %v1642_v50 }
 0x117   : > { %v744_v14 = vadd.f32 %v1226_v48, %v1642_v50 }
 0x119   : > { %v1227_v52 = vpop.f32.mrb[16].mxu0  ;;  %v1323_v53 = vpop.f32.mrb[16].mxu1 }
 0x11a   : > { %v886_v55 = vadd.f32 %v1323_v53, %v725_v51  ;;  %v1228_v56 = vpop.f32.mrb[17].mxu0  ;;  %v877_v57 = vpop.f32.mrb[17].mxu1 }
 0x11b   : > { %v1229_v59 = vadd.f32 %v1228_v56, %v1227_v52  ;;  %v878_v60 = vadd.f32 %v877_v57, %v717_v54  ;;  %v1230_v61 = vpop.f32.mrb[18].mxu0  ;;  %v1324_v62 = vpop.f32.mrb[18].mxu1 }
 0x11c   : > { %1007 = vst.msk [vmem:[%s1648_s8 + $0x10] sm:$0xff] %vm1004_vm1, %v886_v55  ;;  %v889_v0 = vadd.f32 %v1324_v62, %v728_v58  ;;  %v1231_v1 = vpop.f32.mrb[19].mxu0  ;;  %v880_v2 = vpop.f32.mrb[19].mxu1 }
 0x11d   : > { %1005 = vst.msk [vmem:[%s1648_s8] sm:$0xff] %vm1004_vm1, %v878_v60  ;;  %v1232_v3 = vadd.f32 %v1231_v1, %v1230_v61  ;;  %v881_v4 = vadd.f32 %v880_v2, %v720_v63  ;;  %v749_v30 = vadd.f32 %v1229_v59, %v1642_v50 }
 0x11e   : > { %1008 = vst.msk [vmem:[%s1648_s8 + $0x18] sm:$0xff] %vm1004_vm1, %v889_v0 }
 0x11f   : > { %1006 = vst.msk [vmem:[%s1648_s8 + $0x8] sm:$0xff] %vm1004_vm1, %v881_v4  ;;  %v752_v41 = vadd.f32 %v1232_v3, %v1642_v50 }
 0x121   : > { %v1233_v6 = vpop.f32.mrb[20].mxu0  ;;  %v1327_v7 = vpop.f32.mrb[20].mxu1 }
 0x122   : > { %v902_v10 = vadd.f32 %v1327_v7, %v741_v5  ;;  %v1234_v11 = vpop.f32.mrb[21].mxu0  ;;  %v893_v12 = vpop.f32.mrb[21].mxu1 }
 0x123   : > { %v1235_v15 = vadd.f32 %v1234_v11, %v1233_v6  ;;  %v894_v16 = vadd.f32 %v893_v12, %v733_v9  ;;  %v1236_v17 = vpop.f32.mrb[22].mxu0  ;;  %v1328_v18 = vpop.f32.mrb[22].mxu1 }
 0x124   : > { %1011 = vst.msk [vmem:[%s1648_s8 + $0x30] sm:$0xff] %vm1004_vm1, %v902_v10  ;;  %v905_v21 = vadd.f32 %v1328_v18, %v744_v14  ;;  %v1237_v22 = vpop.f32.mrb[23].mxu0  ;;  %v896_v23 = vpop.f32.mrb[23].mxu1 }
 0x125   : > { %1009 = vst.msk [vmem:[%s1648_s8 + $0x20] sm:$0xff] %vm1004_vm1, %v894_v16  ;;  %v1238_v24 = vadd.f32 %v1237_v22, %v1236_v17  ;;  %v897_v26 = vadd.f32 %v896_v23, %v736_v19  ;;  %v757_v27 = vadd.f32 %v1235_v15, %v1642_v50 }
 0x126   : > { %1012 = vst.msk [vmem:[%s1648_s8 + $0x38] sm:$0xff] %vm1004_vm1, %v905_v21 }
 0x127   : > { %1010 = vst.msk [vmem:[%s1648_s8 + $0x28] sm:$0xff] %vm1004_vm1, %v897_v26  ;;  %v760_v35 = vadd.f32 %v1238_v24, %v1642_v50 }
 0x129   : > { %v1239_v28 = vpop.f32.mrb[24].mxu0  ;;  %v1331_v29 = vpop.f32.mrb[24].mxu1 }
 0x12a   : > { %v918_v31 = vadd.f32 %v1331_v29, %v757_v27  ;;  %v1240_v33 = vpop.f32.mrb[25].mxu0  ;;  %v909_v34 = vpop.f32.mrb[25].mxu1 }
 0x12b   : > { %v1241_v36 = vadd.f32 %v1240_v33, %v1239_v28  ;;  %v910_v38 = vadd.f32 %v909_v34, %v749_v30  ;;  %v1242_v39 = vpop.f32.mrb[26].mxu0  ;;  %v1332_v40 = vpop.f32.mrb[26].mxu1 }
 0x12c   : > { %1015 = vst.msk [vmem:[%s1648_s8 + $0x50] sm:$0xff] %vm1004_vm1, %v918_v31  ;;  %v921_v42 = vadd.f32 %v1332_v40, %v760_v35  ;;  %v1243_v43 = vpop.f32.mrb[27].mxu0  ;;  %v912_v45 = vpop.f32.mrb[27].mxu1 }
 0x12d   : > { %1013 = vst.msk [vmem:[%s1648_s8 + $0x40] sm:$0xff] %vm1004_vm1, %v910_v38  ;;  %v1244_v46 = vadd.f32 %v1243_v43, %v1242_v39  ;;  %v913_v47 = vadd.f32 %v912_v45, %v752_v41  ;;  %v765_v52 = vadd.f32 %v1241_v36, %v1642_v50  ;;  %v821_v36 = vadd.f32 %v1626_v20, %v1642_v50 }
 0x12e   : > { %1016 = vst.msk [vmem:[%s1648_s8 + $0x58] sm:$0xff] %vm1004_vm1, %v921_v42  ;;  %v813_v41 = vadd.f32 %v1622_v8, %v1642_v50 }
 0x12f   : > { %1014 = vst.msk [vmem:[%s1648_s8 + $0x48] sm:$0xff] %vm1004_vm1, %v913_v47  ;;  %v768_v59 = vadd.f32 %v1244_v46, %v1642_v50  ;;  %v824_v46 = vadd.f32 %v1628_v25, %v1642_v50 }
 0x131   : > { %v1245_v48 = vpop.f32.mrb[28].mxu0  ;;  %v1335_v51 = vpop.f32.mrb[28].mxu1 }
 0x132   : > { %v1246_v53 = vpop.f32.mrb[29].mxu0  ;;  %v925_v54 = vpop.f32.mrb[29].mxu1 }
 0x133   : > { %v1247_v55 = vadd.f32 %v1246_v53, %v1245_v48  ;;  %v926_v56 = vadd.f32 %v925_v54, %v765_v52  ;;  %v1248_v57 = vpop.f32.mrb[30].mxu0  ;;  %v1336_v58 = vpop.f32.mrb[30].mxu1  ;;  %v816_v52 = vadd.f32 %v1624_v13, %v1642_v50  ;;  %v837_v13 = vadd.f32 %v1634_v44, %v1642_v50 }
 0x134   : > { %v1249_v60 = vpop.f32.mrb[31].mxu0  ;;  %v928_v61 = vpop.f32.mrb[31].mxu1 }
 0x135   : > { %v773_v62 = vadd.f32 %v1247_v55, %v1642_v50  ;;  %1017 = vst.msk [vmem:[%s1648_s8 + $0x60] sm:$0xff] %vm1004_vm1, %v926_v56  ;;  %v1250_v63 = vadd.f32 %v1249_v60, %v1248_v57  ;;  %v929_v0 = vadd.f32 %v928_v61, %v768_v59 }
 0x137   : > { %v934_v1 = vadd.f32 %v1335_v51, %v773_v62  ;;  %v776_v2 = vadd.f32 %v1250_v63, %v1642_v50  ;;  %1018 = vst.msk [vmem:[%s1648_s8 + $0x68] sm:$0xff] %vm1004_vm1, %v929_v0  ;;  %v829_v62 = vadd.f32 %v1630_v32, %v1642_v50  ;;  %v832_v32 = vadd.f32 %v1632_v37, %v1642_v50 }
 0x139   : > { %1019 = vst.msk [vmem:[%s1648_s8 + $0x70] sm:$0xff] %vm1004_vm1, %v934_v1  ;;  %v937_v3 = vadd.f32 %v1336_v58, %v776_v2  ;;  %v1251_v4 = vpop.f32.mrb[32].mxu0  ;;  %v1339_v5 = vpop.f32.mrb[32].mxu1  ;;  %v840_v2 = vadd.f32 %v1636_v49, %v1642_v50 }
 0x13a   : > { %v1252_v6 = vpop.f32.mrb[33].mxu0  ;;  %v941_v7 = vpop.f32.mrb[33].mxu1 }
 0x13b   : > { %1020 = vst.msk [vmem:[%s1648_s8 + $0x78] sm:$0xff] %vm1004_vm1, %v937_v3  ;;  %v1253_v9 = vadd.f32 %v1252_v6, %v1251_v4  ;;  %v1254_v10 = vpop.f32.mrb[34].mxu0  ;;  %v1340_v11 = vpop.f32.mrb[34].mxu1 }
 0x13c   : > { %v1255_v12 = vpop.f32.mrb[35].mxu0  ;;  %v944_v14 = vpop.f32.mrb[35].mxu1 }
 0x13d   : > { %v781_v15 = vadd.f32 %v1253_v9, %v1642_v50  ;;  %v1256_v16 = vadd.f32 %v1255_v12, %v1254_v10 }
 0x13f   : > { %v942_v17 = vadd.f32 %v941_v7, %v781_v15  ;;  %v784_v18 = vadd.f32 %v1256_v16, %v1642_v50 }
 0x141   : > { %1021 = vst.msk [vmem:[%s1648_s8 + $0x80] sm:$0xff] %vm1004_vm1, %v942_v17  ;;  %v945_v19 = vadd.f32 %v944_v14, %v784_v18  ;;  %v1257_v21 = vpop.f32.mrb[36].mxu0  ;;  %v1701_v22 = vpop.f32.mrb[36].mxu1 }
 0x142   : > { %v1258_v23 = vpop.f32.mrb[37].mxu0  ;;  %v957_v24 = vpop.f32.mrb[37].mxu1 }
 0x143   : > { %1022 = vst.msk [vmem:[%s1648_s8 + $0x88] sm:$0xff] %vm1004_vm1, %v945_v19  ;;  %v1259_v26 = vadd.f32 %v1258_v23, %v1257_v21  ;;  %v1260_v27 = vpop.f32.mrb[38].mxu0  ;;  %v1705_v28 = vpop.f32.mrb[38].mxu1 }
 0x144   : > { %v1261_v29 = vpop.f32.mrb[39].mxu0  ;;  %v960_v30 = vpop.f32.mrb[39].mxu1 }
 0x145   : > { %v789_v31 = vadd.f32 %v1259_v26, %v1642_v50  ;;  %v1262_v33 = vadd.f32 %v1261_v29, %v1260_v27 }
 0x147   : > { %v950_v34 = vadd.f32 %v1339_v5, %v789_v31  ;;  %v792_v35 = vadd.f32 %v1262_v33, %v1642_v50 }
 0x149   : > { %1023 = vst.msk [vmem:[%s1648_s8 + $0x90] sm:$0xff] %vm1004_vm1, %v950_v34  ;;  %v953_v38 = vadd.f32 %v1340_v11, %v792_v35  ;;  %v1263_v39 = vpop.f32.mrb[40].mxu0  ;;  %v1347_v40 = vpop.f32.mrb[40].mxu1 }
 0x14a   : > { %v982_v42 = vadd.f32 %v1347_v40, %v821_v36  ;;  %v1264_v43 = vpop.f32.mrb[41].mxu0  ;;  %v973_v45 = vpop.f32.mrb[41].mxu1 }
 0x14b   : > { %1024 = vst.msk [vmem:[%s1648_s8 + $0x98] sm:$0xff] %vm1004_vm1, %v953_v38  ;;  %v1265_v20 = vadd.f32 %v1264_v43, %v1263_v39  ;;  %v974_v47 = vadd.f32 %v973_v45, %v813_v41  ;;  %v1266_v48 = vpop.f32.mrb[42].mxu0  ;;  %v1348_v51 = vpop.f32.mrb[42].mxu1 }
 0x14c   : > { %1031 = vst.msk [vmem:[%s1648_s8 + $0xd0] sm:$0xff] %vm1004_vm1, %v982_v42  ;;  %v985_v8 = vadd.f32 %v1348_v51, %v824_v46  ;;  %v1267_v53 = vpop.f32.mrb[43].mxu0  ;;  %v976_v54 = vpop.f32.mrb[43].mxu1 }
 0x14d   : > { %v797_v55 = vadd.f32 %v1265_v20, %v1642_v50  ;;  %1029 = vst.msk [vmem:[%s1648_s8 + $0xc0] sm:$0xff] %vm1004_vm1, %v974_v47  ;;  %v1268_v25 = vadd.f32 %v1267_v53, %v1266_v48  ;;  %v977_v56 = vadd.f32 %v976_v54, %v816_v52 }
 0x14e   : > { %1032 = vst.msk [vmem:[%s1648_s8 + $0xd8] sm:$0xff] %vm1004_vm1, %v985_v8 }
 0x14f   : > { %v958_v57 = vadd.f32 %v957_v24, %v797_v55  ;;  %v800_v58 = vadd.f32 %v1268_v25, %v1642_v50  ;;  %1030 = vst.msk [vmem:[%s1648_s8 + $0xc8] sm:$0xff] %vm1004_vm1, %v977_v56 }
 0x151   : > { %1025 = vst.msk [vmem:[%s1648_s8 + $0xa0] sm:$0xff] %vm1004_vm1, %v958_v57  ;;  %v961_v59 = vadd.f32 %v960_v30, %v800_v58  ;;  %v1269_v60 = vpop.f32.mrb[44].mxu0  ;;  %v1351_v61 = vpop.f32.mrb[44].mxu1 }
 0x152   : > { %v998_v63 = vadd.f32 %v1351_v61, %v837_v13  ;;  %v1270_v0 = vpop.f32.mrb[45].mxu0  ;;  %v989_v1 = vpop.f32.mrb[45].mxu1 }
 0x153   : > { %1026 = vst.msk [vmem:[%s1648_s8 + $0xa8] sm:$0xff] %vm1004_vm1, %v961_v59  ;;  %v1271_v44 = vadd.f32 %v1270_v0, %v1269_v60  ;;  %v990_v3 = vadd.f32 %v989_v1, %v829_v62  ;;  %v1272_v4 = vpop.f32.mrb[46].mxu0  ;;  %v1352_v5 = vpop.f32.mrb[46].mxu1 }
 0x154   : > { %1035 = vst.msk [vmem:[%s1648_s8 + $0xf0] sm:$0xff] %vm1004_vm1, %v998_v63  ;;  %v1001_v6 = vadd.f32 %v1352_v5, %v840_v2  ;;  %v1273_v7 = vpop.f32.mrb[47].mxu0  ;;  %v992_v9 = vpop.f32.mrb[47].mxu1 }
 0x155   : > { %v805_v10 = vadd.f32 %v1271_v44, %v1642_v50  ;;  %1033 = vst.msk [vmem:[%s1648_s8 + $0xe0] sm:$0xff] %vm1004_vm1, %v990_v3  ;;  %v1274_v49 = vadd.f32 %v1273_v7, %v1272_v4  ;;  %v993_v11 = vadd.f32 %v992_v9, %v832_v32 }
 0x156   : > { %1036 = vst.msk [vmem:[%s1648_s8 + $0xf8] sm:$0xff] %vm1004_vm1, %v1001_v6 }
 0x157   : > { %v966_v12 = vadd.f32 %v1701_v22, %v805_v10  ;;  %v808_v14 = vadd.f32 %v1274_v49, %v1642_v50  ;;  %1034 = vst.msk [vmem:[%s1648_s8 + $0xe8] sm:$0xff] %vm1004_vm1, %v993_v11 }
 0x159   : > { %1027 = vst.msk [vmem:[%s1648_s8 + $0xb0] sm:$0xff] %vm1004_vm1, %v966_v12  ;;  %v969_v37 = vadd.f32 %v1705_v28, %v808_v14 }
 0x15b   : > { %1028 = vst.msk [vmem:[%s1648_s8 + $0xb8] sm:$0xff] %vm1004_vm1, %v969_v37 }
 0x15c PF: > { %s13_s12 = sadd.s32 1, %s1466_s12  }
 0x15d   : > { %p10_p4 = scmp.ge.s32.totalorder %s13_s12, 4  }
 0x15f   :  { %12 = sbr.rel (!%p10_p4) target bundleno = 1 (0x1), region = 62 }

// kernel: unet_forward.117
= control target key start
LH: loop header
LB: loop body
LE: loop exit
PB: predicated region body
PF: predicated region fallthrough
CT: control target
= control target key end

     0   :  { %s767_s12 = smov 0   ;;  %s931_s0 = inlined_call_operand.vmem [shape: bf16[512,32], index: 0, kind: input, shape index: {}]   ;;  %s932_s1 = inlined_call_operand.vmem [shape: bf16[32,16], index: 1, kind: input, shape index: {}]   ;;  %s933_s2 = inlined_call_operand.vmem [shape: f32[1,16], index: 2, kind: input, shape index: {}]   ;;  %s934_s3 = inlined_call_operand.vmem [shape: f32[512,16], index: 3, kind: output, shape index: {}]  }
   0x1 LB: > { %s609_s13 = sadd.s32 4294967295, %s745_s12   ;;  %p613_p0 = scmp.ge.s32.totalorder %s745_s12, 1  ;;  %s745_s12 = sphi %s767_s12, %s13_s12  }
   0x2   : > { %p138_p1 = scmp.lt.s32.totalorder %s745_s12, 3 }
   0x4   : > { %p139_p2 = pnand %p613_p0, %p138_p1 }
   0x5   : > { %v721_v0 = vld [vmem:[%s932_s1] sm:$0xff] (!%p139_p2)   ;;  %s614_s16 = sshll.u32 (!%p139_p2), %s609_s13, 5  ;;  %v722_v1 = vld [vmem:[%s932_s1 + $0x8] sm:$0xff] (!%p139_p2)   ;;  %vm310_vm0 = vcmask (!%p139_p2), 261120   ;;  %vm520_vm1 = vcmask (!%p139_p2), 130048  }
   0x6   : > { %142 = sbr.rel (%p139_p2) target bundleno = 261 (0x105), region = 32  ;;  %p163_p3 = scmp.lt.s32.totalorder (!%p139_p2), %s614_s16, 63  ;;  %673 = vmatprep.subr.bf16.mxu0 (!%p139_p2), %v721_v0  ;;  %709 = vmatprep.subr.bf16.mxu1 (!%p139_p2), %v721_v0  ;;  %v825_v18 = vld [vmem:[%s933_s2] ss:$0 sm:$0xff] (!%p139_p2) }
   0x7   : > { %674 = vmatpush3.bf16.msra.mxu0 (!%p139_p2), %v721_v0  ;;  %711 = vmatpush3.bf16.msra.mxu1 (!%p139_p2), %v721_v0 }
   0x8   : > { %675 = vmatprep.subr.bf16.mxu0 (!%p139_p2), %v722_v1  ;;  %710 = vmatprep.subr.bf16.mxu1 (!%p139_p2), %v722_v1 }
   0xb   : > { %676 = vmatpush3.bf16.msra.mxu0 (!%p139_p2), %v722_v1  ;;  %712 = vmatpush3.bf16.msra.mxu1 (!%p139_p2), %v722_v1 }
   0xd   : > { %s936_s16 = smov (!%p163_p3, %s614_s16), 63 }
   0xe   : > { %s615_s19 = sshll.u32 %s936_s16, 2  ;;  %s617_s23 = sshll.u32 %s936_s16, 3 }
   0xf   : > { %s787_s22 = scalar_lea.vmem %s931_s0, %s615_s19  ;;  %s830_s28 = scalar_lea.vmem %s934_s3, %s617_s23 }
  0x10   : > { %v723_v2 = vld [vmem:[%s787_s22] sm:$0xff]   ;;  %v725_v4 = vld [vmem:[%s787_s22 + $0x8] sm:$0xff]   ;;  %v727_v6 = vld [vmem:[%s787_s22 + $0x10] sm:$0xff]  }
  0x11   : > { %v724_v3 = vld [vmem:[%s787_s22 + $0x40] sm:$0xff]   ;;  %677 = vmatprep.mubr.msk.bf16.mxu0 %vm310_vm0, %v723_v2  ;;  %v726_v5 = vld [vmem:[%s787_s22 + $0x48] sm:$0xff]   ;;  %v728_v7 = vld [vmem:[%s787_s22 + $0x50] sm:$0xff]  }
  0x12   : > { %693 = vmatprep.mubr.msk.bf16.mxu1 %vm310_vm0, %v724_v3  ;;  %678 = vmatmul.mubr.msk.bf16.vlgmr.msra.gmra.mrb[0].mxu0 %vm310_vm0, %v725_v4  ;;  %v729_v8 = vld [vmem:[%s787_s22 + $0x18] sm:$0xff]   ;;  %v731_v10 = vld [vmem:[%s787_s22 + $0x20] sm:$0xff]   ;;  %v733_v12 = vld [vmem:[%s787_s22 + $0x28] sm:$0xff]  }
  0x13   : > { %694 = vmatmul.mubr.msk.bf16.vlgmr.msra.gmra.mrb[0].mxu1 %vm310_vm0, %v726_v5  ;;  %681 = vmatprep.mubr.msk.bf16.mxu0 %vm310_vm0, %v727_v6  ;;  %v730_v9 = vld [vmem:[%s787_s22 + $0x58] sm:$0xff]   ;;  %v732_v11 = vld [vmem:[%s787_s22 + $0x60] sm:$0xff]   ;;  %v734_v13 = vld [vmem:[%s787_s22 + $0x68] sm:$0xff]  }
  0x14   : > { %697 = vmatprep.mubr.msk.bf16.mxu1 %vm310_vm0, %v728_v7  ;;  %v735_v14 = vld [vmem:[%s787_s22 + $0x30] sm:$0xff]   ;;  %v737_v16 = vld [vmem:[%s787_s22 + $0x38] sm:$0xff]  }
  0x15   : > { %v736_v15 = vld [vmem:[%s787_s22 + $0x70] sm:$0xff]   ;;  %v738_v17 = vld [vmem:[%s787_s22 + $0x78] sm:$0xff]  }
  0x1a   : > { %682 = vmatmul.mubr.msk.bf16.gmra.mrb[4].mxu0 %vm310_vm0, %v729_v8 }
  0x1b   : > { %698 = vmatmul.mubr.msk.bf16.gmra.mrb[4].mxu1 %vm310_vm0, %v730_v9  ;;  %685 = vmatprep.mubr.msk.bf16.mxu0 %vm310_vm0, %v731_v10 }
  0x1c   : > { %701 = vmatprep.mubr.msk.bf16.mxu1 %vm310_vm0, %v732_v11 }
  0x22   : > { %686 = vmatmul.mubr.msk.bf16.gmra.mrb[8].mxu0 %vm310_vm0, %v733_v12 }
  0x23   : > { %702 = vmatmul.mubr.msk.bf16.gmra.mrb[8].mxu1 %vm310_vm0, %v734_v13  ;;  %689 = vmatprep.mubr.msk.bf16.mxu0 %vm310_vm0, %v735_v14 }
  0x24   : > { %705 = vmatprep.mubr.msk.bf16.mxu1 %vm310_vm0, %v736_v15 }
  0x2a   : > { %690 = vmatmul.mubr.msk.bf16.gmra.mrb[12].mxu0 %vm310_vm0, %v737_v16 }
  0x2b   : > { %706 = vmatmul.mubr.msk.bf16.gmra.mrb[12].mxu1 %vm310_vm0, %v738_v17 }
  0xe5   : > { %v679_v19 = vpop.f32.mrb[0].mxu0 }
  0xe6   : > { %v402_v20 = vadd.f32 %v679_v19, %v825_v18  ;;  %v695_v21 = vpop.f32.mrb[0].mxu1  ;;  %v393_v22 = vpop.f32.mrb[1].mxu0 }
  0xe7   : > { %v466_v23 = vadd.f32 %v695_v21, %v825_v18  ;;  %v394_v24 = vadd.f32 %v825_v18, %v393_v22  ;;  %v457_v25 = vpop.f32.mrb[1].mxu1  ;;  %v680_v26 = vpop.f32.mrb[2].mxu0 }
  0xe8   : > { %523 = vst.msk [vmem:[%s830_s28 + $0x10] sm:$0xff] %vm520_vm1, %v402_v20  ;;  %v458_v27 = vadd.f32 %v825_v18, %v457_v25  ;;  %v405_v28 = vadd.f32 %v680_v26, %v825_v18  ;;  %v696_v29 = vpop.f32.mrb[2].mxu1  ;;  %v396_v30 = vpop.f32.mrb[3].mxu0 }
  0xe9   : > { %539 = vst.msk [vmem:[%s830_s28 + $0x90] sm:$0xff] %vm520_vm1, %v466_v23  ;;  %521 = vst.msk [vmem:[%s830_s28] sm:$0xff] %vm520_vm1, %v394_v24  ;;  %v469_v31 = vadd.f32 %v696_v29, %v825_v18  ;;  %v397_v32 = vadd.f32 %v825_v18, %v396_v30  ;;  %v460_v33 = vpop.f32.mrb[3].mxu1 }
  0xea   : > { %537 = vst.msk [vmem:[%s830_s28 + $0x80] sm:$0xff] %vm520_vm1, %v458_v27  ;;  %524 = vst.msk [vmem:[%s830_s28 + $0x18] sm:$0xff] %vm520_vm1, %v405_v28  ;;  %v461_v34 = vadd.f32 %v825_v18, %v460_v33 }
  0xeb   : > { %540 = vst.msk [vmem:[%s830_s28 + $0x98] sm:$0xff] %vm520_vm1, %v469_v31  ;;  %522 = vst.msk [vmem:[%s830_s28 + $0x8] sm:$0xff] %vm520_vm1, %v397_v32 }
  0xec   : > { %538 = vst.msk [vmem:[%s830_s28 + $0x88] sm:$0xff] %vm520_vm1, %v461_v34 }
  0xed   : > { %v683_v35 = vpop.f32.mrb[4].mxu0 }
  0xee   : > { %v418_v36 = vadd.f32 %v683_v35, %v825_v18  ;;  %v699_v37 = vpop.f32.mrb[4].mxu1  ;;  %v409_v38 = vpop.f32.mrb[5].mxu0 }
  0xef   : > { %v482_v39 = vadd.f32 %v699_v37, %v825_v18  ;;  %v410_v40 = vadd.f32 %v825_v18, %v409_v38  ;;  %v473_v41 = vpop.f32.mrb[5].mxu1  ;;  %v684_v42 = vpop.f32.mrb[6].mxu0 }
  0xf0   : > { %527 = vst.msk [vmem:[%s830_s28 + $0x30] sm:$0xff] %vm520_vm1, %v418_v36  ;;  %v474_v43 = vadd.f32 %v825_v18, %v473_v41  ;;  %v421_v44 = vadd.f32 %v684_v42, %v825_v18  ;;  %v700_v45 = vpop.f32.mrb[6].mxu1  ;;  %v412_v46 = vpop.f32.mrb[7].mxu0 }
  0xf1   : > { %543 = vst.msk [vmem:[%s830_s28 + $0xb0] sm:$0xff] %vm520_vm1, %v482_v39  ;;  %525 = vst.msk [vmem:[%s830_s28 + $0x20] sm:$0xff] %vm520_vm1, %v410_v40  ;;  %v485_v47 = vadd.f32 %v700_v45, %v825_v18  ;;  %v413_v48 = vadd.f32 %v825_v18, %v412_v46  ;;  %v476_v49 = vpop.f32.mrb[7].mxu1 }
  0xf2   : > { %541 = vst.msk [vmem:[%s830_s28 + $0xa0] sm:$0xff] %vm520_vm1, %v474_v43  ;;  %528 = vst.msk [vmem:[%s830_s28 + $0x38] sm:$0xff] %vm520_vm1, %v421_v44  ;;  %v477_v50 = vadd.f32 %v825_v18, %v476_v49 }
  0xf3   : > { %544 = vst.msk [vmem:[%s830_s28 + $0xb8] sm:$0xff] %vm520_vm1, %v485_v47  ;;  %526 = vst.msk [vmem:[%s830_s28 + $0x28] sm:$0xff] %vm520_vm1, %v413_v48 }
  0xf4   : > { %542 = vst.msk [vmem:[%s830_s28 + $0xa8] sm:$0xff] %vm520_vm1, %v477_v50 }
  0xf5   : > { %v687_v51 = vpop.f32.mrb[8].mxu0 }
  0xf6   : > { %v434_v52 = vadd.f32 %v687_v51, %v825_v18  ;;  %v703_v53 = vpop.f32.mrb[8].mxu1  ;;  %v425_v54 = vpop.f32.mrb[9].mxu0 }
  0xf7   : > { %v498_v55 = vadd.f32 %v703_v53, %v825_v18  ;;  %v426_v56 = vadd.f32 %v825_v18, %v425_v54  ;;  %v489_v57 = vpop.f32.mrb[9].mxu1  ;;  %v688_v58 = vpop.f32.mrb[10].mxu0 }
  0xf8   : > { %531 = vst.msk [vmem:[%s830_s28 + $0x50] sm:$0xff] %vm520_vm1, %v434_v52  ;;  %v490_v59 = vadd.f32 %v825_v18, %v489_v57  ;;  %v437_v60 = vadd.f32 %v688_v58, %v825_v18  ;;  %v704_v61 = vpop.f32.mrb[10].mxu1  ;;  %v428_v62 = vpop.f32.mrb[11].mxu0 }
  0xf9   : > { %547 = vst.msk [vmem:[%s830_s28 + $0xd0] sm:$0xff] %vm520_vm1, %v498_v55  ;;  %529 = vst.msk [vmem:[%s830_s28 + $0x40] sm:$0xff] %vm520_vm1, %v426_v56  ;;  %v501_v63 = vadd.f32 %v704_v61, %v825_v18  ;;  %v429_v0 = vadd.f32 %v825_v18, %v428_v62  ;;  %v492_v1 = vpop.f32.mrb[11].mxu1 }
  0xfa   : > { %545 = vst.msk [vmem:[%s830_s28 + $0xc0] sm:$0xff] %vm520_vm1, %v490_v59  ;;  %532 = vst.msk [vmem:[%s830_s28 + $0x58] sm:$0xff] %vm520_vm1, %v437_v60  ;;  %v493_v2 = vadd.f32 %v825_v18, %v492_v1 }
  0xfb   : > { %548 = vst.msk [vmem:[%s830_s28 + $0xd8] sm:$0xff] %vm520_vm1, %v501_v63  ;;  %530 = vst.msk [vmem:[%s830_s28 + $0x48] sm:$0xff] %vm520_vm1, %v429_v0 }
  0xfc   : > { %546 = vst.msk [vmem:[%s830_s28 + $0xc8] sm:$0xff] %vm520_vm1, %v493_v2 }
  0xfd   : > { %v691_v3 = vpop.f32.mrb[12].mxu0 }
  0xfe   : > { %v450_v4 = vadd.f32 %v691_v3, %v825_v18  ;;  %v707_v5 = vpop.f32.mrb[12].mxu1  ;;  %v441_v6 = vpop.f32.mrb[13].mxu0 }
  0xff   : > { %v514_v7 = vadd.f32 %v707_v5, %v825_v18  ;;  %v442_v8 = vadd.f32 %v825_v18, %v441_v6  ;;  %v505_v9 = vpop.f32.mrb[13].mxu1  ;;  %v692_v10 = vpop.f32.mrb[14].mxu0 }
 0x100   : > { %535 = vst.msk [vmem:[%s830_s28 + $0x70] sm:$0xff] %vm520_vm1, %v450_v4  ;;  %v506_v11 = vadd.f32 %v825_v18, %v505_v9  ;;  %v453_v12 = vadd.f32 %v692_v10, %v825_v18  ;;  %v708_v13 = vpop.f32.mrb[14].mxu1  ;;  %v444_v14 = vpop.f32.mrb[15].mxu0 }
 0x101   : > { %551 = vst.msk [vmem:[%s830_s28 + $0xf0] sm:$0xff] %vm520_vm1, %v514_v7  ;;  %533 = vst.msk [vmem:[%s830_s28 + $0x60] sm:$0xff] %vm520_vm1, %v442_v8  ;;  %v517_v15 = vadd.f32 %v708_v13, %v825_v18  ;;  %v445_v16 = vadd.f32 %v825_v18, %v444_v14  ;;  %v508_v17 = vpop.f32.mrb[15].mxu1 }
 0x102   : > { %549 = vst.msk [vmem:[%s830_s28 + $0xe0] sm:$0xff] %vm520_vm1, %v506_v11  ;;  %536 = vst.msk [vmem:[%s830_s28 + $0x78] sm:$0xff] %vm520_vm1, %v453_v12  ;;  %v509_v19 = vadd.f32 %v825_v18, %v508_v17 }
 0x103   : > { %552 = vst.msk [vmem:[%s830_s28 + $0xf8] sm:$0xff] %vm520_vm1, %v517_v15  ;;  %534 = vst.msk [vmem:[%s830_s28 + $0x68] sm:$0xff] %vm520_vm1, %v445_v16 }
 0x104   : > { %550 = vst.msk [vmem:[%s830_s28 + $0xe8] sm:$0xff] %vm520_vm1, %v509_v19 }
 0x105 PF: > { %s13_s12 = sadd.s32 1, %s745_s12  }
 0x106   : > { %p10_p4 = scmp.ge.s32.totalorder %s13_s12, 4  }
 0x108   :  { %12 = sbr.rel (!%p10_p4) target bundleno = 1 (0x1), region = 62 }

// kernel: unet_forward.131
= control target key start
LH: loop header
LB: loop body
LE: loop exit
PB: predicated region body
PF: predicated region fallthrough
CT: control target
= control target key end

     0   :  { %s752_s12 = smov 0   ;;  %s913_s0 = inlined_call_operand.vmem [shape: bf16[512,16], index: 0, kind: input, shape index: {}]   ;;  %s914_s1 = inlined_call_operand.vmem [shape: bf16[16,3], index: 1, kind: input, shape index: {}]   ;;  %s915_s2 = inlined_call_operand.vmem [shape: f32[1,3], index: 2, kind: input, shape index: {}]   ;;  %s916_s3 = inlined_call_operand.vmem [shape: f32[512,3], index: 3, kind: output, shape index: {}]  }
   0x1 LB: > { %s601_s13 = sadd.s32 4294967295, %s730_s12   ;;  %p605_p0 = scmp.ge.s32.totalorder %s730_s12, 1  ;;  %s730_s12 = sphi %s752_s12, %s13_s12  }
   0x2   : > { %p138_p1 = scmp.lt.s32.totalorder %s730_s12, 3 }
   0x4   : > { %p139_p2 = pnand %p605_p0, %p138_p1 }
   0x5   : > { %v707_v0 = vld [vmem:[%s914_s1] sm:$0xff] (!%p139_p2)   ;;  %s606_s16 = sshll.u32 (!%p139_p2), %s601_s13, 5  ;;  %vm302_vm0 = vcmask (!%p139_p2), 130048   ;;  %vm512_vm1 = vcmask (!%p139_p2), 23552  }
   0x6   : > { %142 = sbr.rel (%p139_p2) target bundleno = 261 (0x105), region = 32  ;;  %p163_p3 = scmp.lt.s32.totalorder (!%p139_p2), %s606_s16, 63  ;;  %663 = vmatprep.subr.bf16.mxu0 (!%p139_p2), %v707_v0  ;;  %697 = vmatprep.subr.bf16.mxu1 (!%p139_p2), %v707_v0  ;;  %v807_v17 = vld [vmem:[%s915_s2] ss:$0 sm:$0xff] (!%p139_p2) }
   0x7   : > { %664 = vmatpush3.bf16.msra.mxu0 (!%p139_p2), %v707_v0  ;;  %698 = vmatpush3.bf16.msra.mxu1 (!%p139_p2), %v707_v0 }
   0xd   : > { %s918_s16 = smov (!%p163_p3, %s606_s16), 63 }
   0xe   : > { %s607_s17 = sshll.u32 %s918_s16, 2  ;;  %s609_s21 = sshll.u32 %s918_s16, 3 }
   0xf   : > { %s769_s20 = scalar_lea.vmem %s913_s0, %s607_s17  ;;  %s812_s26 = scalar_lea.vmem %s916_s3, %s609_s21 }
  0x10   : > { %v708_v1 = vld [vmem:[%s769_s20] sm:$0xff]   ;;  %v710_v3 = vld [vmem:[%s769_s20 + $0x8] sm:$0xff]   ;;  %v712_v5 = vld [vmem:[%s769_s20 + $0x10] sm:$0xff]  }
  0x11   : > { %v709_v2 = vld [vmem:[%s769_s20 + $0x40] sm:$0xff]   ;;  %665 = vmatprep.mubr.msk.bf16.mxu0 %vm302_vm0, %v708_v1  ;;  %v711_v4 = vld [vmem:[%s769_s20 + $0x48] sm:$0xff]   ;;  %v713_v6 = vld [vmem:[%s769_s20 + $0x50] sm:$0xff]  }
  0x12   : > { %681 = vmatprep.mubr.msk.bf16.mxu1 %vm302_vm0, %v709_v2  ;;  %666 = vmatmul.mubr.msk.bf16.vlgmr.msra.gmra.mrb[0].mxu0 %vm302_vm0, %v710_v3  ;;  %v714_v7 = vld [vmem:[%s769_s20 + $0x18] sm:$0xff]   ;;  %v716_v9 = vld [vmem:[%s769_s20 + $0x20] sm:$0xff]   ;;  %v718_v11 = vld [vmem:[%s769_s20 + $0x28] sm:$0xff]  }
  0x13   : > { %682 = vmatmul.mubr.msk.bf16.vlgmr.msra.gmra.mrb[0].mxu1 %vm302_vm0, %v711_v4  ;;  %669 = vmatprep.mubr.msk.bf16.mxu0 %vm302_vm0, %v712_v5  ;;  %v715_v8 = vld [vmem:[%s769_s20 + $0x58] sm:$0xff]   ;;  %v717_v10 = vld [vmem:[%s769_s20 + $0x60] sm:$0xff]   ;;  %v719_v12 = vld [vmem:[%s769_s20 + $0x68] sm:$0xff]  }
  0x14   : > { %685 = vmatprep.mubr.msk.bf16.mxu1 %vm302_vm0, %v713_v6  ;;  %v720_v13 = vld [vmem:[%s769_s20 + $0x30] sm:$0xff]   ;;  %v722_v15 = vld [vmem:[%s769_s20 + $0x38] sm:$0xff]  }
  0x15   : > { %v721_v14 = vld [vmem:[%s769_s20 + $0x70] sm:$0xff]   ;;  %v723_v16 = vld [vmem:[%s769_s20 + $0x78] sm:$0xff]  }
  0x1a   : > { %670 = vmatmul.mubr.msk.bf16.gmra.mrb[4].mxu0 %vm302_vm0, %v714_v7 }
  0x1b   : > { %686 = vmatmul.mubr.msk.bf16.gmra.mrb[4].mxu1 %vm302_vm0, %v715_v8  ;;  %673 = vmatprep.mubr.msk.bf16.mxu0 %vm302_vm0, %v716_v9 }
  0x1c   : > { %689 = vmatprep.mubr.msk.bf16.mxu1 %vm302_vm0, %v717_v10 }
  0x22   : > { %674 = vmatmul.mubr.msk.bf16.gmra.mrb[8].mxu0 %vm302_vm0, %v718_v11 }
  0x23   : > { %690 = vmatmul.mubr.msk.bf16.gmra.mrb[8].mxu1 %vm302_vm0, %v719_v12  ;;  %677 = vmatprep.mubr.msk.bf16.mxu0 %vm302_vm0, %v720_v13 }
  0x24   : > { %693 = vmatprep.mubr.msk.bf16.mxu1 %vm302_vm0, %v721_v14 }
  0x2a   : > { %678 = vmatmul.mubr.msk.bf16.gmra.mrb[12].mxu0 %vm302_vm0, %v722_v15 }
  0x2b   : > { %694 = vmatmul.mubr.msk.bf16.gmra.mrb[12].mxu1 %vm302_vm0, %v723_v16 }
  0xe5   : > { %v667_v18 = vpop.f32.mrb[0].mxu0 }
  0xe6   : > { %v394_v19 = vadd.f32 %v667_v18, %v807_v17  ;;  %v683_v20 = vpop.f32.mrb[0].mxu1  ;;  %v385_v21 = vpop.f32.mrb[1].mxu0 }
  0xe7   : > { %v458_v22 = vadd.f32 %v683_v20, %v807_v17  ;;  %v386_v23 = vadd.f32 %v807_v17, %v385_v21  ;;  %v449_v24 = vpop.f32.mrb[1].mxu1  ;;  %v668_v25 = vpop.f32.mrb[2].mxu0 }
  0xe8   : > { %515 = vst.msk [vmem:[%s812_s26 + $0x10] sm:$0xff] %vm512_vm1, %v394_v19  ;;  %v450_v26 = vadd.f32 %v807_v17, %v449_v24  ;;  %v397_v27 = vadd.f32 %v668_v25, %v807_v17  ;;  %v684_v28 = vpop.f32.mrb[2].mxu1  ;;  %v388_v29 = vpop.f32.mrb[3].mxu0 }
  0xe9   : > { %531 = vst.msk [vmem:[%s812_s26 + $0x90] sm:$0xff] %vm512_vm1, %v458_v22  ;;  %513 = vst.msk [vmem:[%s812_s26] sm:$0xff] %vm512_vm1, %v386_v23  ;;  %v461_v30 = vadd.f32 %v684_v28, %v807_v17  ;;  %v389_v31 = vadd.f32 %v807_v17, %v388_v29  ;;  %v452_v32 = vpop.f32.mrb[3].mxu1 }
  0xea   : > { %529 = vst.msk [vmem:[%s812_s26 + $0x80] sm:$0xff] %vm512_vm1, %v450_v26  ;;  %516 = vst.msk [vmem:[%s812_s26 + $0x18] sm:$0xff] %vm512_vm1, %v397_v27  ;;  %v453_v33 = vadd.f32 %v807_v17, %v452_v32 }
  0xeb   : > { %532 = vst.msk [vmem:[%s812_s26 + $0x98] sm:$0xff] %vm512_vm1, %v461_v30  ;;  %514 = vst.msk [vmem:[%s812_s26 + $0x8] sm:$0xff] %vm512_vm1, %v389_v31 }
  0xec   : > { %530 = vst.msk [vmem:[%s812_s26 + $0x88] sm:$0xff] %vm512_vm1, %v453_v33 }
  0xed   : > { %v671_v34 = vpop.f32.mrb[4].mxu0 }
  0xee   : > { %v410_v35 = vadd.f32 %v671_v34, %v807_v17  ;;  %v687_v36 = vpop.f32.mrb[4].mxu1  ;;  %v401_v37 = vpop.f32.mrb[5].mxu0 }
  0xef   : > { %v474_v38 = vadd.f32 %v687_v36, %v807_v17  ;;  %v402_v39 = vadd.f32 %v807_v17, %v401_v37  ;;  %v465_v40 = vpop.f32.mrb[5].mxu1  ;;  %v672_v41 = vpop.f32.mrb[6].mxu0 }
  0xf0   : > { %519 = vst.msk [vmem:[%s812_s26 + $0x30] sm:$0xff] %vm512_vm1, %v410_v35  ;;  %v466_v42 = vadd.f32 %v807_v17, %v465_v40  ;;  %v413_v43 = vadd.f32 %v672_v41, %v807_v17  ;;  %v688_v44 = vpop.f32.mrb[6].mxu1  ;;  %v404_v45 = vpop.f32.mrb[7].mxu0 }
  0xf1   : > { %535 = vst.msk [vmem:[%s812_s26 + $0xb0] sm:$0xff] %vm512_vm1, %v474_v38  ;;  %517 = vst.msk [vmem:[%s812_s26 + $0x20] sm:$0xff] %vm512_vm1, %v402_v39  ;;  %v477_v46 = vadd.f32 %v688_v44, %v807_v17  ;;  %v405_v47 = vadd.f32 %v807_v17, %v404_v45  ;;  %v468_v48 = vpop.f32.mrb[7].mxu1 }
  0xf2   : > { %533 = vst.msk [vmem:[%s812_s26 + $0xa0] sm:$0xff] %vm512_vm1, %v466_v42  ;;  %520 = vst.msk [vmem:[%s812_s26 + $0x38] sm:$0xff] %vm512_vm1, %v413_v43  ;;  %v469_v49 = vadd.f32 %v807_v17, %v468_v48 }
  0xf3   : > { %536 = vst.msk [vmem:[%s812_s26 + $0xb8] sm:$0xff] %vm512_vm1, %v477_v46  ;;  %518 = vst.msk [vmem:[%s812_s26 + $0x28] sm:$0xff] %vm512_vm1, %v405_v47 }
  0xf4   : > { %534 = vst.msk [vmem:[%s812_s26 + $0xa8] sm:$0xff] %vm512_vm1, %v469_v49 }
  0xf5   : > { %v675_v50 = vpop.f32.mrb[8].mxu0 }
  0xf6   : > { %v426_v51 = vadd.f32 %v675_v50, %v807_v17  ;;  %v691_v52 = vpop.f32.mrb[8].mxu1  ;;  %v417_v53 = vpop.f32.mrb[9].mxu0 }
  0xf7   : > { %v490_v54 = vadd.f32 %v691_v52, %v807_v17  ;;  %v418_v55 = vadd.f32 %v807_v17, %v417_v53  ;;  %v481_v56 = vpop.f32.mrb[9].mxu1  ;;  %v676_v57 = vpop.f32.mrb[10].mxu0 }
  0xf8   : > { %523 = vst.msk [vmem:[%s812_s26 + $0x50] sm:$0xff] %vm512_vm1, %v426_v51  ;;  %v482_v58 = vadd.f32 %v807_v17, %v481_v56  ;;  %v429_v59 = vadd.f32 %v676_v57, %v807_v17  ;;  %v692_v60 = vpop.f32.mrb[10].mxu1  ;;  %v420_v61 = vpop.f32.mrb[11].mxu0 }
  0xf9   : > { %539 = vst.msk [vmem:[%s812_s26 + $0xd0] sm:$0xff] %vm512_vm1, %v490_v54  ;;  %521 = vst.msk [vmem:[%s812_s26 + $0x40] sm:$0xff] %vm512_vm1, %v418_v55  ;;  %v493_v62 = vadd.f32 %v692_v60, %v807_v17  ;;  %v421_v63 = vadd.f32 %v807_v17, %v420_v61  ;;  %v484_v0 = vpop.f32.mrb[11].mxu1 }
  0xfa   : > { %537 = vst.msk [vmem:[%s812_s26 + $0xc0] sm:$0xff] %vm512_vm1, %v482_v58  ;;  %524 = vst.msk [vmem:[%s812_s26 + $0x58] sm:$0xff] %vm512_vm1, %v429_v59  ;;  %v485_v1 = vadd.f32 %v807_v17, %v484_v0 }
  0xfb   : > { %540 = vst.msk [vmem:[%s812_s26 + $0xd8] sm:$0xff] %vm512_vm1, %v493_v62  ;;  %522 = vst.msk [vmem:[%s812_s26 + $0x48] sm:$0xff] %vm512_vm1, %v421_v63 }
  0xfc   : > { %538 = vst.msk [vmem:[%s812_s26 + $0xc8] sm:$0xff] %vm512_vm1, %v485_v1 }
  0xfd   : > { %v679_v2 = vpop.f32.mrb[12].mxu0 }
  0xfe   : > { %v442_v3 = vadd.f32 %v679_v2, %v807_v17  ;;  %v695_v4 = vpop.f32.mrb[12].mxu1  ;;  %v433_v5 = vpop.f32.mrb[13].mxu0 }
  0xff   : > { %v506_v6 = vadd.f32 %v695_v4, %v807_v17  ;;  %v434_v7 = vadd.f32 %v807_v17, %v433_v5  ;;  %v497_v8 = vpop.f32.mrb[13].mxu1  ;;  %v680_v9 = vpop.f32.mrb[14].mxu0 }
 0x100   : > { %527 = vst.msk [vmem:[%s812_s26 + $0x70] sm:$0xff] %vm512_vm1, %v442_v3  ;;  %v498_v10 = vadd.f32 %v807_v17, %v497_v8  ;;  %v445_v11 = vadd.f32 %v680_v9, %v807_v17  ;;  %v696_v12 = vpop.f32.mrb[14].mxu1  ;;  %v436_v13 = vpop.f32.mrb[15].mxu0 }
 0x101   : > { %543 = vst.msk [vmem:[%s812_s26 + $0xf0] sm:$0xff] %vm512_vm1, %v506_v6  ;;  %525 = vst.msk [vmem:[%s812_s26 + $0x60] sm:$0xff] %vm512_vm1, %v434_v7  ;;  %v509_v14 = vadd.f32 %v696_v12, %v807_v17  ;;  %v437_v15 = vadd.f32 %v807_v17, %v436_v13  ;;  %v500_v16 = vpop.f32.mrb[15].mxu1 }
 0x102   : > { %541 = vst.msk [vmem:[%s812_s26 + $0xe0] sm:$0xff] %vm512_vm1, %v498_v10  ;;  %528 = vst.msk [vmem:[%s812_s26 + $0x78] sm:$0xff] %vm512_vm1, %v445_v11  ;;  %v501_v18 = vadd.f32 %v807_v17, %v500_v16 }
 0x103   : > { %544 = vst.msk [vmem:[%s812_s26 + $0xf8] sm:$0xff] %vm512_vm1, %v509_v14  ;;  %526 = vst.msk [vmem:[%s812_s26 + $0x68] sm:$0xff] %vm512_vm1, %v437_v15 }
 0x104   : > { %542 = vst.msk [vmem:[%s812_s26 + $0xe8] sm:$0xff] %vm512_vm1, %v501_v18 }
 0x105 PF: > { %s13_s12 = sadd.s32 1, %s730_s12  }
 0x106   : > { %p10_p4 = scmp.ge.s32.totalorder %s13_s12, 4  }
 0x108   :  { %12 = sbr.rel (!%p10_p4) target bundleno = 1 (0x1), region = 62 }

</bundles_post_ra>
